<compile_context>
chip_gen: v7x
topology: tpu7x:2x2x1
jax: 0.10.0
libtpu: 0.0.40
codegen_flags: <defaults>
</compile_context>

<pallas_src>
import functools

import jax
import jax.numpy as jnp
from jax.experimental import pallas as pl
from jax.experimental.pallas import tpu as pltpu


# ----------------------------------------------------------------------------
# Fused per-batch kernel.  Activation X has shape (N, C2), N = H * Wd,
# channels on the lane dim.
# ----------------------------------------------------------------------------
def _fused_kernel(x_ref, pos_ref,
                  dw1_ref, gn1g_ref, gn1b_ref,
                  se1wr_ref, se1br_ref, se1we_ref, se1be_ref,
                  pw1w_ref, pw1b_ref,
                  dw2_ref, gn2g_ref, gn2b_ref,
                  se2wr_ref, se2br_ref, se2we_ref, se2be_ref,
                  pw2w_ref, pw2b_ref,
                  attpos_ref, gamma_ref,
                  c3w_ref, c3b_ref,
                  o_ref,
                  xpad_ref,
                  *, H, Wd, C2, Cout, pad):
    f32 = jnp.float32
    N = H * Wd

    # Zero the shift-halo scratch once per grid step.  Only the interior rows
    # [pad, pad+N) are ever rewritten below, so the halo stays zero and provides
    # the 'same'-conv zero padding for free (no jnp.pad, no extra HBM pass).
    xpad_ref[...] = jnp.zeros((N + 2 * pad, C2), f32)

    # Column-validity masks for the 3 horizontal tap offsets (computed once and
    # shared by both depthwise convs and the final 3x3 conv).  Row (height)
    # validity is handled for free by the zero halo.
    col = jax.lax.broadcasted_iota(jnp.int32, (N, 1), 0) % Wd
    wmask = [((col + dw >= 0) & (col + dw < Wd)).astype(f32) for dw in (-1, 0, 1)]

    def load_taps(v):
        """Stage activation v (N, C2) into the zero-haloed scratch and return a
        reader for the 9 shifted+masked 3x3 taps (flattened-spatial shifts)."""
        xpad_ref[pad:pad + N, :] = v

        def tap(t):
            dh, dw = t // 3 - 1, t % 3 - 1
            start = pad + dh * Wd + dw            # static python int
            return xpad_ref[start:start + N, :] * wmask[dw + 1]

        return tap

    def dwconv_gn_silu(v, w_ref, g_ref, b_ref):
        # ConvBlockGN: depthwise 3x3 'same' conv + GroupNorm(groups=C2) + SiLU.
        # The depthwise-conv bias is omitted: with per-channel GroupNorm right
        # after, it is exactly cancelled by the mean subtraction.
        tap = load_taps(v)
        w = w_ref[...].astype(f32)                                   # (9, C2)
        acc = jnp.zeros((N, C2), f32)
        for t in range(9):
            acc = acc + tap(t) * w[t:t + 1, :]
        # Single-pass per-channel stats: var = E[x^2] - E[x]^2.
        mean = jnp.sum(acc, axis=0, keepdims=True) * (1.0 / N)
        msq = jnp.sum(acc * acc, axis=0, keepdims=True) * (1.0 / N)
        var = jnp.maximum(msq - mean * mean, 0.0)
        y = (acc - mean) * jax.lax.rsqrt(var + 1e-5)
        y = y * g_ref[...].astype(f32) + b_ref[...].astype(f32)
        return y * jax.nn.sigmoid(y)                                 # SiLU

    def se(v, wr_ref, br_ref, we_ref, be_ref):
        # Squeeze-Excite: global avg pool -> 1x1 -> SiLU -> 1x1 -> sigmoid -> scale.
        m = jnp.sum(v, axis=0, keepdims=True) * (1.0 / N)            # (1, C2)
        y = jnp.dot(m, wr_ref[...].astype(f32),
                    preferred_element_type=f32) + br_ref[...].astype(f32)
        y = y * jax.nn.sigmoid(y)                                    # SiLU
        z = jnp.dot(y, we_ref[...].astype(f32),
                    preferred_element_type=f32) + be_ref[...].astype(f32)
        return v * jax.nn.sigmoid(z)

    def pointwise(v, w_ref, b_ref):
        return jnp.dot(v, w_ref[...].astype(f32),
                       preferred_element_type=f32) + b_ref[...].astype(f32)

    # ---- load, add pixel-unshuffle positional bias (pos_w tiled per channel) ----
    X = x_ref[0].astype(f32) + pos_ref[...].astype(f32)              # (N, C2)

    # ---- block 1: ConvBlockGN -> SE -> 1x1 ----
    X = dwconv_gn_silu(X, dw1_ref, gn1g_ref, gn1b_ref)
    X = se(X, se1wr_ref, se1br_ref, se1we_ref, se1be_ref)
    X = pointwise(X, pw1w_ref, pw1b_ref)

    # ---- block 2: ConvBlockGN -> SE -> 1x1 ----
    X = dwconv_gn_silu(X, dw2_ref, gn2g_ref, gn2b_ref)
    X = se(X, se2wr_ref, se2br_ref, se2we_ref, se2be_ref)
    X = pointwise(X, pw2w_ref, pw2b_ref)

    # ---- channel attention ----
    # TODO(synk): Channel_attention_block_Param is undefined in the snippet.
    # Assumed DANet CAM semantics: att = softmax(max(E) - E) with
    # E = (X + pos)(X + pos)^T contracted over spatial, positional bias on the
    # query/key path only, out = gamma * att @ X + X.
    Xp = X + attpos_ref[...].astype(f32)                             # (N,C2)+(N,1)
    energy = jnp.dot(Xp.T, Xp, preferred_element_type=f32)           # (C2, C2)
    neg = -energy                          # softmax(max(e) - e) == softmax(-e)
    neg = neg - jnp.max(neg, axis=-1, keepdims=True)
    p = jnp.exp(neg)
    att = p * pl.reciprocal(jnp.sum(p, axis=-1, keepdims=True), approx=True)
    attX = jnp.dot(X, att.T, preferred_element_type=f32)             # (N, C2)
    X = gamma_ref[...].astype(f32) * attX + X

    # ---- conv3: dense 3x3 (zero pad), C2 -> Cout ----
    # NOTE: the 9 accumulating MXU calls could be fused into a single K=9*C2
    # im2col matmul; at (N, 9*C2, Cout) = (128, 288, 16) the MXU time is already
    # negligible inside the fused chain, so the tap accumulation (reusing the
    # zero-halo taps above) is kept for robustness.
    tap = load_taps(X)
    w3 = c3w_ref[...].astype(f32)                                    # (9*C2, Cout)
    acc = jnp.zeros((N, Cout), f32)
    for t in range(9):
        acc = acc + jnp.dot(tap(t), w3[t * C2:(t + 1) * C2, :],
                            preferred_element_type=f32)
    out = acc + c3b_ref[...].astype(f32)
    o_ref[0] = out.astype(o_ref.dtype)


# ----------------------------------------------------------------------------
# Parameter initialization (deterministic, synthetic)
# ----------------------------------------------------------------------------
def init_params(key, in_chs, stride, feat_h, feat_w):
    C2 = in_chs * stride
    mid = max(1, int(C2 / 16.0))          # SE reduce_rate = 1/16
    N = feat_h * (feat_w // stride)
    keys = jax.random.split(key, 12)

    def w_init(k, shape, fan_in):
        return jax.random.normal(k, shape, jnp.float32) / jnp.sqrt(float(fan_in))

    p = {}
    # pos_w (1,1,1,1,stride) pre-tiled to the post-unshuffle channel order c*stride+si
    pos = 0.02 * jax.random.normal(keys[0], (stride,), jnp.float32)
    p["pos_c2"] = jnp.tile(pos, in_chs).reshape(1, C2)
    # conv1_w (depthwise 3x3 + GN + SiLU) — conv bias dropped (cancelled by GN)
    p["dw1_w"] = w_init(keys[1], (9, C2), 9)
    p["gn1_g"] = jnp.ones((1, C2), jnp.float32)
    p["gn1_b"] = jnp.zeros((1, C2), jnp.float32)
    # se1_w
    p["se1_wr"] = w_init(keys[2], (C2, mid), C2)
    p["se1_br"] = jnp.zeros((1, mid), jnp.float32)
    p["se1_we"] = w_init(keys[3], (mid, C2), mid)
    p["se1_be"] = jnp.zeros((1, C2), jnp.float32)
    # conv1_wpw (1x1)
    p["pw1_w"] = w_init(keys[4], (C2, C2), C2)
    p["pw1_b"] = jnp.zeros((1, C2), jnp.float32)
    # conv2_w
    p["dw2_w"] = w_init(keys[5], (9, C2), 9)
    p["gn2_g"] = jnp.ones((1, C2), jnp.float32)
    p["gn2_b"] = jnp.zeros((1, C2), jnp.float32)
    # se2_w
    p["se2_wr"] = w_init(keys[6], (C2, mid), C2)
    p["se2_br"] = jnp.zeros((1, mid), jnp.float32)
    p["se2_we"] = w_init(keys[7], (mid, C2), mid)
    p["se2_be"] = jnp.zeros((1, C2), jnp.float32)
    # conv2_wpw (1x1)
    p["pw2_w"] = w_init(keys[8], (C2, C2), C2)
    p["pw2_b"] = jnp.zeros((1, C2), jnp.float32)
    # chs_attw (spatial positional bias stored per-position: shape (N, 1))
    p["att_pos"] = 0.02 * jax.random.normal(keys[9], (N, 1), jnp.float32)
    p["att_gamma"] = jnp.full((1, 1), 0.1, jnp.float32)
    # conv3_w: 3x3, C2 -> in_chs, stored as (9*C2, in_chs), tap-major rows
    p["c3_w"] = w_init(keys[10], (9 * C2, in_chs), 9 * C2)
    p["c3_b"] = jnp.zeros((1, in_chs), jnp.float32)
    return p


_PARAM_ORDER = (
    "pos_c2",
    "dw1_w", "gn1_g", "gn1_b",
    "se1_wr", "se1_br", "se1_we", "se1_be", "pw1_w", "pw1_b",
    "dw2_w", "gn2_g", "gn2_b",
    "se2_wr", "se2_br", "se2_we", "se2_be", "pw2_w", "pw2_b",
    "att_pos", "att_gamma", "c3_w", "c3_b",
)


# ----------------------------------------------------------------------------
# Forward pass: one fused pallas_call per the whole module (grid over batch).
# Wrapper-side work is layout plumbing only (NCHW <-> flattened NHWC).
# ----------------------------------------------------------------------------
def down_pixel_w_pos_groups(x, params, stride):
    # x: (B, C, H, W) NCHW, identical to the PyTorch forward input
    B, C, H, W = x.shape
    s = stride
    Wd = W // s
    C2 = C * s
    N = H * Wd
    Cout = C
    pad = -(-(Wd + 1) // 8) * 8          # halo rows for the 3x3 shifts (sublane aligned)

    # pixel-unshuffle along width into channels-last flat layout; channel order
    # c*stride + si matches the torch permute(0,1,4,2,3).view(b, c*s, h, w//s).
    xs = x.reshape(B, C, H, Wd, s).transpose(0, 2, 3, 1, 4).reshape(B, N, C2)

    plist = [params[name] for name in _PARAM_ORDER]

    def pspec(arr):
        nd = arr.ndim
        return pl.BlockSpec(arr.shape, lambda b, _nd=nd: (0,) * _nd)

    kernel = functools.partial(_fused_kernel, H=H, Wd=Wd, C2=C2, Cout=Cout, pad=pad)
    out = pl.pallas_call(
        kernel,
        out_shape=jax.ShapeDtypeStruct((B, N, Cout), x.dtype),
        grid=(B,),
        in_specs=[pl.BlockSpec((1, N, C2), lambda b: (b, 0, 0))]
                 + [pspec(a) for a in plist],
        out_specs=pl.BlockSpec((1, N, Cout), lambda b: (b, 0, 0)),
        scratch_shapes=[pltpu.VMEM((N + 2 * pad, C2), jnp.float32)],
        compiler_params=pltpu.CompilerParams(dimension_semantics=("parallel",)),
    )(xs, *plist)

    # (B, N, Cout) -> NCHW (B, Cout, H, W//stride)
    return out.reshape(B, H, Wd, Cout).transpose(0, 3, 1, 2)


if __name__ == "__main__":
    key = jax.random.PRNGKey(0)
    B, C, H, W = 2, 16, 16, 16
    stride = 2
    kx, kp = jax.random.split(key)
    x = jax.random.normal(kx, (B, C, H, W), jnp.float32)
    params = init_params(kp, C, stride, H, W)

    forward = jax.jit(down_pixel_w_pos_groups, static_argnums=2)
    out = forward(x, params, stride)
    out = jax.block_until_ready(out)
    assert out.shape == (B, C, H, W // stride), out.shape
    assert bool(jnp.all(jnp.isfinite(out)))
    print("KERNEL_OK")
</pallas_src>

<mosaic_0001>
module attributes {stable_mosaic.version = 11 : i64} {
  func.func @_fused_kernel(%arg0: i32, %arg1: memref<1x128x32xf32, #tpu.memory_space<vmem>>, %arg2: memref<1x32xf32, #tpu.memory_space<vmem>>, %arg3: memref<9x32xf32, #tpu.memory_space<vmem>>, %arg4: memref<1x32xf32, #tpu.memory_space<vmem>>, %arg5: memref<1x32xf32, #tpu.memory_space<vmem>>, %arg6: memref<32x2xf32, #tpu.memory_space<vmem>>, %arg7: memref<1x2xf32, #tpu.memory_space<vmem>>, %arg8: memref<2x32xf32, #tpu.memory_space<vmem>>, %arg9: memref<1x32xf32, #tpu.memory_space<vmem>>, %arg10: memref<32x32xf32, #tpu.memory_space<vmem>>, %arg11: memref<1x32xf32, #tpu.memory_space<vmem>>, %arg12: memref<9x32xf32, #tpu.memory_space<vmem>>, %arg13: memref<1x32xf32, #tpu.memory_space<vmem>>, %arg14: memref<1x32xf32, #tpu.memory_space<vmem>>, %arg15: memref<32x2xf32, #tpu.memory_space<vmem>>, %arg16: memref<1x2xf32, #tpu.memory_space<vmem>>, %arg17: memref<2x32xf32, #tpu.memory_space<vmem>>, %arg18: memref<1x32xf32, #tpu.memory_space<vmem>>, %arg19: memref<32x32xf32, #tpu.memory_space<vmem>>, %arg20: memref<1x32xf32, #tpu.memory_space<vmem>>, %arg21: memref<128x1xf32, #tpu.memory_space<vmem>>, %arg22: memref<1x1xf32, #tpu.memory_space<vmem>>, %arg23: memref<288x16xf32, #tpu.memory_space<vmem>>, %arg24: memref<1x16xf32, #tpu.memory_space<vmem>>, %arg25: memref<1x128x16xf32, #tpu.memory_space<vmem>>, %arg26: memref<160x32xf32, #tpu.memory_space<vmem>>) attributes {dimension_semantics = [#tpu.dimension_semantics<parallel>], iteration_bounds = array<i64: 2>, scalar_prefetch = 0 : i64, scratch_operands = 1 : i64, tpu.core_type = #tpu.core_type<tc>, window_params = [{transform_indices = @transform_0, window_bounds = array<i64: 1, 128, 32>}, {pipeline_mode = #tpu.pipeline_mode<synchronous>, transform_indices = @transform_1, window_bounds = array<i64: 1, 32>}, {pipeline_mode = #tpu.pipeline_mode<synchronous>, transform_indices = @transform_2, window_bounds = array<i64: 9, 32>}, {pipeline_mode = #tpu.pipeline_mode<synchronous>, transform_indices = @transform_3, window_bounds = array<i64: 1, 32>}, {pipeline_mode = #tpu.pipeline_mode<synchronous>, transform_indices = @transform_4, window_bounds = array<i64: 1, 32>}, {pipeline_mode = #tpu.pipeline_mode<synchronous>, transform_indices = @transform_5, window_bounds = array<i64: 32, 2>}, {pipeline_mode = #tpu.pipeline_mode<synchronous>, transform_indices = @transform_6, window_bounds = array<i64: 1, 2>}, {pipeline_mode = #tpu.pipeline_mode<synchronous>, transform_indices = @transform_7, window_bounds = array<i64: 2, 32>}, {pipeline_mode = #tpu.pipeline_mode<synchronous>, transform_indices = @transform_8, window_bounds = array<i64: 1, 32>}, {pipeline_mode = #tpu.pipeline_mode<synchronous>, transform_indices = @transform_9, window_bounds = array<i64: 32, 32>}, {pipeline_mode = #tpu.pipeline_mode<synchronous>, transform_indices = @transform_10, window_bounds = array<i64: 1, 32>}, {pipeline_mode = #tpu.pipeline_mode<synchronous>, transform_indices = @transform_11, window_bounds = array<i64: 9, 32>}, {pipeline_mode = #tpu.pipeline_mode<synchronous>, transform_indices = @transform_12, window_bounds = array<i64: 1, 32>}, {pipeline_mode = #tpu.pipeline_mode<synchronous>, transform_indices = @transform_13, window_bounds = array<i64: 1, 32>}, {pipeline_mode = #tpu.pipeline_mode<synchronous>, transform_indices = @transform_14, window_bounds = array<i64: 32, 2>}, {pipeline_mode = #tpu.pipeline_mode<synchronous>, transform_indices = @transform_15, window_bounds = array<i64: 1, 2>}, {pipeline_mode = #tpu.pipeline_mode<synchronous>, transform_indices = @transform_16, window_bounds = array<i64: 2, 32>}, {pipeline_mode = #tpu.pipeline_mode<synchronous>, transform_indices = @transform_17, window_bounds = array<i64: 1, 32>}, {pipeline_mode = #tpu.pipeline_mode<synchronous>, transform_indices = @transform_18, window_bounds = array<i64: 32, 32>}, {pipeline_mode = #tpu.pipeline_mode<synchronous>, transform_indices = @transform_19, window_bounds = array<i64: 1, 32>}, {pipeline_mode = #tpu.pipeline_mode<synchronous>, transform_indices = @transform_20, window_bounds = array<i64: 128, 1>}, {pipeline_mode = #tpu.pipeline_mode<synchronous>, transform_indices = @transform_21, window_bounds = array<i64: 1, 1>}, {pipeline_mode = #tpu.pipeline_mode<synchronous>, transform_indices = @transform_22, window_bounds = array<i64: 288, 16>}, {pipeline_mode = #tpu.pipeline_mode<synchronous>, transform_indices = @transform_23, window_bounds = array<i64: 1, 16>}, {transform_indices = @transform_24, window_bounds = array<i64: 1, 128, 16>}]} {
    %cst = arith.constant 0.000000e+00 : f32
    %0 = vector.broadcast %cst : f32 to vector<160x32xf32>
    %c0 = arith.constant 0 : index
    %c0_0 = arith.constant 0 : index
    %1 = vector.load %arg26[%c0, %c0_0] : memref<160x32xf32, #tpu.memory_space<vmem>>, vector<160x32xf32>
    tpu.vector_store %arg26[%c0, %c0_0], %0 {strides = array<i32>} : memref<160x32xf32, #tpu.memory_space<vmem>>, vector<160x32xf32>,
    %2 = tpu.iota {dimensions = array<i32: 0>} : vector<128x1xi32>
    %c8_i32 = arith.constant 8 : i32
    %c0_i32 = arith.constant 0 : i32
    %3 = arith.cmpi eq, %c8_i32, %c0_i32 : i32
    %c1_i32 = arith.constant 1 : i32
    %4 = arith.select %3, %c1_i32, %c8_i32 : i32
    %5 = vector.broadcast %4 : i32 to vector<128x1xi32>
    %6 = arith.remsi %2, %5 : vector<128x1xi32>
    %c0_i32_1 = arith.constant 0 : i32
    %7 = vector.broadcast %c0_i32_1 : i32 to vector<128x1xi32>
    %8 = arith.cmpi ne, %6, %7 : vector<128x1xi32>
    %c0_i32_2 = arith.constant 0 : i32
    %9 = vector.broadcast %c0_i32_2 : i32 to vector<128x1xi32>
    %10 = arith.cmpi slt, %6, %9 : vector<128x1xi32>
    %c0_i32_3 = arith.constant 0 : i32
    %11 = arith.cmpi slt, %4, %c0_i32_3 : i32
    %12 = vector.broadcast %11 : i1 to vector<128x1xi1>
    %13 = vector.broadcast %12 : vector<128x1xi1> to vector<128x1xi1>
    %14 = arith.xori %10, %13 : vector<128x1xi1>
    %15 = arith.andi %14, %8 : vector<128x1xi1>
    %16 = vector.broadcast %4 : i32 to vector<128x1xi32>
    %17 = arith.addi %6, %16 : vector<128x1xi32>
    %18 = arith.select %15, %17, %6 : vector<128x1xi1>, vector<128x1xi32>
    %c-1_i32 = arith.constant -1 : i32
    %19 = vector.broadcast %c-1_i32 : i32 to vector<128x1xi32>
    %20 = arith.addi %18, %19 : vector<128x1xi32>
    %c0_i32_4 = arith.constant 0 : i32
    %21 = vector.broadcast %c0_i32_4 : i32 to vector<128x1xi32>
    %22 = arith.cmpi sge, %20, %21 : vector<128x1xi32>
    %c-1_i32_5 = arith.constant -1 : i32
    %23 = vector.broadcast %c-1_i32_5 : i32 to vector<128x1xi32>
    %24 = arith.addi %18, %23 : vector<128x1xi32>
    %c8_i32_6 = arith.constant 8 : i32
    %25 = vector.broadcast %c8_i32_6 : i32 to vector<128x1xi32>
    %26 = arith.cmpi slt, %24, %25 : vector<128x1xi32>
    %27 = arith.andi %22, %26 : vector<128x1xi1>
    %28 = arith.extui %27 : vector<128x1xi1> to vector<128x1xi32>
    %29 = arith.sitofp %28 : vector<128x1xi32> to vector<128x1xf32>
    %c0_i32_7 = arith.constant 0 : i32
    %30 = vector.broadcast %c0_i32_7 : i32 to vector<128x1xi32>
    %31 = arith.addi %18, %30 : vector<128x1xi32>
    %c0_i32_8 = arith.constant 0 : i32
    %32 = vector.broadcast %c0_i32_8 : i32 to vector<128x1xi32>
    %33 = arith.cmpi sge, %31, %32 : vector<128x1xi32>
    %c0_i32_9 = arith.constant 0 : i32
    %34 = vector.broadcast %c0_i32_9 : i32 to vector<128x1xi32>
    %35 = arith.addi %18, %34 : vector<128x1xi32>
    %c8_i32_10 = arith.constant 8 : i32
    %36 = vector.broadcast %c8_i32_10 : i32 to vector<128x1xi32>
    %37 = arith.cmpi slt, %35, %36 : vector<128x1xi32>
    %38 = arith.andi %33, %37 : vector<128x1xi1>
    %39 = arith.extui %38 : vector<128x1xi1> to vector<128x1xi32>
    %40 = arith.sitofp %39 : vector<128x1xi32> to vector<128x1xf32>
    %c1_i32_11 = arith.constant 1 : i32
    %41 = vector.broadcast %c1_i32_11 : i32 to vector<128x1xi32>
    %42 = arith.addi %18, %41 : vector<128x1xi32>
    %c0_i32_12 = arith.constant 0 : i32
    %43 = vector.broadcast %c0_i32_12 : i32 to vector<128x1xi32>
    %44 = arith.cmpi sge, %42, %43 : vector<128x1xi32>
    %c1_i32_13 = arith.constant 1 : i32
    %45 = vector.broadcast %c1_i32_13 : i32 to vector<128x1xi32>
    %46 = arith.addi %18, %45 : vector<128x1xi32>
    %c8_i32_14 = arith.constant 8 : i32
    %47 = vector.broadcast %c8_i32_14 : i32 to vector<128x1xi32>
    %48 = arith.cmpi slt, %46, %47 : vector<128x1xi32>
    %49 = arith.andi %44, %48 : vector<128x1xi1>
    %50 = arith.extui %49 : vector<128x1xi1> to vector<128x1xi32>
    %51 = arith.sitofp %50 : vector<128x1xi32> to vector<128x1xf32>
    %c0_15 = arith.constant 0 : index
    %c0_16 = arith.constant 0 : index
    %c0_17 = arith.constant 0 : index
    %52 = vector.load %arg1[%c0_15, %c0_16, %c0_17] : memref<1x128x32xf32, #tpu.memory_space<vmem>>, vector<1x128x32xf32>
    %53 = vector.shape_cast %52 : vector<1x128x32xf32> to vector<128x32xf32>
    %c0_18 = arith.constant 0 : index
    %c0_19 = arith.constant 0 : index
    %54 = vector.load %arg2[%c0_18, %c0_19] : memref<1x32xf32, #tpu.memory_space<vmem>>, vector<1x32xf32>
    %55 = vector.broadcast %54 : vector<1x32xf32> to vector<128x32xf32>
    %56 = arith.addf %53, %55 : vector<128x32xf32>
    %c16 = arith.constant 16 : index
    %c0_20 = arith.constant 0 : index
    %57 = vector.load %arg26[%c16, %c0_20] : memref<160x32xf32, #tpu.memory_space<vmem>>, vector<128x32xf32>
    tpu.vector_store %arg26[%c16, %c0_20], %56 {strides = array<i32>} : memref<160x32xf32, #tpu.memory_space<vmem>>, vector<128x32xf32>,
    %c0_21 = arith.constant 0 : index
    %c0_22 = arith.constant 0 : index
    %58 = vector.load %arg3[%c0_21, %c0_22] : memref<9x32xf32, #tpu.memory_space<vmem>>, vector<9x32xf32>
    %cst_23 = arith.constant 0.000000e+00 : f32
    %59 = vector.broadcast %cst_23 : f32 to vector<128x32xf32>
    %c7 = arith.constant 7 : index
    %c0_24 = arith.constant 0 : index
    %60 = vector.load %arg26[%c7, %c0_24] : memref<160x32xf32, #tpu.memory_space<vmem>>, vector<128x32xf32>
    %61 = vector.broadcast %29 : vector<128x1xf32> to vector<128x32xf32>
    %62 = arith.mulf %60, %61 : vector<128x32xf32>
    %63 = vector.extract_strided_slice %58 {offsets = [0, 0], sizes = [1, 32], strides = [1, 1]} : vector<9x32xf32> to vector<1x32xf32>
    %64 = vector.broadcast %63 : vector<1x32xf32> to vector<128x32xf32>
    %65 = arith.mulf %62, %64 : vector<128x32xf32>
    %66 = arith.addf %59, %65 : vector<128x32xf32>
    %c8 = arith.constant 8 : index
    %c0_25 = arith.constant 0 : index
    %67 = vector.load %arg26[%c8, %c0_25] : memref<160x32xf32, #tpu.memory_space<vmem>>, vector<128x32xf32>
    %68 = vector.broadcast %40 : vector<128x1xf32> to vector<128x32xf32>
    %69 = arith.mulf %67, %68 : vector<128x32xf32>
    %70 = vector.extract_strided_slice %58 {offsets = [1, 0], sizes = [1, 32], strides = [1, 1]} : vector<9x32xf32> to vector<1x32xf32>
    %71 = vector.broadcast %70 : vector<1x32xf32> to vector<128x32xf32>
    %72 = arith.mulf %69, %71 : vector<128x32xf32>
    %73 = arith.addf %66, %72 : vector<128x32xf32>
    %c9 = arith.constant 9 : index
    %c0_26 = arith.constant 0 : index
    %74 = vector.load %arg26[%c9, %c0_26] : memref<160x32xf32, #tpu.memory_space<vmem>>, vector<128x32xf32>
    %75 = vector.broadcast %51 : vector<128x1xf32> to vector<128x32xf32>
    %76 = arith.mulf %74, %75 : vector<128x32xf32>
    %77 = vector.extract_strided_slice %58 {offsets = [2, 0], sizes = [1, 32], strides = [1, 1]} : vector<9x32xf32> to vector<1x32xf32>
    %78 = vector.broadcast %77 : vector<1x32xf32> to vector<128x32xf32>
    %79 = arith.mulf %76, %78 : vector<128x32xf32>
    %80 = arith.addf %73, %79 : vector<128x32xf32>
    %c15 = arith.constant 15 : index
    %c0_27 = arith.constant 0 : index
    %81 = vector.load %arg26[%c15, %c0_27] : memref<160x32xf32, #tpu.memory_space<vmem>>, vector<128x32xf32>
    %82 = vector.broadcast %29 : vector<128x1xf32> to vector<128x32xf32>
    %83 = arith.mulf %81, %82 : vector<128x32xf32>
    %84 = vector.extract_strided_slice %58 {offsets = [3, 0], sizes = [1, 32], strides = [1, 1]} : vector<9x32xf32> to vector<1x32xf32>
    %85 = vector.broadcast %84 : vector<1x32xf32> to vector<128x32xf32>
    %86 = arith.mulf %83, %85 : vector<128x32xf32>
    %87 = arith.addf %80, %86 : vector<128x32xf32>
    %c16_28 = arith.constant 16 : index
    %c0_29 = arith.constant 0 : index
    %88 = vector.load %arg26[%c16_28, %c0_29] : memref<160x32xf32, #tpu.memory_space<vmem>>, vector<128x32xf32>
    %89 = vector.broadcast %40 : vector<128x1xf32> to vector<128x32xf32>
    %90 = arith.mulf %88, %89 : vector<128x32xf32>
    %91 = vector.extract_strided_slice %58 {offsets = [4, 0], sizes = [1, 32], strides = [1, 1]} : vector<9x32xf32> to vector<1x32xf32>
    %92 = vector.broadcast %91 : vector<1x32xf32> to vector<128x32xf32>
    %93 = arith.mulf %90, %92 : vector<128x32xf32>
    %94 = arith.addf %87, %93 : vector<128x32xf32>
    %c17 = arith.constant 17 : index
    %c0_30 = arith.constant 0 : index
    %95 = vector.load %arg26[%c17, %c0_30] : memref<160x32xf32, #tpu.memory_space<vmem>>, vector<128x32xf32>
    %96 = vector.broadcast %51 : vector<128x1xf32> to vector<128x32xf32>
    %97 = arith.mulf %95, %96 : vector<128x32xf32>
    %98 = vector.extract_strided_slice %58 {offsets = [5, 0], sizes = [1, 32], strides = [1, 1]} : vector<9x32xf32> to vector<1x32xf32>
    %99 = vector.broadcast %98 : vector<1x32xf32> to vector<128x32xf32>
    %100 = arith.mulf %97, %99 : vector<128x32xf32>
    %101 = arith.addf %94, %100 : vector<128x32xf32>
    %c23 = arith.constant 23 : index
    %c0_31 = arith.constant 0 : index
    %102 = vector.load %arg26[%c23, %c0_31] : memref<160x32xf32, #tpu.memory_space<vmem>>, vector<128x32xf32>
    %103 = vector.broadcast %29 : vector<128x1xf32> to vector<128x32xf32>
    %104 = arith.mulf %102, %103 : vector<128x32xf32>
    %105 = vector.extract_strided_slice %58 {offsets = [6, 0], sizes = [1, 32], strides = [1, 1]} : vector<9x32xf32> to vector<1x32xf32>
    %106 = vector.broadcast %105 : vector<1x32xf32> to vector<128x32xf32>
    %107 = arith.mulf %104, %106 : vector<128x32xf32>
    %108 = arith.addf %101, %107 : vector<128x32xf32>
    %c24 = arith.constant 24 : index
    %c0_32 = arith.constant 0 : index
    %109 = vector.load %arg26[%c24, %c0_32] : memref<160x32xf32, #tpu.memory_space<vmem>>, vector<128x32xf32>
    %110 = vector.broadcast %40 : vector<128x1xf32> to vector<128x32xf32>
    %111 = arith.mulf %109, %110 : vector<128x32xf32>
    %112 = vector.extract_strided_slice %58 {offsets = [7, 0], sizes = [1, 32], strides = [1, 1]} : vector<9x32xf32> to vector<1x32xf32>
    %113 = vector.broadcast %112 : vector<1x32xf32> to vector<128x32xf32>
    %114 = arith.mulf %111, %113 : vector<128x32xf32>
    %115 = arith.addf %108, %114 : vector<128x32xf32>
    %c25 = arith.constant 25 : index
    %c0_33 = arith.constant 0 : index
    %116 = vector.load %arg26[%c25, %c0_33] : memref<160x32xf32, #tpu.memory_space<vmem>>, vector<128x32xf32>
    %117 = vector.broadcast %51 : vector<128x1xf32> to vector<128x32xf32>
    %118 = arith.mulf %116, %117 : vector<128x32xf32>
    %119 = vector.extract_strided_slice %58 {offsets = [8, 0], sizes = [1, 32], strides = [1, 1]} : vector<9x32xf32> to vector<1x32xf32>
    %120 = vector.broadcast %119 : vector<1x32xf32> to vector<128x32xf32>
    %121 = arith.mulf %118, %120 : vector<128x32xf32>
    %122 = arith.addf %115, %121 : vector<128x32xf32>
    %cst_34 = arith.constant dense<0.000000e+00> : vector<32xf32>
    %123 = vector.multi_reduction <add>, %122, %cst_34 [0] : vector<128x32xf32> to vector<32xf32>
    %124 = vector.shape_cast %123 : vector<32xf32> to vector<1x32xf32>
    %cst_35 = arith.constant 7.812500e-03 : f32
    %125 = vector.broadcast %cst_35 : f32 to vector<1x32xf32>
    %126 = arith.mulf %124, %125 : vector<1x32xf32>
    %127 = arith.mulf %122, %122 : vector<128x32xf32>
    %cst_36 = arith.constant dense<0.000000e+00> : vector<32xf32>
    %128 = vector.multi_reduction <add>, %127, %cst_36 [0] : vector<128x32xf32> to vector<32xf32>
    %129 = vector.shape_cast %128 : vector<32xf32> to vector<1x32xf32>
    %cst_37 = arith.constant 7.812500e-03 : f32
    %130 = vector.broadcast %cst_37 : f32 to vector<1x32xf32>
    %131 = arith.mulf %129, %130 : vector<1x32xf32>
    %132 = arith.mulf %126, %126 : vector<1x32xf32>
    %133 = arith.subf %131, %132 : vector<1x32xf32>
    %cst_38 = arith.constant 0.000000e+00 : f32
    %134 = vector.broadcast %cst_38 : f32 to vector<1x32xf32>
    %135 = arith.maximumf %133, %134 : vector<1x32xf32>
    %136 = vector.broadcast %126 : vector<1x32xf32> to vector<128x32xf32>
    %137 = arith.subf %122, %136 : vector<128x32xf32>
    %cst_39 = arith.constant 9.99999974E-6 : f32
    %138 = vector.broadcast %cst_39 : f32 to vector<1x32xf32>
    %139 = arith.addf %135, %138 : vector<1x32xf32>
    %140 = math.rsqrt %139 : vector<1x32xf32>
    %141 = vector.broadcast %140 : vector<1x32xf32> to vector<128x32xf32>
    %142 = arith.mulf %137, %141 : vector<128x32xf32>
    %c0_40 = arith.constant 0 : index
    %c0_41 = arith.constant 0 : index
    %143 = vector.load %arg4[%c0_40, %c0_41] : memref<1x32xf32, #tpu.memory_space<vmem>>, vector<1x32xf32>
    %144 = vector.broadcast %143 : vector<1x32xf32> to vector<128x32xf32>
    %145 = arith.mulf %142, %144 : vector<128x32xf32>
    %c0_42 = arith.constant 0 : index
    %c0_43 = arith.constant 0 : index
    %146 = vector.load %arg5[%c0_42, %c0_43] : memref<1x32xf32, #tpu.memory_space<vmem>>, vector<1x32xf32>
    %147 = vector.broadcast %146 : vector<1x32xf32> to vector<128x32xf32>
    %148 = arith.addf %145, %147 : vector<128x32xf32>
    %149 = arith.negf %148 : vector<128x32xf32>
    %150 = math.exp %149 : vector<128x32xf32>
    %cst_44 = arith.constant 1.000000e+00 : f32
    %151 = vector.broadcast %cst_44 : f32 to vector<128x32xf32>
    %152 = arith.addf %151, %150 : vector<128x32xf32>
    %153 = arith.divf %151, %152 : vector<128x32xf32>
    %154 = arith.mulf %148, %153 : vector<128x32xf32>
    %cst_45 = arith.constant dense<0.000000e+00> : vector<32xf32>
    %155 = vector.multi_reduction <add>, %154, %cst_45 [0] : vector<128x32xf32> to vector<32xf32>
    %156 = vector.shape_cast %155 : vector<32xf32> to vector<1x32xf32>
    %cst_46 = arith.constant 7.812500e-03 : f32
    %157 = vector.broadcast %cst_46 : f32 to vector<1x32xf32>
    %158 = arith.mulf %156, %157 : vector<1x32xf32>
    %c0_47 = arith.constant 0 : index
    %c0_48 = arith.constant 0 : index
    %159 = vector.load %arg6[%c0_47, %c0_48] : memref<32x2xf32, #tpu.memory_space<vmem>>, vector<32x2xf32>
    %cst_49 = arith.constant dense<0.000000e+00> : vector<1x2xf32>
    %160 = tpu.matmul %158, %159, %cst_49 {dimension_numbers = #tpu.dot_dimension_numbers<[1], [0], [0], [1], [0, 0, 1, 1], [], []>} : vector<1x32xf32>, vector<32x2xf32>, vector<1x2xf32> -> vector<1x2xf32>
    %c0_50 = arith.constant 0 : index
    %c0_51 = arith.constant 0 : index
    %161 = vector.load %arg7[%c0_50, %c0_51] : memref<1x2xf32, #tpu.memory_space<vmem>>, vector<1x2xf32>
    %162 = arith.addf %160, %161 : vector<1x2xf32>
    %163 = arith.negf %162 : vector<1x2xf32>
    %164 = math.exp %163 : vector<1x2xf32>
    %cst_52 = arith.constant 1.000000e+00 : f32
    %165 = vector.broadcast %cst_52 : f32 to vector<1x2xf32>
    %166 = arith.addf %165, %164 : vector<1x2xf32>
    %167 = arith.divf %165, %166 : vector<1x2xf32>
    %168 = arith.mulf %162, %167 : vector<1x2xf32>
    %c0_53 = arith.constant 0 : index
    %c0_54 = arith.constant 0 : index
    %169 = vector.load %arg8[%c0_53, %c0_54] : memref<2x32xf32, #tpu.memory_space<vmem>>, vector<2x32xf32>
    %cst_55 = arith.constant dense<0.000000e+00> : vector<1x32xf32>
    %170 = tpu.matmul %168, %169, %cst_55 {dimension_numbers = #tpu.dot_dimension_numbers<[1], [0], [0], [1], [0, 0, 1, 1], [], []>} : vector<1x2xf32>, vector<2x32xf32>, vector<1x32xf32> -> vector<1x32xf32>
    %c0_56 = arith.constant 0 : index
    %c0_57 = arith.constant 0 : index
    %171 = vector.load %arg9[%c0_56, %c0_57] : memref<1x32xf32, #tpu.memory_space<vmem>>, vector<1x32xf32>
    %172 = arith.addf %170, %171 : vector<1x32xf32>
    %173 = arith.negf %172 : vector<1x32xf32>
    %174 = math.exp %173 : vector<1x32xf32>
    %cst_58 = arith.constant 1.000000e+00 : f32
    %175 = vector.broadcast %cst_58 : f32 to vector<1x32xf32>
    %176 = arith.addf %175, %174 : vector<1x32xf32>
    %177 = arith.divf %175, %176 : vector<1x32xf32>
    %178 = vector.broadcast %177 : vector<1x32xf32> to vector<128x32xf32>
    %179 = arith.mulf %154, %178 : vector<128x32xf32>
    %c0_59 = arith.constant 0 : index
    %c0_60 = arith.constant 0 : index
    %180 = vector.load %arg10[%c0_59, %c0_60] : memref<32x32xf32, #tpu.memory_space<vmem>>, vector<32x32xf32>
    %cst_61 = arith.constant dense<0.000000e+00> : vector<128x32xf32>
    %181 = tpu.matmul %179, %180, %cst_61 {dimension_numbers = #tpu.dot_dimension_numbers<[1], [0], [0], [1], [0, 0, 1, 1], [], []>} : vector<128x32xf32>, vector<32x32xf32>, vector<128x32xf32> -> vector<128x32xf32>
    %c0_62 = arith.constant 0 : index
    %c0_63 = arith.constant 0 : index
    %182 = vector.load %arg11[%c0_62, %c0_63] : memref<1x32xf32, #tpu.memory_space<vmem>>, vector<1x32xf32>
    %183 = vector.broadcast %182 : vector<1x32xf32> to vector<128x32xf32>
    %184 = arith.addf %181, %183 : vector<128x32xf32>
    %c16_64 = arith.constant 16 : index
    %c0_65 = arith.constant 0 : index
    %185 = vector.load %arg26[%c16_64, %c0_65] : memref<160x32xf32, #tpu.memory_space<vmem>>, vector<128x32xf32>
    tpu.vector_store %arg26[%c16_64, %c0_65], %184 {strides = array<i32>} : memref<160x32xf32, #tpu.memory_space<vmem>>, vector<128x32xf32>,
    %c0_66 = arith.constant 0 : index
    %c0_67 = arith.constant 0 : index
    %186 = vector.load %arg12[%c0_66, %c0_67] : memref<9x32xf32, #tpu.memory_space<vmem>>, vector<9x32xf32>
    %cst_68 = arith.constant 0.000000e+00 : f32
    %187 = vector.broadcast %cst_68 : f32 to vector<128x32xf32>
    %c7_69 = arith.constant 7 : index
    %c0_70 = arith.constant 0 : index
    %188 = vector.load %arg26[%c7_69, %c0_70] : memref<160x32xf32, #tpu.memory_space<vmem>>, vector<128x32xf32>
    %189 = vector.broadcast %29 : vector<128x1xf32> to vector<128x32xf32>
    %190 = arith.mulf %188, %189 : vector<128x32xf32>
    %191 = vector.extract_strided_slice %186 {offsets = [0, 0], sizes = [1, 32], strides = [1, 1]} : vector<9x32xf32> to vector<1x32xf32>
    %192 = vector.broadcast %191 : vector<1x32xf32> to vector<128x32xf32>
    %193 = arith.mulf %190, %192 : vector<128x32xf32>
    %194 = arith.addf %187, %193 : vector<128x32xf32>
    %c8_71 = arith.constant 8 : index
    %c0_72 = arith.constant 0 : index
    %195 = vector.load %arg26[%c8_71, %c0_72] : memref<160x32xf32, #tpu.memory_space<vmem>>, vector<128x32xf32>
    %196 = vector.broadcast %40 : vector<128x1xf32> to vector<128x32xf32>
    %197 = arith.mulf %195, %196 : vector<128x32xf32>
    %198 = vector.extract_strided_slice %186 {offsets = [1, 0], sizes = [1, 32], strides = [1, 1]} : vector<9x32xf32> to vector<1x32xf32>
    %199 = vector.broadcast %198 : vector<1x32xf32> to vector<128x32xf32>
    %200 = arith.mulf %197, %199 : vector<128x32xf32>
    %201 = arith.addf %194, %200 : vector<128x32xf32>
    %c9_73 = arith.constant 9 : index
    %c0_74 = arith.constant 0 : index
    %202 = vector.load %arg26[%c9_73, %c0_74] : memref<160x32xf32, #tpu.memory_space<vmem>>, vector<128x32xf32>
    %203 = vector.broadcast %51 : vector<128x1xf32> to vector<128x32xf32>
    %204 = arith.mulf %202, %203 : vector<128x32xf32>
    %205 = vector.extract_strided_slice %186 {offsets = [2, 0], sizes = [1, 32], strides = [1, 1]} : vector<9x32xf32> to vector<1x32xf32>
    %206 = vector.broadcast %205 : vector<1x32xf32> to vector<128x32xf32>
    %207 = arith.mulf %204, %206 : vector<128x32xf32>
    %208 = arith.addf %201, %207 : vector<128x32xf32>
    %c15_75 = arith.constant 15 : index
    %c0_76 = arith.constant 0 : index
    %209 = vector.load %arg26[%c15_75, %c0_76] : memref<160x32xf32, #tpu.memory_space<vmem>>, vector<128x32xf32>
    %210 = vector.broadcast %29 : vector<128x1xf32> to vector<128x32xf32>
    %211 = arith.mulf %209, %210 : vector<128x32xf32>
    %212 = vector.extract_strided_slice %186 {offsets = [3, 0], sizes = [1, 32], strides = [1, 1]} : vector<9x32xf32> to vector<1x32xf32>
    %213 = vector.broadcast %212 : vector<1x32xf32> to vector<128x32xf32>
    %214 = arith.mulf %211, %213 : vector<128x32xf32>
    %215 = arith.addf %208, %214 : vector<128x32xf32>
    %c16_77 = arith.constant 16 : index
    %c0_78 = arith.constant 0 : index
    %216 = vector.load %arg26[%c16_77, %c0_78] : memref<160x32xf32, #tpu.memory_space<vmem>>, vector<128x32xf32>
    %217 = vector.broadcast %40 : vector<128x1xf32> to vector<128x32xf32>
    %218 = arith.mulf %216, %217 : vector<128x32xf32>
    %219 = vector.extract_strided_slice %186 {offsets = [4, 0], sizes = [1, 32], strides = [1, 1]} : vector<9x32xf32> to vector<1x32xf32>
    %220 = vector.broadcast %219 : vector<1x32xf32> to vector<128x32xf32>
    %221 = arith.mulf %218, %220 : vector<128x32xf32>
    %222 = arith.addf %215, %221 : vector<128x32xf32>
    %c17_79 = arith.constant 17 : index
    %c0_80 = arith.constant 0 : index
    %223 = vector.load %arg26[%c17_79, %c0_80] : memref<160x32xf32, #tpu.memory_space<vmem>>, vector<128x32xf32>
    %224 = vector.broadcast %51 : vector<128x1xf32> to vector<128x32xf32>
    %225 = arith.mulf %223, %224 : vector<128x32xf32>
    %226 = vector.extract_strided_slice %186 {offsets = [5, 0], sizes = [1, 32], strides = [1, 1]} : vector<9x32xf32> to vector<1x32xf32>
    %227 = vector.broadcast %226 : vector<1x32xf32> to vector<128x32xf32>
    %228 = arith.mulf %225, %227 : vector<128x32xf32>
    %229 = arith.addf %222, %228 : vector<128x32xf32>
    %c23_81 = arith.constant 23 : index
    %c0_82 = arith.constant 0 : index
    %230 = vector.load %arg26[%c23_81, %c0_82] : memref<160x32xf32, #tpu.memory_space<vmem>>, vector<128x32xf32>
    %231 = vector.broadcast %29 : vector<128x1xf32> to vector<128x32xf32>
    %232 = arith.mulf %230, %231 : vector<128x32xf32>
    %233 = vector.extract_strided_slice %186 {offsets = [6, 0], sizes = [1, 32], strides = [1, 1]} : vector<9x32xf32> to vector<1x32xf32>
    %234 = vector.broadcast %233 : vector<1x32xf32> to vector<128x32xf32>
    %235 = arith.mulf %232, %234 : vector<128x32xf32>
    %236 = arith.addf %229, %235 : vector<128x32xf32>
    %c24_83 = arith.constant 24 : index
    %c0_84 = arith.constant 0 : index
    %237 = vector.load %arg26[%c24_83, %c0_84] : memref<160x32xf32, #tpu.memory_space<vmem>>, vector<128x32xf32>
    %238 = vector.broadcast %40 : vector<128x1xf32> to vector<128x32xf32>
    %239 = arith.mulf %237, %238 : vector<128x32xf32>
    %240 = vector.extract_strided_slice %186 {offsets = [7, 0], sizes = [1, 32], strides = [1, 1]} : vector<9x32xf32> to vector<1x32xf32>
    %241 = vector.broadcast %240 : vector<1x32xf32> to vector<128x32xf32>
    %242 = arith.mulf %239, %241 : vector<128x32xf32>
    %243 = arith.addf %236, %242 : vector<128x32xf32>
    %c25_85 = arith.constant 25 : index
    %c0_86 = arith.constant 0 : index
    %244 = vector.load %arg26[%c25_85, %c0_86] : memref<160x32xf32, #tpu.memory_space<vmem>>, vector<128x32xf32>
    %245 = vector.broadcast %51 : vector<128x1xf32> to vector<128x32xf32>
    %246 = arith.mulf %244, %245 : vector<128x32xf32>
    %247 = vector.extract_strided_slice %186 {offsets = [8, 0], sizes = [1, 32], strides = [1, 1]} : vector<9x32xf32> to vector<1x32xf32>
    %248 = vector.broadcast %247 : vector<1x32xf32> to vector<128x32xf32>
    %249 = arith.mulf %246, %248 : vector<128x32xf32>
    %250 = arith.addf %243, %249 : vector<128x32xf32>
    %cst_87 = arith.constant dense<0.000000e+00> : vector<32xf32>
    %251 = vector.multi_reduction <add>, %250, %cst_87 [0] : vector<128x32xf32> to vector<32xf32>
    %252 = vector.shape_cast %251 : vector<32xf32> to vector<1x32xf32>
    %cst_88 = arith.constant 7.812500e-03 : f32
    %253 = vector.broadcast %cst_88 : f32 to vector<1x32xf32>
    %254 = arith.mulf %252, %253 : vector<1x32xf32>
    %255 = arith.mulf %250, %250 : vector<128x32xf32>
    %cst_89 = arith.constant dense<0.000000e+00> : vector<32xf32>
    %256 = vector.multi_reduction <add>, %255, %cst_89 [0] : vector<128x32xf32> to vector<32xf32>
    %257 = vector.shape_cast %256 : vector<32xf32> to vector<1x32xf32>
    %cst_90 = arith.constant 7.812500e-03 : f32
    %258 = vector.broadcast %cst_90 : f32 to vector<1x32xf32>
    %259 = arith.mulf %257, %258 : vector<1x32xf32>
    %260 = arith.mulf %254, %254 : vector<1x32xf32>
    %261 = arith.subf %259, %260 : vector<1x32xf32>
    %cst_91 = arith.constant 0.000000e+00 : f32
    %262 = vector.broadcast %cst_91 : f32 to vector<1x32xf32>
    %263 = arith.maximumf %261, %262 : vector<1x32xf32>
    %264 = vector.broadcast %254 : vector<1x32xf32> to vector<128x32xf32>
    %265 = arith.subf %250, %264 : vector<128x32xf32>
    %cst_92 = arith.constant 9.99999974E-6 : f32
    %266 = vector.broadcast %cst_92 : f32 to vector<1x32xf32>
    %267 = arith.addf %263, %266 : vector<1x32xf32>
    %268 = math.rsqrt %267 : vector<1x32xf32>
    %269 = vector.broadcast %268 : vector<1x32xf32> to vector<128x32xf32>
    %270 = arith.mulf %265, %269 : vector<128x32xf32>
    %c0_93 = arith.constant 0 : index
    %c0_94 = arith.constant 0 : index
    %271 = vector.load %arg13[%c0_93, %c0_94] : memref<1x32xf32, #tpu.memory_space<vmem>>, vector<1x32xf32>
    %272 = vector.broadcast %271 : vector<1x32xf32> to vector<128x32xf32>
    %273 = arith.mulf %270, %272 : vector<128x32xf32>
    %c0_95 = arith.constant 0 : index
    %c0_96 = arith.constant 0 : index
    %274 = vector.load %arg14[%c0_95, %c0_96] : memref<1x32xf32, #tpu.memory_space<vmem>>, vector<1x32xf32>
    %275 = vector.broadcast %274 : vector<1x32xf32> to vector<128x32xf32>
    %276 = arith.addf %273, %275 : vector<128x32xf32>
    %277 = arith.negf %276 : vector<128x32xf32>
    %278 = math.exp %277 : vector<128x32xf32>
    %cst_97 = arith.constant 1.000000e+00 : f32
    %279 = vector.broadcast %cst_97 : f32 to vector<128x32xf32>
    %280 = arith.addf %279, %278 : vector<128x32xf32>
    %281 = arith.divf %279, %280 : vector<128x32xf32>
    %282 = arith.mulf %276, %281 : vector<128x32xf32>
    %cst_98 = arith.constant dense<0.000000e+00> : vector<32xf32>
    %283 = vector.multi_reduction <add>, %282, %cst_98 [0] : vector<128x32xf32> to vector<32xf32>
    %284 = vector.shape_cast %283 : vector<32xf32> to vector<1x32xf32>
    %cst_99 = arith.constant 7.812500e-03 : f32
    %285 = vector.broadcast %cst_99 : f32 to vector<1x32xf32>
    %286 = arith.mulf %284, %285 : vector<1x32xf32>
    %c0_100 = arith.constant 0 : index
    %c0_101 = arith.constant 0 : index
    %287 = vector.load %arg15[%c0_100, %c0_101] : memref<32x2xf32, #tpu.memory_space<vmem>>, vector<32x2xf32>
    %cst_102 = arith.constant dense<0.000000e+00> : vector<1x2xf32>
    %288 = tpu.matmul %286, %287, %cst_102 {dimension_numbers = #tpu.dot_dimension_numbers<[1], [0], [0], [1], [0, 0, 1, 1], [], []>} : vector<1x32xf32>, vector<32x2xf32>, vector<1x2xf32> -> vector<1x2xf32>
    %c0_103 = arith.constant 0 : index
    %c0_104 = arith.constant 0 : index
    %289 = vector.load %arg16[%c0_103, %c0_104] : memref<1x2xf32, #tpu.memory_space<vmem>>, vector<1x2xf32>
    %290 = arith.addf %288, %289 : vector<1x2xf32>
    %291 = arith.negf %290 : vector<1x2xf32>
    %292 = math.exp %291 : vector<1x2xf32>
    %cst_105 = arith.constant 1.000000e+00 : f32
    %293 = vector.broadcast %cst_105 : f32 to vector<1x2xf32>
    %294 = arith.addf %293, %292 : vector<1x2xf32>
    %295 = arith.divf %293, %294 : vector<1x2xf32>
    %296 = arith.mulf %290, %295 : vector<1x2xf32>
    %c0_106 = arith.constant 0 : index
    %c0_107 = arith.constant 0 : index
    %297 = vector.load %arg17[%c0_106, %c0_107] : memref<2x32xf32, #tpu.memory_space<vmem>>, vector<2x32xf32>
    %cst_108 = arith.constant dense<0.000000e+00> : vector<1x32xf32>
    %298 = tpu.matmul %296, %297, %cst_108 {dimension_numbers = #tpu.dot_dimension_numbers<[1], [0], [0], [1], [0, 0, 1, 1], [], []>} : vector<1x2xf32>, vector<2x32xf32>, vector<1x32xf32> -> vector<1x32xf32>
    %c0_109 = arith.constant 0 : index
    %c0_110 = arith.constant 0 : index
    %299 = vector.load %arg18[%c0_109, %c0_110] : memref<1x32xf32, #tpu.memory_space<vmem>>, vector<1x32xf32>
    %300 = arith.addf %298, %299 : vector<1x32xf32>
    %301 = arith.negf %300 : vector<1x32xf32>
    %302 = math.exp %301 : vector<1x32xf32>
    %cst_111 = arith.constant 1.000000e+00 : f32
    %303 = vector.broadcast %cst_111 : f32 to vector<1x32xf32>
    %304 = arith.addf %303, %302 : vector<1x32xf32>
    %305 = arith.divf %303, %304 : vector<1x32xf32>
    %306 = vector.broadcast %305 : vector<1x32xf32> to vector<128x32xf32>
    %307 = arith.mulf %282, %306 : vector<128x32xf32>
    %c0_112 = arith.constant 0 : index
    %c0_113 = arith.constant 0 : index
    %308 = vector.load %arg19[%c0_112, %c0_113] : memref<32x32xf32, #tpu.memory_space<vmem>>, vector<32x32xf32>
    %cst_114 = arith.constant dense<0.000000e+00> : vector<128x32xf32>
    %309 = tpu.matmul %307, %308, %cst_114 {dimension_numbers = #tpu.dot_dimension_numbers<[1], [0], [0], [1], [0, 0, 1, 1], [], []>} : vector<128x32xf32>, vector<32x32xf32>, vector<128x32xf32> -> vector<128x32xf32>
    %c0_115 = arith.constant 0 : index
    %c0_116 = arith.constant 0 : index
    %310 = vector.load %arg20[%c0_115, %c0_116] : memref<1x32xf32, #tpu.memory_space<vmem>>, vector<1x32xf32>
    %311 = vector.broadcast %310 : vector<1x32xf32> to vector<128x32xf32>
    %312 = arith.addf %309, %311 : vector<128x32xf32>
    %c0_117 = arith.constant 0 : index
    %c0_118 = arith.constant 0 : index
    %313 = vector.load %arg21[%c0_117, %c0_118] : memref<128x1xf32, #tpu.memory_space<vmem>>, vector<128x1xf32>
    %314 = vector.broadcast %313 : vector<128x1xf32> to vector<128x32xf32>
    %315 = arith.addf %312, %314 : vector<128x32xf32>
    %316 = tpu.transpose %315, [1, 0] : vector<128x32xf32> -> vector<32x128xf32>
    %cst_119 = arith.constant dense<0.000000e+00> : vector<32x32xf32>
    %317 = tpu.matmul %316, %315, %cst_119 {dimension_numbers = #tpu.dot_dimension_numbers<[1], [0], [0], [1], [0, 0, 1, 1], [], []>} : vector<32x128xf32>, vector<128x32xf32>, vector<32x32xf32> -> vector<32x32xf32>
    %cst_120 = arith.constant 0.000000e+00 : f32
    %318 = vector.broadcast %cst_120 : f32 to vector<32x32xf32>
    %319 = arith.subf %318, %317 : vector<32x32xf32>
    %cst_121 = arith.constant dense<0xFF800000> : vector<32xf32>
    %320 = vector.multi_reduction <maximumf>, %319, %cst_121 [1] : vector<32x32xf32> to vector<32xf32>
    %321 = vector.shape_cast %320 : vector<32xf32> to vector<32x1xf32>
    %322 = vector.broadcast %321 : vector<32x1xf32> to vector<32x32xf32>
    %323 = arith.subf %319, %322 : vector<32x32xf32>
    %324 = math.exp %323 : vector<32x32xf32>
    %cst_122 = arith.constant dense<0.000000e+00> : vector<32xf32>
    %325 = vector.multi_reduction <add>, %324, %cst_122 [1] : vector<32x32xf32> to vector<32xf32>
    %326 = vector.shape_cast %325 : vector<32xf32> to vector<32x1xf32>
    %327 = tpu.reciprocal %326 {approx = true} : vector<32x1xf32> -> vector<32x1xf32>
    %328 = vector.broadcast %327 : vector<32x1xf32> to vector<32x32xf32>
    %329 = arith.mulf %324, %328 : vector<32x32xf32>
    %330 = tpu.transpose %329, [1, 0] : vector<32x32xf32> -> vector<32x32xf32>
    %cst_123 = arith.constant dense<0.000000e+00> : vector<128x32xf32>
    %331 = tpu.matmul %312, %330, %cst_123 {dimension_numbers = #tpu.dot_dimension_numbers<[1], [0], [0], [1], [0, 0, 1, 1], [], []>} : vector<128x32xf32>, vector<32x32xf32>, vector<128x32xf32> -> vector<128x32xf32>
    %c0_124 = arith.constant 0 : index
    %c0_125 = arith.constant 0 : index
    %332 = vector.load %arg22[%c0_124, %c0_125] : memref<1x1xf32, #tpu.memory_space<vmem>>, vector<1x1xf32>
    %333 = vector.broadcast %332 : vector<1x1xf32> to vector<128x32xf32>
    %334 = arith.mulf %333, %331 : vector<128x32xf32>
    %335 = arith.addf %334, %312 : vector<128x32xf32>
    %c16_126 = arith.constant 16 : index
    %c0_127 = arith.constant 0 : index
    %336 = vector.load %arg26[%c16_126, %c0_127] : memref<160x32xf32, #tpu.memory_space<vmem>>, vector<128x32xf32>
    tpu.vector_store %arg26[%c16_126, %c0_127], %335 {strides = array<i32>} : memref<160x32xf32, #tpu.memory_space<vmem>>, vector<128x32xf32>,
    %c0_128 = arith.constant 0 : index
    %c0_129 = arith.constant 0 : index
    %337 = vector.load %arg23[%c0_128, %c0_129] : memref<288x16xf32, #tpu.memory_space<vmem>>, vector<288x16xf32>
    %cst_130 = arith.constant 0.000000e+00 : f32
    %338 = vector.broadcast %cst_130 : f32 to vector<128x16xf32>
    %c7_131 = arith.constant 7 : index
    %c0_132 = arith.constant 0 : index
    %339 = vector.load %arg26[%c7_131, %c0_132] : memref<160x32xf32, #tpu.memory_space<vmem>>, vector<128x32xf32>
    %340 = vector.broadcast %29 : vector<128x1xf32> to vector<128x32xf32>
    %341 = arith.mulf %339, %340 : vector<128x32xf32>
    %342 = vector.extract_strided_slice %337 {offsets = [0, 0], sizes = [32, 16], strides = [1, 1]} : vector<288x16xf32> to vector<32x16xf32>
    %cst_133 = arith.constant dense<0.000000e+00> : vector<128x16xf32>
    %343 = tpu.matmul %341, %342, %cst_133 {dimension_numbers = #tpu.dot_dimension_numbers<[1], [0], [0], [1], [0, 0, 1, 1], [], []>} : vector<128x32xf32>, vector<32x16xf32>, vector<128x16xf32> -> vector<128x16xf32>
    %344 = arith.addf %338, %343 : vector<128x16xf32>
    %c8_134 = arith.constant 8 : index
    %c0_135 = arith.constant 0 : index
    %345 = vector.load %arg26[%c8_134, %c0_135] : memref<160x32xf32, #tpu.memory_space<vmem>>, vector<128x32xf32>
    %346 = vector.broadcast %40 : vector<128x1xf32> to vector<128x32xf32>
    %347 = arith.mulf %345, %346 : vector<128x32xf32>
    %348 = vector.extract_strided_slice %337 {offsets = [32, 0], sizes = [32, 16], strides = [1, 1]} : vector<288x16xf32> to vector<32x16xf32>
    %cst_136 = arith.constant dense<0.000000e+00> : vector<128x16xf32>
    %349 = tpu.matmul %347, %348, %cst_136 {dimension_numbers = #tpu.dot_dimension_numbers<[1], [0], [0], [1], [0, 0, 1, 1], [], []>} : vector<128x32xf32>, vector<32x16xf32>, vector<128x16xf32> -> vector<128x16xf32>
    %350 = arith.addf %344, %349 : vector<128x16xf32>
    %c9_137 = arith.constant 9 : index
    %c0_138 = arith.constant 0 : index
    %351 = vector.load %arg26[%c9_137, %c0_138] : memref<160x32xf32, #tpu.memory_space<vmem>>, vector<128x32xf32>
    %352 = vector.broadcast %51 : vector<128x1xf32> to vector<128x32xf32>
    %353 = arith.mulf %351, %352 : vector<128x32xf32>
    %354 = vector.extract_strided_slice %337 {offsets = [64, 0], sizes = [32, 16], strides = [1, 1]} : vector<288x16xf32> to vector<32x16xf32>
    %cst_139 = arith.constant dense<0.000000e+00> : vector<128x16xf32>
    %355 = tpu.matmul %353, %354, %cst_139 {dimension_numbers = #tpu.dot_dimension_numbers<[1], [0], [0], [1], [0, 0, 1, 1], [], []>} : vector<128x32xf32>, vector<32x16xf32>, vector<128x16xf32> -> vector<128x16xf32>
    %356 = arith.addf %350, %355 : vector<128x16xf32>
    %c15_140 = arith.constant 15 : index
    %c0_141 = arith.constant 0 : index
    %357 = vector.load %arg26[%c15_140, %c0_141] : memref<160x32xf32, #tpu.memory_space<vmem>>, vector<128x32xf32>
    %358 = vector.broadcast %29 : vector<128x1xf32> to vector<128x32xf32>
    %359 = arith.mulf %357, %358 : vector<128x32xf32>
    %360 = vector.extract_strided_slice %337 {offsets = [96, 0], sizes = [32, 16], strides = [1, 1]} : vector<288x16xf32> to vector<32x16xf32>
    %cst_142 = arith.constant dense<0.000000e+00> : vector<128x16xf32>
    %361 = tpu.matmul %359, %360, %cst_142 {dimension_numbers = #tpu.dot_dimension_numbers<[1], [0], [0], [1], [0, 0, 1, 1], [], []>} : vector<128x32xf32>, vector<32x16xf32>, vector<128x16xf32> -> vector<128x16xf32>
    %362 = arith.addf %356, %361 : vector<128x16xf32>
    %c16_143 = arith.constant 16 : index
    %c0_144 = arith.constant 0 : index
    %363 = vector.load %arg26[%c16_143, %c0_144] : memref<160x32xf32, #tpu.memory_space<vmem>>, vector<128x32xf32>
    %364 = vector.broadcast %40 : vector<128x1xf32> to vector<128x32xf32>
    %365 = arith.mulf %363, %364 : vector<128x32xf32>
    %366 = vector.extract_strided_slice %337 {offsets = [128, 0], sizes = [32, 16], strides = [1, 1]} : vector<288x16xf32> to vector<32x16xf32>
    %cst_145 = arith.constant dense<0.000000e+00> : vector<128x16xf32>
    %367 = tpu.matmul %365, %366, %cst_145 {dimension_numbers = #tpu.dot_dimension_numbers<[1], [0], [0], [1], [0, 0, 1, 1], [], []>} : vector<128x32xf32>, vector<32x16xf32>, vector<128x16xf32> -> vector<128x16xf32>
    %368 = arith.addf %362, %367 : vector<128x16xf32>
    %c17_146 = arith.constant 17 : index
    %c0_147 = arith.constant 0 : index
    %369 = vector.load %arg26[%c17_146, %c0_147] : memref<160x32xf32, #tpu.memory_space<vmem>>, vector<128x32xf32>
    %370 = vector.broadcast %51 : vector<128x1xf32> to vector<128x32xf32>
    %371 = arith.mulf %369, %370 : vector<128x32xf32>
    %372 = vector.extract_strided_slice %337 {offsets = [160, 0], sizes = [32, 16], strides = [1, 1]} : vector<288x16xf32> to vector<32x16xf32>
    %cst_148 = arith.constant dense<0.000000e+00> : vector<128x16xf32>
    %373 = tpu.matmul %371, %372, %cst_148 {dimension_numbers = #tpu.dot_dimension_numbers<[1], [0], [0], [1], [0, 0, 1, 1], [], []>} : vector<128x32xf32>, vector<32x16xf32>, vector<128x16xf32> -> vector<128x16xf32>
    %374 = arith.addf %368, %373 : vector<128x16xf32>
    %c23_149 = arith.constant 23 : index
    %c0_150 = arith.constant 0 : index
    %375 = vector.load %arg26[%c23_149, %c0_150] : memref<160x32xf32, #tpu.memory_space<vmem>>, vector<128x32xf32>
    %376 = vector.broadcast %29 : vector<128x1xf32> to vector<128x32xf32>
    %377 = arith.mulf %375, %376 : vector<128x32xf32>
    %378 = vector.extract_strided_slice %337 {offsets = [192, 0], sizes = [32, 16], strides = [1, 1]} : vector<288x16xf32> to vector<32x16xf32>
    %cst_151 = arith.constant dense<0.000000e+00> : vector<128x16xf32>
    %379 = tpu.matmul %377, %378, %cst_151 {dimension_numbers = #tpu.dot_dimension_numbers<[1], [0], [0], [1], [0, 0, 1, 1], [], []>} : vector<128x32xf32>, vector<32x16xf32>, vector<128x16xf32> -> vector<128x16xf32>
    %380 = arith.addf %374, %379 : vector<128x16xf32>
    %c24_152 = arith.constant 24 : index
    %c0_153 = arith.constant 0 : index
    %381 = vector.load %arg26[%c24_152, %c0_153] : memref<160x32xf32, #tpu.memory_space<vmem>>, vector<128x32xf32>
    %382 = vector.broadcast %40 : vector<128x1xf32> to vector<128x32xf32>
    %383 = arith.mulf %381, %382 : vector<128x32xf32>
    %384 = vector.extract_strided_slice %337 {offsets = [224, 0], sizes = [32, 16], strides = [1, 1]} : vector<288x16xf32> to vector<32x16xf32>
    %cst_154 = arith.constant dense<0.000000e+00> : vector<128x16xf32>
    %385 = tpu.matmul %383, %384, %cst_154 {dimension_numbers = #tpu.dot_dimension_numbers<[1], [0], [0], [1], [0, 0, 1, 1], [], []>} : vector<128x32xf32>, vector<32x16xf32>, vector<128x16xf32> -> vector<128x16xf32>
    %386 = arith.addf %380, %385 : vector<128x16xf32>
    %c25_155 = arith.constant 25 : index
    %c0_156 = arith.constant 0 : index
    %387 = vector.load %arg26[%c25_155, %c0_156] : memref<160x32xf32, #tpu.memory_space<vmem>>, vector<128x32xf32>
    %388 = vector.broadcast %51 : vector<128x1xf32> to vector<128x32xf32>
    %389 = arith.mulf %387, %388 : vector<128x32xf32>
    %390 = vector.extract_strided_slice %337 {offsets = [256, 0], sizes = [32, 16], strides = [1, 1]} : vector<288x16xf32> to vector<32x16xf32>
    %cst_157 = arith.constant dense<0.000000e+00> : vector<128x16xf32>
    %391 = tpu.matmul %389, %390, %cst_157 {dimension_numbers = #tpu.dot_dimension_numbers<[1], [0], [0], [1], [0, 0, 1, 1], [], []>} : vector<128x32xf32>, vector<32x16xf32>, vector<128x16xf32> -> vector<128x16xf32>
    %392 = arith.addf %386, %391 : vector<128x16xf32>
    %c0_158 = arith.constant 0 : index
    %c0_159 = arith.constant 0 : index
    %393 = vector.load %arg24[%c0_158, %c0_159] : memref<1x16xf32, #tpu.memory_space<vmem>>, vector<1x16xf32>
    %394 = vector.broadcast %393 : vector<1x16xf32> to vector<128x16xf32>
    %395 = arith.addf %392, %394 : vector<128x16xf32>
    %c0_160 = arith.constant 0 : index
    %c0_161 = arith.constant 0 : index
    %c0_162 = arith.constant 0 : index
    %396 = vector.load %arg25[%c0_160, %c0_161, %c0_162] : memref<1x128x16xf32, #tpu.memory_space<vmem>>, vector<1x128x16xf32>
    %397 = vector.shape_cast %396 : vector<1x128x16xf32> to vector<128x16xf32>
    %398 = vector.shape_cast %395 : vector<128x16xf32> to vector<1x128x16xf32>
    tpu.vector_store %arg25[%c0_160, %c0_161, %c0_162], %398 {strides = array<i32>} : memref<1x128x16xf32, #tpu.memory_space<vmem>>, vector<1x128x16xf32>,
    return
  }
  func.func @transform_0(%arg0: i32) -> (i32, i32, i32) {
    %c0_i32 = arith.constant 0 : i32
    %c0_i32_0 = arith.constant 0 : i32
    %c0_i32_1 = arith.constant 0 : i32
    return %arg0, %c0_i32, %c0_i32_0 : i32, i32, i32
  }
  func.func @transform_1(%arg0: i32) -> (i32, i32) {
    %c0_i32 = arith.constant 0 : i32
    %c0_i32_0 = arith.constant 0 : i32
    %c0_i32_1 = arith.constant 0 : i32
    return %c0_i32, %c0_i32_0 : i32, i32
  }
  func.func @transform_2(%arg0: i32) -> (i32, i32) {
    %c0_i32 = arith.constant 0 : i32
    %c0_i32_0 = arith.constant 0 : i32
    %c0_i32_1 = arith.constant 0 : i32
    return %c0_i32, %c0_i32_0 : i32, i32
  }
  func.func @transform_3(%arg0: i32) -> (i32, i32) {
    %c0_i32 = arith.constant 0 : i32
    %c0_i32_0 = arith.constant 0 : i32
    %c0_i32_1 = arith.constant 0 : i32
    return %c0_i32, %c0_i32_0 : i32, i32
  }
  func.func @transform_4(%arg0: i32) -> (i32, i32) {
    %c0_i32 = arith.constant 0 : i32
    %c0_i32_0 = arith.constant 0 : i32
    %c0_i32_1 = arith.constant 0 : i32
    return %c0_i32, %c0_i32_0 : i32, i32
  }
  func.func @transform_5(%arg0: i32) -> (i32, i32) {
    %c0_i32 = arith.constant 0 : i32
    %c0_i32_0 = arith.constant 0 : i32
    %c0_i32_1 = arith.constant 0 : i32
    return %c0_i32, %c0_i32_0 : i32, i32
  }
  func.func @transform_6(%arg0: i32) -> (i32, i32) {
    %c0_i32 = arith.constant 0 : i32
    %c0_i32_0 = arith.constant 0 : i32
    %c0_i32_1 = arith.constant 0 : i32
    return %c0_i32, %c0_i32_0 : i32, i32
  }
  func.func @transform_7(%arg0: i32) -> (i32, i32) {
    %c0_i32 = arith.constant 0 : i32
    %c0_i32_0 = arith.constant 0 : i32
    %c0_i32_1 = arith.constant 0 : i32
    return %c0_i32, %c0_i32_0 : i32, i32
  }
  func.func @transform_8(%arg0: i32) -> (i32, i32) {
    %c0_i32 = arith.constant 0 : i32
    %c0_i32_0 = arith.constant 0 : i32
    %c0_i32_1 = arith.constant 0 : i32
    return %c0_i32, %c0_i32_0 : i32, i32
  }
  func.func @transform_9(%arg0: i32) -> (i32, i32) {
    %c0_i32 = arith.constant 0 : i32
    %c0_i32_0 = arith.constant 0 : i32
    %c0_i32_1 = arith.constant 0 : i32
    return %c0_i32, %c0_i32_0 : i32, i32
  }
  func.func @transform_10(%arg0: i32) -> (i32, i32) {
    %c0_i32 = arith.constant 0 : i32
    %c0_i32_0 = arith.constant 0 : i32
    %c0_i32_1 = arith.constant 0 : i32
    return %c0_i32, %c0_i32_0 : i32, i32
  }
  func.func @transform_11(%arg0: i32) -> (i32, i32) {
    %c0_i32 = arith.constant 0 : i32
    %c0_i32_0 = arith.constant 0 : i32
    %c0_i32_1 = arith.constant 0 : i32
    return %c0_i32, %c0_i32_0 : i32, i32
  }
  func.func @transform_12(%arg0: i32) -> (i32, i32) {
    %c0_i32 = arith.constant 0 : i32
    %c0_i32_0 = arith.constant 0 : i32
    %c0_i32_1 = arith.constant 0 : i32
    return %c0_i32, %c0_i32_0 : i32, i32
  }
  func.func @transform_13(%arg0: i32) -> (i32, i32) {
    %c0_i32 = arith.constant 0 : i32
    %c0_i32_0 = arith.constant 0 : i32
    %c0_i32_1 = arith.constant 0 : i32
    return %c0_i32, %c0_i32_0 : i32, i32
  }
  func.func @transform_14(%arg0: i32) -> (i32, i32) {
    %c0_i32 = arith.constant 0 : i32
    %c0_i32_0 = arith.constant 0 : i32
    %c0_i32_1 = arith.constant 0 : i32
    return %c0_i32, %c0_i32_0 : i32, i32
  }
  func.func @transform_15(%arg0: i32) -> (i32, i32) {
    %c0_i32 = arith.constant 0 : i32
    %c0_i32_0 = arith.constant 0 : i32
    %c0_i32_1 = arith.constant 0 : i32
    return %c0_i32, %c0_i32_0 : i32, i32
  }
  func.func @transform_16(%arg0: i32) -> (i32, i32) {
    %c0_i32 = arith.constant 0 : i32
    %c0_i32_0 = arith.constant 0 : i32
    %c0_i32_1 = arith.constant 0 : i32
    return %c0_i32, %c0_i32_0 : i32, i32
  }
  func.func @transform_17(%arg0: i32) -> (i32, i32) {
    %c0_i32 = arith.constant 0 : i32
    %c0_i32_0 = arith.constant 0 : i32
    %c0_i32_1 = arith.constant 0 : i32
    return %c0_i32, %c0_i32_0 : i32, i32
  }
  func.func @transform_18(%arg0: i32) -> (i32, i32) {
    %c0_i32 = arith.constant 0 : i32
    %c0_i32_0 = arith.constant 0 : i32
    %c0_i32_1 = arith.constant 0 : i32
    return %c0_i32, %c0_i32_0 : i32, i32
  }
  func.func @transform_19(%arg0: i32) -> (i32, i32) {
    %c0_i32 = arith.constant 0 : i32
    %c0_i32_0 = arith.constant 0 : i32
    %c0_i32_1 = arith.constant 0 : i32
    return %c0_i32, %c0_i32_0 : i32, i32
  }
  func.func @transform_20(%arg0: i32) -> (i32, i32) {
    %c0_i32 = arith.constant 0 : i32
    %c0_i32_0 = arith.constant 0 : i32
    %c0_i32_1 = arith.constant 0 : i32
    return %c0_i32, %c0_i32_0 : i32, i32
  }
  func.func @transform_21(%arg0: i32) -> (i32, i32) {
    %c0_i32 = arith.constant 0 : i32
    %c0_i32_0 = arith.constant 0 : i32
    %c0_i32_1 = arith.constant 0 : i32
    return %c0_i32, %c0_i32_0 : i32, i32
  }
  func.func @transform_22(%arg0: i32) -> (i32, i32) {
    %c0_i32 = arith.constant 0 : i32
    %c0_i32_0 = arith.constant 0 : i32
    %c0_i32_1 = arith.constant 0 : i32
    return %c0_i32, %c0_i32_0 : i32, i32
  }
  func.func @transform_23(%arg0: i32) -> (i32, i32) {
    %c0_i32 = arith.constant 0 : i32
    %c0_i32_0 = arith.constant 0 : i32
    %c0_i32_1 = arith.constant 0 : i32
    return %c0_i32, %c0_i32_0 : i32, i32
  }
  func.func @transform_24(%arg0: i32) -> (i32, i32, i32) {
    %c0_i32 = arith.constant 0 : i32
    %c0_i32_0 = arith.constant 0 : i32
    %c0_i32_1 = arith.constant 0 : i32
    return %arg0, %c0_i32, %c0_i32_0 : i32, i32, i32
  }
}

</mosaic_0001>

<bundles_post_ra>
// kernel: down_pixel_w_pos_groups.1
= control target key start
LH: loop header
LB: loop body
LE: loop exit
PB: predicated region body
PF: predicated region fallthrough
CT: control target
= control target key end

     0   :  { %s8219_s27 = smov 0   ;;  %s11424_s0 = inlined_call_operand.vmem [shape: f32[2,128,32], index: 0, kind: input, shape index: {}]   ;;  %s11425_s1 = inlined_call_operand.vmem [shape: f32[1,32], index: 1, kind: input, shape index: {}]   ;;  %s11426_s2 = inlined_call_operand.vmem [shape: f32[9,32], index: 2, kind: input, shape index: {}]   ;;  %s11427_s3 = inlined_call_operand.vmem [shape: f32[1,32], index: 3, kind: input, shape index: {}]   ;;  %s11428_s4 = inlined_call_operand.vmem [shape: f32[1,32], index: 4, kind: input, shape index: {}]   ;;  %s11429_s5 = inlined_call_operand.vmem [shape: f32[32,2], index: 5, kind: input, shape index: {}]   ;;  %s11430_s6 = inlined_call_operand.vmem [shape: f32[1,2], index: 6, kind: input, shape index: {}]   ;;  %s11431_s7 = inlined_call_operand.vmem [shape: f32[2,32], index: 7, kind: input, shape index: {}]   ;;  %s11432_s8 = inlined_call_operand.vmem [shape: f32[1,32], index: 8, kind: input, shape index: {}]   ;;  %s11433_s9 = inlined_call_operand.vmem [shape: f32[32,32], index: 9, kind: input, shape index: {}]   ;;  %s11434_s10 = inlined_call_operand.vmem [shape: f32[1,32], index: 10, kind: input, shape index: {}]   ;;  %s11435_s11 = inlined_call_operand.vmem [shape: f32[9,32], index: 11, kind: input, shape index: {}]   ;;  %s11436_s12 = inlined_call_operand.vmem [shape: f32[1,32], index: 12, kind: input, shape index: {}]   ;;  %s11437_s13 = inlined_call_operand.vmem [shape: f32[1,32], index: 13, kind: input, shape index: {}]   ;;  %s11438_s14 = inlined_call_operand.vmem [shape: f32[32,2], index: 14, kind: input, shape index: {}]   ;;  %s11439_s15 = inlined_call_operand.vmem [shape: f32[1,2], index: 15, kind: input, shape index: {}]   ;;  %s11440_s16 = inlined_call_operand.vmem [shape: f32[2,32], index: 16, kind: input, shape index: {}]   ;;  %s11441_s17 = inlined_call_operand.vmem [shape: f32[1,32], index: 17, kind: input, shape index: {}]   ;;  %s11442_s18 = inlined_call_operand.vmem [shape: f32[32,32], index: 18, kind: input, shape index: {}]   ;;  %s11443_s19 = inlined_call_operand.vmem [shape: f32[1,32], index: 19, kind: input, shape index: {}]   ;;  %s11444_s20 = inlined_call_operand.vmem [shape: f32[128,1], index: 20, kind: input, shape index: {}]   ;;  %s11445_s21 = inlined_call_operand.<no memory space> [shape: f32[1,1], index: 21, kind: input, shape index: {}]   ;;  %s11446_s22 = inlined_call_operand.vmem [shape: f32[288,16], index: 22, kind: input, shape index: {}]   ;;  %s11447_s23 = inlined_call_operand.vmem [shape: f32[1,16], index: 23, kind: input, shape index: {}]   ;;  %s11448_s24 = inlined_call_operand.vmem [shape: f32[2,128,16], index: 24, kind: output, shape index: {}]  }
   0x1   :  { %11728 = sst [smem:[#allocation93_spill]] %s11424_s0  ;;  %v29_v0 = vstv %s11445_s21 }
   0x2   :  { %11729 = sst [smem:[#allocation94_spill]] %s11425_s1  ;;  %30 = vst [vmem:[#allocation3] sm:$0x1] %v29_v0 }
   0x3   :  { %11730 = sst [smem:[#allocation95_spill]] %s11426_s2 }
   0x4   :  { %11731 = sst [smem:[#allocation96_spill]] %s11427_s3 }
   0x5   :  { %11732 = sst [smem:[#allocation97_spill]] %s11428_s4 }
   0x6   :  { %11733 = sst [smem:[#allocation98_spill]] %s11429_s5 }
   0x7   :  { %11734 = sst [smem:[#allocation99_spill]] %s11430_s6 }
   0x8   :  { %11735 = sst [smem:[#allocation100_spill]] %s11431_s7 }
   0x9   :  { %11736 = sst [smem:[#allocation101_spill]] %s11432_s8 }
   0xa LB: > { %s6607_s28 = sadd.s32 4294967295, %s8085_s27   ;;  %p6611_p0 = scmp.ge.s32.totalorder %s8085_s27, 1  ;;  %s8085_s27 = sphi %s8219_s27, %s36_s27  }
   0xb   : > { %p664_p1 = scmp.lt.s32.totalorder %s8085_s27, 3 }
   0xd   : > { %p665_p2 = pnand %p6611_p0, %p664_p1 }
   0xf   : > { %668 = sbr.rel (%p665_p2) target bundleno = 3307 (0xceb), region = 116 }
  0x16   : > { %s11737_s29 = sld [smem:[#allocation98_spill]]  ;;  %v11454_v4 = vmov 0.0|0.0   ;;  %vm11451_vm0 = vmmov 0   ;;  %v11455_v7 = vmov 0.0   ;;  %vm11453_vm1 = vcmask 261120   ;;  %p8327_p3 = scmp.lt.s32.totalorder %s6607_s28, 1 }
  0x17   : > { %7629 = vmatprep.subr.bf16.mxu0 %v11454_v4  ;;  %7183 = vmatprep.mubr.msk.f32.mxu0 %vm11451_vm0, %v11455_v7  ;;  %741 = vst.msk [vmem:[#allocation2] sm:$0xff] %vm11453_vm1, %v11455_v7  ;;  %742 = vst.msk [vmem:[#allocation2 + $0x8] sm:$0xff] %vm11453_vm1, %v11455_v7  ;;  %v761_v9 = vlaneseq  ;;  %s11740_s26 = sld [smem:[#allocation93_spill]]  ;;  %s11750_s0 = sld [smem:[#allocation94_spill]] }
  0x18   : > { %743 = vst.msk [vmem:[#allocation2 + $0x10] sm:$0xff] %vm11453_vm1, %v11455_v7  ;;  %744 = vst.msk [vmem:[#allocation2 + $0x18] sm:$0xff] %vm11453_vm1, %v11455_v7  ;;  %7186 = vmatprep.subr.mxu1 %v11455_v7  ;;  %7188 = vmatprep.mubr.msk.f32.mxu1 %vm11451_vm0, %v11455_v7  ;;  %s12548_s28 = smov (!%p8327_p3, %s6607_s28), 1  ;;  %s11787_s3 = sld [smem:[#allocation95_spill]] }
  0x19   : > { %745 = vst.msk [vmem:[#allocation2 + $0x20] sm:$0xff] %vm11453_vm1, %v11455_v7  ;;  %746 = vst.msk [vmem:[#allocation2 + $0x28] sm:$0xff] %vm11453_vm1, %v11455_v7  ;;  %v8287_v10 = vshrl.u32 %v761_v9, 7  ;;  %s6899_s4 = sshll.u32 %s12548_s28, 7  ;;  %s12011_s21 = sld [smem:[#allocation97_spill]] }
  0x1a   : > { %747 = vst.msk [vmem:[#allocation2 + $0x30] sm:$0xff] %vm11453_vm1, %v11455_v7  ;;  %748 = vst.msk [vmem:[#allocation2 + $0x38] sm:$0xff] %vm11453_vm1, %v11455_v7  ;;  %s12030_s30 = sld [smem:[#allocation100_spill]]  ;;  %s12031_s1 = sld [smem:[#allocation99_spill]] }
  0x1b   : > { %749 = vst.msk [vmem:[#allocation2 + $0x40] sm:$0xff] %vm11453_vm1, %v11455_v7  ;;  %750 = vst.msk [vmem:[#allocation2 + $0x48] sm:$0xff] %vm11453_vm1, %v11455_v7  ;;  %v8290_v11 = vadd.s32 8, %v8287_v10  ;;  %v8293_v12 = vadd.s32 16, %v8287_v10  ;;  %v8296_v13 = vadd.s32 24, %v8287_v10  ;;  %v8299_v14 = vadd.s32 32, %v8287_v10 }
  0x1c   : > { %v2146_v1 = vld [vmem:[%s11737_s29] sm:$0xff]  ;;  %v2147_v2 = vld [vmem:[%s11737_s29 + $0x8] sm:$0xff]  ;;  %v2148_v3 = vld [vmem:[%s11737_s29 + $0x10] sm:$0xff]  ;;  %751 = vst.msk [vmem:[#allocation2 + $0x50] sm:$0xff] %vm11453_vm1, %v11455_v7  ;;  %v8302_v15 = vadd.s32 40, %v8287_v10  ;;  %v8305_v16 = vadd.s32 48, %v8287_v10 }
  0x1d   : > { %v7630_v5 = vpack.c.bf16 %v2147_v2, %v2146_v1  ;;  %v2149_v6 = vld [vmem:[%s11737_s29 + $0x18] sm:$0xff]  ;;  %752 = vst.msk [vmem:[#allocation2 + $0x58] sm:$0xff] %vm11453_vm1, %v11455_v7  ;;  %753 = vst.msk [vmem:[#allocation2 + $0x60] sm:$0xff] %vm11453_vm1, %v11455_v7  ;;  %v8308_v17 = vadd.s32 56, %v8287_v10  ;;  %v8311_v18 = vadd.s32 64, %v8287_v10  ;;  %v8314_v19 = vadd.s32 72, %v8287_v10  ;;  %s8400_s6 = scalar_lea.vmem %s11740_s26, %s6899_s4 }
  0x1e   : > { %754 = vst.msk [vmem:[#allocation2 + $0x68] sm:$0xff] %vm11453_vm1, %v11455_v7  ;;  %755 = vst.msk [vmem:[#allocation2 + $0x70] sm:$0xff] %vm11453_vm1, %v11455_v7  ;;  %v7633_v8 = vpack.c.bf16 %v2149_v6, %v2148_v3  ;;  %v8317_v20 = vadd.s32 80, %v8287_v10  ;;  %v8320_v21 = vadd.s32 88, %v8287_v10  ;;  %v8323_v22 = vadd.s32 96, %v8287_v10  ;;  %v1242_v3 = vld [vmem:[%s8400_s6] sm:$0xff] }
  0x1f   : > { %756 = vst.msk [vmem:[#allocation2 + $0x78] sm:$0xff] %vm11453_vm1, %v11455_v7  ;;  %757 = vst.msk [vmem:[#allocation2 + $0x80] sm:$0xff] %vm11453_vm1, %v11455_v7  ;;  %7631 = vmatpush3.bf16.msra.mxu0 %v7630_v5  ;;  %v8332_v23 = vadd.s32 104, %v8287_v10  ;;  %v8335_v24 = vadd.s32 112, %v8287_v10  ;;  %v8338_v25 = vadd.s32 120, %v8287_v10  ;;  %v782_v26 = vand.u32 7, %v8287_v10 }
  0x20   : > { %758 = vst.msk [vmem:[#allocation2 + $0x88] sm:$0xff] %vm11453_vm1, %v11455_v7  ;;  %759 = vst.msk [vmem:[#allocation2 + $0x90] sm:$0xff] %vm11453_vm1, %v11455_v7  ;;  %7632 = vmatprep.subr.bf16.mxu0 %v11454_v4  ;;  %v789_v27 = vand.u32 7, %v8290_v11  ;;  %v796_v28 = vand.u32 7, %v8293_v12  ;;  %v803_v29 = vand.u32 7, %v8296_v13  ;;  %v810_v30 = vand.u32 7, %v8299_v14 }
  0x21   : > { %760 = vst.msk [vmem:[#allocation2 + $0x98] sm:$0xff] %vm11453_vm1, %v11455_v7  ;;  %11738 = vst [vmem:[#allocation4_spill] sm:$0xff] %v8287_v10  ;;  %v817_v31 = vand.u32 7, %v8302_v15  ;;  %v824_v32 = vand.u32 7, %v8305_v16  ;;  %v831_v33 = vand.u32 7, %v8308_v17  ;;  %v838_v34 = vand.u32 7, %v8311_v18 }
  0x22   : > { %v845_v35 = vand.u32 7, %v8314_v19  ;;  %v852_v36 = vand.u32 7, %v8317_v20  ;;  %v859_v37 = vand.u32 7, %v8320_v21  ;;  %v866_v38 = vand.u32 7, %v8323_v22  ;;  %v6648_v5 = vld [vmem:[%s11750_s0] ss:$0 sm:$0xff] }
  0x23   : > { %7634 = vmatpush3.bf16.msra.mxu0 %v7633_v8  ;;  %v11459_v39 = vand.u32 7, %v8332_v23  ;;  %v11458_v40 = vand.u32 7, %v8335_v24  ;;  %v11457_v41 = vand.u32 7, %v8338_v25  ;;  %v970_v42 = vadd.s32 4294967295, %v782_v26  ;;  %v1249_v11 = vld [vmem:[%s8400_s6 + $0x38] sm:$0xff]  ;;  %v1252_v17 = vld [vmem:[%s8400_s6 + $0x50] sm:$0xff] }
  0x24   : > { %7643 = vmatprep.subr.bf16.mxu0 %v11454_v4  ;;  %v971_v43 = vadd.s32 4294967295, %v789_v27  ;;  %v972_v44 = vadd.s32 4294967295, %v796_v28  ;;  %v973_v45 = vadd.s32 4294967295, %v803_v29  ;;  %v974_v46 = vadd.s32 4294967295, %v810_v30  ;;  %s12010_s26 = sld [smem:[#allocation96_spill]] }
  0x25   : > { %v975_v47 = vadd.s32 4294967295, %v817_v31  ;;  %v976_v48 = vadd.s32 4294967295, %v824_v32  ;;  %v977_v49 = vadd.s32 4294967295, %v831_v33  ;;  %v978_v50 = vadd.s32 4294967295, %v838_v34 }
  0x26   : > { %v979_v51 = vadd.s32 4294967295, %v845_v35  ;;  %v980_v52 = vadd.s32 4294967295, %v852_v36  ;;  %v981_v53 = vadd.s32 4294967295, %v859_v37  ;;  %v982_v54 = vadd.s32 4294967295, %v866_v38 }
  0x27   : > { %v983_v55 = vadd.s32 4294967295, %v11459_v39  ;;  %v984_v56 = vadd.s32 4294967295, %v11458_v40  ;;  %v985_v57 = vadd.s32 4294967295, %v11457_v41  ;;  %vm986_vm2 = vcmp.ge.s32.totalorder %v970_v42, 0 }
  0x28   : > { %vm987_vm3 = vcmp.ge.s32.totalorder %v971_v43, 0  ;;  %vm988_vm4 = vcmp.ge.s32.totalorder %v972_v44, 0  ;;  %vm989_vm5 = vcmp.ge.s32.totalorder %v973_v45, 0  ;;  %vm990_vm6 = vcmp.ge.s32.totalorder %v974_v46, 0  ;;  %v1243_v43 = vld [vmem:[%s8400_s6 + $0x8] sm:$0xff]  ;;  %v1244_v44 = vld [vmem:[%s8400_s6 + $0x10] sm:$0xff] }
  0x29   : > { %vm991_vm7 = vcmp.ge.s32.totalorder %v975_v47, 0  ;;  %vm992_vm8 = vcmp.ge.s32.totalorder %v976_v48, 0  ;;  %vm993_vm9 = vcmp.ge.s32.totalorder %v977_v49, 0  ;;  %vm994_vm10 = vcmp.ge.s32.totalorder %v978_v50, 0  ;;  %v1245_v45 = vld [vmem:[%s8400_s6 + $0x18] sm:$0xff]  ;;  %v1246_v50 = vld [vmem:[%s8400_s6 + $0x20] sm:$0xff] }
  0x2a   : > { %vm995_vm11 = vcmp.ge.s32.totalorder %v979_v51, 0  ;;  %vm996_vm12 = vcmp.ge.s32.totalorder %v980_v52, 0  ;;  %vm997_vm13 = vcmp.ge.s32.totalorder %v981_v53, 0  ;;  %vm998_vm14 = vcmp.ge.s32.totalorder %v982_v54, 0  ;;  %v1247_v51 = vld [vmem:[%s8400_s6 + $0x28] sm:$0xff] }
  0x2b   : > { %vm999_vm15 = vcmp.ge.s32.totalorder %v983_v55, 0  ;;  %vm1000_vm0 = vcmp.ge.s32.totalorder %v984_v56, 0  ;;  %vm1001_vm1 = vcmp.ge.s32.totalorder %v985_v57, 0  ;;  %v8404_v58 = vsel %vm986_vm2, 1.0, %v11455_v7  ;;  %v1248_v55 = vld [vmem:[%s8400_s6 + $0x30] sm:$0xff]  ;;  %v1257_v56 = vld [vmem:[%s8400_s6 + $0x78] sm:$0xff] }
  0x2c   : > { %11741 = vst [vmem:[#allocation5_spill] sm:$0xff] %v8404_v58  ;;  %v8408_v59 = vsel %vm987_vm3, 1.0, %v11455_v7  ;;  %v8412_v60 = vsel %vm988_vm4, 1.0, %v11455_v7  ;;  %v8416_v61 = vsel %vm989_vm5, 1.0, %v11455_v7  ;;  %v8420_v62 = vsel %vm990_vm6, 1.0, %v11455_v7 }
  0x2d   : > { %11742 = vst [vmem:[#allocation6_spill] sm:$0xff] %v8408_v59  ;;  %11743 = vst [vmem:[#allocation7_spill] sm:$0xff] %v8412_v60  ;;  %v8424_v63 = vsel %vm991_vm7, 1.0, %v11455_v7  ;;  %v8428_v0 = vsel %vm992_vm8, 1.0, %v11455_v7  ;;  %v8432_v1 = vsel %vm993_vm9, 1.0, %v11455_v7  ;;  %v8436_v2 = vsel %vm994_vm10, 1.0, %v11455_v7 }
  0x2e   : > { %11744 = vst [vmem:[#allocation8_spill] sm:$0xff] %v8416_v61  ;;  %11745 = vst [vmem:[#allocation9_spill] sm:$0xff] %v8420_v62  ;;  %v8444_v6 = vsel %vm995_vm11, 1.0, %v11455_v7  ;;  %v8448_v8 = vsel %vm996_vm12, 1.0, %v11455_v7  ;;  %v8452_v9 = vsel %vm997_vm13, 1.0, %v11455_v7  ;;  %v8456_v42 = vsel %vm998_vm14, 1.0, %v11455_v7 }
  0x2f   : > { %11746 = vst [vmem:[#allocation10_spill] sm:$0xff] %v8424_v63  ;;  %11747 = vst [vmem:[#allocation11_spill] sm:$0xff] %v8428_v0  ;;  %v8463_v46 = vsel %vm999_vm15, 1.0, %v11455_v7  ;;  %v8467_v47 = vsel %vm1000_vm0, 1.0, %v11455_v7  ;;  %v8471_v48 = vsel %vm1001_vm1, 1.0, %v11455_v7  ;;  %v8475_v49 = vadd.s32 1, %v782_v26 }
  0x30   : > { %11748 = vst [vmem:[#allocation12_spill] sm:$0xff] %v8432_v1  ;;  %11749 = vst [vmem:[#allocation13_spill] sm:$0xff] %v8436_v2  ;;  %v8481_v52 = vadd.s32 1, %v789_v27  ;;  %v8485_v53 = vadd.s32 1, %v796_v28  ;;  %v8489_v54 = vadd.s32 1, %v803_v29  ;;  %v8493_v26 = vadd.s32 1, %v810_v30 }
  0x31   : > { %11751 = vst [vmem:[#allocation14_spill] sm:$0xff] %v8444_v6  ;;  %11752 = vst [vmem:[#allocation15_spill] sm:$0xff] %v8448_v8  ;;  %v8499_v12 = vadd.s32 1, %v817_v31  ;;  %v8503_v27 = vadd.s32 1, %v824_v32  ;;  %v8507_v13 = vadd.s32 1, %v831_v33  ;;  %v8511_v14 = vadd.s32 1, %v838_v34 }
  0x32   : > { %11753 = vst [vmem:[#allocation16_spill] sm:$0xff] %v8452_v9  ;;  %11754 = vst [vmem:[#allocation17_spill] sm:$0xff] %v8456_v42  ;;  %v1250_v28 = vld [vmem:[%s8400_s6 + $0x40] sm:$0xff]  ;;  %v1251_v29 = vld [vmem:[%s8400_s6 + $0x48] sm:$0xff]  ;;  %v8517_v15 = vadd.s32 1, %v845_v35  ;;  %v8521_v30 = vadd.s32 1, %v852_v36  ;;  %v1265_v18 = vadd.f32 %v6648_v5, %v1242_v3  ;;  %v1266_v57 = vadd.f32 %v6648_v5, %v1243_v43 }
  0x33   : > { %11755 = vst [vmem:[#allocation18_spill] sm:$0xff] %v8463_v46  ;;  %11756 = vst [vmem:[#allocation19_spill] sm:$0xff] %v8467_v47  ;;  %v8525_v16 = vadd.s32 1, %v859_v37  ;;  %v1253_v31 = vld [vmem:[%s8400_s6 + $0x58] sm:$0xff]  ;;  %v1254_v32 = vld [vmem:[%s8400_s6 + $0x60] sm:$0xff]  ;;  %v1267_v4 = vadd.f32 %v6648_v5, %v1244_v44  ;;  %v1268_v19 = vadd.f32 %v6648_v5, %v1245_v45  ;;  %v1269_v35 = vadd.f32 %v6648_v5, %v1246_v50 }
  0x34   : > { %11757 = vst [vmem:[#allocation20_spill] sm:$0xff] %v8471_v48  ;;  %v1255_v33 = vld [vmem:[%s8400_s6 + $0x68] sm:$0xff]  ;;  %v1256_v34 = vld [vmem:[%s8400_s6 + $0x70] sm:$0xff]  ;;  %v1270_v7 = vadd.f32 %v6648_v5, %v1247_v51  ;;  %v1271_v41 = vadd.f32 %v6648_v5, %v1248_v55  ;;  %v1272_v20 = vadd.f32 %v6648_v5, %v1249_v11  ;;  %v1273_v36 = vadd.f32 %v6648_v5, %v1250_v28 }
  0x35   : > { %vm11758_vm0 = vcmask 261120   ;;  %v1274_v21 = vadd.f32 %v6648_v5, %v1251_v29  ;;  %v1275_v37 = vadd.f32 %v6648_v5, %v1252_v17  ;;  %v1276_v40 = vadd.f32 %v6648_v5, %v1253_v31 }
  0x36   : > { %1281 = vst.msk [vmem:[#allocation2 + $0x10] sm:$0xff] %vm11758_vm0, %v1265_v18  ;;  %v1277_v39 = vadd.f32 %v6648_v5, %v1254_v32  ;;  %vm11759_vm1 = vmmov %vm11758_vm0  ;;  %v1158_v3 = vadd.s32 1, %v866_v38  ;;  %v1278_v43 = vadd.f32 %v6648_v5, %v1255_v33  ;;  %v1279_v44 = vadd.f32 %v6648_v5, %v1256_v34  ;;  %v1367_v32 = vld [vmem:[#allocation2 + $0x8] sm:$0xff]  ;;  %v1768_v33 = vld [vmem:[#allocation2 + $0x91] sm:$0xff] }
  0x37   : > { %1282 = vst.msk [vmem:[#allocation2 + $0x18] sm:$0xff] %vm11759_vm1, %v1266_v57  ;;  %vm11760_vm2 = vmmov %vm11758_vm0  ;;  %v1280_v45 = vadd.f32 %v6648_v5, %v1257_v56  ;;  %v11768_v51 = vand.u32 7, %v8335_v24  ;;  %v11769_v22 = vand.u32 7, %v8338_v25  ;;  %vm1178_vm9 = vcmp.lt.s32.totalorder %v8475_v49, 8 }
  0x38   : > { %1283 = vst.msk [vmem:[#allocation2 + $0x20] sm:$0xff] %vm11760_vm2, %v1267_v4  ;;  %vm11761_vm3 = vmmov %vm11758_vm0  ;;  %v11767_v4 = vand.u32 7, %v8332_v23  ;;  %vm1179_vm14 = vcmp.lt.s32.totalorder %v8481_v52, 8  ;;  %vm1180_vm15 = vcmp.lt.s32.totalorder %v8485_v53, 8  ;;  %v1297_v53 = vld [vmem:[%s11787_s3] sm:$0xff]  ;;  %v11461_v28 = vsub.s32 3, %v8287_v10 }
  0x39   : > { %1284 = vst.msk [vmem:[#allocation2 + $0x28] sm:$0xff] %vm11761_vm3, %v1268_v19  ;;  %vm11762_vm4 = vmmov %vm11758_vm0  ;;  %v1160_v55 = vadd.s32 1, %v11768_v51  ;;  %v1161_v38 = vadd.s32 1, %v11769_v22  ;;  %v11463_v29 = vsub.s32 4, %v8287_v10  ;;  %v11467_v17 = vsub.s32 6, %v8287_v10 }
  0x3a   : > { %1285 = vst.msk [vmem:[#allocation2 + $0x30] sm:$0xff] %vm11762_vm4, %v1269_v35  ;;  %vm11763_vm5 = vmmov %vm11758_vm0  ;;  %v1159_v50 = vadd.s32 1, %v11767_v4  ;;  %v11470_v18 = vsub.s32 7, %v8287_v10 }
  0x3b   : > { %1286 = vst.msk [vmem:[#allocation2 + $0x38] sm:$0xff] %vm11763_vm5, %v1270_v7  ;;  %vm11764_vm6 = vmmov %vm11758_vm0  ;;  %vm1183_vm5 = vcmp.lt.s32.totalorder %v8499_v12, 8  ;;  %v11777_v7 = vmov 0.0   ;;  %v8690_v51 = vrot.slane %v1297_v53, %v11463_v29  ;;  %v8698_v22 = vrot.slane %v1297_v53, %v11467_v17 }
  0x3c   : > { %1287 = vst.msk [vmem:[#allocation2 + $0x40] sm:$0xff] %vm11764_vm6, %v1271_v41  ;;  %vm11765_vm7 = vmmov %vm11758_vm0  ;;  %vm1184_vm6 = vcmp.lt.s32.totalorder %v8503_v27, 8  ;;  %v8572_v23 = vsel %vm1178_vm9, 1.0, %v11777_v7  ;;  %v8577_v24 = vsel %vm1179_vm14, 1.0, %v11777_v7  ;;  %v8582_v25 = vsel %vm1180_vm15, 1.0, %v11777_v7 }
  0x3d   : > { %1288 = vst.msk [vmem:[#allocation2 + $0x48] sm:$0xff] %vm11765_vm7, %v1272_v20  ;;  %vm11766_vm8 = vmmov %vm11758_vm0  ;;  %vm1185_vm7 = vcmp.lt.s32.totalorder %v8507_v13, 8  ;;  %vm11783_vm9 = vcmp.lt.s32.totalorder %v8493_v26, 8  ;;  %v8601_v49 = vsel %vm1183_vm5, 1.0, %v11777_v7  ;;  %v8606_v52 = vsel %vm1184_vm6, 1.0, %v11777_v7  ;;  %v1300_v19 = vld [vmem:[#allocation2 + $0xf] sm:$0xff] }
  0x3e   : > { %1289 = vst.msk [vmem:[#allocation2 + $0x50] sm:$0xff] %vm11766_vm8, %v1273_v36  ;;  %vm11770_vm10 = vmmov %vm11758_vm0  ;;  %vm1186_vm8 = vcmp.lt.s32.totalorder %v8511_v14, 8  ;;  %v8596_v5 = vsel %vm11783_vm9, 1.0, %v11777_v7  ;;  %v8614_v26 = vsel %vm1185_vm7, 1.0, %v11777_v7  ;;  %v11460_v27 = vsub.s32 2, %v8287_v10  ;;  %v8654_v35 = vld [vmem:[#allocation2 + $0x10] sm:$0xff] }
  0x3f   : > { %1290 = vst.msk [vmem:[#allocation2 + $0x58] sm:$0xff] %vm11770_vm10, %v1274_v21  ;;  %vm11771_vm11 = vmmov %vm11758_vm0  ;;  %vm1187_vm10 = vcmp.lt.s32.totalorder %v8517_v15, 8  ;;  %v8619_v11 = vsel %vm1186_vm8, 1.0, %v11777_v7  ;;  %v11464_v13 = vsub.s32 5, %v8287_v10  ;;  %v1435_v20 = vld [vmem:[#allocation2 + $0x9] sm:$0xff]  ;;  %v8668_v21 = vld [vmem:[#allocation2 + $0x17] sm:$0xff]  ;;  %v8710_v29 = vrot.slane %v1297_v53, %v11470_v18 }
  0x40   : > { %1291 = vst.msk [vmem:[#allocation2 + $0x60] sm:$0xff] %vm11771_vm11, %v1275_v37  ;;  %vm11772_vm12 = vmmov %vm11758_vm0  ;;  %vm1188_vm11 = vcmp.lt.s32.totalorder %v8521_v30, 8  ;;  %v8624_v12 = vsel %vm1187_vm10, 1.0, %v11777_v7  ;;  %v8670_v37 = vld [vmem:[#allocation2 + $0x1f] sm:$0xff] }
  0x41   : > { %1292 = vst.msk [vmem:[#allocation2 + $0x68] sm:$0xff] %vm11772_vm12, %v1276_v40  ;;  %vm11773_vm13 = vmmov %vm11758_vm0  ;;  %vm1181_vm0 = vcmp.lt.s32.totalorder %v8489_v54, 8  ;;  %vm1189_vm12 = vcmp.lt.s32.totalorder %v8525_v16, 8  ;;  %v11462_v40 = vsub.s32 1, %v8287_v10  ;;  %v1299_v54 = vld [vmem:[#allocation2 + $0x7] sm:$0xff]  ;;  %v8643_v34 = vsel %vm1188_vm11, 1.0, %v11777_v7 }
  0x42   : > { %1293 = vst.msk [vmem:[#allocation2 + $0x70] sm:$0xff] %vm11773_vm13, %v1277_v39  ;;  %vm11774_vm2 = vmmov %vm11759_vm1  ;;  %vm1190_vm13 = vcmp.lt.s32.totalorder %v1158_v3, 8  ;;  %v8585_v39 = vsub.s32 0, %v8287_v10  ;;  %v8591_v41 = vsel %vm1181_vm0, 1.0, %v11777_v7  ;;  %v1315_v31 = vmul.f32 %v8404_v58, %v1299_v54  ;;  %v8672_v3 = vld [vmem:[#allocation2 + $0x27] sm:$0xff] }
  0x43   : > { %1294 = vst.msk [vmem:[#allocation2 + $0x78] sm:$0xff] %vm11774_vm2, %v1278_v43  ;;  %vm11775_vm3 = vmmov %vm11759_vm1  ;;  %vm1191_vm2 = vcmp.lt.s32.totalorder %v1159_v50, 8  ;;  %v8637_v15 = vrot.slane %v1297_v53, %v11462_v40  ;;  %v8648_v56 = vsel %vm1189_vm12, 1.0, %v11777_v7  ;;  %v8652_v57 = vsel %vm1190_vm13, 1.0, %v11777_v7  ;;  %v8682_v4 = vld [vmem:[#allocation2 + $0x3f] sm:$0xff] }
  0x44   : > { %1295 = vst.msk [vmem:[#allocation2 + $0x80] sm:$0xff] %vm11775_vm3, %v1279_v44  ;;  %vm11776_vm4 = vmmov %vm11759_vm1  ;;  %vm1192_vm1 = vcmp.lt.s32.totalorder %v1160_v55, 8  ;;  %vm1193_vm3 = vcmp.lt.s32.totalorder %v1161_v38, 8  ;;  %v8633_v14 = vrot.slane %v1297_v53, %v8585_v39  ;;  %v8658_v36 = vsel %vm1191_vm2, 1.0, %v11777_v7  ;;  %v8678_v44 = vld [vmem:[#allocation2 + $0x2f] sm:$0xff]  ;;  %v8700_v38 = vld [vmem:[#allocation2 + $0x47] sm:$0xff] }
  0x45   : > { %1296 = vst.msk [vmem:[#allocation2 + $0x88] sm:$0xff] %vm11776_vm4, %v1280_v45  ;;  %11778 = vst [vmem:[#allocation21_spill] sm:$0xff] %v8572_v23  ;;  %v8662_v30 = vsel %vm1192_vm1, 1.0, %v11777_v7  ;;  %v8666_v16 = vsel %vm1193_vm3, 1.0, %v11777_v7  ;;  %v8676_v43 = vrot.slane %v1297_v53, %v11460_v27  ;;  %v8680_v45 = vld [vmem:[#allocation2 + $0x37] sm:$0xff]  ;;  %v8686_v50 = vrot.slane %v1297_v53, %v11461_v28  ;;  %v8702_v54 = vld [vmem:[#allocation2 + $0x4f] sm:$0xff] }
  0x46   : > { %11779 = vst [vmem:[#allocation22_spill] sm:$0xff] %v8577_v24  ;;  %11780 = vst [vmem:[#allocation23_spill] sm:$0xff] %v8582_v25  ;;  %v8694_v55 = vrot.slane %v1297_v53, %v11464_v13  ;;  %v8704_v27 = vld [vmem:[#allocation2 + $0x57] sm:$0xff]  ;;  %v1335_v28 = vmul.f32 %v8633_v14, %v1315_v31  ;;  %v1403_v40 = vmul.f32 %v8637_v15, %v1367_v32 }
  0x47   : > { %11781 = vst [vmem:[#allocation24_spill] sm:$0xff] %v8585_v39  ;;  %11782 = vst [vmem:[#allocation25_spill] sm:$0xff] %v8591_v41  ;;  %v8713_v13 = vmul.f32 %v8666_v16, %v1768_v33  ;;  %v8715_v39 = vld [vmem:[#allocation2 + $0x5f] sm:$0xff]  ;;  %v1317_v31 = vmul.f32 %v8412_v60, %v8668_v21  ;;  %v8726_v32 = vmul.f32 %v8637_v15, %v8654_v35 }
  0x48   : > { %11784 = vst [vmem:[#allocation26_spill] sm:$0xff] %v8596_v5  ;;  %11785 = vst [vmem:[#allocation27_spill] sm:$0xff] %v8601_v49  ;;  %v8717_v17 = vld [vmem:[#allocation2 + $0x67] sm:$0xff]  ;;  %v8729_v53 = vmul.f32 %v8572_v23, %v1435_v20  ;;  %v1318_v18 = vmul.f32 %v8416_v61, %v8670_v37  ;;  %v1319_v10 = vmul.f32 %v8420_v62, %v8672_v3  ;;  %v8840_v60 = vld [vmem:[#allocation2 + $0x19] sm:$0xff] }
  0x49   : > { %11786 = vst [vmem:[#allocation28_spill] sm:$0xff] %v8606_v52  ;;  %11788 = vst [vmem:[#allocation29_spill] sm:$0xff] %v8614_v26  ;;  %v8719_v7 = vld [vmem:[#allocation2 + $0x6f] sm:$0xff]  ;;  %v1321_v20 = vmul.f32 %v8428_v0, %v8680_v45  ;;  %v1322_v23 = vmul.f32 %v8432_v1, %v8682_v4 }
  0x4a   : > { %11789 = vst [vmem:[#allocation30_spill] sm:$0xff] %v8619_v11  ;;  %11790 = vst [vmem:[#allocation31_spill] sm:$0xff] %v8624_v12  ;;  %v8731_v33 = vld [vmem:[#allocation2 + $0x77] sm:$0xff] }
  0x4b   : > { %11791 = vst [vmem:[#allocation32_spill] sm:$0xff] %v8643_v34  ;;  %11792 = vst [vmem:[#allocation33_spill] sm:$0xff] %v8648_v56  ;;  %v1329_v1 = vmul.f32 %v8467_v47, %v8731_v33  ;;  %v8775_v47 = vld [vmem:[#allocation2 + $0x28] sm:$0xff]  ;;  %v8802_v0 = vld [vmem:[#allocation2 + $0x70] sm:$0xff] }
  0x4c   : > { %11793 = vst [vmem:[#allocation34_spill] sm:$0xff] %v8652_v57  ;;  %11794 = vst [vmem:[#allocation35_spill] sm:$0xff] %v8654_v35  ;;  %v1324_v35 = vmul.f32 %v8444_v6, %v8702_v54  ;;  %v8764_v6 = vld [vmem:[#allocation2 + $0x18] sm:$0xff] }
  0x4d   : > { %11795 = vst [vmem:[#allocation36_spill] sm:$0xff] %v8658_v36  ;;  %11796 = vst [vmem:[#allocation37_spill] sm:$0xff] %v8662_v30 }
  0x4e   : > { %11797 = vst [vmem:[#allocation38_spill] sm:$0xff] %v8666_v16  ;;  %11798 = vst [vmem:[#allocation39_spill] sm:$0xff] %v8668_v21 }
  0x4f   : > { %11799 = vst [vmem:[#allocation40_spill] sm:$0xff] %v8670_v37  ;;  %11800 = vst [vmem:[#allocation41_spill] sm:$0xff] %v8672_v3 }
  0x50   : > { %11801 = vst [vmem:[#allocation42_spill] sm:$0xff] %v8678_v44  ;;  %11802 = vst [vmem:[#allocation43_spill] sm:$0xff] %v8680_v45 }
  0x51   : > { %11803 = vst [vmem:[#allocation44_spill] sm:$0xff] %v8682_v4  ;;  %11804 = vst [vmem:[#allocation45_spill] sm:$0xff] %v8686_v50  ;;  %v1325_v50 = vmul.f32 %v8448_v8, %v8704_v27  ;;  %v8768_v8 = vadd.f32 %v1403_v40, %v1335_v28  ;;  %v1342_v40 = vmul.f32 %v8633_v14, %v1322_v23  ;;  %v8797_v23 = vld [vmem:[#allocation2 + $0x60] sm:$0xff]  ;;  %v8804_v4 = vld [vmem:[#allocation2 + $0x78] sm:$0xff] }
  0x52   : > { %11805 = vst [vmem:[#allocation46_spill] sm:$0xff] %v8690_v51  ;;  %11806 = vst [vmem:[#allocation47_spill] sm:$0xff] %v8694_v55  ;;  %v8742_v55 = vld [vmem:[#allocation2 + $0x7f] sm:$0xff]  ;;  %v1323_v51 = vmul.f32 %v8436_v2, %v8700_v38 }
  0x53   : > { %11807 = vst [vmem:[#allocation48_spill] sm:$0xff] %v8698_v22  ;;  %11808 = vst [vmem:[#allocation49_spill] sm:$0xff] %v8700_v38  ;;  %v1316_v22 = vmul.f32 %v8408_v59, %v1300_v19  ;;  %v1337_v38 = vmul.f32 %v8633_v14, %v1317_v31  ;;  %v8779_v31 = vld [vmem:[#allocation2 + $0x38] sm:$0xff] }
  0x54   : > { %11809 = vst [vmem:[#allocation50_spill] sm:$0xff] %v8702_v54  ;;  %11810 = vst [vmem:[#allocation51_spill] sm:$0xff] %v8704_v27  ;;  %v8766_v54 = vld [vmem:[#allocation2 + $0x20] sm:$0xff]  ;;  %v1343_v28 = vmul.f32 %v8633_v14, %v1323_v51  ;;  %v8795_v27 = vld [vmem:[#allocation2 + $0x58] sm:$0xff] }
  0x55   : > { %11811 = vst [vmem:[#allocation52_spill] sm:$0xff] %v8710_v29  ;;  %11812 = vst [vmem:[#allocation53_spill] sm:$0xff] %v8713_v13  ;;  %v1320_v13 = vmul.f32 %v8424_v63, %v8678_v44  ;;  %v8740_v29 = vmul.f32 %v8404_v58, %v1300_v19  ;;  %v1326_v19 = vmul.f32 %v8452_v9, %v8715_v39  ;;  %v8799_v51 = vld [vmem:[#allocation2 + $0x68] sm:$0xff]  ;;  %v8806_v63 = vld [vmem:[#allocation2 + $0x80] sm:$0xff] }
  0x56   : > { %11813 = vst [vmem:[#allocation54_spill] sm:$0xff] %v8715_v39  ;;  %11814 = vst [vmem:[#allocation55_spill] sm:$0xff] %v8717_v17  ;;  %v1327_v58 = vmul.f32 %v8456_v42, %v8717_v17  ;;  %v1336_v2 = vmul.f32 %v8633_v14, %v1316_v22  ;;  %v1330_v9 = vmul.f32 %v8471_v48, %v8742_v55  ;;  %v8777_v22 = vld [vmem:[#allocation2 + $0x30] sm:$0xff] }
  0x57   : > { %11815 = vst [vmem:[#allocation56_spill] sm:$0xff] %v8719_v7  ;;  %11816 = vst [vmem:[#allocation57_spill] sm:$0xff] %v8731_v33  ;;  %v1338_v42 = vmul.f32 %v8633_v14, %v1318_v18  ;;  %v1341_v33 = vmul.f32 %v8633_v14, %v1321_v20  ;;  %v1344_v48 = vmul.f32 %v8633_v14, %v1324_v35  ;;  %v8787_v18 = vld [vmem:[#allocation2 + $0x48] sm:$0xff]  ;;  %v8837_v44 = vld [vmem:[#allocation2 + $0x11] sm:$0xff] }
  0x58   : > { %11817 = vst [vmem:[#allocation58_spill] sm:$0xff] %v8740_v29  ;;  %11818 = vst [vmem:[#allocation59_spill] sm:$0xff] %v8742_v55  ;;  %v1328_v29 = vmul.f32 %v8463_v46, %v8719_v7  ;;  %v1339_v46 = vmul.f32 %v8633_v14, %v1319_v10  ;;  %v1340_v7 = vmul.f32 %v8633_v14, %v1320_v13  ;;  %v8785_v55 = vld [vmem:[#allocation2 + $0x40] sm:$0xff]  ;;  %v8789_v10 = vld [vmem:[#allocation2 + $0x50] sm:$0xff] }
  0x59   : > { %11819 = vst [vmem:[#allocation60_spill] sm:$0xff] %v8764_v6  ;;  %11820 = vst [vmem:[#allocation61_spill] sm:$0xff] %v8766_v54  ;;  %v1345_v13 = vmul.f32 %v8633_v14, %v1325_v50  ;;  %v1346_v17 = vmul.f32 %v8633_v14, %v1326_v19  ;;  %v1347_v39 = vmul.f32 %v8633_v14, %v1327_v58  ;;  %v8846_v59 = vld [vmem:[#allocation2 + $0x31] sm:$0xff] }
  0x5a   : > { %11821 = vst [vmem:[#allocation62_spill] sm:$0xff] %v8775_v47  ;;  %11822 = vst [vmem:[#allocation63_spill] sm:$0xff] %v8777_v22  ;;  %v1348_v20 = vmul.f32 %v8633_v14, %v1328_v29  ;;  %v1349_v35 = vmul.f32 %v8633_v14, %v1329_v1  ;;  %v1405_v50 = vmul.f32 %v8637_v15, %v8764_v6 }
  0x5b   : > { %11823 = vst [vmem:[#allocation64_spill] sm:$0xff] %v8779_v31  ;;  %11824 = vst [vmem:[#allocation65_spill] sm:$0xff] %v8785_v55  ;;  %v1406_v58 = vmul.f32 %v8637_v15, %v8766_v54  ;;  %v1407_v29 = vmul.f32 %v8637_v15, %v8775_v47  ;;  %v1408_v19 = vmul.f32 %v8637_v15, %v8777_v22 }
  0x5c   : > { %11825 = vst [vmem:[#allocation66_spill] sm:$0xff] %v8787_v18  ;;  %11826 = vst [vmem:[#allocation67_spill] sm:$0xff] %v8789_v10  ;;  %v1409_v1 = vmul.f32 %v8637_v15, %v8779_v31  ;;  %v1410_v45 = vmul.f32 %v8637_v15, %v8785_v55  ;;  %v1411_v62 = vmul.f32 %v8637_v15, %v8787_v18 }
  0x5d   : > { %11827 = vst [vmem:[#allocation68_spill] sm:$0xff] %v8795_v27  ;;  %11828 = vst [vmem:[#allocation69_spill] sm:$0xff] %v8797_v23  ;;  %v1412_v6 = vmul.f32 %v8637_v15, %v8789_v10  ;;  %v1413_v54 = vmul.f32 %v8637_v15, %v8795_v27  ;;  %v1414_v47 = vmul.f32 %v8637_v15, %v8797_v23 }
  0x5e   : > { %11829 = vst [vmem:[#allocation70_spill] sm:$0xff] %v8799_v51  ;;  %11830 = vst [vmem:[#allocation71_spill] sm:$0xff] %v8802_v0  ;;  %v1415_v22 = vmul.f32 %v8637_v15, %v8799_v51  ;;  %v1350_v31 = vmul.f32 %v8633_v14, %v1330_v9  ;;  %v1416_v55 = vmul.f32 %v8637_v15, %v8802_v0  ;;  %v8842_v51 = vld [vmem:[#allocation2 + $0x21] sm:$0xff]  ;;  %v8844_v9 = vld [vmem:[#allocation2 + $0x29] sm:$0xff] }
  0x5f   : > { %11831 = vst [vmem:[#allocation72_spill] sm:$0xff] %v8804_v4  ;;  %11832 = vst [vmem:[#allocation73_spill] sm:$0xff] %v8806_v63  ;;  %v1417_v18 = vmul.f32 %v8637_v15, %v8804_v4  ;;  %v1418_v10 = vmul.f32 %v8637_v15, %v8806_v63  ;;  %v1420_v27 = vadd.f32 %v8726_v32, %v1336_v2  ;;  %v8848_v15 = vld [vmem:[#allocation2 + $0x39] sm:$0xff]  ;;  %v8850_v63 = vld [vmem:[#allocation2 + $0x41] sm:$0xff] }
  0x60   : > { %v1421_v61 = vadd.f32 %v1405_v50, %v1337_v38  ;;  %v1422_v23 = vadd.f32 %v1406_v58, %v1338_v42  ;;  %v1423_v3 = vadd.f32 %v1407_v29, %v1339_v46  ;;  %v1424_v14 = vadd.f32 %v1408_v19, %v1340_v7  ;;  %11833 = vst [vmem:[#allocation74_spill] sm:$0xff] %v8850_v63  ;;  %v8852_v32 = vld [vmem:[#allocation2 + $0x49] sm:$0xff]  ;;  %v8854_v50 = vld [vmem:[#allocation2 + $0x51] sm:$0xff]  ;;  %v8856_v58 = vld [vmem:[#allocation2 + $0x59] sm:$0xff] }
  0x61   : > { %v1425_v0 = vadd.f32 %v1409_v1, %v1341_v33  ;;  %v1426_v37 = vadd.f32 %v1410_v45, %v1342_v40  ;;  %v1427_v4 = vadd.f32 %v1411_v62, %v1343_v28  ;;  %v1428_v2 = vadd.f32 %v1412_v6, %v1344_v48  ;;  %11834 = vst [vmem:[#allocation75_spill] sm:$0xff] %v8852_v32  ;;  %v8858_v62 = vld [vmem:[#allocation2 + $0x61] sm:$0xff]  ;;  %v8860_v40 = vld [vmem:[#allocation2 + $0x69] sm:$0xff]  ;;  %v8862_v28 = vld [vmem:[#allocation2 + $0x71] sm:$0xff] }
  0x62   : > { %v1429_v38 = vadd.f32 %v1413_v54, %v1345_v13  ;;  %v1430_v42 = vadd.f32 %v1414_v47, %v1346_v17  ;;  %v1431_v46 = vadd.f32 %v1415_v22, %v1347_v39  ;;  %11835 = vst [vmem:[#allocation76_spill] sm:$0xff] %v8854_v50  ;;  %11836 = vst [vmem:[#allocation77_spill] sm:$0xff] %v8856_v58  ;;  %v8866_v47 = vld [vmem:[#allocation2 + $0x79] sm:$0xff]  ;;  %v8868_v48 = vld [vmem:[#allocation2 + $0x81] sm:$0xff] }
  0x63   : > { %v1432_v7 = vadd.f32 %v1416_v55, %v1348_v20  ;;  %v1433_v33 = vadd.f32 %v1417_v18, %v1349_v35  ;;  %v1434_v45 = vadd.f32 %v1418_v10, %v1350_v31  ;;  %11837 = vst [vmem:[#allocation78_spill] sm:$0xff] %v8858_v62  ;;  %11838 = vst [vmem:[#allocation79_spill] sm:$0xff] %v8860_v40 }
  0x64   : > { %11839 = vst [vmem:[#allocation80_spill] sm:$0xff] %v8862_v28  ;;  %v1452_v6 = vmul.f32 %v8577_v24, %v8837_v44  ;;  %11840 = vst [vmem:[#allocation81_spill] sm:$0xff] %v8866_v47  ;;  %v1453_v39 = vmul.f32 %v8582_v25, %v8840_v60  ;;  %v1454_v17 = vmul.f32 %v8591_v41, %v8842_v51 }
  0x65   : > { %11841 = vst [vmem:[#allocation82_spill] sm:$0xff] %v8868_v48  ;;  %v1455_v55 = vmul.f32 %v8596_v5, %v8844_v9  ;;  %v1456_v54 = vmul.f32 %v8601_v49, %v8846_v59  ;;  %v1457_v22 = vmul.f32 %v8606_v52, %v8848_v15  ;;  %v1458_v31 = vmul.f32 %v8614_v26, %v8850_v63  ;;  %vm11966_vm14 = vmmov %vm11776_vm4 }
  0x66   : > { %v1459_v18 = vmul.f32 %v8619_v11, %v8852_v32  ;;  %v1460_v10 = vmul.f32 %v8624_v12, %v8854_v50  ;;  %v1461_v13 = vmul.f32 %v8643_v34, %v8856_v58  ;;  %v1462_v20 = vmul.f32 %v8648_v56, %v8858_v62  ;;  %vm11967_vm15 = vmmov %vm11776_vm4 }
  0x67   : > { %v1463_v35 = vmul.f32 %v8652_v57, %v8860_v40  ;;  %v1464_v29 = vmul.f32 %v8658_v36, %v8862_v28  ;;  %v1465_v19 = vmul.f32 %v8662_v30, %v8866_v47  ;;  %v1466_v1 = vmul.f32 %v8666_v16, %v8868_v48  ;;  %vm11968_vm0 = vmmov %vm11776_vm4 }
  0x68   : > { %v1471_v12 = vmul.f32 %v8676_v43, %v8729_v53  ;;  %v1472_v34 = vmul.f32 %v8676_v43, %v1452_v6  ;;  %v1473_v58 = vmul.f32 %v8676_v43, %v1453_v39  ;;  %v1474_v56 = vmul.f32 %v8676_v43, %v1454_v17  ;;  %vm11971_vm1 = vmmov %vm11968_vm0 }
  0x69   : > { %v1475_v57 = vmul.f32 %v8676_v43, %v1455_v55  ;;  %v1476_v40 = vmul.f32 %v8676_v43, %v1456_v54  ;;  %v1477_v36 = vmul.f32 %v8676_v43, %v1457_v22  ;;  %v1478_v30 = vmul.f32 %v8676_v43, %v1458_v31  ;;  %vm11974_vm4 = vmmov %vm11968_vm0 }
  0x6a   : > { %v1479_v47 = vmul.f32 %v8676_v43, %v1459_v18  ;;  %v1480_v16 = vmul.f32 %v8676_v43, %v1460_v10  ;;  %v1481_v53 = vmul.f32 %v8676_v43, %v1461_v13  ;;  %v1482_v6 = vmul.f32 %v8676_v43, %v1462_v20  ;;  %vm11977_vm5 = vmmov %vm11968_vm0 }
  0x6b   : > { %v1483_v39 = vmul.f32 %v8676_v43, %v1463_v35  ;;  %v1484_v17 = vmul.f32 %v8676_v43, %v1464_v29  ;;  %v1485_v55 = vmul.f32 %v8676_v43, %v1465_v19  ;;  %v1486_v54 = vmul.f32 %v8676_v43, %v1466_v1  ;;  %v11842_v19 = vld [vmem:[#allocation6_spill] sm:$0xff]  ;;  %v11843_v1 = vld [vmem:[#allocation40_spill] sm:$0xff]  ;;  %vm11982_vm6 = vmmov %vm11968_vm0 }
  0x6c   : > { %v1487_v22 = vadd.f32 %v1471_v12, %v8768_v8  ;;  %v1488_v48 = vadd.f32 %v1472_v34, %v1420_v27  ;;  %v1489_v31 = vadd.f32 %v1473_v58, %v1421_v61  ;;  %v1490_v28 = vadd.f32 %v1474_v56, %v1422_v23  ;;  %v11844_v8 = vld [vmem:[#allocation7_spill] sm:$0xff]  ;;  %v8920_v61 = vld [vmem:[#allocation2 + $0x87] sm:$0xff]  ;;  %v11848_v56 = vld [vmem:[#allocation42_spill] sm:$0xff] }
  0x6d   : > { %v1491_v18 = vadd.f32 %v1475_v57, %v1423_v3  ;;  %v1492_v62 = vadd.f32 %v1476_v40, %v1424_v14  ;;  %v1493_v10 = vadd.f32 %v1477_v36, %v1425_v0  ;;  %v1494_v11 = vadd.f32 %v1478_v30, %v1426_v37  ;;  %11845 = vst [vmem:[#allocation83_spill] sm:$0xff] %v8920_v61  ;;  %v11846_v27 = vld [vmem:[#allocation41_spill] sm:$0xff]  ;;  %v11847_v34 = vld [vmem:[#allocation8_spill] sm:$0xff]  ;;  %v11850_v30 = vld [vmem:[#allocation43_spill] sm:$0xff] }
  0x6e   : > { %v1495_v13 = vadd.f32 %v1479_v47, %v1427_v4  ;;  %v1496_v50 = vadd.f32 %v1480_v16, %v1428_v2  ;;  %v1497_v20 = vadd.f32 %v1481_v53, %v1429_v38  ;;  %v1498_v26 = vadd.f32 %v1482_v6, %v1430_v42  ;;  %v11849_v57 = vld [vmem:[#allocation9_spill] sm:$0xff]  ;;  %v11851_v16 = vld [vmem:[#allocation10_spill] sm:$0xff]  ;;  %v11852_v3 = vld [vmem:[#allocation44_spill] sm:$0xff] }
  0x6f   : > { %v1499_v35 = vadd.f32 %v1483_v39, %v1431_v46  ;;  %v1500_v32 = vadd.f32 %v1484_v17, %v1432_v7  ;;  %v1501_v29 = vadd.f32 %v1485_v55, %v1433_v33  ;;  %v1502_v52 = vadd.f32 %v1486_v54, %v1434_v45  ;;  %v11853_v4 = vld [vmem:[#allocation11_spill] sm:$0xff]  ;;  %v11854_v14 = vld [vmem:[#allocation49_spill] sm:$0xff]  ;;  %v11855_v2 = vld [vmem:[#allocation12_spill] sm:$0xff] }
  0x70   : > { %v1505_v43 = vmul.f32 %v11842_v19, %v8668_v21  ;;  %v1506_v12 = vmul.f32 %v11844_v8, %v11843_v1  ;;  %v1507_v0 = vmul.f32 %v11847_v34, %v11846_v27  ;;  %v1508_v36 = vmul.f32 %v11849_v57, %v11848_v56  ;;  %v11856_v42 = vld [vmem:[#allocation50_spill] sm:$0xff]  ;;  %v11857_v46 = vld [vmem:[#allocation13_spill] sm:$0xff]  ;;  %v11858_v7 = vld [vmem:[#allocation51_spill] sm:$0xff] }
  0x71   : > { %v1509_v37 = vmul.f32 %v11851_v16, %v11850_v30  ;;  %v1510_v23 = vmul.f32 %v11853_v4, %v11852_v3  ;;  %v1511_v38 = vmul.f32 %v11855_v2, %v11854_v14  ;;  %v1512_v58 = vmul.f32 %v11857_v46, %v11856_v42  ;;  %v11859_v33 = vld [vmem:[#allocation14_spill] sm:$0xff]  ;;  %v11861_v47 = vld [vmem:[#allocation15_spill] sm:$0xff]  ;;  %v11863_v39 = vld [vmem:[#allocation16_spill] sm:$0xff] }
  0x72   : > { %v1513_v45 = vmul.f32 %v11859_v33, %v11858_v7  ;;  %v11860_v40 = vld [vmem:[#allocation54_spill] sm:$0xff]  ;;  %v11862_v6 = vld [vmem:[#allocation55_spill] sm:$0xff]  ;;  %v11864_v55 = vld [vmem:[#allocation56_spill] sm:$0xff] }
  0x73   : > { %v1514_v53 = vmul.f32 %v11861_v47, %v11860_v40  ;;  %v1515_v17 = vmul.f32 %v11863_v39, %v11862_v6  ;;  %v11865_v54 = vld [vmem:[#allocation17_spill] sm:$0xff]  ;;  %v11867_v4 = vld [vmem:[#allocation18_spill] sm:$0xff]  ;;  %v11868_v30 = vld [vmem:[#allocation59_spill] sm:$0xff] }
  0x74   : > { %v1516_v16 = vmul.f32 %v11865_v54, %v11864_v55  ;;  %v11866_v57 = vld [vmem:[#allocation57_spill] sm:$0xff]  ;;  %v11869_v2 = vld [vmem:[#allocation19_spill] sm:$0xff]  ;;  %v11870_v46 = vld [vmem:[#allocation20_spill] sm:$0xff] }
  0x75   : > { %v1517_v3 = vmul.f32 %v11867_v4, %v11866_v57  ;;  %v1518_v14 = vmul.f32 %v11869_v2, %v11868_v30  ;;  %v1519_v42 = vmul.f32 %v11870_v46, %v8920_v61  ;;  %v11871_v34 = vld [vmem:[#allocation58_spill] sm:$0xff]  ;;  %v11872_v33 = vld [vmem:[#allocation45_spill] sm:$0xff]  ;;  %v11873_v21 = vld [vmem:[#allocation35_spill] sm:$0xff] }
  0x76   : > { %v1524_v7 = vmul.f32 %v11872_v33, %v11871_v34  ;;  %v1525_v47 = vmul.f32 %v11872_v33, %v1505_v43  ;;  %v1526_v40 = vmul.f32 %v11872_v33, %v1506_v12  ;;  %v1527_v39 = vmul.f32 %v11872_v33, %v1507_v0  ;;  %vm11983_vm7 = vmmov %vm11968_vm0 }
  0x77   : > { %v1528_v54 = vmul.f32 %v11872_v33, %v1508_v36  ;;  %v1529_v55 = vmul.f32 %v11872_v33, %v1509_v37  ;;  %v1530_v4 = vmul.f32 %v11872_v33, %v1510_v23  ;;  %v1531_v2 = vmul.f32 %v11872_v33, %v1511_v38  ;;  %vm11984_vm8 = vmmov %vm11968_vm0 }
  0x78   : > { %v1532_v30 = vmul.f32 %v11872_v33, %v1512_v58  ;;  %v1533_v46 = vmul.f32 %v11872_v33, %v1513_v45  ;;  %v1534_v34 = vmul.f32 %v11872_v33, %v1514_v53  ;;  %v1535_v43 = vmul.f32 %v11872_v33, %v1515_v17  ;;  %vm11985_vm10 = vmmov %vm11968_vm0 }
  0x79   : > { %v1536_v12 = vmul.f32 %v11872_v33, %v1516_v16  ;;  %v1537_v0 = vmul.f32 %v11872_v33, %v1517_v3  ;;  %v1538_v36 = vmul.f32 %v11872_v33, %v1518_v14  ;;  %v1539_v37 = vmul.f32 %v11872_v33, %v1519_v42  ;;  %v11874_v14 = vld [vmem:[#allocation46_spill] sm:$0xff]  ;;  %v11875_v42 = vld [vmem:[#allocation60_spill] sm:$0xff]  ;;  %v11887_v33 = vld [vmem:[#allocation71_spill] sm:$0xff] }
  0x7a   : > { %v1540_v61 = vadd.f32 %v1524_v7, %v1487_v22  ;;  %v1541_v23 = vadd.f32 %v1525_v47, %v1488_v48  ;;  %v1542_v57 = vadd.f32 %v1526_v40, %v1489_v31  ;;  %v1543_v38 = vadd.f32 %v1527_v39, %v1490_v28  ;;  %v11876_v22 = vld [vmem:[#allocation61_spill] sm:$0xff]  ;;  %v11879_v31 = vld [vmem:[#allocation63_spill] sm:$0xff]  ;;  %v11888_v47 = vld [vmem:[#allocation72_spill] sm:$0xff] }
  0x7b   : > { %v1544_v6 = vadd.f32 %v1528_v54, %v1491_v18  ;;  %v1545_v58 = vadd.f32 %v1529_v55, %v1492_v62  ;;  %v1546_v56 = vadd.f32 %v1530_v4, %v1493_v10  ;;  %v1547_v45 = vadd.f32 %v1531_v2, %v1494_v11  ;;  %v8971_v62 = vld [vmem:[#allocation2 + $0x88] sm:$0xff]  ;;  %v11878_v11 = vld [vmem:[#allocation62_spill] sm:$0xff]  ;;  %vm11986_vm11 = vmmov %vm11968_vm0 }
  0x7c   : > { %v1548_v8 = vadd.f32 %v1532_v30, %v1495_v13  ;;  %v1549_v53 = vadd.f32 %v1533_v46, %v1496_v50  ;;  %v1550_v27 = vadd.f32 %v1534_v34, %v1497_v20  ;;  %v1551_v17 = vadd.f32 %v1535_v43, %v1498_v26  ;;  %11877 = vst [vmem:[#allocation58_spill] sm:$0xff] %v8971_v62  ;;  %v11881_v18 = vld [vmem:[#allocation65_spill] sm:$0xff]  ;;  %v11882_v10 = vld [vmem:[#allocation66_spill] sm:$0xff]  ;;  %v11883_v20 = vld [vmem:[#allocation67_spill] sm:$0xff] }
  0x7d   : > { %v1552_v19 = vadd.f32 %v1536_v12, %v1499_v35  ;;  %v1553_v16 = vadd.f32 %v1537_v0, %v1500_v32  ;;  %v1554_v1 = vadd.f32 %v1538_v36, %v1501_v29  ;;  %v1555_v3 = vadd.f32 %v1539_v37, %v1502_v52  ;;  %v11880_v32 = vld [vmem:[#allocation64_spill] sm:$0xff]  ;;  %v11885_v4 = vld [vmem:[#allocation69_spill] sm:$0xff]  ;;  %v11886_v46 = vld [vmem:[#allocation70_spill] sm:$0xff] }
  0x7e   : > { %v1577_v63 = vmul.f32 %v11874_v14, %v11873_v21  ;;  %v1578_v48 = vmul.f32 %v11874_v14, %v11875_v42  ;;  %v1579_v28 = vmul.f32 %v11874_v14, %v11876_v22  ;;  %v1580_v50 = vmul.f32 %v11874_v14, %v11878_v11  ;;  %v11884_v29 = vld [vmem:[#allocation68_spill] sm:$0xff]  ;;  %v11889_v55 = vld [vmem:[#allocation73_spill] sm:$0xff]  ;;  %vm11989_vm12 = vmmov %vm11968_vm0 }
  0x7f   : > { %v1581_v26 = vmul.f32 %v11874_v14, %v11879_v31  ;;  %v1582_v52 = vmul.f32 %v11874_v14, %v11880_v32  ;;  %v1583_v21 = vmul.f32 %v11874_v14, %v11881_v18  ;;  %v1584_v13 = vmul.f32 %v11874_v14, %v11882_v10  ;;  %vm11990_vm13 = vmmov %vm11968_vm0 }
  0x80   : > { %v1585_v35 = vmul.f32 %v11874_v14, %v11883_v20  ;;  %v1586_v30 = vmul.f32 %v11874_v14, %v11884_v29  ;;  %v1587_v2 = vmul.f32 %v11874_v14, %v11885_v4  ;;  %v1588_v7 = vmul.f32 %v11874_v14, %v11886_v46  ;;  %vm11991_vm2 = vmmov %vm11968_vm0 }
  0x81   : > { %v1589_v40 = vmul.f32 %v11874_v14, %v11887_v33  ;;  %v1590_v39 = vmul.f32 %v11874_v14, %v11888_v47  ;;  %v1591_v54 = vmul.f32 %v11874_v14, %v11889_v55  ;;  %v1592_v34 = vmul.f32 %v11874_v14, %v8971_v62  ;;  %v11890_v55 = vld [vmem:[#allocation21_spill] sm:$0xff]  ;;  %v11900_v14 = vld [vmem:[#allocation78_spill] sm:$0xff]  ;;  %vm11992_vm3 = vmmov %vm11968_vm0 }
  0x82   : > { %v1593_v43 = vadd.f32 %v1577_v63, %v1540_v61  ;;  %v1594_v12 = vadd.f32 %v1578_v48, %v1541_v23  ;;  %v1595_v0 = vadd.f32 %v1579_v28, %v1542_v57  ;;  %v1596_v36 = vadd.f32 %v1580_v50, %v1543_v38  ;;  %v9005_v57 = vld [vmem:[#allocation2 + $0x89] sm:$0xff]  ;;  %v11901_v48 = vld [vmem:[#allocation32_spill] sm:$0xff]  ;;  %v11902_v50 = vld [vmem:[#allocation79_spill] sm:$0xff] }
  0x83   : > { %v1597_v37 = vadd.f32 %v1581_v26, %v1544_v6  ;;  %v1598_v4 = vadd.f32 %v1582_v52, %v1545_v58  ;;  %v1599_v29 = vadd.f32 %v1583_v21, %v1546_v56  ;;  %v1600_v46 = vadd.f32 %v1584_v13, %v1547_v45  ;;  %11891 = vst [vmem:[#allocation45_spill] sm:$0xff] %v9005_v57  ;;  %v11893_v56 = vld [vmem:[#allocation28_spill] sm:$0xff]  ;;  %v11894_v6 = vld [vmem:[#allocation75_spill] sm:$0xff]  ;;  %v11895_v23 = vld [vmem:[#allocation29_spill] sm:$0xff] }
  0x84   : > { %v1601_v20 = vadd.f32 %v1585_v35, %v1548_v8  ;;  %v1602_v10 = vadd.f32 %v1586_v30, %v1549_v53  ;;  %v1603_v33 = vadd.f32 %v1587_v2, %v1550_v27  ;;  %v1604_v18 = vadd.f32 %v1588_v7, %v1551_v17  ;;  %v11892_v27 = vld [vmem:[#allocation74_spill] sm:$0xff]  ;;  %v11896_v58 = vld [vmem:[#allocation76_spill] sm:$0xff]  ;;  %v11898_v17 = vld [vmem:[#allocation77_spill] sm:$0xff] }
  0x85   : > { %v1605_v32 = vadd.f32 %v1589_v40, %v1552_v19  ;;  %v1606_v47 = vadd.f32 %v1590_v39, %v1553_v16  ;;  %v1607_v31 = vadd.f32 %v1591_v54, %v1554_v1  ;;  %v1608_v11 = vadd.f32 %v1592_v34, %v1555_v3  ;;  %v11897_v45 = vld [vmem:[#allocation30_spill] sm:$0xff]  ;;  %v11899_v16 = vld [vmem:[#allocation31_spill] sm:$0xff]  ;;  %v11903_v26 = vld [vmem:[#allocation33_spill] sm:$0xff] }
  0x86   : > { %v1610_v22 = vmul.f32 %v11890_v55, %v8837_v44  ;;  %v1611_v63 = vmul.f32 %v8577_v24, %v8840_v60  ;;  %v1612_v61 = vmul.f32 %v8582_v25, %v8842_v51  ;;  %v1613_v8 = vmul.f32 %v8591_v41, %v8844_v9  ;;  %v11904_v21 = vld [vmem:[#allocation80_spill] sm:$0xff]  ;;  %v11905_v13 = vld [vmem:[#allocation34_spill] sm:$0xff]  ;;  %v11906_v30 = vld [vmem:[#allocation81_spill] sm:$0xff] }
  0x87   : > { %v1614_v19 = vmul.f32 %v8596_v5, %v8846_v59  ;;  %v1615_v1 = vmul.f32 %v8601_v49, %v8848_v15  ;;  %v1616_v44 = vmul.f32 %v11893_v56, %v11892_v27  ;;  %v1617_v38 = vmul.f32 %v11895_v23, %v11894_v6  ;;  %v11907_v2 = vld [vmem:[#allocation36_spill] sm:$0xff]  ;;  %v11908_v40 = vld [vmem:[#allocation82_spill] sm:$0xff]  ;;  %v11909_v39 = vld [vmem:[#allocation37_spill] sm:$0xff] }
  0x88   : > { %v1618_v53 = vmul.f32 %v11897_v45, %v11896_v58  ;;  %v1619_v3 = vmul.f32 %v11899_v16, %v11898_v17  ;;  %v1620_v28 = vmul.f32 %v11901_v48, %v11900_v14  ;;  %v1621_v52 = vmul.f32 %v11903_v26, %v11902_v50  ;;  %v11910_v34 = vld [vmem:[#allocation38_spill] sm:$0xff]  ;;  %v11911_v23 = vld [vmem:[#allocation47_spill] sm:$0xff]  ;;  %v11913_v49 = vld [vmem:[#allocation5_spill] sm:$0xff] }
  0x89   : > { %v1622_v35 = vmul.f32 %v11905_v13, %v11904_v21  ;;  %v1623_v7 = vmul.f32 %v11907_v2, %v11906_v30  ;;  %v1624_v54 = vmul.f32 %v11909_v39, %v11908_v40  ;;  %v1625_v45 = vmul.f32 %v11910_v34, %v9005_v57  ;;  %vm11993_vm9 = vmmov %vm11968_vm0 }
  0x8a   : > { %v1630_v16 = vmul.f32 %v11911_v23, %v1610_v22  ;;  %v1631_v17 = vmul.f32 %v11911_v23, %v1611_v63  ;;  %v1632_v48 = vmul.f32 %v11911_v23, %v1612_v61  ;;  %v1633_v26 = vmul.f32 %v11911_v23, %v1613_v8 }
  0x8b   : > { %v1634_v50 = vmul.f32 %v11911_v23, %v1614_v19  ;;  %v1635_v13 = vmul.f32 %v11911_v23, %v1615_v1  ;;  %v1636_v2 = vmul.f32 %v11911_v23, %v1616_v44  ;;  %v1637_v30 = vmul.f32 %v11911_v23, %v1617_v38 }
  0x8c   : > { %v1638_v39 = vmul.f32 %v11911_v23, %v1618_v53  ;;  %v1639_v34 = vmul.f32 %v11911_v23, %v1619_v3  ;;  %v1640_v22 = vmul.f32 %v11911_v23, %v1620_v28  ;;  %v1641_v63 = vmul.f32 %v11911_v23, %v1621_v52 }
  0x8d   : > { %v1642_v61 = vmul.f32 %v11911_v23, %v1622_v35  ;;  %v1643_v8 = vmul.f32 %v11911_v23, %v1623_v7  ;;  %v1644_v19 = vmul.f32 %v11911_v23, %v1624_v54  ;;  %v1645_v1 = vmul.f32 %v11911_v23, %v1625_v45  ;;  %v11912_v54 = vld [vmem:[#allocation39_spill] sm:$0xff]  ;;  %v11924_v45 = vld [vmem:[#allocation49_spill] sm:$0xff] }
  0x8e   : > { %v1646_v57 = vadd.f32 %v1630_v16, %v1593_v43  ;;  %v1647_v44 = vadd.f32 %v1631_v17, %v1594_v12  ;;  %v1648_v40 = vadd.f32 %v1632_v48, %v1595_v0  ;;  %v1649_v38 = vadd.f32 %v1633_v26, %v1596_v36  ;;  %v11914_v43 = vld [vmem:[#allocation40_spill] sm:$0xff]  ;;  %v11915_v12 = vld [vmem:[#allocation6_spill] sm:$0xff]  ;;  %v11916_v36 = vld [vmem:[#allocation41_spill] sm:$0xff] }
  0x8f   : > { %v1650_v21 = vadd.f32 %v1634_v50, %v1597_v37  ;;  %v1651_v53 = vadd.f32 %v1635_v13, %v1598_v4  ;;  %v1652_v14 = vadd.f32 %v1636_v2, %v1599_v29  ;;  %v1653_v3 = vadd.f32 %v1637_v30, %v1600_v46  ;;  %v11917_v37 = vld [vmem:[#allocation7_spill] sm:$0xff]  ;;  %v1662_v29 = vld [vmem:[#allocation2 + $0x8f] sm:$0xff]  ;;  %v11927_v50 = vld [vmem:[#allocation12_spill] sm:$0xff] }
  0x90   : > { %v1654_v58 = vadd.f32 %v1638_v39, %v1601_v20  ;;  %v1655_v28 = vadd.f32 %v1639_v34, %v1602_v10  ;;  %v1656_v62 = vadd.f32 %v1640_v22, %v1603_v33  ;;  %v1657_v52 = vadd.f32 %v1641_v63, %v1604_v18  ;;  %v11918_v46 = vld [vmem:[#allocation42_spill] sm:$0xff]  ;;  %v11919_v20 = vld [vmem:[#allocation8_spill] sm:$0xff]  ;;  %v11920_v33 = vld [vmem:[#allocation43_spill] sm:$0xff] }
  0x91   : > { %v1658_v56 = vadd.f32 %v1642_v61, %v1605_v32  ;;  %v1659_v35 = vadd.f32 %v1643_v8, %v1606_v47  ;;  %v1660_v6 = vadd.f32 %v1644_v19, %v1607_v31  ;;  %v9049_v7 = vadd.f32 %v1645_v1, %v1608_v11  ;;  %v11921_v18 = vld [vmem:[#allocation9_spill] sm:$0xff]  ;;  %v11922_v47 = vld [vmem:[#allocation44_spill] sm:$0xff]  ;;  %v11923_v31 = vld [vmem:[#allocation10_spill] sm:$0xff] }
  0x92   : > { %v1663_v23 = vmul.f32 %v11913_v49, %v11912_v54  ;;  %v1664_v0 = vmul.f32 %v11915_v12, %v11914_v43  ;;  %v1665_v4 = vmul.f32 %v11917_v37, %v11916_v36  ;;  %v1666_v10 = vmul.f32 %v11919_v20, %v11918_v46  ;;  %v11925_v17 = vld [vmem:[#allocation11_spill] sm:$0xff]  ;;  %v11926_v48 = vld [vmem:[#allocation50_spill] sm:$0xff]  ;;  %v11929_v30 = vld [vmem:[#allocation13_spill] sm:$0xff] }
  0x93   : > { %v1667_v32 = vmul.f32 %v11921_v18, %v11920_v33  ;;  %v1668_v11 = vmul.f32 %v11923_v31, %v11922_v47  ;;  %v1669_v16 = vmul.f32 %v11925_v17, %v11924_v45  ;;  %v1670_v26 = vmul.f32 %v11927_v50, %v11926_v48  ;;  %v11928_v13 = vld [vmem:[#allocation51_spill] sm:$0xff]  ;;  %v11930_v39 = vld [vmem:[#allocation54_spill] sm:$0xff]  ;;  %v11934_v19 = vld [vmem:[#allocation56_spill] sm:$0xff] }
  0x94   : > { %v1671_v2 = vmul.f32 %v11929_v30, %v11928_v13  ;;  %v11931_v34 = vld [vmem:[#allocation14_spill] sm:$0xff]  ;;  %v11932_v63 = vld [vmem:[#allocation55_spill] sm:$0xff]  ;;  %v11935_v1 = vld [vmem:[#allocation16_spill] sm:$0xff] }
  0x95   : > { %v1672_v22 = vmul.f32 %v11931_v34, %v11930_v39  ;;  %v11933_v61 = vld [vmem:[#allocation15_spill] sm:$0xff]  ;;  %v1674_v54 = vmul.f32 %v11935_v1, %v11934_v19  ;;  %v11936_v43 = vld [vmem:[#allocation57_spill] sm:$0xff]  ;;  %v11939_v47 = vld [vmem:[#allocation18_spill] sm:$0xff] }
  0x96   : > { %v1673_v8 = vmul.f32 %v11933_v61, %v11932_v63  ;;  %v11937_v36 = vld [vmem:[#allocation17_spill] sm:$0xff]  ;;  %v11938_v33 = vld [vmem:[#allocation59_spill] sm:$0xff]  ;;  %v11942_v18 = vld [vmem:[#allocation20_spill] sm:$0xff] }
  0x97   : > { %v1675_v46 = vmul.f32 %v11937_v36, %v11936_v43  ;;  %v1676_v45 = vmul.f32 %v11939_v47, %v11938_v33  ;;  %v11940_v17 = vld [vmem:[#allocation83_spill] sm:$0xff]  ;;  %v1678_v13 = vmul.f32 %v11942_v18, %v1662_v29  ;;  %v11943_v30 = vld [vmem:[#allocation48_spill] sm:$0xff]  ;;  %v11946_v20 = vld [vmem:[#allocation62_spill] sm:$0xff] }
  0x98   : > { %v11941_v48 = vld [vmem:[#allocation19_spill] sm:$0xff]  ;;  %v1683_v31 = vmul.f32 %v11943_v30, %v1663_v23  ;;  %v1684_v39 = vmul.f32 %v11943_v30, %v1664_v0  ;;  %v1685_v63 = vmul.f32 %v11943_v30, %v1665_v4  ;;  %v1686_v61 = vmul.f32 %v11943_v30, %v1666_v10 }
  0x99   : > { %v1677_v50 = vmul.f32 %v11941_v48, %v11940_v17  ;;  %v1687_v19 = vmul.f32 %v11943_v30, %v1667_v32  ;;  %v1688_v43 = vmul.f32 %v11943_v30, %v1668_v11  ;;  %v1689_v36 = vmul.f32 %v11943_v30, %v1669_v16 }
  0x9a   : > { %v1690_v33 = vmul.f32 %v11943_v30, %v1670_v26  ;;  %v1691_v17 = vmul.f32 %v11943_v30, %v1671_v2  ;;  %v1692_v29 = vmul.f32 %v11943_v30, %v1672_v22  ;;  %v1693_v23 = vmul.f32 %v11943_v30, %v1673_v8  ;;  %v11944_v8 = vld [vmem:[#allocation52_spill] sm:$0xff] }
  0x9b   : > { %v1694_v0 = vmul.f32 %v11943_v30, %v1674_v54  ;;  %v1695_v4 = vmul.f32 %v11943_v30, %v1675_v46  ;;  %v1696_v10 = vmul.f32 %v11943_v30, %v1676_v45  ;;  %v1697_v32 = vmul.f32 %v11943_v30, %v1677_v50  ;;  %v11945_v54 = vld [vmem:[#allocation61_spill] sm:$0xff] }
  0x9c   : > { %v1698_v11 = vmul.f32 %v11943_v30, %v1678_v13  ;;  %v1699_v18 = vadd.f32 %v1683_v31, %v1646_v57  ;;  %v1700_v16 = vadd.f32 %v1684_v39, %v1647_v44  ;;  %v1701_v48 = vadd.f32 %v1685_v63, %v1648_v40  ;;  %v11950_v13 = vld [vmem:[#allocation66_spill] sm:$0xff]  ;;  %v11952_v39 = vld [vmem:[#allocation68_spill] sm:$0xff] }
  0x9d   : > { %v1702_v26 = vadd.f32 %v1686_v61, %v1649_v38  ;;  %v1703_v47 = vadd.f32 %v1687_v19, %v1650_v21  ;;  %v1704_v2 = vadd.f32 %v1688_v43, %v1651_v53  ;;  %v1705_v1 = vadd.f32 %v1689_v36, %v1652_v14  ;;  %v11953_v19 = vld [vmem:[#allocation27_spill] sm:$0xff] }
  0x9e   : > { %v1706_v22 = vadd.f32 %v1690_v33, %v1653_v3  ;;  %v1736_v34 = vmul.f32 %v11944_v8, %v11875_v42  ;;  %v1737_v46 = vmul.f32 %v11944_v8, %v11945_v54  ;;  %v1738_v45 = vmul.f32 %v11944_v8, %v11946_v20  ;;  %v9113_v42 = vld [vmem:[%s11787_s3 + $0x8] ss:$0 sm:$0xff] }
  0x9f   : > { %v1707_v50 = vadd.f32 %v1691_v17, %v1654_v58  ;;  %v1769_v57 = vmul.f32 %v11890_v55, %v8840_v60  ;;  %v1770_v40 = vmul.f32 %v8577_v24, %v8842_v51  ;;  %v1771_v14 = vmul.f32 %v8582_v25, %v8844_v9  ;;  %v11947_v60 = vld [vmem:[#allocation63_spill] sm:$0xff]  ;;  %v11948_v9 = vld [vmem:[#allocation64_spill] sm:$0xff] }
  0xa0   : > { %v1708_v21 = vadd.f32 %v1692_v29, %v1655_v28  ;;  %v1709_v44 = vadd.f32 %v1693_v23, %v1656_v62  ;;  %v1710_v38 = vadd.f32 %v1694_v0, %v1657_v52  ;;  %v1711_v53 = vadd.f32 %v1695_v4, %v1658_v56  ;;  %v11955_v29 = vld [vmem:[#allocation70_spill] sm:$0xff]  ;;  %v11956_v4 = vld [vmem:[#allocation75_spill] sm:$0xff] }
  0xa1   : > { %v9115_v3 = vadd.f32 %v1696_v10, %v1659_v35  ;;  %v9117_v58 = vadd.f32 %v1697_v32, %v1660_v6  ;;  %v1739_v20 = vmul.f32 %v11944_v8, %v11947_v60  ;;  %v1772_v51 = vmul.f32 %v8591_v41, %v8846_v59  ;;  %v11949_v35 = vld [vmem:[#allocation65_spill] sm:$0xff]  ;;  %v11957_v10 = vld [vmem:[#allocation28_spill] sm:$0xff]  ;;  %v11961_v60 = vld [vmem:[#allocation58_spill] sm:$0xff] }
  0xa2   : > { %v1740_v31 = vmul.f32 %v11944_v8, %v11948_v9  ;;  %v1752_v30 = vadd.f32 %v1736_v34, %v1699_v18  ;;  %v1753_v61 = vadd.f32 %v1737_v46, %v1700_v16  ;;  %v1754_v36 = vadd.f32 %v1738_v45, %v1701_v48  ;;  %v11951_v34 = vld [vmem:[#allocation67_spill] sm:$0xff]  ;;  %v11962_v9 = vld [vmem:[#allocation76_spill] sm:$0xff] }
  0xa3   : > { %v1773_v62 = vmul.f32 %v8596_v5, %v8848_v15  ;;  %v1789_v56 = vmul.f32 %v9113_v42, %v1769_v57  ;;  %v1790_v6 = vmul.f32 %v9113_v42, %v1770_v40  ;;  %v1791_v28 = vmul.f32 %v9113_v42, %v1771_v14  ;;  %v11958_v46 = vld [vmem:[#allocation71_spill] sm:$0xff]  ;;  %v11959_v57 = vld [vmem:[#allocation72_spill] sm:$0xff]  ;;  %v11960_v14 = vld [vmem:[#allocation73_spill] sm:$0xff] }
  0xa4   : > { %v9131_v52 = vadd.f32 %v1698_v11, %v9049_v7  ;;  %v1741_v59 = vmul.f32 %v11944_v8, %v11949_v35  ;;  %v1742_v18 = vmul.f32 %v11944_v8, %v11950_v13  ;;  %v1743_v48 = vmul.f32 %v11944_v8, %v11951_v34  ;;  %v11954_v7 = vld [vmem:[#allocation69_spill] sm:$0xff] }
  0xa5   : > { %v1744_v15 = vmul.f32 %v11944_v8, %v11952_v39  ;;  %v1755_v63 = vadd.f32 %v1739_v20, %v1702_v26  ;;  %v1774_v43 = vmul.f32 %v11953_v19, %v11892_v27  ;;  %v1792_v33 = vmul.f32 %v9113_v42, %v1772_v51  ;;  %v1715_v11 = vld [vmem:[#allocation2 + $0x90] sm:$0xff] }
  0xa6   : > { %v1745_v17 = vmul.f32 %v11944_v8, %v11954_v7  ;;  %v1746_v23 = vmul.f32 %v11944_v8, %v11955_v29  ;;  %v1756_v0 = vadd.f32 %v1740_v31, %v1703_v47  ;;  %v1775_v32 = vmul.f32 %v11957_v10, %v11956_v4  ;;  %v11963_v31 = vld [vmem:[#allocation29_spill] sm:$0xff] }
  0xa7   : > { %v1793_v16 = vmul.f32 %v9113_v42, %v1773_v62  ;;  %v9151_v54 = vadd.f32 %v1789_v56, %v1752_v30  ;;  %v9153_v26 = vadd.f32 %v1790_v6, %v1753_v61  ;;  %v9155_v27 = vadd.f32 %v1791_v28, %v1754_v36  ;;  %v11964_v6 = vld [vmem:[#allocation77_spill] sm:$0xff]  ;;  %v11965_v28 = vld [vmem:[#allocation30_spill] sm:$0xff] }
  0xa8   : > { %v1747_v45 = vmul.f32 %v11944_v8, %v11958_v46  ;;  %v1748_v40 = vmul.f32 %v11944_v8, %v11959_v57  ;;  %v1749_v47 = vmul.f32 %v11944_v8, %v11960_v14  ;;  %v9165_v20 = vmul.f32 %v11944_v8, %v11961_v60  ;;  %v11972_v57 = vld [vmem:[#allocation79_spill] sm:$0xff]  ;;  %v11973_v14 = vld [vmem:[#allocation32_spill] sm:$0xff] }
  0xa9   : > { %v1757_v51 = vadd.f32 %v1741_v59, %v1704_v2  ;;  %v1776_v30 = vmul.f32 %v11963_v31, %v11962_v9  ;;  %v1794_v61 = vmul.f32 %v9113_v42, %v1774_v43  ;;  %v9170_v36 = vadd.f32 %v1792_v33, %v1755_v63  ;;  %v11970_v33 = vld [vmem:[#allocation31_spill] sm:$0xff]  ;;  %v11978_v9 = vld [vmem:[#allocation81_spill] sm:$0xff] }
  0xaa   : > { %v9173_v62 = vmul.f32 %v11944_v8, %v1715_v11  ;;  %v1758_v56 = vadd.f32 %v1742_v18, %v1705_v1  ;;  %v1777_v35 = vmul.f32 %v11965_v28, %v11964_v6  ;;  %v1795_v13 = vmul.f32 %v9113_v42, %v1775_v32  ;;  %v11969_v18 = vld [vmem:[#allocation78_spill] sm:$0xff]  ;;  %v11981_v6 = vld [vmem:[#allocation36_spill] sm:$0xff] }
  0xab   : > { %v9178_v34 = vadd.f32 %v1793_v16, %v1756_v0  ;;  %v1821_v2 = vsel %vm11966_vm14, %v9151_v54, 0.0  ;;  %v1822_v59 = vsel %vm11967_vm15, %v9153_v26, 0.0  ;;  %v1824_v39 = vsel %vm11968_vm0, %v9155_v27, 0.0  ;;  %vm11994_vm14 = vmmov %vm11968_vm0 }
  0xac   : > { %v1759_v63 = vadd.f32 %v1743_v48, %v1706_v22  ;;  %v1760_v8 = vadd.f32 %v1744_v15, %v1707_v50  ;;  %v1761_v43 = vadd.f32 %v1745_v17, %v1708_v21  ;;  %v1823_v1 = vadd.f32 %v1822_v59, %v1821_v2  ;;  %vm11995_vm15 = vmmov %vm11968_vm0 }
  0xad   : > { %v1778_v7 = vmul.f32 %v11970_v33, %v11969_v18  ;;  %v1796_v29 = vmul.f32 %v9113_v42, %v1776_v30  ;;  %v9189_v0 = vadd.f32 %v1794_v61, %v1757_v51  ;;  %v1826_v4 = vsel %vm11971_vm1, %v9170_v36, 0.0  ;;  %v11979_v30 = vld [vmem:[#allocation34_spill] sm:$0xff]  ;;  %vm11997_vm1 = vmmov %vm11968_vm0 }
  0xae   : > { %v1762_v32 = vadd.f32 %v1746_v23, %v1709_v44  ;;  %v1763_v11 = vadd.f32 %v1747_v45, %v1710_v38  ;;  %v1764_v16 = vadd.f32 %v1748_v40, %v1711_v53  ;;  %v1825_v46 = vadd.f32 %v1824_v39, %v1823_v1  ;;  %v11975_v53 = vld [vmem:[#allocation80_spill] sm:$0xff]  ;;  %v11976_v23 = vld [vmem:[#allocation33_spill] sm:$0xff] }
  0xaf   : > { %v1779_v22 = vmul.f32 %v11973_v14, %v11972_v57  ;;  %v1797_v50 = vmul.f32 %v9113_v42, %v1777_v35  ;;  %v9196_v21 = vadd.f32 %v1795_v13, %v1758_v56  ;;  %v1828_v48 = vsel %vm11974_vm4, %v9178_v34, 0.0  ;;  %v11980_v56 = vld [vmem:[#allocation82_spill] sm:$0xff]  ;;  %vm11998_vm4 = vmmov %vm11968_vm0 }
  0xb0   : > { %v1827_v15 = vadd.f32 %v1826_v4, %v1825_v46  ;;  %v1859_v17 = vmul.f32 %v9151_v54, %v9151_v54  ;;  %v1860_v44 = vmul.f32 %v9153_v26, %v9153_v26  ;;  %v1861_v38 = vmul.f32 %v9155_v27, %v9155_v27 }
  0xb1   : > { %v1780_v45 = vmul.f32 %v11976_v23, %v11975_v53  ;;  %v1798_v40 = vmul.f32 %v9113_v42, %v1778_v7  ;;  %v9209_v60 = vadd.f32 %v1796_v29, %v1759_v63  ;;  %v1830_v51 = vsel %vm11977_vm5, %v9189_v0, 0.0  ;;  %vm11999_vm5 = vmmov %vm11968_vm0 }
  0xb2   : > { %v1781_v61 = vmul.f32 %v11979_v30, %v11978_v9  ;;  %v1782_v35 = vmul.f32 %v11981_v6, %v11980_v56  ;;  %v1829_v13 = vadd.f32 %v1828_v48, %v1827_v15  ;;  %v1862_v2 = vmul.f32 %v9170_v36, %v9170_v36  ;;  %v11988_v48 = vld [vmem:[#allocation37_spill] sm:$0xff] }
  0xb3   : > { %v1799_v59 = vmul.f32 %v9113_v42, %v1779_v22  ;;  %v9220_v39 = vadd.f32 %v1797_v50, %v1760_v8  ;;  %v1832_v63 = vsel %vm11982_vm6, %v9196_v21, 0.0  ;;  %v1863_v1 = vmul.f32 %v9178_v34, %v9178_v34  ;;  %v11987_v50 = vld [vmem:[#allocation45_spill] sm:$0xff]  ;;  %vm12000_vm6 = vmmov %vm11968_vm0 }
  0xb4   : > { %v1831_v18 = vadd.f32 %v1830_v51, %v1829_v13  ;;  %v1875_v7 = vsel %vm11983_vm7, %v1859_v17, 0.0  ;;  %v1876_v29 = vsel %vm11984_vm8, %v1860_v44, 0.0  ;;  %v1878_v4 = vsel %vm11985_vm10, %v1861_v38, 0.0  ;;  %vm12001_vm7 = vmmov %vm11968_vm0 }
  0xb5   : > { %v1800_v46 = vmul.f32 %v9113_v42, %v1780_v45  ;;  %v9230_v57 = vadd.f32 %v1798_v40, %v1761_v43  ;;  %v1834_v8 = vsel %vm11986_vm11, %v9209_v60, 0.0  ;;  %v1877_v22 = vadd.f32 %v1876_v29, %v1875_v7  ;;  %vm12002_vm8 = vmmov %vm11968_vm0 }
  0xb6   : > { %v1783_v15 = vmul.f32 %v11988_v48, %v11987_v50  ;;  %v1833_v53 = vadd.f32 %v1832_v63, %v1831_v18  ;;  %v1864_v51 = vmul.f32 %v9189_v0, %v9189_v0  ;;  %v1880_v17 = vsel %vm11989_vm12, %v1862_v2, 0.0  ;;  %vm12003_vm10 = vmmov %vm11968_vm0 }
  0xb7   : > { %v1801_v44 = vmul.f32 %v9113_v42, %v1781_v61  ;;  %v9240_v38 = vadd.f32 %v1799_v59, %v1762_v32  ;;  %v1836_v43 = vsel %vm11990_vm13, %v9220_v39, 0.0  ;;  %v1879_v45 = vadd.f32 %v1878_v4, %v1877_v22  ;;  %vm12004_vm11 = vmmov %vm11968_vm0 }
  0xb8   : > { %v1765_v40 = vadd.f32 %v1749_v47, %v9115_v3  ;;  %v1835_v9 = vadd.f32 %v1834_v8, %v1833_v53  ;;  %v1865_v56 = vmul.f32 %v9196_v21, %v9196_v21  ;;  %v1882_v13 = vsel %vm11991_vm2, %v1863_v1, 0.0  ;;  %vm12005_vm12 = vmmov %vm11968_vm0 }
  0xb9   : > { %v1802_v63 = vmul.f32 %v9113_v42, %v1782_v35  ;;  %v9249_v18 = vadd.f32 %v1800_v46, %v1763_v11  ;;  %v1838_v32 = vsel %vm11992_vm3, %v9230_v57, 0.0  ;;  %v1881_v61 = vadd.f32 %v1880_v17, %v1879_v45  ;;  %v11996_v46 = vld [vmem:[#allocation53_spill] sm:$0xff]  ;;  %vm12006_vm13 = vmmov %vm11968_vm0 }
  0xba   : > { %v1766_v2 = vadd.f32 %v9165_v20, %v9117_v58  ;;  %v1837_v59 = vadd.f32 %v1836_v43, %v1835_v9  ;;  %v1866_v3 = vmul.f32 %v9209_v60, %v9209_v60  ;;  %v1884_v47 = vsel %vm11993_vm9, %v1864_v51, 0.0  ;;  %vm12007_vm2 = vmmov %vm11968_vm0 }
  0xbb   : > { %v1803_v7 = vmul.f32 %v9113_v42, %v1783_v15  ;;  %v9259_v1 = vadd.f32 %v1801_v44, %v1764_v16  ;;  %v1840_v11 = vsel %vm11994_vm14, %v9240_v38, 0.0  ;;  %v1883_v35 = vadd.f32 %v1882_v13, %v1881_v61  ;;  %vm12008_vm3 = vmmov %vm11968_vm0 }
  0xbc   : > { %v1767_v29 = vadd.f32 %v9173_v62, %v9131_v52  ;;  %v1839_v4 = vadd.f32 %v1838_v32, %v1837_v59  ;;  %v1867_v58 = vmul.f32 %v9220_v39, %v9220_v39  ;;  %v1886_v20 = vsel %vm11995_vm15, %v1865_v56, 0.0  ;;  %vm12009_vm9 = vmmov %vm11968_vm0 }
  0xbd   : > { %v1804_v8 = vmul.f32 %v9113_v42, %v11996_v46  ;;  %v9270_v22 = vadd.f32 %v1802_v63, %v1765_v40  ;;  %v1842_v16 = vsel %vm11968_vm0, %v9249_v18, 0.0  ;;  %v1885_v50 = vadd.f32 %v1884_v47, %v1883_v35  ;;  %vm12012_vm14 = vmmov %vm11968_vm0 }
  0xbe   : > { %v1841_v15 = vadd.f32 %v1840_v11, %v1839_v4  ;;  %v1868_v53 = vmul.f32 %v9230_v57, %v9230_v57  ;;  %v1888_v52 = vsel %vm11997_vm1, %v1866_v3, 0.0  ;;  %v9277_v62 = vadd.f32 %v1803_v7, %v1766_v2  ;;  %vm12013_vm15 = vmmov %vm11968_vm0 }
  0xbf   : > { %v1844_v51 = vsel %vm11998_vm4, %v9259_v1, 0.0  ;;  %v1887_v17 = vadd.f32 %v1886_v20, %v1885_v50  ;;  %v1869_v42 = vmul.f32 %v9240_v38, %v9240_v38  ;;  %v1890_v43 = vsel %vm11999_vm5, %v1867_v58, 0.0  ;;  %vm12014_vm1 = vmmov %vm11968_vm0 }
  0xc0   : > { %v1843_v44 = vadd.f32 %v1842_v16, %v1841_v15  ;;  %v9284_v45 = vadd.f32 %v1804_v8, %v1767_v29  ;;  %v1846_v40 = vsel %vm12000_vm6, %v9270_v22, 0.0  ;;  %v1870_v13 = vmul.f32 %v9249_v18, %v9249_v18  ;;  %vm12015_vm4 = vmmov %vm11968_vm0 }
  0xc1   : > { %v1889_v9 = vadd.f32 %v1888_v52, %v1887_v17  ;;  %v1892_v63 = vsel %vm12001_vm7, %v1868_v53, 0.0  ;;  %v1848_v32 = vsel %vm12002_vm8, %v9277_v62, 0.0  ;;  %v1871_v59 = vmul.f32 %v9259_v1, %v9259_v1  ;;  %vm12016_vm5 = vmmov %vm11968_vm0 }
  0xc2   : > { %v1845_v56 = vadd.f32 %v1844_v51, %v1843_v44  ;;  %v1894_v3 = vsel %vm12003_vm10, %v1869_v42, 0.0  ;;  %v1850_v47 = vsel %vm12004_vm11, %v9284_v45, 0.0  ;;  %v1872_v35 = vmul.f32 %v9270_v22, %v9270_v22  ;;  %vm12017_vm6 = vmmov %vm11968_vm0 }
  0xc3   : > { %v1891_v61 = vadd.f32 %v1890_v43, %v1889_v9  ;;  %v1896_v29 = vsel %vm12005_vm12, %v1870_v13, 0.0  ;;  %v1873_v20 = vmul.f32 %v9277_v62, %v9277_v62  ;;  %v1898_v46 = vsel %vm12006_vm13, %v1871_v59, 0.0  ;;  %vm12018_vm7 = vmmov %vm11968_vm0 }
  0xc4   : > { %v1847_v2 = vadd.f32 %v1846_v40, %v1845_v56  ;;  %v1874_v50 = vmul.f32 %v9284_v45, %v9284_v45  ;;  %v1900_v15 = vsel %vm12007_vm2, %v1872_v35, 0.0  ;;  %vm12019_vm8 = vmmov %vm11968_vm0 }
  0xc5   : > { %v1893_v7 = vadd.f32 %v1892_v63, %v1891_v61  ;;  %v1902_v51 = vsel %vm12008_vm3, %v1873_v20, 0.0  ;;  %vm12020_vm10 = vmmov %vm11968_vm0 }
  0xc6   : > { %v1849_v11 = vadd.f32 %v1848_v32, %v1847_v2  ;;  %v1904_v42 = vsel %vm12009_vm9, %v1874_v50, 0.0  ;;  %vm12021_vm11 = vmmov %vm11968_vm0 }
  0xc7   : > { %v1895_v4 = vadd.f32 %v1894_v3, %v1893_v7  ;;  %vm12022_vm12 = vmmov %vm11968_vm0 }
  0xc8   : > { %v1851_v58 = vadd.f32 %v1850_v47, %v1849_v11  ;;  %vm12023_vm13 = vmmov %vm11968_vm0 }
  0xc9   : > { %v1897_v8 = vadd.f32 %v1896_v29, %v1895_v4  ;;  %vm12024_vm2 = vmmov %vm11968_vm0 }
  0xca   : > { %v1852_v16 = vrot.slane %v1851_v58, 4  ;;  %vm12025_vm3 = vmmov %vm11968_vm0 }
  0xcb   : > { %v1899_v53 = vadd.f32 %v1898_v46, %v1897_v8  ;;  %vm12026_vm9 = vmmov %vm11968_vm0 }
  0xcc   : > { %v1853_v52 = vadd.f32 %v1852_v16, %v1851_v58 }
  0xcd   : > { %v1901_v17 = vadd.f32 %v1900_v15, %v1899_v53 }
  0xce   : > { %v1854_v44 = vrot.slane %v1853_v52, 2 }
  0xcf   : > { %v1903_v43 = vadd.f32 %v1902_v51, %v1901_v17 }
  0xd0   : > { %v1855_v40 = vadd.f32 %v1854_v44, %v1853_v52 }
  0xd1   : > { %v1905_v9 = vadd.f32 %v1904_v42, %v1903_v43 }
  0xd2   : > { %v1856_v56 = vrot.slane %v1855_v40, 1 }
  0xd3   : > { %v1906_v13 = vrot.slane %v1905_v9, 4 }
  0xd4   : > { %v1857_v63 = vadd.f32 %v1856_v56, %v1855_v40 }
  0xd5   : > { %v1907_v32 = vadd.f32 %v1906_v13, %v1905_v9 }
  0xd6   : > { %v9309_v2 = vmul.f32 0.0078125, %v1857_v63 }
  0xd7   : > { %v1908_v61 = vrot.slane %v1907_v32, 2 }
  0xd8   : > { %v1913_v7 = vmul.f32 %v9309_v2, %v9309_v2  ;;  %v1916_v58 = vsub.f32 %v9151_v54, %v9309_v2  ;;  %v1917_v20 = vsub.f32 %v9153_v26, %v9309_v2  ;;  %v1918_v46 = vsub.f32 %v9155_v27, %v9309_v2 }
  0xd9   : > { %v1909_v59 = vadd.f32 %v1908_v61, %v1907_v32  ;;  %v1919_v8 = vsub.f32 %v9170_v36, %v9309_v2  ;;  %v1920_v16 = vsub.f32 %v9178_v34, %v9309_v2  ;;  %v1921_v15 = vsub.f32 %v9189_v0, %v9309_v2  ;;  %v6650_v36 = vld [vmem:[%s12010_s26] ss:$0 sm:$0xff] }
  0xda   : > { %v1922_v53 = vsub.f32 %v9196_v21, %v9309_v2  ;;  %v1923_v26 = vsub.f32 %v9209_v60, %v9309_v2  ;;  %v1924_v34 = vsub.f32 %v9220_v39, %v9309_v2  ;;  %v1925_v0 = vsub.f32 %v9230_v57, %v9309_v2  ;;  %v6651_v39 = vld [vmem:[%s12011_s21] ss:$0 sm:$0xff] }
  0xdb   : > { %v1910_v3 = vrot.slane %v1909_v59, 1  ;;  %v1926_v21 = vsub.f32 %v9240_v38, %v9309_v2  ;;  %v1927_v9 = vsub.f32 %v9249_v18, %v9309_v2  ;;  %v1928_v57 = vsub.f32 %v9259_v1, %v9309_v2 }
  0xdc   : > { %v1929_v38 = vsub.f32 %v9270_v22, %v9309_v2  ;;  %v1930_v61 = vsub.f32 %v9277_v62, %v9309_v2  ;;  %v1931_v1 = vsub.f32 %v9284_v45, %v9309_v2 }
  0xdd   : > { %v1911_v47 = vadd.f32 %v1910_v3, %v1909_v59 }
  0xdf   : > { %v1912_v11 = vmul.f32 0.0078125, %v1911_v47 }
  0xe1   : > { %v1914_v35 = vsub.f32 %v1912_v11, %v1913_v7 }
  0xe3   : > { %v1915_v29 = vmax.f32 %v1914_v35, 0.0 }
  0xe5   : > { %v1932_v4 = vadd.f32 1e-05, %v1915_v29 }
  0xe7   : > { %7915 = vrsqrt.f32 %v1932_v4 }
  0xf1   : > { %v7916_v50 = vpop.eup %7915 }
  0xf2   : > { %v1934_v54 = vmul.f32 %v7916_v50, %v1916_v58  ;;  %v1935_v52 = vmul.f32 %v7916_v50, %v1917_v20  ;;  %v1936_v51 = vmul.f32 %v7916_v50, %v1918_v46  ;;  %v1937_v27 = vmul.f32 %v7916_v50, %v1919_v8 }
  0xf3   : > { %v1938_v17 = vmul.f32 %v7916_v50, %v1920_v16  ;;  %v1939_v44 = vmul.f32 %v7916_v50, %v1921_v15  ;;  %v1940_v42 = vmul.f32 %v7916_v50, %v1922_v53  ;;  %v1941_v56 = vmul.f32 %v7916_v50, %v1923_v26 }
  0xf4   : > { %v1957_v43 = vmul.f32 %v6650_v36, %v1934_v54  ;;  %v1958_v40 = vmul.f32 %v6650_v36, %v1935_v52  ;;  %v1959_v60 = vmul.f32 %v6650_v36, %v1936_v51  ;;  %v1960_v13 = vmul.f32 %v6650_v36, %v1937_v27 }
  0xf5   : > { %v1942_v63 = vmul.f32 %v7916_v50, %v1924_v34  ;;  %v1961_v32 = vmul.f32 %v6650_v36, %v1938_v17  ;;  %v1943_v59 = vmul.f32 %v7916_v50, %v1925_v0  ;;  %v1944_v3 = vmul.f32 %v7916_v50, %v1926_v21 }
  0xf6   : > { %v1962_v18 = vmul.f32 %v6650_v36, %v1939_v44  ;;  %v1963_v47 = vmul.f32 %v6650_v36, %v1940_v42  ;;  %v9349_v7 = vadd.f32 %v6651_v39, %v1957_v43  ;;  %v9351_v11 = vadd.f32 %v6651_v39, %v1958_v40 }
  0xf7   : > { %v9353_v35 = vadd.f32 %v6651_v39, %v1959_v60  ;;  %v1945_v29 = vmul.f32 %v7916_v50, %v1927_v9  ;;  %v1964_v22 = vmul.f32 %v6650_v36, %v1941_v56  ;;  %v9357_v4 = vadd.f32 %v6651_v39, %v1960_v13 }
  0xf8   : > { %v1946_v58 = vmul.f32 %v7916_v50, %v1928_v57  ;;  %v1947_v20 = vmul.f32 %v7916_v50, %v1929_v38  ;;  %v1965_v62 = vmul.f32 %v6650_v36, %v1942_v63  ;;  %v9359_v46 = vadd.f32 %v6651_v39, %v1961_v32 }
  0xf9   : > { %v1948_v8 = vmul.f32 %v7916_v50, %v1930_v61  ;;  %v1966_v16 = vmul.f32 %v6650_v36, %v1943_v59  ;;  %v1967_v15 = vmul.f32 %v6650_v36, %v1944_v3  ;;  %v9361_v53 = vadd.f32 %v6651_v39, %v1962_v18 }
  0xfa   : > { %v9363_v54 = vadd.f32 %v6651_v39, %v1963_v47  ;;  %v6652_v52 = vmul.f32 -1.442695, %v9349_v7  ;;  %v6653_v45 = vmul.f32 -1.442695, %v9351_v11  ;;  %v6654_v2 = vmul.f32 -1.442695, %v9353_v35 }
  0xfb   : > { %v1949_v51 = vmul.f32 %v7916_v50, %v1931_v1  ;;  %v1968_v26 = vmul.f32 %v6650_v36, %v1945_v29  ;;  %v9368_v27 = vadd.f32 %v6651_v39, %v1964_v22  ;;  %v6655_v34 = vmul.f32 -1.442695, %v9357_v4 }
  0xfc   : > { %v1969_v17 = vmul.f32 %v6650_v36, %v1946_v58  ;;  %v9371_v0 = vadd.f32 %v6651_v39, %v1965_v62  ;;  %7917 = vpow2.f32 %v6652_v52  ;;  %v6656_v21 = vmul.f32 -1.442695, %v9359_v46 }
  0xfd   : > { %v1970_v44 = vmul.f32 %v6650_v36, %v1947_v20  ;;  %v9374_v42 = vadd.f32 %v6651_v39, %v1966_v16  ;;  %7919 = vpow2.f32 %v6653_v45  ;;  %v6657_v43 = vmul.f32 -1.442695, %v9361_v53 }
  0xfe   : > { %v1971_v40 = vmul.f32 %v6650_v36, %v1948_v8  ;;  %v9377_v60 = vadd.f32 %v6651_v39, %v1967_v15  ;;  %7921 = vpow2.f32 %v6654_v2  ;;  %v6658_v50 = vmul.f32 -1.442695, %v9363_v54 }
  0xff   : > { %v1972_v9 = vmul.f32 %v6650_v36, %v1949_v51  ;;  %v9380_v56 = vadd.f32 %v6651_v39, %v1968_v26  ;;  %7923 = vpow2.f32 %v6655_v34  ;;  %v6659_v13 = vmul.f32 -1.442695, %v9368_v27 }
 0x100   : > { %v9383_v57 = vadd.f32 %v6651_v39, %v1969_v17  ;;  %7925 = vpow2.f32 %v6656_v21  ;;  %v6660_v38 = vmul.f32 -1.442695, %v9371_v0  ;;  %v9386_v63 = vadd.f32 %v6651_v39, %v1970_v44 }
 0x101   : > { %7927 = vpow2.f32 %v6657_v43  ;;  %v6661_v32 = vmul.f32 -1.442695, %v9374_v42  ;;  %v9389_v61 = vadd.f32 %v6651_v39, %v1971_v40  ;;  %v6662_v36 = vmul.f32 -1.442695, %v9377_v60 }
 0x102   : > { %7929 = vpow2.f32 %v6658_v50  ;;  %v9392_v59 = vadd.f32 %v6651_v39, %v1972_v9  ;;  %v6663_v3 = vmul.f32 -1.442695, %v9380_v56  ;;  %v6664_v18 = vmul.f32 -1.442695, %v9383_v57 }
 0x103   : > { %7931 = vpow2.f32 %v6659_v13  ;;  %v6665_v47 = vmul.f32 -1.442695, %v9386_v63  ;;  %v6666_v29 = vmul.f32 -1.442695, %v9389_v61 }
 0x104   : > { %7933 = vpow2.f32 %v6660_v38  ;;  %v6667_v58 = vmul.f32 -1.442695, %v9392_v59 }
 0x105   : > { %7935 = vpow2.f32 %v6661_v32 }
 0x106   : > { %v7918_v1 = vpop.eup %7917  ;;  %7937 = vpow2.f32 %v6662_v36 }
 0x107   : > { %v7920_v22 = vpop.eup %7919  ;;  %7939 = vpow2.f32 %v6663_v3  ;;  %v2044_v39 = vadd.f32 1.0, %v7918_v1 }
 0x108   : > { %v7922_v20 = vpop.eup %7921  ;;  %7941 = vpow2.f32 %v6664_v18  ;;  %v2045_v8 = vadd.f32 1.0, %v7920_v22 }
 0x109   : > { %v7924_v62 = vpop.eup %7923  ;;  %7943 = vpow2.f32 %v6665_v47  ;;  %v2046_v15 = vadd.f32 1.0, %v7922_v20 }
 0x10a   : > { %v7926_v16 = vpop.eup %7925  ;;  %7945 = vpow2.f32 %v6666_v29  ;;  %v2047_v45 = vadd.f32 1.0, %v7924_v62 }
 0x10b   : > { %v7928_v52 = vpop.eup %7927  ;;  %7947 = vpow2.f32 %v6667_v58  ;;  %v2048_v51 = vadd.f32 1.0, %v7926_v16 }
 0x10c   : > { %v7930_v2 = vpop.eup %7929  ;;  %7949 = vrcp.f32 %v2044_v39  ;;  %v2049_v34 = vadd.f32 1.0, %v7928_v52 }
 0x10d   : > { %v7932_v26 = vpop.eup %7931  ;;  %7951 = vrcp.f32 %v2045_v8  ;;  %v2050_v21 = vadd.f32 1.0, %v7930_v2 }
 0x10e   : > { %v7934_v17 = vpop.eup %7933  ;;  %7953 = vrcp.f32 %v2046_v15  ;;  %v2051_v43 = vadd.f32 1.0, %v7932_v26 }
 0x10f   : > { %v7936_v44 = vpop.eup %7935  ;;  %7955 = vrcp.f32 %v2047_v45  ;;  %v2052_v9 = vadd.f32 1.0, %v7934_v17 }
 0x110   : > { %v7938_v40 = vpop.eup %7937  ;;  %7957 = vrcp.f32 %v2048_v51  ;;  %v2053_v32 = vadd.f32 1.0, %v7936_v44 }
 0x111   : > { %v7940_v50 = vpop.eup %7939  ;;  %7959 = vrcp.f32 %v2049_v34  ;;  %v2054_v18 = vadd.f32 1.0, %v7938_v40 }
 0x112   : > { %v7942_v13 = vpop.eup %7941  ;;  %7961 = vrcp.f32 %v2050_v21  ;;  %v2055_v29 = vadd.f32 1.0, %v7940_v50 }
 0x113   : > { %v7944_v38 = vpop.eup %7943  ;;  %7963 = vrcp.f32 %v2051_v43  ;;  %v2056_v62 = vadd.f32 1.0, %v7942_v13 }
 0x114   : > { %v7946_v36 = vpop.eup %7945  ;;  %7965 = vrcp.f32 %v2052_v9  ;;  %v2057_v52 = vadd.f32 1.0, %v7944_v38 }
 0x115   : > { %v7948_v3 = vpop.eup %7947  ;;  %7967 = vrcp.f32 %v2053_v32  ;;  %v2058_v21 = vadd.f32 1.0, %v7946_v36 }
 0x116   : > { %v7950_v47 = vpop.eup %7949  ;;  %7969 = vrcp.f32 %v2054_v18  ;;  %v2059_v50 = vadd.f32 1.0, %v7948_v3 }
 0x117   : > { %v7952_v1 = vpop.eup %7951  ;;  %v9400_v22 = vmul.f32 %v7950_v47, %v9349_v7  ;;  %7971 = vrcp.f32 %v2055_v29 }
 0x118   : > { %v7954_v58 = vpop.eup %7953  ;;  %v9403_v20 = vmul.f32 %v7952_v1, %v9351_v11  ;;  %7973 = vrcp.f32 %v2056_v62 }
 0x119   : > { %v7956_v39 = vpop.eup %7955  ;;  %v9406_v8 = vmul.f32 %v7954_v58, %v9353_v35  ;;  %v2108_v16 = vsel %vm12012_vm14, %v9400_v22, 0.0  ;;  %7975 = vrcp.f32 %v2057_v52  ;;  %vm12027_vm14 = vmmov %vm11968_vm0 }
 0x11a   : > { %v7958_v15 = vpop.eup %7957  ;;  %v9411_v45 = vmul.f32 %v7956_v39, %v9357_v4  ;;  %v2109_v7 = vsel %vm12013_vm15, %v9403_v20, 0.0  ;;  %7977 = vrcp.f32 %v2058_v21  ;;  %vm12029_vm15 = vmmov 0  }
 0x11b   : > { %v7960_v2 = vpop.eup %7959  ;;  %v9416_v11 = vmul.f32 %v7958_v15, %v9359_v46  ;;  %v2110_v51 = vadd.f32 %v2109_v7, %v2108_v16  ;;  %v2111_v35 = vsel %vm11968_vm0, %v9406_v8, 0.0  ;;  %7979 = vrcp.f32 %v2059_v50 }
 0x11c   : > { %v7962_v26 = vpop.eup %7961  ;;  %v9421_v34 = vmul.f32 %v7960_v2, %v9361_v53  ;;  %v2113_v4 = vsel %vm12014_vm1, %v9411_v45, 0.0  ;;  %vm2237_vm0 = vcmask 1041408   ;;  %vm2233_vm1 = vcmask 15360  }
 0x11d   : > { %v7964_v17 = vpop.eup %7963  ;;  %v2112_v44 = vadd.f32 %v2111_v35, %v2110_v51  ;;  %v9426_v43 = vmul.f32 %v7962_v26, %v9363_v54  ;;  %v2115_v46 = vsel %vm12015_vm4, %v9416_v11, 0.0  ;;  %vm12034_vm4 = vmmov %vm12024_vm2 }
 0x11e   : > { %v7966_v40 = vpop.eup %7965  ;;  %v9431_v53 = vmul.f32 %v7964_v17, %v9368_v27  ;;  %v2117_v13 = vsel %vm12016_vm5, %v9421_v34, 0.0  ;;  %vm12035_vm5 = vmmov %vm12024_vm2 }
 0x11f   : > { %v2114_v9 = vadd.f32 %v2113_v4, %v2112_v44  ;;  %v7968_v38 = vpop.eup %7967  ;;  %v9436_v36 = vmul.f32 %v7966_v40, %v9371_v0  ;;  %v2119_v54 = vsel %vm12017_vm6, %v9426_v43, 0.0  ;;  %vm12036_vm6 = vmmov %vm12024_vm2 }
 0x120   : > { %v7970_v18 = vpop.eup %7969  ;;  %v9441_v47 = vmul.f32 %v7968_v38, %v9374_v42  ;;  %v2121_v27 = vsel %vm12018_vm7, %v9431_v53, 0.0  ;;  %vm12037_vm7 = vmmov %vm12024_vm2 }
 0x121   : > { %v2116_v32 = vadd.f32 %v2115_v46, %v2114_v9  ;;  %v7972_v1 = vpop.eup %7971  ;;  %v9446_v58 = vmul.f32 %v7970_v18, %v9377_v60  ;;  %v2123_v0 = vsel %vm12019_vm8, %v9436_v36, 0.0  ;;  %vm12038_vm8 = vmmov %vm12024_vm2 }
 0x122   : > { %v7974_v39 = vpop.eup %7973  ;;  %v9451_v16 = vmul.f32 %v7972_v1, %v9380_v56  ;;  %v2125_v42 = vsel %vm12020_vm10, %v9441_v47, 0.0  ;;  %v12028_v1 = vmov 0.0   ;;  %vm12039_vm10 = vmmov %vm12024_vm2 }
 0x123   : > { %v2118_v3 = vadd.f32 %v2117_v13, %v2116_v32  ;;  %v7976_v15 = vpop.eup %7975  ;;  %v9456_v7 = vmul.f32 %v7974_v39, %v9383_v57  ;;  %v2127_v60 = vsel %vm12021_vm11, %v9446_v58, 0.0  ;;  %vm12040_vm11 = vmmov %vm12024_vm2 }
 0x124   : > { %v7978_v2 = vpop.eup %7977  ;;  %v9461_v35 = vmul.f32 %v7976_v15, %v9386_v63  ;;  %v2129_v56 = vsel %vm12022_vm12, %v9451_v16, 0.0  ;;  %vm12041_vm12 = vmmov %vm12024_vm2 }
 0x125   : > { %v2120_v29 = vadd.f32 %v2119_v54, %v2118_v3  ;;  %v7980_v26 = vpop.eup %7979  ;;  %v9466_v17 = vmul.f32 %v7978_v2, %v9389_v61  ;;  %v2131_v57 = vsel %vm12023_vm13, %v9456_v7, 0.0  ;;  %vm12042_vm13 = vmmov %vm12024_vm2 }
 0x126   : > { %v9471_v44 = vmul.f32 %v7980_v26, %v9392_v59  ;;  %v2133_v46 = vsel %vm12024_vm2, %v9461_v35, 0.0  ;;  %v2338_v26 = vld [vmem:[%s11433_s9 + $0x8] sm:$0xff] }
 0x127   : > { %v2122_v62 = vadd.f32 %v2121_v27, %v2120_v29  ;;  %v2135_v40 = vsel %vm12025_vm3, %v9466_v17, 0.0  ;;  %v2231_v29 = vld [vmem:[%s12030_s30] sm:$0x3]  ;;  %vm12043_vm3 = vmmov %vm12024_vm2 }
 0x128   : > { %v2137_v9 = vsel %vm12026_vm9, %v9471_v44, 0.0  ;;  %7187 = vmatpush3.msk.msra.mxu1 %vm2237_vm0, %v2231_v29  ;;  %vm12044_vm9 = vmmov %vm12024_vm2 }
 0x129   : > { %v2124_v52 = vadd.f32 %v2123_v0, %v2122_v62  ;;  %v2150_v0 = vld [vmem:[%s12031_s1] sm:$0x1]  ;;  %s12032_s1 = sld [smem:[#allocation101_spill]] }
 0x12b   : > { %v2126_v51 = vadd.f32 %v2125_v42, %v2124_v52 }
 0x12d   : > { %v2128_v4 = vadd.f32 %v2127_v60, %v2126_v51 }
 0x12f   : > { %v2130_v21 = vadd.f32 %v2129_v56, %v2128_v4  ;;  %v2337_v56 = vld [vmem:[%s11433_s9] sm:$0xff] }
 0x130   : > { %v7635_v4 = vpack.c.bf16 %v2338_v26, %v2337_v56 }
 0x131   : > { %v2132_v63 = vadd.f32 %v2131_v57, %v2130_v21  ;;  %v2339_v57 = vld [vmem:[%s11433_s9 + $0x10] sm:$0xff]  ;;  %v2340_v21 = vld [vmem:[%s11433_s9 + $0x18] sm:$0xff] }
 0x132   : > { %7636 = vmatprep.subr.bf16.mxu1 %v7635_v4 }
 0x133   : > { %v2134_v50 = vadd.f32 %v2133_v46, %v2132_v63  ;;  %v7639_v46 = vpack.c.bf16 %v2340_v21, %v2339_v57  ;;  %v2232_v63 = vld [vmem:[%s12032_s1] sm:$0x1]  ;;  %s11370_s1 = scalar_lea.vmem %s11448_s24, %s6899_s4 }
 0x134   : > { %v2557_v21 = vld [vmem:[%s11435_s11] sm:$0xff] }
 0x135   : > { %v2136_v61 = vadd.f32 %v2135_v40, %v2134_v50 }
 0x137   : > { %v2138_v13 = vadd.f32 %v2137_v9, %v2136_v61 }
 0x139   : > { %v2139_v38 = vrot.slane %v2138_v13, 4 }
 0x13b   : > { %v2140_v32 = vadd.f32 %v2139_v38, %v2138_v13 }
 0x13d   : > { %v2141_v54 = vrot.slane %v2140_v32, 2 }
 0x13f   : > { %v2142_v18 = vadd.f32 %v2141_v54, %v2140_v32  ;;  %v12033_v54 = vld [vmem:[#allocation24_spill] sm:$0xff] }
 0x141   : > { %v2143_v3 = vrot.slane %v2142_v18, 1 }
 0x143   : > { %v2144_v59 = vadd.f32 %v2143_v3, %v2142_v18 }
 0x145   : > { %v2145_v27 = vmul.f32 0.0078125, %v2144_v59 }
 0x147   : > { %7184 = vmatmul.mubr.msk.f32.vlgmr.msra.gmra.mrb[0].mxu0 %vm12027_vm14, %v2145_v27  ;;  %vm12045_vm14 = vmmov %vm12024_vm2 }
 0x148   : > { %7231 = vmatprep.mubr.msk.f32.mxu0 %vm12029_vm15, %v12028_v1 }
 0x21a   : > { %v2220_v39 = vpop.f32.mrb[0].mxu0 }
 0x21b   : > { %v2221_v62 = vadd.f32 %v2220_v39, %v2150_v0  ;;  %v7185_v42 = vpop.f32.mrb[1].mxu0 }
 0x21c   : > { %v9555_v42 = vld [vmem:[%s11434_s10] ss:$0 sm:$0xff] }
 0x21d   : > { %v6669_v15 = vmul.f32 -1.442695, %v2221_v62 }
 0x21f   : > { %7981 = vpow2.f32 %v6669_v15 }
 0x229   : > { %v7982_v52 = vpop.eup %7981 }
 0x22a   : > { %v2227_v60 = vadd.f32 1.0, %v7982_v52 }
 0x22c   : > { %7983 = vrcp.f32 %v2227_v60 }
 0x236   : > { %v7984_v2 = vpop.eup %7983 }
 0x237   : > { %v2230_v51 = vmul.f32 %v7984_v2, %v2221_v62  ;;  %v12049_v62 = vmov 0.0|0.0  }
 0x239   : > { %7189 = vmatmul.mubr.msk.f32.vlgmr.msra.gmra.mrb[0].mxu1 %vm2233_vm1, %v2230_v51 }
 0x23a   : > { %7638 = vmatpush3.bf16.msra.mxu1 %v7635_v4 }
 0x23b   : > { %7640 = vmatprep.subr.bf16.mxu1 %v7639_v46 }
 0x23e   : > { %7642 = vmatpush3.bf16.msra.mxu1 %v7639_v46  ;;  %v2559_v46 = vld [vmem:[#allocation2 + $0x7] sm:$0xff] }
 0x30c   : > { %v2307_v40 = vpop.f32.mrb[0].mxu1 }
 0x30d   : > { %v2308_v50 = vadd.f32 %v2307_v40, %v2232_v63  ;;  %v7190_v9 = vpop.f32.mrb[1].mxu1 }
 0x30e   : > { %v12055_v9 = vld [vmem:[#allocation4_spill] sm:$0xff] }
 0x30f   : > { %v6672_v61 = vmul.f32 -1.442695, %v2308_v50 }
 0x311   : > { %7985 = vpow2.f32 %v6672_v61  ;;  %v12056_v61 = vsub.s32 1, %v12055_v9 }
 0x31b   : > { %v7986_v13 = vpop.eup %7985 }
 0x31c   : > { %v2314_v38 = vadd.f32 1.0, %v7986_v13  ;;  %v9573_v13 = vrot.slane %v2557_v21, %v12056_v61 }
 0x31e   : > { %7987 = vrcp.f32 %v2314_v38  ;;  %v2575_v38 = vmul.f32 %v11913_v49, %v2559_v46 }
 0x328   : > { %v7988_v32 = vpop.eup %7987 }
 0x329   : > { %v2320_v18 = vrot.slane %v7988_v32, %v12033_v54  ;;  %v9577_v32 = vrot.slane %v2557_v21, %v12033_v54 }
 0x32b   : > { %v2321_v3 = vmul.f32 %v2320_v18, %v9400_v22  ;;  %v2322_v59 = vmul.f32 %v2320_v18, %v9403_v20  ;;  %v2323_v27 = vmul.f32 %v2320_v18, %v9406_v8  ;;  %v2324_v29 = vmul.f32 %v2320_v18, %v9411_v45 }
 0x32c   : > { %v2325_v0 = vmul.f32 %v2320_v18, %v9416_v11  ;;  %v2326_v22 = vmul.f32 %v2320_v18, %v9421_v34  ;;  %v2327_v20 = vmul.f32 %v2320_v18, %v9426_v43  ;;  %v2328_v8 = vmul.f32 %v2320_v18, %v9431_v53 }
 0x32d   : > { %7199 = vmatprep.mubr.msk.f32.mxu1 %vm12034_vm4, %v2321_v3  ;;  %v2329_v39 = vmul.f32 %v2320_v18, %v9436_v36  ;;  %v2330_v45 = vmul.f32 %v2320_v18, %v9441_v47  ;;  %v2331_v11 = vmul.f32 %v2320_v18, %v9446_v58  ;;  %v2332_v34 = vmul.f32 %v2320_v18, %v9451_v16  ;;  %vm12046_vm4 = vmmov %vm12024_vm2  ;;  %v3406_v58 = vld [vmem:[%s11438_s14] sm:$0xff]  ;;  %v3407_v16 = vld [vmem:[%s11438_s14 + $0x8] sm:$0xff] }
 0x32e   : > { %7200 = vmatmul.mubr.msk.f32.vlgmr.msra.gmra.mrb[2].mxu1 %vm12035_vm5, %v2322_v59  ;;  %v2333_v43 = vmul.f32 %v2320_v18, %v9456_v7  ;;  %v2334_v53 = vmul.f32 %v2320_v18, %v9461_v35  ;;  %v2335_v36 = vmul.f32 %v2320_v18, %v9466_v17  ;;  %vm12047_vm5 = vmmov %vm12024_vm2  ;;  %v2336_v47 = vmul.f32 %v2320_v18, %v9471_v44  ;;  %v3408_v7 = vld [vmem:[%s11438_s14 + $0x10] sm:$0xff]  ;;  %v3409_v17 = vld [vmem:[%s11438_s14 + $0x18] sm:$0xff] }
 0x32f   : > { %7202 = vmatprep.mubr.msk.f32.mxu1 %vm12036_vm6, %v2323_v27  ;;  %vm12048_vm6 = vmmov %vm12024_vm2  ;;  %v7644_v35 = vpack.c.bf16 %v3407_v16, %v3406_v58  ;;  %v7647_v44 = vpack.c.bf16 %v3409_v17, %v3408_v7  ;;  %v2627_v3 = vld [vmem:[#allocation2 + $0x8] sm:$0xff]  ;;  %v3028_v27 = vld [vmem:[#allocation2 + $0x91] sm:$0xff]  ;;  %v12062_v58 = vsub.s32 7, %v12055_v9  ;;  %v12065_v17 = vsub.s32 4, %v12055_v9 }
 0x331   : > { %7645 = vmatpush3.bf16.msra.mxu0 %v7644_v35  ;;  %v9593_v16 = vrot.slane %v2557_v21, %v12062_v58 }
 0x332   : > { %7203 = vmatmul.mubr.msk.f32.gmra.mrb[4].mxu1 %vm12037_vm7, %v2324_v29  ;;  %7646 = vmatprep.subr.bf16.mxu0 %v12049_v62  ;;  %vm12050_vm7 = vmmov %vm12024_vm2  ;;  %v12067_v62 = vsub.s32 5, %v12055_v9 }
 0x333   : > { %7205 = vmatprep.mubr.msk.f32.mxu1 %vm12038_vm8, %v2325_v0  ;;  %vm12051_vm8 = vmmov %vm12024_vm2  ;;  %v2595_v0 = vmul.f32 %v9577_v32, %v2575_v38  ;;  %12063 = vst [vmem:[#allocation46_spill] sm:$0xff] %v9593_v16 }
 0x335   : > { %7648 = vmatpush3.bf16.msra.mxu0 %v7647_v44  ;;  %v9600_v44 = vrot.slane %v2557_v21, %v12065_v17  ;;  %v12083_v17 = vld [vmem:[#allocation8_spill] sm:$0xff] }
 0x336   : > { %7206 = vmatmul.mubr.msk.f32.gmra.mrb[6].mxu1 %vm12039_vm10, %v2326_v22  ;;  %7234 = vmatprep.subr.mxu0 %v12028_v1  ;;  %vm12052_vm10 = vmmov %vm12024_vm2  ;;  %v2663_v22 = vmul.f32 %v9573_v13, %v2627_v3 }
 0x337   : > { %7208 = vmatprep.mubr.msk.f32.mxu1 %vm12040_vm11, %v2327_v20  ;;  %vm12053_vm11 = vmmov %vm12024_vm2  ;;  %12066 = vst [vmem:[#allocation74_spill] sm:$0xff] %v9600_v44 }
 0x33a   : > { %7209 = vmatmul.mubr.msk.f32.gmra.mrb[8].mxu1 %vm12041_vm12, %v2328_v8  ;;  %vm12054_vm12 = vmmov %vm12024_vm2 }
 0x33b   : > { %7211 = vmatprep.mubr.msk.f32.mxu1 %vm12042_vm13, %v2329_v39  ;;  %vm12057_vm13 = vmmov %vm12024_vm2 }
 0x33e   : > { %7212 = vmatmul.mubr.msk.f32.gmra.mrb[10].mxu1 %vm12024_vm2, %v2330_v45  ;;  %v2975_v45 = vld [vmem:[#allocation2 + $0x90] sm:$0xff] }
 0x33f   : > { %7214 = vmatprep.mubr.msk.f32.mxu1 %vm12043_vm3, %v2331_v11  ;;  %v12058_v11 = vld [vmem:[#allocation38_spill] sm:$0xff]  ;;  %vm12076_vm3 = vmmov %vm12024_vm2 }
 0x342   : > { %7215 = vmatmul.mubr.msk.f32.gmra.mrb[12].mxu1 %vm12044_vm9, %v2332_v34  ;;  %v3044_v34 = vmul.f32 %v12058_v11, %v3028_v27  ;;  %vm12079_vm9 = vmmov %vm12024_vm2 }
 0x343   : > { %7217 = vmatprep.mubr.msk.f32.mxu1 %vm12045_vm14, %v2333_v43  ;;  %v12059_v43 = vsub.s32 2, %v12055_v9  ;;  %vm12080_vm14 = vmmov %vm12024_vm2 }
 0x346   : > { %7218 = vmatmul.mubr.msk.f32.gmra.mrb[14].mxu1 %vm12046_vm4, %v2334_v53  ;;  %v9585_v53 = vrot.slane %v2557_v21, %v12059_v43  ;;  %vm12085_vm4 = vmmov %vm12024_vm2 }
 0x347   : > { %7220 = vmatprep.mubr.msk.f32.mxu1 %vm12047_vm5, %v2335_v36  ;;  %v12060_v36 = vsub.s32 3, %v12055_v9  ;;  %vm12086_vm5 = vmmov %vm12024_vm2 }
 0x34a   : > { %7221 = vmatmul.mubr.msk.f32.gmra.mrb[16].mxu1 %vm12048_vm6, %v2336_v47  ;;  %v9589_v47 = vrot.slane %v2557_v21, %v12060_v36  ;;  %vm12094_vm6 = vmmov %vm12024_vm2 }
 0x34c   : > { %12061 = vst [vmem:[#allocation35_spill] sm:$0xff] %v9589_v47 }
 0x401   : > { %v7201_v15 = vpop.f32.mrb[2].mxu1 }
 0x402   : > { %v2468_v52 = vadd.f32 %v7201_v15, %v9555_v42  ;;  %v2462_v60 = vpop.f32.mrb[3].mxu1  ;;  %v9604_v15 = vrot.slane %v2557_v21, %v12067_v62 }
 0x403   : > { %v2463_v2 = vadd.f32 %v9555_v42, %v2462_v60 }
 0x404   : > { %2542 = vst.msk [vmem:[#allocation2 + $0x18] sm:$0xff] %vm12050_vm7, %v2468_v52  ;;  %12068 = vst [vmem:[#allocation47_spill] sm:$0xff] %v9604_v15  ;;  %v12069_v52 = vsub.s32 6, %v12055_v9 }
 0x405   : > { %2541 = vst.msk [vmem:[#allocation2 + $0x10] sm:$0xff] %vm12051_vm8, %v2463_v2  ;;  %v7204_v51 = vpop.f32.mrb[4].mxu1  ;;  %vm12098_vm7 = vmmov %vm12024_vm2 }
 0x406   : > { %v2478_v56 = vadd.f32 %v7204_v51, %v9555_v42  ;;  %v2472_v26 = vpop.f32.mrb[5].mxu1  ;;  %v9608_v60 = vrot.slane %v2557_v21, %v12069_v52  ;;  %vm12100_vm8 = vmmov %vm12024_vm2 }
 0x407   : > { %v2473_v4 = vadd.f32 %v9555_v42, %v2472_v26  ;;  %v2679_v26 = vadd.f32 %v2663_v22, %v2595_v0 }
 0x408   : > { %2544 = vst.msk [vmem:[#allocation2 + $0x28] sm:$0xff] %vm12052_vm10, %v2478_v56  ;;  %12070 = vst [vmem:[#allocation39_spill] sm:$0xff] %v9608_v60 }
 0x409   : > { %2543 = vst.msk [vmem:[#allocation2 + $0x20] sm:$0xff] %vm12053_vm11, %v2473_v4  ;;  %v7207_v57 = vpop.f32.mrb[6].mxu1  ;;  %vm12101_vm10 = vmmov %vm12024_vm2 }
 0x40a   : > { %v2488_v63 = vadd.f32 %v7207_v57, %v9555_v42  ;;  %v2482_v40 = vpop.f32.mrb[7].mxu1  ;;  %vm12252_vm11 = vmmov %vm12024_vm2 }
 0x40b   : > { %v2483_v50 = vadd.f32 %v9555_v42, %v2482_v40  ;;  %v2629_v51 = vld [vmem:[#allocation2 + $0x18] sm:$0xff]  ;;  %v9619_v40 = vmul.f32 %v9593_v16, %v2975_v45 }
 0x40c   : > { %2546 = vst.msk [vmem:[#allocation2 + $0x38] sm:$0xff] %vm12054_vm12, %v2488_v63  ;;  %v2695_v29 = vld [vmem:[#allocation2 + $0x9] sm:$0xff]  ;;  %v9595_v7 = vld [vmem:[#allocation2 + $0x17] sm:$0xff]  ;;  %v9616_v63 = vld [vmem:[%s11435_s11 + $0x8] ss:$0 sm:$0xff] }
 0x40d   : > { %2545 = vst.msk [vmem:[#allocation2 + $0x30] sm:$0xff] %vm12057_vm13, %v2483_v50  ;;  %v7210_v18 = vpop.f32.mrb[8].mxu1  ;;  %v2560_v8 = vld [vmem:[#allocation2 + $0xf] sm:$0xff]  ;;  %12064 = vst [vmem:[#allocation60_spill] sm:$0xff] %v9595_v7  ;;  %v2711_v35 = vmul.f32 %v11890_v55, %v2695_v29  ;;  %v2577_v21 = vmul.f32 %v11917_v37, %v9595_v7  ;;  %v9629_v3 = vmul.f32 %v9616_v63, %v3044_v34 }
 0x40e   : > { %v2492_v59 = vpop.f32.mrb[9].mxu1  ;;  %v2498_v2 = vadd.f32 %v7210_v18, %v9555_v42  ;;  %v2576_v56 = vmul.f32 %v11915_v12, %v2560_v8  ;;  %v2696_v4 = vld [vmem:[#allocation2 + $0x11] sm:$0xff]  ;;  %12071 = vst [vmem:[#allocation40_spill] sm:$0xff] %v9616_v63  ;;  %12072 = vst [vmem:[#allocation41_spill] sm:$0xff] %v9619_v40  ;;  %v2764_v27 = vmul.f32 %v11913_v49, %v2560_v8 }
 0x40f   : > { %v2493_v57 = vadd.f32 %v9555_v42, %v2492_v59  ;;  %v2628_v50 = vld [vmem:[#allocation2 + $0x10] sm:$0xff]  ;;  %12074 = vst [vmem:[#allocation43_spill] sm:$0xff] %v9629_v3  ;;  %v2731_v59 = vmul.f32 %v9585_v53, %v2711_v35  ;;  %v2712_v45 = vmul.f32 %v8577_v24, %v2696_v4  ;;  %v9650_v8 = vmul.f32 %v9593_v16, %v2629_v51  ;;  %vm12253_vm12 = vmmov %vm12024_vm2 }
 0x410   : > { %v9623_v9 = vld [vmem:[#allocation2 + $0x1f] sm:$0xff]  ;;  %2548 = vst.msk [vmem:[#allocation2 + $0x48] sm:$0xff] %vm12024_vm2, %v2498_v2  ;;  %v2596_v43 = vmul.f32 %v9577_v32, %v2576_v56  ;;  %v2664_v36 = vmul.f32 %v9573_v13, %v2628_v50  ;;  %v2765_v58 = vmul.f32 %v11915_v12, %v9595_v7  ;;  %v9656_v35 = vld [vmem:[#allocation2 + $0x27] sm:$0xff]  ;;  %v2837_v56 = vmul.f32 %v9600_v44, %v2628_v50  ;;  %vm12254_vm13 = vmmov %vm12024_vm2 }
 0x411   : > { %v7213_v20 = vpop.f32.mrb[10].mxu1  ;;  %12073 = vst [vmem:[#allocation42_spill] sm:$0xff] %v9623_v9  ;;  %2547 = vst.msk [vmem:[#allocation2 + $0x40] sm:$0xff] %vm12076_vm3, %v2493_v57  ;;  %v9645_v34 = vld [vmem:[#allocation2 + $0x19] sm:$0xff]  ;;  %v2578_v62 = vmul.f32 %v12083_v17, %v9623_v9  ;;  %v9666_v57 = vld [vmem:[#allocation2 + $0x28] sm:$0xff]  ;;  %v2747_v54 = vadd.f32 %v2731_v59, %v2679_v26  ;;  %v2784_v1 = vmul.f32 %v9589_v47, %v2764_v27 }
 0x412   : > { %v2502_v39 = vpop.f32.mrb[11].mxu1  ;;  %v2508_v61 = vadd.f32 %v7213_v20, %v9555_v42  ;;  %v9639_v20 = vmul.f32 %v9573_v13, %v2629_v51  ;;  %12078 = vst [vmem:[#allocation50_spill] sm:$0xff] %v9645_v34  ;;  %12081 = vst [vmem:[#allocation51_spill] sm:$0xff] %v9650_v8  ;;  %v9672_v3 = vld [vmem:[#allocation2 + $0x20] sm:$0xff]  ;;  %v2732_v50 = vmul.f32 %v9585_v53, %v2712_v45 }
 0x413   : > { %v2503_v38 = vadd.f32 %v9555_v42, %v2502_v39  ;;  %v9642_v39 = vmul.f32 %v9600_v44, %v2629_v51  ;;  %12082 = vst [vmem:[#allocation54_spill] sm:$0xff] %v9656_v35  ;;  %v2597_v51 = vmul.f32 %v9577_v32, %v2577_v21  ;;  %12087 = vst [vmem:[#allocation56_spill] sm:$0xff] %v9666_v57  ;;  %v9685_v26 = vld [vmem:[#allocation2 + $0x21] sm:$0xff]  ;;  %v12095_v59 = vld [vmem:[#allocation11_spill] sm:$0xff] }
 0x414   : > { %v9633_v29 = vld [vmem:[#allocation2 + $0x2f] sm:$0xff]  ;;  %2550 = vst.msk [vmem:[#allocation2 + $0x58] sm:$0xff] %vm12079_vm9, %v2508_v61  ;;  %v9660_v52 = vld [vmem:[#allocation2 + $0x37] sm:$0xff]  ;;  %12089 = vst [vmem:[#allocation57_spill] sm:$0xff] %v9672_v3  ;;  %v9681_v40 = vmul.f32 %v11890_v55, %v2696_v4  ;;  %v2680_v8 = vadd.f32 %v2664_v36, %v2596_v43  ;;  %v2785_v16 = vmul.f32 %v9589_v47, %v2765_v58 }
 0x415   : > { %v7216_v46 = vpop.f32.mrb[12].mxu1  ;;  %12075 = vst [vmem:[#allocation44_spill] sm:$0xff] %v9633_v29  ;;  %12077 = vst [vmem:[#allocation49_spill] sm:$0xff] %v9642_v39  ;;  %v2581_v27 = vmul.f32 %v12095_v59, %v9660_v52  ;;  %v2598_v45 = vmul.f32 %v9577_v32, %v2578_v62  ;;  %v9694_v4 = vld [vmem:[#allocation2 + $0x30] sm:$0xff]  ;;  %v2800_v49 = vadd.f32 %v2784_v1, %v2747_v54  ;;  %v9709_v15 = vld [vmem:[#allocation2 + $0x38] sm:$0xff] }
 0x416   : > { %v2512_v18 = vpop.f32.mrb[13].mxu1  ;;  %v2518_v0 = vadd.f32 %v7216_v46, %v9555_v42  ;;  %2549 = vst.msk [vmem:[#allocation2 + $0x50] sm:$0xff] %vm12080_vm14, %v2503_v38  ;;  %12084 = vst [vmem:[#allocation55_spill] sm:$0xff] %v9660_v52  ;;  %v12088_v46 = vld [vmem:[#allocation10_spill] sm:$0xff]  ;;  %v2714_v62 = vmul.f32 %v8591_v41, %v9685_v26  ;;  %v2748_v54 = vadd.f32 %v2732_v50, %v2680_v8 }
 0x417   : > { %v2513_v22 = vadd.f32 %v9555_v42, %v2512_v18  ;;  %v2580_v61 = vmul.f32 %v12088_v46, %v9633_v29  ;;  %12091 = vst [vmem:[#allocation83_spill] sm:$0xff] %v9681_v40  ;;  %12093 = vst [vmem:[#allocation48_spill] sm:$0xff] %v9685_v26  ;;  %v9696_v55 = vld [vmem:[#allocation2 + $0x31] sm:$0xff]  ;;  %v2668_v40 = vmul.f32 %v9573_v13, %v9694_v4 }
 0x418   : > { %2552 = vst.msk [vmem:[#allocation2 + $0x68] sm:$0xff] %vm12085_vm4, %v2518_v0  ;;  %v2713_v0 = vmul.f32 %v8582_v25, %v9645_v34  ;;  %12096 = vst [vmem:[#allocation52_spill] sm:$0xff] %v9694_v4  ;;  %v2716_v1 = vmul.f32 %v11953_v19, %v9696_v55  ;;  %v9729_v8 = vadd.f32 %v2837_v56, %v2800_v49 }
 0x419   : > { %2551 = vst.msk [vmem:[#allocation2 + $0x60] sm:$0xff] %vm12086_vm5, %v2513_v22  ;;  %v7219_v2 = vpop.f32.mrb[14].mxu1  ;;  %v9676_v22 = vld [vmem:[#allocation2 + $0x29] sm:$0xff]  ;;  %12097 = vst [vmem:[#allocation61_spill] sm:$0xff] %v9696_v55  ;;  %v2600_v12 = vmul.f32 %v9577_v32, %v2580_v61  ;;  %v9733_v50 = vmul.f32 %v9600_v44, %v9672_v3 }
 0x41a   : > { %v2528_v38 = vadd.f32 %v7219_v2, %v9555_v42  ;;  %v2522_v18 = vpop.f32.mrb[15].mxu1  ;;  %12090 = vst [vmem:[#allocation59_spill] sm:$0xff] %v9676_v22  ;;  %v12092_v2 = vld [vmem:[#allocation9_spill] sm:$0xff]  ;;  %v2715_v43 = vmul.f32 %v8596_v5, %v9676_v22  ;;  %v2733_v7 = vmul.f32 %v9585_v53, %v2713_v0  ;;  %12099 = vst [vmem:[#allocation62_spill] sm:$0xff] %v9709_v15 }
 0x41b   : > { %v2523_v21 = vadd.f32 %v9555_v42, %v2522_v18  ;;  %v2579_v63 = vmul.f32 %v12092_v2, %v9656_v35  ;;  %v2667_v18 = vmul.f32 %v9573_v13, %v9666_v57  ;;  %v2601_v5 = vmul.f32 %v9577_v32, %v2581_v27  ;;  %12103 = vst [vmem:[#allocation64_spill] sm:$0xff] %v9729_v8  ;;  %vm12259_vm3 = vmmov %vm12024_vm2 }
 0x41c   : > { %2554 = vst.msk [vmem:[#allocation2 + $0x78] sm:$0xff] %vm12094_vm6, %v2528_v38  ;;  %v2666_v38 = vmul.f32 %v9573_v13, %v9672_v3  ;;  %v2766_v0 = vmul.f32 %v11917_v37, %v9623_v9  ;;  %v2681_v27 = vadd.f32 %v9639_v20, %v2597_v51  ;;  %v2735_v19 = vmul.f32 %v9585_v53, %v2715_v43  ;;  %vm12262_vm9 = vmmov %vm12024_vm2 }
 0x41d   : > { %2553 = vst.msk [vmem:[#allocation2 + $0x70] sm:$0xff] %vm12098_vm7, %v2523_v21  ;;  %v7222_v60 = vpop.f32.mrb[16].mxu1  ;;  %12104 = vst [vmem:[#allocation65_spill] sm:$0xff] %v9733_v50  ;;  %v9744_v20 = vld [vmem:[#allocation2 + $0x57] sm:$0xff]  ;;  %v2736_v49 = vmul.f32 %v9585_v53, %v2716_v1 }
 0x41e   : > { %v2538_v36 = vadd.f32 %v7222_v60, %v9555_v42  ;;  %v2532_v58 = vpop.f32.mrb[17].mxu1  ;;  %v2599_v60 = vmul.f32 %v9577_v32, %v2579_v63  ;;  %v2682_v61 = vadd.f32 %v2666_v38, %v2598_v45  ;;  %v2669_v63 = vmul.f32 %v9573_v13, %v9709_v15  ;;  %v9739_v38 = vld [vmem:[#allocation2 + $0x47] sm:$0xff]  ;;  %vm12267_vm14 = vmmov %vm12024_vm2 }
 0x41f   : > { %v2533_v21 = vadd.f32 %v9555_v42, %v2532_v58  ;;  %v2767_v42 = vmul.f32 %v12083_v17, %v9656_v35  ;;  %v9723_v58 = vld [vmem:[#allocation2 + $0x3f] sm:$0xff]  ;;  %v9737_v45 = vmul.f32 %v8577_v24, %v9645_v34  ;;  %v2734_v17 = vmul.f32 %v9585_v53, %v2714_v62  ;;  %vm12268_vm4 = vmmov %vm12024_vm2 }
 0x420   : > { %2556 = vst.msk [vmem:[#allocation2 + $0x88] sm:$0xff] %vm12100_vm8, %v2538_v36  ;;  %12102 = vst [vmem:[#allocation63_spill] sm:$0xff] %v9723_v58  ;;  %v2684_v36 = vadd.f32 %v2668_v40, %v2600_v12  ;;  %v2683_v12 = vadd.f32 %v2667_v18, %v2599_v60  ;;  %v9746_v40 = vadd.f32 %v2669_v63, %v2601_v5  ;;  %v9751_v56 = vld [vmem:[#allocation2 + $0x5f] sm:$0xff]  ;;  %v9753_v43 = vld [vmem:[#allocation2 + $0x67] sm:$0xff] }
 0x421   : > { %2555 = vst.msk [vmem:[#allocation2 + $0x80] sm:$0xff] %vm12101_vm10, %v2533_v21  ;;  %12105 = vst [vmem:[#allocation66_spill] sm:$0xff] %v9737_v45  ;;  %v9741_v21 = vld [vmem:[#allocation2 + $0x4f] sm:$0xff]  ;;  %v9749_v51 = vadd.f32 %v2733_v7, %v2681_v27  ;;  %v12107_v24 = vld [vmem:[#allocation12_spill] sm:$0xff]  ;;  %v9757_v3 = vadd.f32 %v2734_v17, %v2682_v61  ;;  %v2768_v62 = vmul.f32 %v12092_v2, %v9633_v29 }
 0x422   : > { %v2582_v34 = vmul.f32 %v12107_v24, %v9723_v58  ;;  %v2769_v5 = vmul.f32 %v12088_v46, %v9660_v52  ;;  %v12109_v18 = vld [vmem:[#allocation13_spill] sm:$0xff]  ;;  %v12110_v7 = vld [vmem:[#allocation14_spill] sm:$0xff]  ;;  %v9769_v27 = vadd.f32 %v2735_v19, %v2683_v12  ;;  %v9771_v37 = vadd.f32 %v2736_v49, %v2684_v36  ;;  %v9773_v17 = vld [vmem:[#allocation2 + $0x39] sm:$0xff] }
 0x423   : > { %12106 = vst [vmem:[#allocation67_spill] sm:$0xff] %v9749_v51  ;;  %12108 = vst [vmem:[#allocation68_spill] sm:$0xff] %v9757_v3  ;;  %v2583_v60 = vmul.f32 %v12109_v18, %v9739_v38  ;;  %v2584_v1 = vmul.f32 %v12110_v7, %v9741_v21  ;;  %v9767_v63 = vld [vmem:[#allocation2 + $0x48] sm:$0xff]  ;;  %v12115_v61 = vld [vmem:[#allocation15_spill] sm:$0xff]  ;;  %v9780_v46 = vmul.f32 %v9589_v47, %v2766_v0 }
 0x424   : > { %12111 = vst [vmem:[#allocation69_spill] sm:$0xff] %v9767_v63  ;;  %12112 = vst [vmem:[#allocation70_spill] sm:$0xff] %v9769_v27  ;;  %v2585_v2 = vmul.f32 %v12115_v61, %v9744_v20  ;;  %v9777_v29 = vld [vmem:[#allocation2 + $0x40] sm:$0xff]  ;;  %v9783_v52 = vmul.f32 %v9589_v47, %v2767_v42  ;;  %v9785_v35 = vadd.f32 %v2785_v16, %v2748_v54  ;;  %v9787_v9 = vld [vmem:[#allocation2 + $0x6f] sm:$0xff] }
 0x425   : > { %12113 = vst [vmem:[#allocation75_spill] sm:$0xff] %v9771_v37  ;;  %12114 = vst [vmem:[#allocation71_spill] sm:$0xff] %v9773_v17  ;;  %v9789_v19 = vld [vmem:[#allocation2 + $0x77] sm:$0xff]  ;;  %v12120_v36 = vld [vmem:[#allocation16_spill] sm:$0xff]  ;;  %v9797_v45 = vmul.f32 %v9600_v44, %v9666_v57  ;;  %v9801_v0 = vmul.f32 %v9600_v44, %v9694_v4  ;;  %v2602_v16 = vmul.f32 %v9577_v32, %v2582_v34 }
 0x426   : > { %12116 = vst [vmem:[#allocation72_spill] sm:$0xff] %v9777_v29  ;;  %12117 = vst [vmem:[#allocation73_spill] sm:$0xff] %v9780_v46  ;;  %v2586_v12 = vmul.f32 %v12120_v36, %v9751_v56  ;;  %v12121_v49 = vld [vmem:[#allocation17_spill] sm:$0xff]  ;;  %v9806_v42 = vld [vmem:[#allocation2 + $0x58] sm:$0xff]  ;;  %v2671_v55 = vmul.f32 %v9573_v13, %v9767_v63  ;;  %v9811_v41 = vmul.f32 %v9589_v47, %v2768_v62 }
 0x427   : > { %12118 = vst [vmem:[#allocation58_spill] sm:$0xff] %v9783_v52  ;;  %12119 = vst [vmem:[#allocation76_spill] sm:$0xff] %v9785_v35  ;;  %v2587_v8 = vmul.f32 %v12121_v49, %v9753_v43  ;;  %v9804_v54 = vld [vmem:[#allocation2 + $0x50] sm:$0xff]  ;;  %v9814_v22 = vmul.f32 %v9589_v47, %v2769_v5  ;;  %v2603_v57 = vmul.f32 %v9577_v32, %v2583_v60  ;;  %v9818_v25 = vld [vmem:[#allocation2 + $0x60] sm:$0xff] }
 0x428   : > { %12122 = vst [vmem:[#allocation77_spill] sm:$0xff] %v9797_v45  ;;  %12123 = vst [vmem:[#allocation78_spill] sm:$0xff] %v9801_v0  ;;  %v2604_v4 = vmul.f32 %v9577_v32, %v2584_v1  ;;  %v9820_v34 = vld [vmem:[#allocation2 + $0x68] sm:$0xff]  ;;  %v9822_v26 = vld [vmem:[#allocation2 + $0x78] sm:$0xff]  ;;  %v2670_v0 = vmul.f32 %v9573_v13, %v9777_v29  ;;  %v2717_v62 = vmul.f32 %v11957_v10, %v9773_v17 }
 0x429   : > { %12124 = vst [vmem:[#allocation79_spill] sm:$0xff] %v9804_v54  ;;  %12125 = vst [vmem:[#allocation80_spill] sm:$0xff] %v9806_v42  ;;  %v9828_v45 = vld [vmem:[#allocation2 + $0x7f] sm:$0xff]  ;;  %v12132_v5 = vld [vmem:[#allocation18_spill] sm:$0xff]  ;;  %v2605_v39 = vmul.f32 %v9577_v32, %v2585_v2  ;;  %v9839_v63 = vmul.f32 %v12095_v59, %v9723_v58  ;;  %v2606_v29 = vmul.f32 %v9577_v32, %v2586_v12 }
 0x42a   : > { %12126 = vst [vmem:[#allocation81_spill] sm:$0xff] %v9811_v41  ;;  %12127 = vst [vmem:[#allocation82_spill] sm:$0xff] %v9814_v22  ;;  %v2588_v50 = vmul.f32 %v12132_v5, %v9787_v9  ;;  %v12133_v60 = vld [vmem:[#allocation19_spill] sm:$0xff]  ;;  %v9835_v35 = vld [vmem:[#allocation2 + $0x49] sm:$0xff]  ;;  %v2607_v10 = vmul.f32 %v9577_v32, %v2587_v8  ;;  %v2672_v44 = vmul.f32 %v9573_v13, %v9804_v54 }
 0x42b   : > { %12128 = vst [vmem:[#allocation45_spill] sm:$0xff] %v9818_v25  ;;  %12129 = vst [vmem:[#allocation53_spill] sm:$0xff] %v9820_v34  ;;  %v2589_v1 = vmul.f32 %v12133_v60, %v9789_v19  ;;  %v9843_v17 = vld [vmem:[#allocation2 + $0x70] sm:$0xff]  ;;  %v2673_v15 = vmul.f32 %v9573_v13, %v9806_v42  ;;  %v9849_v22 = vld [vmem:[#allocation2 + $0x41] sm:$0xff]  ;;  %v2674_v59 = vmul.f32 %v9573_v13, %v9818_v25 }
 0x42c   : > { %12130 = vst [vmem:[#allocation4_spill] sm:$0xff] %v9822_v26  ;;  %12131 = vst [vmem:[#allocation12_spill] sm:$0xff] %v9828_v45  ;;  %v9851_v2 = vld [vmem:[#allocation2 + $0x51] sm:$0xff]  ;;  %v2675_v12 = vmul.f32 %v9573_v13, %v9820_v34  ;;  %v2677_v8 = vmul.f32 %v9573_v13, %v9822_v26  ;;  %v2686_v58 = vadd.f32 %v2670_v0, %v2602_v16  ;;  %v9859_v37 = vld [vmem:[#allocation2 + $0x59] sm:$0xff] }
 0x42d   : > { %12134 = vst [vmem:[#allocation13_spill] sm:$0xff] %v9835_v35  ;;  %12135 = vst [vmem:[#allocation14_spill] sm:$0xff] %v9839_v63  ;;  %v9861_v54 = vld [vmem:[#allocation2 + $0x61] sm:$0xff]  ;;  %v9863_v41 = vld [vmem:[#allocation2 + $0x69] sm:$0xff]  ;;  %v2687_v52 = vadd.f32 %v2671_v55, %v2603_v57  ;;  %v2688_v3 = vadd.f32 %v2672_v44, %v2604_v4  ;;  %v2719_v0 = vmul.f32 %v11965_v28, %v9835_v35 }
 0x42e   : > { %12136 = vst [vmem:[#allocation15_spill] sm:$0xff] %v9843_v17  ;;  %12137 = vst [vmem:[#allocation16_spill] sm:$0xff] %v9849_v22  ;;  %v12142_v42 = vld [vmem:[#allocation20_spill] sm:$0xff]  ;;  %v9867_v46 = vld [vmem:[#allocation2 + $0x71] sm:$0xff]  ;;  %v2608_v16 = vmul.f32 %v9577_v32, %v2588_v50  ;;  %v2609_v26 = vmul.f32 %v9577_v32, %v2589_v1  ;;  %v2676_v51 = vmul.f32 %v9573_v13, %v9843_v17 }
 0x42f   : > { %12138 = vst [vmem:[#allocation84_spill] sm:$0xff] %v9851_v2  ;;  %12139 = vst [vmem:[#allocation85_spill] sm:$0xff] %v9859_v37  ;;  %v2590_v27 = vmul.f32 %v12142_v42, %v9828_v45  ;;  %v9869_v25 = vld [vmem:[#allocation2 + $0x79] sm:$0xff]  ;;  %v9871_v34 = vld [vmem:[#allocation2 + $0x81] sm:$0xff]  ;;  %v2689_v47 = vadd.f32 %v2673_v15, %v2605_v39  ;;  %v2718_v55 = vmul.f32 %v11963_v31, %v9849_v22 }
 0x430   : > { %12140 = vst [vmem:[#allocation86_spill] sm:$0xff] %v9861_v54  ;;  %12141 = vst [vmem:[#allocation87_spill] sm:$0xff] %v9863_v41  ;;  %v9879_v63 = vld [vmem:[#allocation2 + $0x80] sm:$0xff]  ;;  %v2720_v44 = vmul.f32 %v11970_v33, %v9851_v2  ;;  %v2721_v57 = vmul.f32 %v11973_v14, %v9859_v37  ;;  %v2722_v4 = vmul.f32 %v11976_v23, %v9861_v54 }
 0x431   : > { %12143 = vst [vmem:[#allocation88_spill] sm:$0xff] %v9867_v46  ;;  %12144 = vst [vmem:[#allocation89_spill] sm:$0xff] %v9869_v25  ;;  %v2723_v50 = vmul.f32 %v11979_v30, %v9863_v41  ;;  %v2724_v15 = vmul.f32 %v11981_v6, %v9867_v46  ;;  %v2725_v39 = vmul.f32 %v11988_v48, %v9869_v25 }
 0x432   : > { %12145 = vst [vmem:[#allocation90_spill] sm:$0xff] %v9871_v34  ;;  %12146 = vst [vmem:[#allocation91_spill] sm:$0xff] %v9879_v63  ;;  %v2726_v1 = vmul.f32 %v12058_v11, %v9871_v34  ;;  %v2610_v33 = vmul.f32 %v9577_v32, %v2590_v27  ;;  %v2690_v28 = vadd.f32 %v2674_v59, %v2606_v29 }
 0x433   : > { %v2737_v14 = vmul.f32 %v9585_v53, %v2717_v62  ;;  %v2739_v37 = vmul.f32 %v9585_v53, %v2719_v0  ;;  %v2678_v23 = vmul.f32 %v9573_v13, %v9879_v63  ;;  %v2691_v30 = vadd.f32 %v2675_v12, %v2607_v10  ;;  %v9911_v62 = vld [vmem:[#allocation2 + $0x87] sm:$0xff]  ;;  %vm12269_vm5 = vmmov %vm12024_vm2 }
 0x434   : > { %v2692_v41 = vadd.f32 %v2676_v51, %v2608_v16  ;;  %v2693_v54 = vadd.f32 %v2677_v8, %v2609_v26  ;;  %v2738_v6 = vmul.f32 %v9585_v53, %v2718_v55  ;;  %v2740_v48 = vmul.f32 %v9585_v53, %v2720_v44  ;;  %12147 = vst [vmem:[#allocation92_spill] sm:$0xff] %v9911_v62  ;;  %v12148_v44 = vld [vmem:[#allocation14_spill] sm:$0xff]  ;;  %vm12270_vm6 = vmmov %vm12024_vm2 }
 0x435   : > { %v2741_v25 = vmul.f32 %v9585_v53, %v2721_v57  ;;  %v2742_v11 = vmul.f32 %v9585_v53, %v2722_v4  ;;  %v2743_v32 = vmul.f32 %v9585_v53, %v2723_v50  ;;  %v2744_v29 = vmul.f32 %v9585_v53, %v2724_v15  ;;  %v12149_v57 = vld [vmem:[#allocation35_spill] sm:$0xff]  ;;  %vm12271_vm7 = vmmov %vm12024_vm2 }
 0x436   : > { %v2745_v59 = vmul.f32 %v9585_v53, %v2725_v39  ;;  %v2746_v27 = vmul.f32 %v9585_v53, %v2726_v1  ;;  %v2694_v13 = vadd.f32 %v2678_v23, %v2610_v33  ;;  %v2753_v10 = vadd.f32 %v2737_v14, %v9746_v40  ;;  %v12150_v39 = vld [vmem:[#allocation67_spill] sm:$0xff]  ;;  %v12151_v1 = vld [vmem:[#allocation73_spill] sm:$0xff]  ;;  %vm12274_vm8 = vmmov %vm12024_vm2 }
 0x437   : > { %v2754_v26 = vadd.f32 %v2738_v6, %v2686_v58  ;;  %v2755_v51 = vadd.f32 %v2739_v37, %v2687_v52  ;;  %v2756_v12 = vadd.f32 %v2740_v48, %v2688_v3  ;;  %v2771_v8 = vmul.f32 %v12107_v24, %v9739_v38  ;;  %vm12275_vm10 = vmmov %vm12024_vm2 }
 0x438   : > { %v2772_v0 = vmul.f32 %v12109_v18, %v9741_v21  ;;  %v2773_v16 = vmul.f32 %v12110_v7, %v9744_v20  ;;  %v2774_v53 = vmul.f32 %v12115_v61, %v9751_v56  ;;  %v2775_v33 = vmul.f32 %v12120_v36, %v9753_v43 }
 0x439   : > { %v2776_v37 = vmul.f32 %v12121_v49, %v9787_v9  ;;  %v2777_v14 = vmul.f32 %v12132_v5, %v9789_v19  ;;  %v2757_v23 = vadd.f32 %v2741_v25, %v2689_v47  ;;  %v2758_v6 = vadd.f32 %v2742_v11, %v2690_v28 }
 0x43a   : > { %v2778_v48 = vmul.f32 %v12133_v60, %v9828_v45  ;;  %v2779_v3 = vmul.f32 %v12142_v42, %v9911_v62  ;;  %v2759_v52 = vadd.f32 %v2743_v32, %v2691_v30  ;;  %v2760_v58 = vadd.f32 %v2744_v29, %v2692_v41  ;;  %v12152_v29 = vld [vmem:[#allocation68_spill] sm:$0xff] }
 0x43b   : > { %v2761_v40 = vadd.f32 %v2745_v59, %v2693_v54  ;;  %v2762_v55 = vadd.f32 %v2746_v27, %v2694_v13  ;;  %v2790_v4 = vmul.f32 %v12149_v57, %v12148_v44  ;;  %v2791_v50 = vmul.f32 %v12149_v57, %v2771_v8  ;;  %v12153_v59 = vld [vmem:[#allocation58_spill] sm:$0xff]  ;;  %v12155_v8 = vld [vmem:[#allocation81_spill] sm:$0xff]  ;;  %v12161_v45 = vld [vmem:[#allocation72_spill] sm:$0xff] }
 0x43c   : > { %v2792_v15 = vmul.f32 %v12149_v57, %v2772_v0  ;;  %v2793_v25 = vmul.f32 %v12149_v57, %v2773_v16  ;;  %v2794_v28 = vmul.f32 %v12149_v57, %v2774_v53  ;;  %v2795_v11 = vmul.f32 %v12149_v57, %v2775_v33  ;;  %v12154_v13 = vld [vmem:[#allocation70_spill] sm:$0xff]  ;;  %v12156_v16 = vld [vmem:[#allocation75_spill] sm:$0xff] }
 0x43d   : > { %v2796_v47 = vmul.f32 %v12149_v57, %v2776_v37  ;;  %v2797_v30 = vmul.f32 %v12149_v57, %v2777_v14  ;;  %v2798_v41 = vmul.f32 %v12149_v57, %v2778_v48  ;;  %v2799_v54 = vmul.f32 %v12149_v57, %v2779_v3  ;;  %v12157_v53 = vld [vmem:[#allocation82_spill] sm:$0xff] }
 0x43e   : > { %v2802_v32 = vadd.f32 %v12151_v1, %v12150_v39  ;;  %v2803_v27 = vadd.f32 %v12153_v59, %v12152_v29  ;;  %v2804_v0 = vadd.f32 %v12155_v8, %v12154_v13  ;;  %v2805_v33 = vadd.f32 %v12157_v53, %v12156_v16  ;;  %v9950_v39 = vld [vmem:[#allocation2 + $0x88] sm:$0xff]  ;;  %v12159_v1 = vld [vmem:[#allocation62_spill] sm:$0xff] }
 0x43f   : > { %v2806_v44 = vadd.f32 %v2790_v4, %v2753_v10  ;;  %v2807_v37 = vadd.f32 %v2791_v50, %v2754_v26  ;;  %v2808_v42 = vadd.f32 %v2792_v15, %v2755_v51  ;;  %v2809_v14 = vadd.f32 %v2793_v25, %v2756_v12  ;;  %12158 = vst [vmem:[#allocation14_spill] sm:$0xff] %v9950_v39  ;;  %v12160_v29 = vld [vmem:[#allocation74_spill] sm:$0xff]  ;;  %v12162_v8 = vld [vmem:[#allocation69_spill] sm:$0xff]  ;;  %v12163_v26 = vld [vmem:[#allocation79_spill] sm:$0xff] }
 0x440   : > { %v2810_v60 = vadd.f32 %v2794_v28, %v2757_v23  ;;  %v2811_v48 = vadd.f32 %v2795_v11, %v2758_v6  ;;  %v2812_v62 = vadd.f32 %v2796_v47, %v2759_v52  ;;  %v2813_v3 = vadd.f32 %v2797_v30, %v2760_v58  ;;  %v12164_v12 = vld [vmem:[#allocation80_spill] sm:$0xff]  ;;  %v12165_v6 = vld [vmem:[#allocation45_spill] sm:$0xff]  ;;  %v12172_v53 = vld [vmem:[#allocation78_spill] sm:$0xff] }
 0x441   : > { %v2814_v57 = vadd.f32 %v2798_v41, %v2761_v40  ;;  %v2815_v5 = vadd.f32 %v2799_v54, %v2762_v55  ;;  %v2842_v59 = vmul.f32 %v12160_v29, %v12159_v1  ;;  %v2843_v13 = vmul.f32 %v12160_v29, %v12161_v45  ;;  %v12166_v58 = vld [vmem:[#allocation53_spill] sm:$0xff]  ;;  %v12167_v4 = vld [vmem:[#allocation4_spill] sm:$0xff] }
 0x442   : > { %v2844_v10 = vmul.f32 %v12160_v29, %v12162_v8  ;;  %v2845_v51 = vmul.f32 %v12160_v29, %v12163_v26  ;;  %v2846_v23 = vmul.f32 %v12160_v29, %v12164_v12  ;;  %v2847_v52 = vmul.f32 %v12160_v29, %v12165_v6  ;;  %v12168_v28 = vld [vmem:[#allocation76_spill] sm:$0xff]  ;;  %v12169_v11 = vld [vmem:[#allocation49_spill] sm:$0xff] }
 0x443   : > { %v2848_v40 = vmul.f32 %v12160_v29, %v12166_v58  ;;  %v2849_v55 = vmul.f32 %v12160_v29, %v9843_v17  ;;  %v2850_v50 = vmul.f32 %v12160_v29, %v12167_v4  ;;  %v2851_v15 = vmul.f32 %v12160_v29, %v9879_v63  ;;  %v12170_v30 = vld [vmem:[#allocation65_spill] sm:$0xff] }
 0x444   : > { %v2852_v25 = vmul.f32 %v12160_v29, %v9950_v39  ;;  %v2854_v47 = vadd.f32 %v12169_v11, %v12168_v28  ;;  %v2855_v41 = vadd.f32 %v12170_v30, %v2802_v32  ;;  %v12171_v54 = vld [vmem:[#allocation77_spill] sm:$0xff]  ;;  %v2857_v58 = vadd.f32 %v12172_v53, %v2804_v0  ;;  %v12174_v28 = vld [vmem:[#allocation48_spill] sm:$0xff]  ;;  %v12175_v11 = vld [vmem:[#allocation23_spill] sm:$0xff] }
 0x445   : > { %v2856_v16 = vadd.f32 %v12171_v54, %v2803_v27  ;;  %v2858_v6 = vadd.f32 %v2842_v59, %v2805_v33  ;;  %v2859_v17 = vadd.f32 %v2843_v13, %v2806_v44  ;;  %v2860_v12 = vadd.f32 %v2844_v10, %v2807_v37  ;;  %v9979_v39 = vld [vmem:[#allocation2 + $0x89] sm:$0xff]  ;;  %v12176_v30 = vld [vmem:[#allocation59_spill] sm:$0xff]  ;;  %v12179_v33 = vld [vmem:[#allocation26_spill] sm:$0xff] }
 0x446   : > { %v2861_v26 = vadd.f32 %v2845_v51, %v2808_v42  ;;  %v2862_v4 = vadd.f32 %v2846_v23, %v2809_v14  ;;  %v2863_v8 = vadd.f32 %v2847_v52, %v2810_v60  ;;  %v2864_v45 = vadd.f32 %v2848_v40, %v2811_v48  ;;  %12173 = vst [vmem:[#allocation35_spill] sm:$0xff] %v9979_v39  ;;  %v12177_v27 = vld [vmem:[#allocation25_spill] sm:$0xff]  ;;  %v12180_v37 = vld [vmem:[#allocation71_spill] sm:$0xff]  ;;  %v12182_v60 = vld [vmem:[#allocation28_spill] sm:$0xff] }
 0x447   : > { %v2865_v63 = vadd.f32 %v2849_v55, %v2812_v62  ;;  %v2866_v1 = vadd.f32 %v2850_v50, %v2813_v3  ;;  %v2867_v49 = vadd.f32 %v2851_v15, %v2814_v57  ;;  %v2868_v29 = vadd.f32 %v2852_v25, %v2815_v5  ;;  %v12178_v0 = vld [vmem:[#allocation61_spill] sm:$0xff]  ;;  %v12181_v42 = vld [vmem:[#allocation27_spill] sm:$0xff]  ;;  %v12183_v48 = vld [vmem:[#allocation30_spill] sm:$0xff] }
 0x448   : > { %v2872_v32 = vmul.f32 %v12175_v11, %v12174_v28  ;;  %v2873_v54 = vmul.f32 %v12177_v27, %v12176_v30  ;;  %v2874_v44 = vmul.f32 %v12179_v33, %v12178_v0  ;;  %v2875_v14 = vmul.f32 %v12181_v42, %v12180_v37  ;;  %v12184_v57 = vld [vmem:[#allocation85_spill] sm:$0xff]  ;;  %v12185_v59 = vld [vmem:[#allocation31_spill] sm:$0xff]  ;;  %v12186_v10 = vld [vmem:[#allocation86_spill] sm:$0xff] }
 0x449   : > { %v2876_v62 = vmul.f32 %v12182_v60, %v9849_v22  ;;  %v2877_v5 = vmul.f32 %v11963_v31, %v9835_v35  ;;  %v2878_v3 = vmul.f32 %v12183_v48, %v9851_v2  ;;  %v2879_v13 = vmul.f32 %v12185_v59, %v12184_v57  ;;  %v12187_v51 = vld [vmem:[#allocation32_spill] sm:$0xff]  ;;  %v12188_v52 = vld [vmem:[#allocation87_spill] sm:$0xff]  ;;  %v12189_v40 = vld [vmem:[#allocation33_spill] sm:$0xff] }
 0x44a   : > { %v2880_v23 = vmul.f32 %v12187_v51, %v12186_v10  ;;  %v2881_v55 = vmul.f32 %v12189_v40, %v12188_v52  ;;  %v12190_v50 = vld [vmem:[#allocation34_spill] sm:$0xff]  ;;  %v12191_v25 = vld [vmem:[#allocation89_spill] sm:$0xff]  ;;  %v12192_v53 = vld [vmem:[#allocation36_spill] sm:$0xff] }
 0x44b   : > { %v2882_v15 = vmul.f32 %v12190_v50, %v9867_v46  ;;  %v2883_v60 = vmul.f32 %v12192_v53, %v12191_v25  ;;  %v12193_v31 = vld [vmem:[#allocation37_spill] sm:$0xff]  ;;  %v12194_v48 = vld [vmem:[#allocation38_spill] sm:$0xff]  ;;  %v12195_v42 = vld [vmem:[#allocation83_spill] sm:$0xff] }
 0x44c   : > { %v2884_v35 = vmul.f32 %v12193_v31, %v9871_v34  ;;  %v2885_v2 = vmul.f32 %v12194_v48, %v9979_v39  ;;  %v12196_v59 = vld [vmem:[#allocation47_spill] sm:$0xff]  ;;  %v12197_v22 = vld [vmem:[#allocation66_spill] sm:$0xff]  ;;  %v12198_v34 = vld [vmem:[#allocation64_spill] sm:$0xff] }
 0x44d   : > { %v2890_v57 = vmul.f32 %v12196_v59, %v12195_v42  ;;  %v2891_v51 = vmul.f32 %v12196_v59, %v12197_v22  ;;  %v2892_v40 = vmul.f32 %v12196_v59, %v2872_v32  ;;  %v2893_v52 = vmul.f32 %v12196_v59, %v2873_v54  ;;  %v12199_v28 = vld [vmem:[#allocation60_spill] sm:$0xff] }
 0x44e   : > { %v2894_v50 = vmul.f32 %v12196_v59, %v2874_v44  ;;  %v2895_v53 = vmul.f32 %v12196_v59, %v2875_v14  ;;  %v2896_v25 = vmul.f32 %v12196_v59, %v2876_v62  ;;  %v2897_v31 = vmul.f32 %v12196_v59, %v2877_v5 }
 0x44f   : > { %v2898_v48 = vmul.f32 %v12196_v59, %v2878_v3  ;;  %v2899_v39 = vmul.f32 %v12196_v59, %v2879_v13  ;;  %v2900_v42 = vmul.f32 %v12196_v59, %v2880_v23  ;;  %v2901_v22 = vmul.f32 %v12196_v59, %v2881_v55 }
 0x450   : > { %v2902_v32 = vmul.f32 %v12196_v59, %v2882_v15  ;;  %v2903_v54 = vmul.f32 %v12196_v59, %v2883_v60  ;;  %v2904_v44 = vmul.f32 %v12196_v59, %v2884_v35  ;;  %v2905_v14 = vmul.f32 %v12196_v59, %v2885_v2  ;;  %v2922_v35 = vld [vmem:[#allocation2 + $0x8f] sm:$0xff] }
 0x451   : > { %v2906_v62 = vadd.f32 %v2890_v57, %v12198_v34  ;;  %v2907_v46 = vadd.f32 %v2891_v51, %v2854_v47  ;;  %v2908_v5 = vadd.f32 %v2892_v40, %v2855_v41  ;;  %v2909_v10 = vadd.f32 %v2893_v52, %v2856_v16  ;;  %v12200_v2 = vld [vmem:[#allocation5_spill] sm:$0xff]  ;;  %v12201_v34 = vld [vmem:[#allocation42_spill] sm:$0xff] }
 0x452   : > { %v2910_v3 = vadd.f32 %v2894_v50, %v2857_v58  ;;  %v2911_v33 = vadd.f32 %v2895_v53, %v2858_v6  ;;  %v2912_v13 = vadd.f32 %v2896_v25, %v2859_v17  ;;  %v2913_v37 = vadd.f32 %v2897_v31, %v2860_v12  ;;  %v12202_v47 = vld [vmem:[#allocation6_spill] sm:$0xff]  ;;  %v12204_v58 = vld [vmem:[#allocation7_spill] sm:$0xff]  ;;  %v12205_v17 = vld [vmem:[#allocation44_spill] sm:$0xff] }
 0x453   : > { %v2914_v23 = vadd.f32 %v2898_v48, %v2861_v26  ;;  %v2915_v27 = vadd.f32 %v2899_v39, %v2862_v4  ;;  %v2916_v55 = vadd.f32 %v2900_v42, %v2863_v8  ;;  %v2917_v0 = vadd.f32 %v2901_v22, %v2864_v45  ;;  %v12203_v16 = vld [vmem:[#allocation54_spill] sm:$0xff]  ;;  %v12206_v31 = vld [vmem:[#allocation8_spill] sm:$0xff]  ;;  %v12207_v39 = vld [vmem:[#allocation55_spill] sm:$0xff] }
 0x454   : > { %v2918_v15 = vadd.f32 %v2902_v32, %v2865_v63  ;;  %v2919_v11 = vadd.f32 %v2903_v54, %v2866_v1  ;;  %v2920_v60 = vadd.f32 %v2904_v44, %v2867_v49  ;;  %v2921_v30 = vadd.f32 %v2905_v14, %v2868_v29  ;;  %v12208_v8 = vld [vmem:[#allocation9_spill] sm:$0xff]  ;;  %v12209_v63 = vld [vmem:[#allocation63_spill] sm:$0xff]  ;;  %v12210_v1 = vld [vmem:[#allocation10_spill] sm:$0xff] }
 0x455   : > { %v2923_v59 = vmul.f32 %v12200_v2, %v12199_v28  ;;  %v2924_v41 = vmul.f32 %v12202_v47, %v12201_v34  ;;  %v2925_v6 = vmul.f32 %v12204_v58, %v12203_v16  ;;  %v2926_v26 = vmul.f32 %v12206_v31, %v12205_v17  ;;  %v12211_v12 = vld [vmem:[#allocation11_spill] sm:$0xff]  ;;  %v12212_v52 = vld [vmem:[#allocation17_spill] sm:$0xff]  ;;  %v12213_v50 = vld [vmem:[#allocation12_spill] sm:$0xff] }
 0x456   : > { %v2927_v45 = vmul.f32 %v12208_v8, %v12207_v39  ;;  %v2928_v49 = vmul.f32 %v12210_v1, %v12209_v63  ;;  %v2929_v4 = vmul.f32 %v12211_v12, %v9739_v38  ;;  %v2930_v29 = vmul.f32 %v12107_v24, %v9741_v21  ;;  %v12214_v38 = vld [vmem:[#allocation18_spill] sm:$0xff]  ;;  %v12215_v53 = vld [vmem:[#allocation92_spill] sm:$0xff]  ;;  %v12216_v21 = vld [vmem:[#allocation19_spill] sm:$0xff] }
 0x457   : > { %v2931_v28 = vmul.f32 %v12109_v18, %v9744_v20  ;;  %v2932_v48 = vmul.f32 %v12110_v7, %v9751_v56  ;;  %v2933_v57 = vmul.f32 %v12115_v61, %v9753_v43  ;;  %v2934_v51 = vmul.f32 %v12120_v36, %v9787_v9  ;;  %v12217_v22 = vld [vmem:[#allocation20_spill] sm:$0xff]  ;;  %v12218_v32 = vld [vmem:[#allocation39_spill] sm:$0xff] }
 0x458   : > { %v2935_v40 = vmul.f32 %v12212_v52, %v9789_v19  ;;  %v2936_v25 = vmul.f32 %v12214_v38, %v12213_v50  ;;  %v2937_v42 = vmul.f32 %v12216_v21, %v12215_v53  ;;  %v2938_v20 = vmul.f32 %v12217_v22, %v2922_v35 }
 0x459   : > { %v2943_v54 = vmul.f32 %v12218_v32, %v2923_v59  ;;  %v2944_v56 = vmul.f32 %v12218_v32, %v2924_v41  ;;  %v2945_v43 = vmul.f32 %v12218_v32, %v2925_v6  ;;  %v2946_v44 = vmul.f32 %v12218_v32, %v2926_v26 }
 0x45a   : > { %v2947_v9 = vmul.f32 %v12218_v32, %v2927_v45  ;;  %v2948_v19 = vmul.f32 %v12218_v32, %v2928_v49  ;;  %v2949_v14 = vmul.f32 %v12218_v32, %v2929_v4  ;;  %v2950_v34 = vmul.f32 %v12218_v32, %v2930_v29 }
 0x45b   : > { %v2951_v16 = vmul.f32 %v12218_v32, %v2931_v28  ;;  %v2952_v35 = vmul.f32 %v12218_v32, %v2932_v48  ;;  %v2953_v59 = vmul.f32 %v12218_v32, %v2933_v57  ;;  %v2954_v41 = vmul.f32 %v12218_v32, %v2934_v51 }
 0x45c   : > { %v2955_v6 = vmul.f32 %v12218_v32, %v2935_v40  ;;  %v2956_v17 = vmul.f32 %v12218_v32, %v2936_v25  ;;  %v2957_v26 = vmul.f32 %v12218_v32, %v2937_v42  ;;  %v2958_v39 = vmul.f32 %v12218_v32, %v2938_v20  ;;  %v12219_v25 = vld [vmem:[#allocation57_spill] sm:$0xff]  ;;  %v12220_v42 = vld [vmem:[#allocation46_spill] sm:$0xff]  ;;  %v12221_v20 = vld [vmem:[#allocation56_spill] sm:$0xff] }
 0x45d   : > { %v2959_v45 = vadd.f32 %v2943_v54, %v2906_v62  ;;  %v2960_v63 = vadd.f32 %v2944_v56, %v2907_v46  ;;  %v2961_v49 = vadd.f32 %v2945_v43, %v2908_v5  ;;  %v2962_v4 = vadd.f32 %v2946_v44, %v2909_v10  ;;  %v12222_v62 = vld [vmem:[#allocation50_spill] sm:$0xff]  ;;  %v12223_v10 = vld [vmem:[#allocation21_spill] sm:$0xff]  ;;  %v12230_v32 = vld [vmem:[#allocation72_spill] sm:$0xff] }
 0x45e   : > { %v2963_v29 = vadd.f32 %v2947_v9, %v2910_v3  ;;  %v2964_v28 = vadd.f32 %v2948_v19, %v2911_v33  ;;  %v2965_v50 = vadd.f32 %v2949_v14, %v2912_v13  ;;  %v2966_v48 = vadd.f32 %v2950_v34, %v2913_v37  ;;  %v12224_v33 = vld [vmem:[#allocation48_spill] sm:$0xff]  ;;  %v12225_v3 = vld [vmem:[#allocation22_spill] sm:$0xff]  ;;  %v12226_v13 = vld [vmem:[#allocation59_spill] sm:$0xff] }
 0x45f   : > { %v2967_v53 = vadd.f32 %v2951_v16, %v2914_v23  ;;  %v2968_v57 = vadd.f32 %v2952_v35, %v2915_v27  ;;  %v2969_v22 = vadd.f32 %v2953_v59, %v2916_v55  ;;  %v2970_v51 = vadd.f32 %v2954_v41, %v2917_v0  ;;  %v12227_v27 = vld [vmem:[#allocation23_spill] sm:$0xff]  ;;  %v12232_v19 = vld [vmem:[#allocation61_spill] sm:$0xff]  ;;  %v12236_v41 = vld [vmem:[#allocation80_spill] sm:$0xff] }
 0x460   : > { %v2971_v21 = vadd.f32 %v2955_v6, %v2918_v15  ;;  %v2972_v40 = vadd.f32 %v2956_v17, %v2919_v11  ;;  %v10075_v38 = vadd.f32 %v2957_v26, %v2920_v60  ;;  %v2997_v52 = vmul.f32 %v12220_v42, %v12219_v25  ;;  %v12228_v11 = vld [vmem:[#allocation52_spill] sm:$0xff]  ;;  %v12229_v15 = vld [vmem:[#allocation62_spill] sm:$0xff]  ;;  %v12231_v56 = vld [vmem:[#allocation51_spill] sm:$0xff] }
 0x461   : > { %v2998_v46 = vmul.f32 %v12220_v42, %v12221_v20  ;;  %v3029_v5 = vmul.f32 %v12223_v10, %v12222_v62  ;;  %v3030_v37 = vmul.f32 %v12225_v3, %v12224_v33  ;;  %v3031_v23 = vmul.f32 %v12227_v27, %v12226_v13  ;;  %v12233_v14 = vld [vmem:[#allocation25_spill] sm:$0xff]  ;;  %v12235_v35 = vld [vmem:[#allocation79_spill] sm:$0xff]  ;;  %v12239_v20 = vld [vmem:[#allocation40_spill] sm:$0xff] }
 0x462   : > { %v10087_v0 = vadd.f32 %v2958_v39, %v2921_v30  ;;  %v2999_v55 = vmul.f32 %v12220_v42, %v12228_v11  ;;  %v3000_v60 = vmul.f32 %v12220_v42, %v12229_v15  ;;  %v3001_v54 = vmul.f32 %v12220_v42, %v12230_v32  ;;  %v12234_v16 = vld [vmem:[#allocation69_spill] sm:$0xff]  ;;  %v12237_v26 = vld [vmem:[#allocation71_spill] sm:$0xff]  ;;  %v12238_v39 = vld [vmem:[#allocation26_spill] sm:$0xff] }
 0x463   : > { %v3012_v43 = vadd.f32 %v12231_v56, %v2959_v45  ;;  %v3013_v44 = vadd.f32 %v2997_v52, %v2960_v63  ;;  %v3014_v9 = vadd.f32 %v2998_v46, %v2961_v49  ;;  %v3032_v34 = vmul.f32 %v12233_v14, %v12232_v19  ;;  %v12240_v49 = vld [vmem:[#allocation45_spill] sm:$0xff]  ;;  %v12242_v11 = vld [vmem:[#allocation16_spill] sm:$0xff]  ;;  %v12243_v15 = vld [vmem:[#allocation27_spill] sm:$0xff] }
 0x464   : > { %v3002_v30 = vmul.f32 %v12220_v42, %v12234_v16  ;;  %v3003_v59 = vmul.f32 %v12220_v42, %v12235_v35  ;;  %v3004_v6 = vmul.f32 %v12220_v42, %v12236_v41  ;;  %v3015_v17 = vadd.f32 %v2999_v55, %v2962_v4  ;;  %v12241_v62 = vld [vmem:[#allocation53_spill] sm:$0xff]  ;;  %v12245_v19 = vld [vmem:[#allocation4_spill] sm:$0xff]  ;;  %v12246_v35 = vld [vmem:[#allocation91_spill] sm:$0xff] }
 0x465   : > { %v3033_v25 = vmul.f32 %v12238_v39, %v12237_v26  ;;  %v3049_v45 = vmul.f32 %v12239_v20, %v3029_v5  ;;  %v3050_v52 = vmul.f32 %v12239_v20, %v3030_v37  ;;  %v3051_v63 = vmul.f32 %v12239_v20, %v3031_v23  ;;  %v12244_v37 = vld [vmem:[#allocation15_spill] sm:$0xff]  ;;  %v12249_v26 = vld [vmem:[#allocation28_spill] sm:$0xff] }
 0x466   : > { %v3005_v46 = vmul.f32 %v12220_v42, %v12240_v49  ;;  %v3006_v33 = vmul.f32 %v12220_v42, %v12241_v62  ;;  %v3016_v13 = vadd.f32 %v3000_v60, %v2963_v29  ;;  %v3034_v32 = vmul.f32 %v12243_v15, %v12242_v11  ;;  %v12247_v60 = vld [vmem:[#allocation14_spill] sm:$0xff]  ;;  %v12250_v49 = vld [vmem:[#allocation84_spill] sm:$0xff]  ;;  %v12251_v62 = vld [vmem:[#allocation29_spill] sm:$0xff] }
 0x467   : > { %v3052_v4 = vmul.f32 %v12239_v20, %v3032_v34  ;;  %v10116_v55 = vadd.f32 %v3049_v45, %v3012_v43  ;;  %v10118_v56 = vadd.f32 %v3050_v52, %v3013_v44  ;;  %v10120_v5 = vadd.f32 %v3051_v63, %v3014_v9  ;;  %v12248_v43 = vld [vmem:[#allocation13_spill] sm:$0xff] }
 0x468   : > { %v3007_v23 = vmul.f32 %v12220_v42, %v12244_v37  ;;  %v3008_v16 = vmul.f32 %v12220_v42, %v12245_v19  ;;  %v3009_v29 = vmul.f32 %v12220_v42, %v12246_v35  ;;  %v10130_v41 = vmul.f32 %v12220_v42, %v12247_v60 }
 0x469   : > { %v3017_v34 = vadd.f32 %v3001_v54, %v2964_v28  ;;  %v3035_v44 = vmul.f32 %v12249_v26, %v12248_v43  ;;  %v3053_v9 = vmul.f32 %v12239_v20, %v3033_v25  ;;  %v10135_v45 = vadd.f32 %v3052_v4, %v3015_v17  ;;  %v12258_v26 = vld [vmem:[#allocation31_spill] sm:$0xff] }
 0x46a   : > { %v3018_v52 = vadd.f32 %v3002_v30, %v2965_v50  ;;  %v3019_v63 = vadd.f32 %v3003_v59, %v2966_v48  ;;  %v3036_v11 = vmul.f32 %v12251_v62, %v12250_v49  ;;  %v3054_v37 = vmul.f32 %v12239_v20, %v3034_v32  ;;  %v12255_v30 = vld [vmem:[#allocation85_spill] sm:$0xff]  ;;  %v12256_v59 = vld [vmem:[#allocation30_spill] sm:$0xff] }
 0x46b   : > { %v10140_v19 = vadd.f32 %v3053_v9, %v3016_v13  ;;  %v3081_v42 = vsel %vm12252_vm11, %v10116_v55, 0.0  ;;  %v3082_v28 = vsel %vm12253_vm12, %v10118_v56, 0.0  ;;  %v3084_v54 = vsel %vm12254_vm13, %v10120_v5, 0.0  ;;  %v12257_v62 = vld [vmem:[#allocation86_spill] sm:$0xff]  ;;  %vm12278_vm11 = vmmov %vm12024_vm2 }
 0x46c   : > { %v3020_v17 = vadd.f32 %v3004_v6, %v2967_v53  ;;  %v3021_v25 = vadd.f32 %v3005_v46, %v2968_v57  ;;  %v3022_v50 = vadd.f32 %v3006_v33, %v2969_v22  ;;  %v3083_v48 = vadd.f32 %v3082_v28, %v3081_v42  ;;  %v12266_v42 = vld [vmem:[#allocation34_spill] sm:$0xff]  ;;  %vm12279_vm12 = vmmov %vm12024_vm2 }
 0x46d   : > { %v3037_v4 = vmul.f32 %v12256_v59, %v12255_v30  ;;  %v3055_v32 = vmul.f32 %v12239_v20, %v3035_v44  ;;  %v10151_v13 = vadd.f32 %v3054_v37, %v3017_v34  ;;  %v3086_v35 = vsel %vm12024_vm2, %v10135_v45, 0.0  ;;  %v12265_v37 = vld [vmem:[#allocation89_spill] sm:$0xff]  ;;  %vm12280_vm13 = vmmov %vm12024_vm2 }
 0x46e   : > { %v3023_v60 = vadd.f32 %v3007_v23, %v2970_v51  ;;  %v3024_v43 = vadd.f32 %v3008_v16, %v2971_v21  ;;  %v3025_v9 = vadd.f32 %v3009_v29, %v2972_v40  ;;  %v3085_v49 = vadd.f32 %v3084_v54, %v3083_v48  ;;  %v12260_v40 = vld [vmem:[#allocation87_spill] sm:$0xff]  ;;  %v12261_v23 = vld [vmem:[#allocation32_spill] sm:$0xff] }
 0x46f   : > { %v3038_v53 = vmul.f32 %v12258_v26, %v12257_v62  ;;  %v3056_v22 = vmul.f32 %v12239_v20, %v3036_v11  ;;  %v10158_v57 = vadd.f32 %v3055_v32, %v3018_v52  ;;  %v3088_v6 = vsel %vm12259_vm3, %v10140_v19, 0.0  ;;  %v12263_v52 = vld [vmem:[#allocation88_spill] sm:$0xff]  ;;  %v12264_v62 = vld [vmem:[#allocation33_spill] sm:$0xff]  ;;  %vm12282_vm3 = vmmov %vm12024_vm2 }
 0x470   : > { %v3087_v46 = vadd.f32 %v3086_v35, %v3085_v49  ;;  %v3119_v33 = vmul.f32 %v10116_v55, %v10116_v55  ;;  %v3120_v51 = vmul.f32 %v10118_v56, %v10118_v56  ;;  %v3121_v21 = vmul.f32 %v10120_v5, %v10120_v5  ;;  %v4361_v26 = vld [vmem:[%s11446_s22 + $0xb0] sm:$0xff] }
 0x471   : > { %v3039_v16 = vmul.f32 %v12261_v23, %v12260_v40  ;;  %v3057_v29 = vmul.f32 %v12239_v20, %v3037_v4  ;;  %v10171_v34 = vadd.f32 %v3056_v22, %v3019_v63  ;;  %v3090_v44 = vsel %vm12262_vm9, %v10151_v13, 0.0  ;;  %vm12283_vm9 = vmmov %vm12024_vm2 }
 0x472   : > { %v3040_v11 = vmul.f32 %v12264_v62, %v12263_v52  ;;  %v3041_v28 = vmul.f32 %v12266_v42, %v12265_v37  ;;  %v3089_v54 = vadd.f32 %v3088_v6, %v3087_v46  ;;  %v3122_v48 = vmul.f32 %v10135_v45, %v10135_v45  ;;  %v12273_v52 = vld [vmem:[#allocation36_spill] sm:$0xff] }
 0x473   : > { %v3058_v30 = vmul.f32 %v12239_v20, %v3038_v53  ;;  %v10182_v32 = vadd.f32 %v3057_v29, %v3020_v17  ;;  %v3092_v63 = vsel %vm12267_vm14, %v10158_v57, 0.0  ;;  %v3123_v4 = vmul.f32 %v10140_v19, %v10140_v19  ;;  %v12272_v29 = vld [vmem:[#allocation90_spill] sm:$0xff]  ;;  %vm12284_vm14 = vmmov %vm12024_vm2 }
 0x474   : > { %v3091_v35 = vadd.f32 %v3090_v44, %v3089_v54  ;;  %v3135_v49 = vsel %vm12268_vm4, %v3119_v33, 0.0  ;;  %v3136_v22 = vsel %vm12269_vm5, %v3120_v51, 0.0  ;;  %v3138_v6 = vsel %vm12270_vm6, %v3121_v21, 0.0  ;;  %v12276_v54 = vld [vmem:[#allocation35_spill] sm:$0xff]  ;;  %vm12285_vm4 = vmmov %vm12024_vm2 }
 0x475   : > { %v3059_v46 = vmul.f32 %v12239_v20, %v3039_v16  ;;  %v10192_v40 = vadd.f32 %v3058_v30, %v3021_v25  ;;  %v3094_v17 = vsel %vm12271_vm7, %v10171_v34, 0.0  ;;  %v3137_v53 = vadd.f32 %v3136_v22, %v3135_v49  ;;  %v12277_v30 = vld [vmem:[#allocation37_spill] sm:$0xff]  ;;  %vm12286_vm5 = vmmov %vm12024_vm2 }
 0x476   : > { %v3042_v37 = vmul.f32 %v12273_v52, %v12272_v29  ;;  %v3093_v42 = vadd.f32 %v3092_v63, %v3091_v35  ;;  %v3124_v44 = vmul.f32 %v10151_v13, %v10151_v13  ;;  %v3140_v33 = vsel %vm12274_vm8, %v3122_v48, 0.0  ;;  %vm12288_vm6 = vmmov %vm12024_vm2 }
 0x477   : > { %v3060_v51 = vmul.f32 %v12239_v20, %v3040_v11  ;;  %v10202_v21 = vadd.f32 %v3059_v46, %v3022_v50  ;;  %v3096_v25 = vsel %vm12275_vm10, %v10182_v32, 0.0  ;;  %v3139_v16 = vadd.f32 %v3138_v6, %v3137_v53  ;;  %vm12289_vm7 = vmmov %vm12024_vm2 }
 0x478   : > { %v3043_v49 = vmul.f32 %v12277_v30, %v12276_v54  ;;  %v3095_v22 = vadd.f32 %v3094_v17, %v3093_v42  ;;  %v3125_v63 = vmul.f32 %v10158_v57, %v10158_v57  ;;  %v3142_v35 = vsel %vm12278_vm11, %v3123_v4, 0.0  ;;  %vm12290_vm8 = vmmov %vm12024_vm2 }
 0x479   : > { %v3061_v29 = vmul.f32 %v12239_v20, %v3041_v28  ;;  %v10212_v48 = vadd.f32 %v3060_v51, %v3023_v60  ;;  %v3098_v50 = vsel %vm12279_vm12, %v10192_v40, 0.0  ;;  %v3141_v11 = vadd.f32 %v3140_v33, %v3139_v16  ;;  %v12281_v51 = vld [vmem:[#allocation41_spill] sm:$0xff]  ;;  %vm12291_vm10 = vmmov %vm12024_vm2 }
 0x47a   : > { %v3026_v6 = vadd.f32 %v10130_v41, %v10075_v38  ;;  %v3097_v46 = vadd.f32 %v3096_v25, %v3095_v22  ;;  %v3126_v42 = vmul.f32 %v10171_v34, %v10171_v34  ;;  %v3144_v17 = vsel %vm12280_vm13, %v3124_v44, 0.0  ;;  %vm12292_vm11 = vmmov %vm12024_vm2 }
 0x47b   : > { %v3062_v53 = vmul.f32 %v12239_v20, %v3042_v37  ;;  %v10222_v4 = vadd.f32 %v3061_v29, %v3024_v43  ;;  %v3100_v60 = vsel %vm12024_vm2, %v10202_v21, 0.0  ;;  %v3143_v28 = vadd.f32 %v3142_v35, %v3141_v11  ;;  %vm12293_vm12 = vmmov %vm12024_vm2 }
 0x47c   : > { %v3027_v33 = vadd.f32 %v12281_v51, %v10087_v0  ;;  %v3099_v16 = vadd.f32 %v3098_v50, %v3097_v46  ;;  %v3127_v38 = vmul.f32 %v10182_v32, %v10182_v32  ;;  %v3146_v41 = vsel %vm12282_vm3, %v3125_v63, 0.0  ;;  %vm12294_vm13 = vmmov %vm12024_vm2 }
 0x47d   : > { %v3063_v25 = vmul.f32 %v12239_v20, %v3043_v49  ;;  %v10232_v44 = vadd.f32 %v3062_v53, %v3025_v9  ;;  %v3102_v43 = vsel %vm12283_vm9, %v10212_v48, 0.0  ;;  %v3145_v37 = vadd.f32 %v3144_v17, %v3143_v28  ;;  %v12287_v49 = vld [vmem:[#allocation43_spill] sm:$0xff]  ;;  %vm12295_vm3 = vmmov %vm12024_vm2 }
 0x47e   : > { %v3101_v54 = vadd.f32 %v3100_v60, %v3099_v16  ;;  %v3128_v22 = vmul.f32 %v10192_v40, %v10192_v40  ;;  %v3148_v0 = vsel %vm12284_vm14, %v3126_v42, 0.0  ;;  %v3104_v29 = vsel %vm12285_vm4, %v10222_v4, 0.0  ;;  %vm12296_vm9 = vmmov %vm12024_vm2 }
 0x47f   : > { %v10239_v35 = vadd.f32 %v3063_v25, %v3026_v6  ;;  %v3147_v63 = vadd.f32 %v3146_v41, %v3145_v37  ;;  %v3129_v20 = vmul.f32 %v10202_v21, %v10202_v21  ;;  %v3150_v9 = vsel %vm12286_vm5, %v3127_v38, 0.0  ;;  %vm12297_vm14 = vmmov %vm12024_vm2 }
 0x480   : > { %v3103_v50 = vadd.f32 %v3102_v43, %v3101_v54  ;;  %v10247_v11 = vadd.f32 %v12287_v49, %v3027_v33  ;;  %v3106_v46 = vsel %vm12288_vm6, %v10232_v44, 0.0  ;;  %v3130_v6 = vmul.f32 %v10212_v48, %v10212_v48  ;;  %vm12298_vm4 = vmmov %vm12024_vm2 }
 0x481   : > { %v3149_v17 = vadd.f32 %v3148_v0, %v3147_v63  ;;  %v3152_v53 = vsel %vm12289_vm7, %v3128_v22, 0.0  ;;  %v3108_v60 = vsel %vm12290_vm8, %v10239_v35, 0.0  ;;  %v3131_v16 = vmul.f32 %v10222_v4, %v10222_v4  ;;  %vm12299_vm5 = vmmov %vm12024_vm2 }
 0x482   : > { %v3105_v42 = vadd.f32 %v3104_v29, %v3103_v50  ;;  %v3154_v33 = vsel %vm12291_vm10, %v3129_v20, 0.0  ;;  %v3110_v38 = vsel %vm12292_vm11, %v10247_v11, 0.0  ;;  %v3132_v43 = vmul.f32 %v10232_v44, %v10232_v44  ;;  %vm12300_vm6 = vmmov %vm12024_vm2 }
 0x483   : > { %v3151_v28 = vadd.f32 %v3150_v9, %v3149_v17  ;;  %v3156_v37 = vsel %vm12293_vm12, %v3130_v6, 0.0  ;;  %v3133_v0 = vmul.f32 %v10239_v35, %v10239_v35  ;;  %v3158_v29 = vsel %vm12294_vm13, %v3131_v16, 0.0  ;;  %vm12301_vm7 = vmmov %vm12024_vm2 }
 0x484   : > { %v3107_v51 = vadd.f32 %v3106_v46, %v3105_v42  ;;  %v3134_v20 = vmul.f32 %v10247_v11, %v10247_v11  ;;  %v3160_v9 = vsel %vm12024_vm2, %v3132_v43, 0.0  ;;  %vm12302_vm8 = vmmov %vm12024_vm2 }
 0x485   : > { %v3153_v41 = vadd.f32 %v3152_v53, %v3151_v28  ;;  %v3162_v17 = vsel %vm12295_vm3, %v3133_v0, 0.0  ;;  %vm12303_vm10 = vmmov %vm12024_vm2 }
 0x486   : > { %v3109_v25 = vadd.f32 %v3108_v60, %v3107_v51  ;;  %v3164_v53 = vsel %vm12296_vm9, %v3134_v20, 0.0  ;;  %vm12304_vm11 = vmmov %vm12024_vm2 }
 0x487   : > { %v3155_v54 = vadd.f32 %v3154_v33, %v3153_v41  ;;  %vm12305_vm12 = vmmov %vm12024_vm2 }
 0x488   : > { %v3111_v22 = vadd.f32 %v3110_v38, %v3109_v25  ;;  %vm12306_vm13 = vmmov %vm12024_vm2 }
 0x489   : > { %v3157_v63 = vadd.f32 %v3156_v37, %v3155_v54  ;;  %vm12307_vm3 = vmmov %vm12024_vm2 }
 0x48a   : > { %v3112_v50 = vrot.slane %v3111_v22, 4  ;;  %vm12308_vm9 = vmmov %vm12024_vm2 }
 0x48b   : > { %v3159_v49 = vadd.f32 %v3158_v29, %v3157_v63 }
 0x48c   : > { %v3113_v46 = vadd.f32 %v3112_v50, %v3111_v22 }
 0x48d   : > { %v3161_v42 = vadd.f32 %v3160_v9, %v3159_v49 }
 0x48e   : > { %v3114_v6 = vrot.slane %v3113_v46, 2 }
 0x48f   : > { %v3163_v60 = vadd.f32 %v3162_v17, %v3161_v42 }
 0x490   : > { %v3115_v28 = vadd.f32 %v3114_v6, %v3113_v46 }
 0x491   : > { %v3165_v51 = vadd.f32 %v3164_v53, %v3163_v60 }
 0x492   : > { %v3116_v33 = vrot.slane %v3115_v28, 1 }
 0x493   : > { %v3166_v16 = vrot.slane %v3165_v51, 4 }
 0x494   : > { %v3117_v38 = vadd.f32 %v3116_v33, %v3115_v28 }
 0x495   : > { %v3167_v41 = vadd.f32 %v3166_v16, %v3165_v51 }
 0x496   : > { %v10272_v37 = vmul.f32 0.0078125, %v3117_v38 }
 0x497   : > { %v3168_v25 = vrot.slane %v3167_v41, 2 }
 0x498   : > { %v3173_v22 = vmul.f32 %v10272_v37, %v10272_v37  ;;  %v3176_v9 = vsub.f32 %v10116_v55, %v10272_v37  ;;  %v3177_v49 = vsub.f32 %v10118_v56, %v10272_v37  ;;  %v3178_v46 = vsub.f32 %v10120_v5, %v10272_v37  ;;  %v10297_v5 = vld [vmem:[%s11436_s12] ss:$0 sm:$0xff] }
 0x499   : > { %v3169_v54 = vadd.f32 %v3168_v25, %v3167_v41  ;;  %v3179_v42 = vsub.f32 %v10135_v45, %v10272_v37  ;;  %v3180_v6 = vsub.f32 %v10140_v19, %v10272_v37  ;;  %v3181_v56 = vsub.f32 %v10151_v13, %v10272_v37 }
 0x49a   : > { %v3182_v45 = vsub.f32 %v10158_v57, %v10272_v37  ;;  %v3183_v51 = vsub.f32 %v10171_v34, %v10272_v37  ;;  %v3184_v25 = vsub.f32 %v10182_v32, %v10272_v37 }
 0x49b   : > { %v3170_v43 = vrot.slane %v3169_v54, 1 }
 0x49d   : > { %v3171_v29 = vadd.f32 %v3170_v43, %v3169_v54  ;;  %v10315_v54 = vld [vmem:[%s11437_s13] ss:$0 sm:$0xff] }
 0x49f   : > { %v3172_v0 = vmul.f32 0.0078125, %v3171_v29  ;;  %v3185_v29 = vsub.f32 %v10192_v40, %v10272_v37  ;;  %v3187_v40 = vsub.f32 %v10212_v48, %v10272_v37 }
 0x4a1   : > { %v3174_v63 = vsub.f32 %v3172_v0, %v3173_v22  ;;  %v3186_v22 = vsub.f32 %v10202_v21, %v10272_v37  ;;  %v3188_v21 = vsub.f32 %v10222_v4, %v10272_v37 }
 0x4a3   : > { %v3175_v50 = vmax.f32 %v3174_v63, 0.0 }
 0x4a5   : > { %v3192_v20 = vadd.f32 1e-05, %v3175_v50 }
 0x4a7   : > { %7989 = vrsqrt.f32 %v3192_v20 }
 0x4b1   : > { %v10282_v17 = vpop.eup %7989 }
 0x4b2   : > { %v3194_v53 = vmul.f32 %v10282_v17, %v3176_v9  ;;  %v3195_v60 = vmul.f32 %v10282_v17, %v3177_v49  ;;  %v3196_v55 = vmul.f32 %v10282_v17, %v3178_v46  ;;  %v3197_v28 = vmul.f32 %v10282_v17, %v3179_v42 }
 0x4b3   : > { %v3198_v19 = vmul.f32 %v10282_v17, %v3180_v6  ;;  %v3199_v33 = vmul.f32 %v10282_v17, %v3181_v56  ;;  %v3200_v16 = vmul.f32 %v10282_v17, %v3182_v45  ;;  %v3201_v34 = vmul.f32 %v10282_v17, %v3183_v51 }
 0x4b4   : > { %v3217_v13 = vmul.f32 %v10297_v5, %v3194_v53  ;;  %v3218_v38 = vmul.f32 %v10297_v5, %v3195_v60  ;;  %v3219_v41 = vmul.f32 %v10297_v5, %v3196_v55  ;;  %v3220_v57 = vmul.f32 %v10297_v5, %v3197_v28 }
 0x4b5   : > { %v3221_v43 = vmul.f32 %v10297_v5, %v3198_v19  ;;  %v3202_v0 = vmul.f32 %v10282_v17, %v3184_v25  ;;  %v3222_v32 = vmul.f32 %v10297_v5, %v3199_v33  ;;  %v3223_v63 = vmul.f32 %v10297_v5, %v3200_v16 }
 0x4b6   : > { %v10327_v50 = vadd.f32 %v10315_v54, %v3217_v13  ;;  %v10330_v20 = vadd.f32 %v10315_v54, %v3218_v38  ;;  %v10333_v9 = vadd.f32 %v10315_v54, %v3219_v41  ;;  %v3203_v49 = vmul.f32 %v10282_v17, %v3185_v29 }
 0x4b7   : > { %v10341_v46 = vadd.f32 %v10315_v54, %v3220_v57  ;;  %v3189_v42 = vsub.f32 %v10232_v44, %v10272_v37  ;;  %v3204_v6 = vmul.f32 %v10282_v17, %v3186_v22  ;;  %v3224_v53 = vmul.f32 %v10297_v5, %v3201_v34 }
 0x4b8   : > { %v10348_v60 = vadd.f32 %v10315_v54, %v3221_v43  ;;  %v3205_v48 = vmul.f32 %v10282_v17, %v3187_v40  ;;  %v3206_v55 = vmul.f32 %v10282_v17, %v3188_v21  ;;  %v3225_v4 = vmul.f32 %v10297_v5, %v3202_v0 }
 0x4b9   : > { %v10354_v56 = vadd.f32 %v10315_v54, %v3222_v32  ;;  %v10357_v28 = vadd.f32 %v10315_v54, %v3223_v63  ;;  %v6693_v44 = vmul.f32 -1.442695, %v10327_v50  ;;  %v6694_v45 = vmul.f32 -1.442695, %v10330_v20 }
 0x4ba   : > { %v6695_v19 = vmul.f32 -1.442695, %v10333_v9  ;;  %v3207_v51 = vmul.f32 %v10282_v17, %v3189_v42  ;;  %v3226_v33 = vmul.f32 %v10297_v5, %v3203_v49  ;;  %v6696_v16 = vmul.f32 -1.442695, %v10341_v46 }
 0x4bb   : > { %v3227_v13 = vmul.f32 %v10297_v5, %v3204_v6  ;;  %v10367_v38 = vadd.f32 %v10315_v54, %v3224_v53  ;;  %7991 = vpow2.f32 %v6693_v44  ;;  %v6697_v41 = vmul.f32 -1.442695, %v10348_v60 }
 0x4bc   : > { %v3228_v25 = vmul.f32 %v10297_v5, %v3205_v48  ;;  %7993 = vpow2.f32 %v6694_v45  ;;  %v6698_v57 = vmul.f32 -1.442695, %v10354_v56  ;;  %v3229_v34 = vmul.f32 %v10297_v5, %v3206_v55 }
 0x4bd   : > { %v10374_v43 = vadd.f32 %v10315_v54, %v3225_v4  ;;  %7995 = vpow2.f32 %v6695_v19  ;;  %v6699_v29 = vmul.f32 -1.442695, %v10357_v28  ;;  %v3230_v22 = vmul.f32 %v10297_v5, %v3207_v51 }
 0x4be   : > { %v10379_v0 = vadd.f32 %v10315_v54, %v3226_v33  ;;  %7997 = vpow2.f32 %v6696_v16  ;;  %v3190_v32 = vsub.f32 %v10239_v35, %v10272_v37  ;;  %v10384_v63 = vadd.f32 %v10315_v54, %v3227_v13 }
 0x4bf   : > { %7999 = vpow2.f32 %v6697_v41  ;;  %v6700_v40 = vmul.f32 -1.442695, %v10367_v38  ;;  %v3191_v21 = vsub.f32 %v10247_v11, %v10272_v37  ;;  %v10390_v49 = vadd.f32 %v10315_v54, %v3228_v25 }
 0x4c0   : > { %8001 = vpow2.f32 %v6698_v57  ;;  %v3208_v42 = vmul.f32 %v10282_v17, %v3190_v32  ;;  %v10394_v6 = vadd.f32 %v10315_v54, %v3229_v34  ;;  %v6701_v35 = vmul.f32 -1.442695, %v10374_v43 }
 0x4c1   : > { %8003 = vpow2.f32 %v6699_v29  ;;  %v10398_v53 = vadd.f32 %v10315_v54, %v3230_v22  ;;  %v6702_v48 = vmul.f32 -1.442695, %v10379_v0  ;;  %v3209_v55 = vmul.f32 %v10282_v17, %v3191_v21 }
 0x4c2   : > { %8005 = vpow2.f32 %v6700_v40  ;;  %v6703_v11 = vmul.f32 -1.442695, %v10384_v63  ;;  %v6704_v37 = vmul.f32 -1.442695, %v10390_v49  ;;  %v3231_v44 = vmul.f32 %v10297_v5, %v3208_v42 }
 0x4c3   : > { %8007 = vpow2.f32 %v6701_v35  ;;  %v6705_v45 = vmul.f32 -1.442695, %v10394_v6  ;;  %v6706_v51 = vmul.f32 -1.442695, %v10398_v53  ;;  %v3232_v16 = vmul.f32 %v10297_v5, %v3209_v55 }
 0x4c4   : > { %8009 = vpow2.f32 %v6702_v48  ;;  %v10409_v57 = vadd.f32 %v10315_v54, %v3231_v44 }
 0x4c5   : > { %v7992_v4 = vpop.eup %7991  ;;  %8011 = vpow2.f32 %v6703_v11  ;;  %v10412_v40 = vadd.f32 %v10315_v54, %v3232_v16 }
 0x4c6   : > { %v7994_v19 = vpop.eup %7993  ;;  %v3304_v17 = vadd.f32 1.0, %v7992_v4  ;;  %8013 = vpow2.f32 %v6704_v37  ;;  %v6707_v35 = vmul.f32 -1.442695, %v10409_v57 }
 0x4c7   : > { %v7996_v33 = vpop.eup %7995  ;;  %v3305_v41 = vadd.f32 1.0, %v7994_v19  ;;  %8015 = vpow2.f32 %v6705_v45  ;;  %v6708_v11 = vmul.f32 -1.442695, %v10412_v40 }
 0x4c8   : > { %v7998_v13 = vpop.eup %7997  ;;  %v3306_v34 = vadd.f32 1.0, %v7996_v33  ;;  %8017 = vpow2.f32 %v6706_v51 }
 0x4c9   : > { %v8000_v25 = vpop.eup %7999  ;;  %v3307_v22 = vadd.f32 1.0, %v7998_v13  ;;  %8019 = vrcp.f32 %v3304_v17 }
 0x4ca   : > { %v8002_v29 = vpop.eup %8001  ;;  %v3308_v21 = vadd.f32 1.0, %v8000_v25  ;;  %8021 = vrcp.f32 %v3305_v41 }
 0x4cb   : > { %v8004_v32 = vpop.eup %8003  ;;  %v3309_v5 = vadd.f32 1.0, %v8002_v29  ;;  %8023 = vrcp.f32 %v3306_v34 }
 0x4cc   : > { %v8006_v42 = vpop.eup %8005  ;;  %v3310_v48 = vadd.f32 1.0, %v8004_v32  ;;  %8025 = vrcp.f32 %v3307_v22 }
 0x4cd   : > { %v8008_v55 = vpop.eup %8007  ;;  %8027 = vrcp.f32 %v3308_v21  ;;  %v3311_v4 = vadd.f32 1.0, %v8006_v42 }
 0x4ce   : > { %v8010_v37 = vpop.eup %8009  ;;  %8029 = vrcp.f32 %v3309_v5  ;;  %v3312_v45 = vadd.f32 1.0, %v8008_v55 }
 0x4cf   : > { %v8012_v44 = vpop.eup %8011  ;;  %8031 = vpow2.f32 %v6707_v35  ;;  %v3313_v33 = vadd.f32 1.0, %v8010_v37 }
 0x4d0   : > { %v8014_v54 = vpop.eup %8013  ;;  %8033 = vrcp.f32 %v3310_v48  ;;  %v3314_v13 = vadd.f32 1.0, %v8012_v44 }
 0x4d1   : > { %v8016_v19 = vpop.eup %8015  ;;  %8035 = vpow2.f32 %v6708_v11  ;;  %v3315_v22 = vadd.f32 1.0, %v8014_v54 }
 0x4d2   : > { %v8018_v51 = vpop.eup %8017  ;;  %8037 = vrcp.f32 %v3311_v4  ;;  %v3316_v48 = vadd.f32 1.0, %v8016_v19 }
 0x4d3   : > { %v8020_v16 = vpop.eup %8019  ;;  %8039 = vrcp.f32 %v3312_v45  ;;  %v3317_v4 = vadd.f32 1.0, %v8018_v51 }
 0x4d4   : > { %v8022_v17 = vpop.eup %8021  ;;  %v10417_v41 = vmul.f32 %v8020_v16, %v10327_v50  ;;  %8041 = vrcp.f32 %v3313_v33 }
 0x4d5   : > { %v8024_v25 = vpop.eup %8023  ;;  %v10420_v34 = vmul.f32 %v8022_v17, %v10330_v20  ;;  %8043 = vrcp.f32 %v3314_v13 }
 0x4d6   : > { %v8026_v29 = vpop.eup %8025  ;;  %v10423_v32 = vmul.f32 %v8024_v25, %v10333_v9  ;;  %v3368_v21 = vsel %vm12297_vm14, %v10417_v41, 0.0  ;;  %8045 = vrcp.f32 %v3315_v22  ;;  %vm12309_vm14 = vmmov %vm12024_vm2 }
 0x4d7   : > { %v8028_v5 = vpop.eup %8027  ;;  %v10428_v42 = vmul.f32 %v8026_v29, %v10341_v46  ;;  %v3369_v50 = vsel %vm12298_vm4, %v10420_v34, 0.0  ;;  %8047 = vrcp.f32 %v3316_v48  ;;  %vm12310_vm4 = vmmov %vm12024_vm2 }
 0x4d8   : > { %v8030_v35 = vpop.eup %8029  ;;  %v3370_v20 = vadd.f32 %v3369_v50, %v3368_v21  ;;  %v10433_v11 = vmul.f32 %v8028_v5, %v10348_v60  ;;  %v3371_v9 = vsel %vm12299_vm5, %v10423_v32, 0.0  ;;  %8049 = vrcp.f32 %v3317_v4  ;;  %vm12311_vm5 = vmmov %vm12024_vm2 }
 0x4d9   : > { %v8032_v55 = vpop.eup %8031  ;;  %v10438_v54 = vmul.f32 %v8030_v35, %v10354_v56  ;;  %v3373_v45 = vsel %vm12300_vm6, %v10428_v42, 0.0  ;;  %vm12312_vm6 = vmmov %vm12024_vm2 }
 0x4da   : > { %v8034_v37 = vpop.eup %8033  ;;  %v3372_v44 = vadd.f32 %v3371_v9, %v3370_v20  ;;  %v3318_v33 = vadd.f32 1.0, %v8032_v55  ;;  %v3375_v17 = vsel %vm12301_vm7, %v10433_v11, 0.0 }
 0x4db   : > { %v8036_v46 = vpop.eup %8035  ;;  %v10443_v60 = vmul.f32 %v8034_v37, %v10357_v28  ;;  %v3377_v29 = vsel %vm12302_vm8, %v10438_v54, 0.0 }
 0x4dc   : > { %v8038_v19 = vpop.eup %8037  ;;  %v3374_v16 = vadd.f32 %v3373_v45, %v3372_v44  ;;  %v3319_v13 = vadd.f32 1.0, %v8036_v46  ;;  %8051 = vrcp.f32 %v3318_v33 }
 0x4dd   : > { %v8040_v51 = vpop.eup %8039  ;;  %v10448_v56 = vmul.f32 %v8038_v19, %v10367_v38  ;;  %v3379_v28 = vsel %vm12303_vm10, %v10443_v60, 0.0 }
 0x4de   : > { %v3376_v25 = vadd.f32 %v3375_v17, %v3374_v16  ;;  %v8042_v22 = vpop.eup %8041  ;;  %v10453_v5 = vmul.f32 %v8040_v51, %v10374_v43  ;;  %8053 = vrcp.f32 %v3319_v13 }
 0x4df   : > { %v8044_v50 = vpop.eup %8043  ;;  %v10458_v48 = vmul.f32 %v8042_v22, %v10379_v0  ;;  %v3381_v38 = vsel %vm12304_vm11, %v10448_v56, 0.0 }
 0x4e0   : > { %v3378_v21 = vadd.f32 %v3377_v29, %v3376_v25  ;;  %v8046_v20 = vpop.eup %8045  ;;  %v10463_v9 = vmul.f32 %v8044_v50, %v10384_v63  ;;  %v3383_v43 = vsel %vm12305_vm12, %v10453_v5, 0.0 }
 0x4e1   : > { %v8048_v37 = vpop.eup %8047  ;;  %v10468_v44 = vmul.f32 %v8046_v20, %v10390_v49  ;;  %v3385_v0 = vsel %vm12306_vm13, %v10458_v48, 0.0 }
 0x4e2   : > { %v3380_v35 = vadd.f32 %v3379_v28, %v3378_v21  ;;  %v8050_v46 = vpop.eup %8049  ;;  %v10473_v19 = vmul.f32 %v8048_v37, %v10394_v6  ;;  %v3387_v63 = vsel %vm12024_vm2, %v10463_v9, 0.0 }
 0x4e3   : > { %v10478_v17 = vmul.f32 %v8050_v46, %v10398_v53  ;;  %v3389_v49 = vsel %vm12307_vm3, %v10468_v44, 0.0  ;;  %v3491_v46 = vld [vmem:[%s11440_s16] sm:$0x3] }
 0x4e4   : > { %v3382_v55 = vadd.f32 %v3381_v38, %v3380_v35  ;;  %v3391_v6 = vsel %vm12308_vm9, %v10473_v19, 0.0 }
 0x4e5   : > { %v3393_v21 = vsel %vm12309_vm14, %v10478_v17, 0.0 }
 0x4e6   : > { %v3384_v4 = vadd.f32 %v3383_v43, %v3382_v55  ;;  %v8052_v33 = vpop.eup %8051 }
 0x4e7   : > { %v10483_v25 = vmul.f32 %v8052_v33, %v10409_v57 }
 0x4e8   : > { %v3386_v45 = vadd.f32 %v3385_v0, %v3384_v4  ;;  %v8054_v51 = vpop.eup %8053  ;;  %v12313_v0 = vmov 0.0  }
 0x4e9   : > { %v10488_v22 = vmul.f32 %v8054_v51, %v10412_v40  ;;  %v3395_v28 = vsel %vm12310_vm4, %v10483_v25, 0.0 }
 0x4ea   : > { %v3388_v16 = vadd.f32 %v3387_v63, %v3386_v45  ;;  %v3410_v45 = vld [vmem:[%s11439_s15] sm:$0x1] }
 0x4eb   : > { %v3397_v35 = vsel %vm12311_vm5, %v10488_v22, 0.0 }
 0x4ec   : > { %v3390_v13 = vadd.f32 %v3389_v49, %v3388_v16 }
 0x4ee   : > { %v3392_v29 = vadd.f32 %v3391_v6, %v3390_v13 }
 0x4f0   : > { %v3394_v53 = vadd.f32 %v3393_v21, %v3392_v29  ;;  %v3595_v21 = vld [vmem:[%s11442_s18] sm:$0xff] }
 0x4f2   : > { %v3396_v50 = vadd.f32 %v3395_v28, %v3394_v53  ;;  %v3596_v53 = vld [vmem:[%s11442_s18 + $0x8] sm:$0xff]  ;;  %v3597_v28 = vld [vmem:[%s11442_s18 + $0x10] sm:$0xff] }
 0x4f4   : > { %v3398_v57 = vadd.f32 %v3397_v35, %v3396_v50  ;;  %v7649_v50 = vpack.c.bf16 %v3596_v53, %v3595_v21  ;;  %v3598_v35 = vld [vmem:[%s11442_s18 + $0x18] sm:$0xff] }
 0x4f6   : > { %v3399_v38 = vrot.slane %v3398_v57, 4  ;;  %7650 = vmatprep.subr.bf16.mxu1 %v7649_v50 }
 0x4f7   : > { %7652 = vmatpush3.bf16.msra.mxu1 %v7649_v50 }
 0x4f8   : > { %v3400_v20 = vadd.f32 %v3399_v38, %v3398_v57  ;;  %v7653_v57 = vpack.c.bf16 %v3598_v35, %v3597_v28  ;;  %v3799_v38 = vld [vmem:[%s11444_s20] sm:$0xff] }
 0x4fa   : > { %v3401_v55 = vrot.slane %v3400_v20, 2  ;;  %7654 = vmatprep.subr.bf16.mxu1 %v7653_v57 }
 0x4fb   : > { %7656 = vmatpush3.bf16.msra.mxu1 %v7653_v57 }
 0x4fc   : > { %v3402_v43 = vadd.f32 %v3401_v55, %v3400_v20  ;;  %v3801_v20 = vld [vmem:[%s11444_s20 + $0x10] sm:$0xff]  ;;  %v8090_v55 = vmov 0  }
 0x4fd   : > { %7913 = vset.pattern.permute.xlu0 %v8090_v55  ;;  %7914 = vset.pattern.permute.xlu1 %v8090_v55 }
 0x4fe   : > { %v3403_v37 = vrot.slane %v3402_v43, 1  ;;  %3817 = vperm.xlu0 %7913, %v3799_v38   ;;  %3827 = vperm.xlu1 %7914, %v3801_v20   ;;  %v12314_v20 = vld [vmem:[#allocation24_spill] sm:$0xff] }
 0x500   : > { %v3404_v4 = vadd.f32 %v3403_v37, %v3402_v43  ;;  %v3800_v43 = vld [vmem:[%s11444_s20 + $0x8] sm:$0xff]  ;;  %v3802_v37 = vld [vmem:[%s11444_s20 + $0x18] sm:$0xff] }
 0x502   : > { %v3405_v40 = vmul.f32 0.0078125, %v3404_v4  ;;  %3822 = vperm.xlu0 %7913, %v3800_v43   ;;  %3832 = vperm.xlu1 %7914, %v3802_v37   ;;  %v3803_v4 = vld [vmem:[%s11444_s20 + $0x20] sm:$0xff] }
 0x504   : > { %7232 = vmatmul.mubr.msk.f32.vlgmr.msra.gmra.mrb[2].mxu0 %vm12312_vm6, %v3405_v40  ;;  %v3804_v40 = vld [vmem:[%s11444_s20 + $0x28] sm:$0xff] }
 0x505   : > { %7236 = vmatprep.mubr.msk.f32.mxu0 %vm12029_vm15, %v12313_v0  ;;  %7235 = vmatpush3.msk.msra.mxu0 %vm2237_vm0, %v3491_v46  ;;  %v3805_v0 = vld [vmem:[%s11444_s20 + $0x30] sm:$0xff]  ;;  %v3806_v46 = vld [vmem:[%s11444_s20 + $0x38] sm:$0xff]  ;;  %vm12315_vm15 = vmmov %vm12024_vm2 }
 0x506   : > { %3837 = vperm.xlu0 %7913, %v3803_v4   ;;  %3842 = vperm.xlu1 %7914, %v3804_v40   ;;  %vm12316_vm0 = vmmov %vm12024_vm2 }
 0x507   : > { %vm12318_vm7 = vmmov %vm12316_vm0 }
 0x508   : > { %vm12319_vm8 = vmmov %vm12316_vm0 }
 0x509   : > { %vm12320_vm10 = vmmov %vm12316_vm0 }
 0x50a   : > { %3847 = vperm.xlu0 %7913, %v3805_v0   ;;  %3852 = vperm.xlu1 %7914, %v3806_v46   ;;  %vm12321_vm11 = vmmov %vm12316_vm0 }
 0x50b   : > { %vm12322_vm12 = vmmov %vm12316_vm0 }
 0x50c   : > { %vm12323_vm13 = vmmov %vm12316_vm0 }
 0x50d   : > { %vm12324_vm2 = vmmov %vm12316_vm0 }
 0x50e   : > { %vm12325_vm3 = vmmov %vm12316_vm0 }
 0x50f   : > { %vm12326_vm9 = vmmov %vm12316_vm0 }
 0x510   : > { %vm12327_vm14 = vmmov %vm12316_vm0 }
 0x511   : > { %vm12328_vm4 = vmmov %vm12316_vm0 }
 0x512   : > { %vm12329_vm5 = vmmov %vm12316_vm0 }
 0x513   : > { %vm12330_vm6 = vmmov %vm12316_vm0 }
 0x5d7   : > { %v3480_v63 = vpop.f32.mrb[2].mxu0 }
 0x5d8   : > { %v3481_v33 = vadd.f32 %v3480_v63, %v3410_v45  ;;  %v7233_v16 = vpop.f32.mrb[3].mxu0  ;;  %v3807_v45 = vld [vmem:[%s11444_s20 + $0x40] sm:$0xff]  ;;  %v3808_v63 = vld [vmem:[%s11444_s20 + $0x48] sm:$0xff] }
 0x5d9   : > { %3857 = vperm.xlu0 %7913, %v3807_v45   ;;  %3862 = vperm.xlu1 %7914, %v3808_v63   ;;  %v3810_v16 = vld [vmem:[%s11444_s20 + $0x58] sm:$0xff]  ;;  %v10606_v63 = vld [vmem:[%s11443_s19] ss:$0 sm:$0xff] }
 0x5da   : > { %v6710_v49 = vmul.f32 -1.442695, %v3481_v33 }
 0x5dc   : > { %8055 = vpow2.f32 %v6710_v49  ;;  %v3811_v49 = vld [vmem:[%s11444_s20 + $0x60] sm:$0xff] }
 0x5dd   : > { %3872 = vperm.xlu1 %7914, %v3810_v16  }
 0x5e6   : > { %v8056_v51 = vpop.eup %8055 }
 0x5e7   : > { %v3487_v13 = vadd.f32 1.0, %v8056_v51  ;;  %v3812_v51 = vld [vmem:[%s11444_s20 + $0x68] sm:$0xff] }
 0x5e8   : > { %3882 = vperm.xlu1 %7914, %v3812_v51  }
 0x5e9   : > { %8057 = vrcp.f32 %v3487_v13  ;;  %v3813_v13 = vld [vmem:[%s11444_s20 + $0x70] sm:$0xff] }
 0x5f3   : > { %v8058_v6 = vpop.eup %8057 }
 0x5f4   : > { %v3490_v29 = vmul.f32 %v8058_v6, %v3481_v33  ;;  %v3809_v33 = vld [vmem:[%s11444_s20 + $0x50] sm:$0xff]  ;;  %v3814_v6 = vld [vmem:[%s11444_s20 + $0x78] sm:$0xff] }
 0x5f5   : > { %3867 = vperm.xlu0 %7913, %v3809_v33   ;;  %3892 = vperm.xlu1 %7914, %v3814_v6  }
 0x5f6   : > { %7237 = vmatmul.mubr.msk.f32.vlgmr.msra.gmra.mrb[4].mxu0 %vm2233_vm1, %v3490_v29  ;;  %v3492_v29 = vld [vmem:[%s11441_s17] sm:$0x1]  ;;  %vm12317_vm1 = vmmov %vm12316_vm0 }
 0x5f9   : > { %3877 = vperm.xlu0 %7913, %v3811_v49  }
 0x5fd   : > { %3887 = vperm.xlu0 %7913, %v3813_v13  }
 0x6c9   : > { %v3565_v21 = vpop.f32.mrb[4].mxu0 }
 0x6ca   : > { %v3566_v53 = vadd.f32 %v3565_v21, %v3492_v29  ;;  %v7238_v28 = vpop.f32.mrb[5].mxu0 }
 0x6cc   : > { %v6713_v50 = vmul.f32 -1.442695, %v3566_v53 }
 0x6ce   : > { %8059 = vpow2.f32 %v6713_v50 }
 0x6d8   : > { %v8060_v35 = vpop.eup %8059 }
 0x6d9   : > { %v3572_v57 = vadd.f32 1.0, %v8060_v35 }
 0x6db   : > { %8061 = vrcp.f32 %v3572_v57 }
 0x6e5   : > { %v8062_v38 = vpop.eup %8061 }
 0x6e6   : > { %v3578_v55 = vrot.slane %v8062_v38, %v12314_v20 }
 0x6e8   : > { %v3579_v43 = vmul.f32 %v3578_v55, %v10417_v41  ;;  %v3580_v37 = vmul.f32 %v3578_v55, %v10420_v34  ;;  %v3581_v4 = vmul.f32 %v3578_v55, %v10423_v32  ;;  %v3582_v40 = vmul.f32 %v3578_v55, %v10428_v42 }
 0x6e9   : > { %v3583_v0 = vmul.f32 %v3578_v55, %v10433_v11  ;;  %v3584_v41 = vmul.f32 %v3578_v55, %v10438_v54  ;;  %v3585_v34 = vmul.f32 %v3578_v55, %v10443_v60  ;;  %v3586_v32 = vmul.f32 %v3578_v55, %v10448_v56 }
 0x6ea   : > { %7247 = vmatprep.mubr.msk.f32.mxu1 %vm12315_vm15, %v3579_v43  ;;  %v3587_v46 = vmul.f32 %v3578_v55, %v10453_v5  ;;  %v3588_v42 = vmul.f32 %v3578_v55, %v10458_v48  ;;  %v3589_v11 = vmul.f32 %v3578_v55, %v10463_v9  ;;  %v3590_v54 = vmul.f32 %v3578_v55, %v10468_v44  ;;  %v3828_v9 = vpop.permute.xlu1 %3827  ;;  %v3818_v44 = vpop.permute.xlu0 %3817  ;;  %vm12331_vm15 = vmmov %vm12316_vm0 }
 0x6eb   : > { %7248 = vmatmul.mubr.msk.f32.vlgmr.msra.gmra.mrb[18].mxu1 %vm12316_vm0, %v3580_v37  ;;  %v3591_v60 = vmul.f32 %v3578_v55, %v10473_v19  ;;  %v3592_v56 = vmul.f32 %v3578_v55, %v10478_v17  ;;  %v3593_v5 = vmul.f32 %v3578_v55, %v10483_v25  ;;  %v3594_v48 = vmul.f32 %v3578_v55, %v10488_v22 }
 0x6ec   : > { %7250 = vmatprep.mubr.msk.f32.mxu1 %vm12317_vm1, %v3581_v4  ;;  %vm12332_vm1 = vmmov %vm12316_vm0 }
 0x6ee   : > { %v3833_v45 = vpop.permute.xlu1 %3832  ;;  %v3823_v19 = vpop.permute.xlu0 %3822 }
 0x6ef   : > { %7251 = vmatmul.mubr.msk.f32.gmra.mrb[20].mxu1 %vm12318_vm7, %v3582_v40  ;;  %vm12333_vm7 = vmmov %vm12316_vm0 }
 0x6f0   : > { %7253 = vmatprep.mubr.msk.f32.mxu1 %vm12319_vm8, %v3583_v0  ;;  %vm12334_vm8 = vmmov %vm12316_vm0 }
 0x6f2   : > { %v3843_v17 = vpop.permute.xlu1 %3842  ;;  %v3838_v25 = vpop.permute.xlu0 %3837 }
 0x6f3   : > { %7254 = vmatmul.mubr.msk.f32.gmra.mrb[22].mxu1 %vm12320_vm10, %v3584_v41  ;;  %vm12335_vm10 = vmmov %vm12316_vm0 }
 0x6f4   : > { %7256 = vmatprep.mubr.msk.f32.mxu1 %vm12321_vm11, %v3585_v34  ;;  %vm12336_vm11 = vmmov %vm12316_vm0 }
 0x6f6   : > { %v3853_v53 = vpop.permute.xlu1 %3852  ;;  %v3848_v35 = vpop.permute.xlu0 %3847 }
 0x6f7   : > { %7257 = vmatmul.mubr.msk.f32.gmra.mrb[24].mxu1 %vm12322_vm12, %v3586_v32  ;;  %vm12337_vm12 = vmmov %vm12316_vm0 }
 0x6f8   : > { %7259 = vmatprep.mubr.msk.f32.mxu1 %vm12323_vm13, %v3587_v46  ;;  %vm12338_vm13 = vmmov %vm12316_vm0 }
 0x6fa   : > { %v3863_v0 = vpop.permute.xlu1 %3862  ;;  %v3858_v32 = vpop.permute.xlu0 %3857 }
 0x6fb   : > { %7260 = vmatmul.mubr.msk.f32.gmra.mrb[26].mxu1 %vm12324_vm2, %v3588_v42  ;;  %vm12339_vm2 = vmmov %vm12316_vm0 }
 0x6fc   : > { %7262 = vmatprep.mubr.msk.f32.mxu1 %vm12325_vm3, %v3589_v11  ;;  %vm7690_vm3 = vmpackc.low %vm12339_vm2, %vm12339_vm2 }
 0x6fd   : > { %vm12353_vm2 = vmmov %vm12316_vm0 }
 0x6ff   : > { %7263 = vmatmul.mubr.msk.f32.gmra.mrb[28].mxu1 %vm12326_vm9, %v3590_v54  ;;  %vm12340_vm9 = vmmov %vm12316_vm0 }
 0x700   : > { %7265 = vmatprep.mubr.msk.f32.mxu1 %vm12327_vm14, %v3591_v60  ;;  %vm12341_vm14 = vmmov %vm12316_vm0 }
 0x703   : > { %7266 = vmatmul.mubr.msk.f32.gmra.mrb[30].mxu1 %vm12328_vm4, %v3592_v56  ;;  %vm12342_vm4 = vmmov %vm12316_vm0 }
 0x704   : > { %7268 = vmatprep.mubr.msk.f32.mxu1 %vm12329_vm5, %v3593_v5  ;;  %vm12343_vm5 = vmmov %vm12316_vm0 }
 0x707   : > { %7269 = vmatmul.mubr.msk.f32.gmra.mrb[32].mxu1 %vm12330_vm6, %v3594_v48  ;;  %vm12344_vm6 = vmmov %vm12316_vm0 }
 0x7be   : > { %v7249_v33 = vpop.f32.mrb[18].mxu1 }
 0x7bf   : > { %v10609_v16 = vadd.f32 %v7249_v33, %v10606_v63  ;;  %v3720_v49 = vpop.f32.mrb[19].mxu1 }
 0x7c0   : > { %v10612_v22 = vadd.f32 %v10606_v63, %v3720_v49 }
 0x7c1   : > { %v3896_v51 = vadd.f32 %v3823_v19, %v10609_v16 }
 0x7c2   : > { %v7252_v13 = vpop.f32.mrb[20].mxu1  ;;  %v3895_v6 = vadd.f32 %v3818_v44, %v10612_v22  ;;  %v3873_v44 = vpop.permute.xlu1 %3872 }
 0x7c3   : > { %v10617_v29 = vadd.f32 %v7252_v13, %v10606_v63  ;;  %v3730_v21 = vpop.f32.mrb[21].mxu1 }
 0x7c4   : > { %v10620_v28 = vadd.f32 %v10606_v63, %v3730_v21  ;;  %3911 = vxpose.xlu0.b32.start [1/16] (narrow) %v3895_v6, 32  ;;  %v7657_v50 = vpack.c.bf16 %v3896_v51, %v3895_v6 }
 0x7c5   : > { %v3898_v57 = vadd.f32 %v3833_v45, %v10617_v29 }
 0x7c6   : > { %v3897_v38 = vadd.f32 %v3828_v9, %v10620_v28  ;;  %v7255_v20 = vpop.f32.mrb[22].mxu1  ;;  %7658 = vmatprep.subr.bf16.mxu1 %v7657_v50 }
 0x7c7   : > { %v10625_v55 = vadd.f32 %v7255_v20, %v10606_v63  ;;  %v3740_v43 = vpop.f32.mrb[23].mxu1  ;;  %7660 = vmatpush3.bf16.msra.mxu1 %v7657_v50  ;;  %v3883_v50 = vpop.permute.xlu1 %3882 }
 0x7c8   : > { %v10628_v37 = vadd.f32 %v10606_v63, %v3740_v43  ;;  %3912 = vxpose.xlu0.b32.cont [2/16] (narrow) %v3896_v51, 32  ;;  %v7661_v4 = vpack.c.bf16 %v3898_v57, %v3897_v38 }
 0x7c9   : > { %v3900_v40 = vadd.f32 %v3843_v17, %v10625_v55  ;;  %v3868_v17 = vpop.permute.xlu0 %3867 }
 0x7ca   : > { %v3899_v41 = vadd.f32 %v3838_v25, %v10628_v37  ;;  %v7258_v34 = vpop.f32.mrb[24].mxu1  ;;  %7662 = vmatprep.subr.bf16.mxu1 %v7661_v4 }
 0x7cb   : > { %v10633_v46 = vadd.f32 %v7258_v34, %v10606_v63  ;;  %v3750_v42 = vpop.f32.mrb[25].mxu1  ;;  %7664 = vmatpush3.bf16.msra.mxu1 %v7661_v4 }
 0x7cc   : > { %v10636_v11 = vadd.f32 %v10606_v63, %v3750_v42  ;;  %3913 = vxpose.xlu0.b32.cont [3/16] (narrow) %v3897_v38, 32  ;;  %v7665_v54 = vpack.c.bf16 %v3900_v40, %v3899_v41 }
 0x7cd   : > { %v3902_v60 = vadd.f32 %v3853_v53, %v10633_v46  ;;  %v3878_v38 = vpop.permute.xlu0 %3877 }
 0x7ce   : > { %v3901_v56 = vadd.f32 %v3848_v35, %v10636_v11  ;;  %v7261_v5 = vpop.f32.mrb[26].mxu1  ;;  %7666 = vmatprep.subr.bf16.mxu1 %v7665_v54 }
 0x7cf   : > { %v10641_v48 = vadd.f32 %v7261_v5, %v10606_v63  ;;  %v3760_v9 = vpop.f32.mrb[27].mxu1  ;;  %7668 = vmatpush3.bf16.msra.mxu1 %v7665_v54  ;;  %v3893_v5 = vpop.permute.xlu1 %3892 }
 0x7d0   : > { %v10644_v45 = vadd.f32 %v10606_v63, %v3760_v9  ;;  %3914 = vxpose.xlu0.b32.cont [4/16] (narrow) %v3898_v57, 32  ;;  %v7669_v19 = vpack.c.bf16 %v3902_v60, %v3901_v56 }
 0x7d1   : > { %v3904_v33 = vadd.f32 %v3863_v0, %v10641_v48 }
 0x7d2   : > { %v3903_v25 = vadd.f32 %v3858_v32, %v10644_v45  ;;  %v7264_v49 = vpop.f32.mrb[28].mxu1  ;;  %7670 = vmatprep.subr.bf16.mxu1 %v7669_v19 }
 0x7d3   : > { %v10649_v51 = vadd.f32 %v7264_v49, %v10606_v63  ;;  %v3770_v13 = vpop.f32.mrb[29].mxu1  ;;  %7672 = vmatpush3.bf16.msra.mxu1 %v7669_v19  ;;  %v3888_v19 = vpop.permute.xlu0 %3887 }
 0x7d4   : > { %v10652_v6 = vadd.f32 %v10606_v63, %v3770_v13  ;;  %3915 = vxpose.xlu0.b32.cont [5/16] (narrow) %v3899_v41, 32  ;;  %v7673_v21 = vpack.c.bf16 %v3904_v33, %v3903_v25 }
 0x7d5   : > { %v3906_v53 = vadd.f32 %v3873_v44, %v10649_v51 }
 0x7d6   : > { %v3905_v35 = vadd.f32 %v3868_v17, %v10652_v6  ;;  %v7267_v57 = vpop.f32.mrb[30].mxu1  ;;  %7674 = vmatprep.subr.bf16.mxu1 %v7673_v21 }
 0x7d7   : > { %v10657_v20 = vadd.f32 %v7267_v57, %v10606_v63  ;;  %v3780_v43 = vpop.f32.mrb[31].mxu1  ;;  %7676 = vmatpush3.bf16.msra.mxu1 %v7673_v21 }
 0x7d8   : > { %v10660_v4 = vadd.f32 %v10606_v63, %v3780_v43  ;;  %3916 = vxpose.xlu0.b32.cont [6/16] (narrow) %v3900_v40, 32  ;;  %v7677_v0 = vpack.c.bf16 %v3906_v53, %v3905_v35 }
 0x7d9   : > { %v3908_v41 = vadd.f32 %v3883_v50, %v10657_v20 }
 0x7da   : > { %v3907_v34 = vadd.f32 %v3878_v38, %v10660_v4  ;;  %v7270_v32 = vpop.f32.mrb[32].mxu1  ;;  %7678 = vmatprep.subr.bf16.mxu1 %v7677_v0 }
 0x7db   : > { %v10665_v42 = vadd.f32 %v7270_v32, %v10606_v63  ;;  %v3790_v54 = vpop.f32.mrb[33].mxu1  ;;  %7680 = vmatpush3.bf16.msra.mxu1 %v7677_v0 }
 0x7dc   : > { %v10668_v9 = vadd.f32 %v10606_v63, %v3790_v54  ;;  %3917 = vxpose.xlu0.b32.cont [7/16] (narrow) %v3901_v56, 32  ;;  %v7681_v44 = vpack.c.bf16 %v3908_v41, %v3907_v34 }
 0x7dd   : > { %v3910_v40 = vadd.f32 %v3893_v5, %v10665_v42 }
 0x7de   : > { %v3909_v17 = vadd.f32 %v3888_v19, %v10668_v9  ;;  %7682 = vmatprep.subr.bf16.mxu1 %v7681_v44 }
 0x7df   : > { %7684 = vmatpush3.bf16.msra.mxu1 %v7681_v44 }
 0x7e0   : > { %3918 = vxpose.xlu0.b32.cont [8/16] (narrow) %v3902_v60, 32  ;;  %v7685_v49 = vpack.c.bf16 %v3910_v40, %v3909_v17 }
 0x7e2   : > { %7686 = vmatprep.subr.bf16.mxu1 %v7685_v49 }
 0x7e3   : > { %7688 = vmatpush3.bf16.msra.mxu1 %v7685_v49 }
 0x7e4   : > { %3919 = vxpose.xlu0.b32.cont [9/16] (narrow) %v3903_v25, 32 }
 0x7e8   : > { %3920 = vxpose.xlu0.b32.cont [10/16] (narrow) %v3904_v33, 32 }
 0x7ec   : > { %3921 = vxpose.xlu0.b32.cont [11/16] (narrow) %v3905_v35, 32 }
 0x7f0   : > { %3922 = vxpose.xlu0.b32.cont [12/16] (narrow) %v3906_v53, 32 }
 0x7f4   : > { %3923 = vxpose.xlu0.b32.cont [13/16] (narrow) %v3907_v34, 32 }
 0x7f8   : > { %3924 = vxpose.xlu0.b32.cont [14/16] (narrow) %v3908_v41, 32 }
 0x7fc   : > { %3925 = vxpose.xlu0.b32.cont [15/16] (narrow) %v3909_v17, 32 }
 0x800   : > { %3926 = vxpose.xlu0.b32.end [16/16] (narrow) %v3910_v40, 32 }
 0x844   : > { %v3927_v63 = vpop.trf.xlu0 }
 0x845   : > { %7303 = vmatprep.mubr.f32.mxu1 %v3927_v63 }
 0x848   : > { %v3928_v56 = vpop.trf.xlu0 }
 0x849   : > { %7304 = vmatmul.mubr.f32.vlgmr.msra.gmra.mrb[34].mxu1 %v3928_v56 }
 0x84c   : > { %v3929_v13 = vpop.trf.xlu0 }
 0x84d   : > { %7306 = vmatprep.mubr.f32.mxu1 %v3929_v13 }
 0x850   : > { %v3930_v21 = vpop.trf.xlu0 }
 0x851   : > { %7307 = vmatmul.mubr.f32.gmra.mrb[36].mxu1 %v3930_v21 }
 0x852   : > { %7317 = vmatprep.mubr.msk.f32.mxu1 %vm12331_vm15, %v10612_v22  ;;  %vm12345_vm15 = vmmov %vm12316_vm0 }
 0x91c   : > { %v7305_v60 = vpop.f32.mrb[34].mxu1 }
 0x91d   : > { %v4029_v25 = vsub.f32 0.0, %v7305_v60  ;;  %v4009_v33 = vpop.f32.mrb[35].mxu1 }
 0x91e   : > { %v4028_v50 = vsub.f32 0.0, %v4009_v33 }
 0x91f   : > { %v4035_v53 = vsel %vm12316_vm0, %v4029_v25, -inf }
 0x920   : > { %4036 = vmax.xlane.f32.xlu1 %v4035_v53  ;;  %v4032_v35 = vsel %vm12332_vm1, %v4028_v50, -inf  ;;  %vm12346_vm1 = vmmov %vm12316_vm0 }
 0x924   : > { %4033 = vmax.xlane.f32.xlu1 %v4032_v35  ;;  %v7308_v57 = vpop.f32.mrb[36].mxu1 }
 0x925   : > { %v4019_v38 = vpop.f32.mrb[37].mxu1  ;;  %v4031_v0 = vsub.f32 0.0, %v7308_v57 }
 0x926   : > { %v4030_v43 = vsub.f32 0.0, %v4019_v38 }
 0x927   : > { %v4041_v34 = vsel %vm12334_vm8, %v4031_v0, -inf  ;;  %vm12348_vm8 = vmmov %vm12316_vm0 }
 0x928   : > { %v4038_v41 = vsel %vm12333_vm7, %v4030_v43, -inf  ;;  %vm12347_vm7 = vmmov %vm12316_vm0 }
 0x929   : > { %4039 = vmax.xlane.f32.xlu1 %v4038_v41 }
 0x92d   : > { %4042 = vmax.xlane.f32.xlu1 %v4041_v34 }
 0x9ad   : > { %v4037_v32 = vpop.xlane.xlu1 %4036 }
 0x9ae   : > { %v4045_v54 = vsub.f32 %v4029_v25, %v4037_v32 }
 0x9b0   : > { %v4050_v5 = vmul.f32 1.442695, %v4045_v54 }
 0x9b1   : > { %v4034_v44 = vpop.xlane.xlu1 %4033 }
 0x9b2   : > { %8063 = vpow2.f32 %v4050_v5  ;;  %v4044_v19 = vsub.f32 %v4028_v50, %v4034_v44 }
 0x9b4   : > { %v4048_v40 = vmul.f32 1.442695, %v4044_v19 }
 0x9b6   : > { %8065 = vpow2.f32 %v4048_v40  ;;  %v4040_v17 = vpop.xlane.xlu1 %4039 }
 0x9b7   : > { %v4046_v49 = vsub.f32 %v4030_v43, %v4040_v17  ;;  %v6751_v43 = vld [vmem:[#allocation3] ss:$0 sm:$0xff] }
 0x9b9   : > { %v4052_v63 = vmul.f32 1.442695, %v4046_v49 }
 0x9ba   : > { %v4043_v56 = vpop.xlane.xlu1 %4042 }
 0x9bb   : > { %8067 = vpow2.f32 %v4052_v63  ;;  %v4047_v13 = vsub.f32 %v4031_v0, %v4043_v56 }
 0x9bc   : > { %v8064_v21 = vpop.eup %8063 }
 0x9bd   : > { %v4054_v60 = vmul.f32 1.442695, %v4047_v13  ;;  %v4059_v33 = vsel %vm12335_vm10, %v8064_v21, 0.0  ;;  %vm12349_vm10 = vmmov %vm12316_vm0 }
 0x9be   : > { %4060 = vadd.xlane.f32.xlu1 %v4059_v33 }
 0x9bf   : > { %8069 = vpow2.f32 %v4054_v60  ;;  %v4344_v60 = vld [vmem:[%s11446_s22 + $0x28] sm:$0xff] }
 0x9c0   : > { %v8066_v53 = vpop.eup %8065 }
 0x9c1   : > { %v4056_v25 = vsel %vm12336_vm11, %v8066_v53, 0.0  ;;  %vm12350_vm11 = vmmov %vm12316_vm0 }
 0x9c2   : > { %4057 = vadd.xlane.f32.xlu1 %v4056_v25  ;;  %v4352_v25 = vld [vmem:[%s11446_s22 + $0x68] sm:$0xff] }
 0x9c5   : > { %v8068_v35 = vpop.eup %8067 }
 0x9c6   : > { %v4062_v50 = vsel %vm12337_vm12, %v8068_v35, 0.0  ;;  %vm12351_vm12 = vmmov %vm12316_vm0 }
 0x9c7   : > { %4063 = vadd.xlane.f32.xlu1 %v4062_v50  ;;  %v4345_v50 = vld [vmem:[%s11446_s22 + $0x30] sm:$0xff] }
 0x9c9   : > { %v8070_v57 = vpop.eup %8069 }
 0x9ca   : > { %v4065_v38 = vsel %vm12338_vm13, %v8070_v57, 0.0  ;;  %vm12352_vm13 = vmmov %vm12316_vm0 }
 0x9cb   : > { %4066 = vadd.xlane.f32.xlu1 %v4065_v38 }
 0x9dc   : > { %4288 = vperm.xlu1 %7914, %v6751_v43   ;;  %v4353_v43 = vld [vmem:[%s11446_s22 + $0x70] sm:$0xff] }
 0xa4b   : > { %v4061_v0 = vpop.xlane.xlu1 %4060 }
 0xa4c   : > { %8071 = vrcp.f32 %v4061_v0  ;;  %v4354_v0 = vld [vmem:[%s11446_s22 + $0x78] sm:$0xff] }
 0xa4f   : > { %v4058_v41 = vpop.xlane.xlu1 %4057 }
 0xa50   : > { %8073 = vrcp.f32 %v4058_v41  ;;  %v7729_v41 = vpack.c.bf16 %v4354_v0, %v4353_v43  ;;  %v4341_v43 = vld [vmem:[%s11446_s22 + $0x10] sm:$0xff]  ;;  %v4342_v0 = vld [vmem:[%s11446_s22 + $0x18] sm:$0xff] }
 0xa54   : > { %v4064_v34 = vpop.xlane.xlu1 %4063 }
 0xa55   : > { %8075 = vrcp.f32 %v4064_v34  ;;  %v4407_v34 = vld [vmem:[#allocation2 + $0x8] sm:$0xff] }
 0xa56   : > { %v8072_v32 = vpop.eup %8071 }
 0xa57   : > { %v4073_v19 = vmul.f32 %v8072_v32, %v8064_v21  ;;  %v4343_v21 = vld [vmem:[%s11446_s22 + $0x20] sm:$0xff] }
 0xa58   : > { %v4067_v54 = vpop.xlane.xlu1 %4066  ;;  %v7701_v33 = vpack.c.bf16 %v4344_v60, %v4343_v21  ;;  %v4355_v32 = vld [vmem:[%s11446_s22 + $0x80] sm:$0xff] }
 0xa59   : > { %8077 = vrcp.f32 %v4067_v54  ;;  %v4356_v54 = vld [vmem:[%s11446_s22 + $0x88] sm:$0xff] }
 0xa5a   : > { %v8074_v5 = vpop.eup %8073 }
 0xa5b   : > { %v4072_v44 = vmul.f32 %v8074_v5, %v8066_v53  ;;  %v4351_v53 = vld [vmem:[%s11446_s22 + $0x60] sm:$0xff]  ;;  %v10745_v5 = vpack.c.bf16 %v4356_v54, %v4355_v32  ;;  %v4357_v32 = vld [vmem:[%s11446_s22 + $0x90] sm:$0xff]  ;;  %v4358_v54 = vld [vmem:[%s11446_s22 + $0x98] sm:$0xff] }
 0xa5d   : > { %v7689_v40 = vpack.c.bf16 %v4073_v19, %v4072_v44  ;;  %v4339_v44 = vld [vmem:[%s11446_s22] sm:$0xff]  ;;  %v4340_v19 = vld [vmem:[%s11446_s22 + $0x8] sm:$0xff] }
 0xa5f   : > { %7691 = vmatprep.subr.msk.bf16.mxu1 %vm7690_vm3, %v7689_v40  ;;  %v8076_v17 = vpop.eup %8075 }
 0xa60   : > { %7694 = vmatpush3.bf16.xpose.msk.msra.mxu1 %vm7690_vm3, %v7689_v40  ;;  %v4074_v63 = vmul.f32 %v8076_v17, %v8068_v35  ;;  %v7725_v35 = vpack.c.bf16 %v4352_v25, %v4351_v53  ;;  %v7709_v40 = vpack.c.bf16 %v4340_v19, %v4339_v44  ;;  %v10754_v17 = vpop.permute.xlu1 %4288  ;;  %v7713_v44 = vpack.c.bf16 %v4342_v0, %v4341_v43 }
 0xa62   : > { %7726 = vmatprep.subr.bf16.mxu0 %v7725_v35 }
 0xa63   : > { %v8078_v49 = vpop.eup %8077  ;;  %7728 = vmatpush3.bf16.msra.mxu0 %v7725_v35 }
 0xa64   : > { %v4075_v56 = vmul.f32 %v8078_v49, %v8070_v57  ;;  %v4346_v57 = vld [vmem:[%s11446_s22 + $0x38] sm:$0xff]  ;;  %7730 = vmatprep.subr.bf16.mxu0 %v7729_v41 }
 0xa65   : > { %v7705_v38 = vpack.c.bf16 %v4346_v57, %v4345_v50 }
 0xa66   : > { %v7695_v13 = vpack.c.bf16 %v4075_v56, %v4074_v63 }
 0xa67   : > { %7732 = vmatpush3.bf16.msra.mxu0 %v7729_v41 }
 0xa68   : > { %7697 = vmatprep.subr.msk.bf16.mxu1 %vm7690_vm3, %v7695_v13  ;;  %7734 = vmatprep.subr.bf16.mxu0 %v10745_v5 }
 0xa69   : > { %7700 = vmatpush3.bf16.xpose.msk.msra.mxu1 %vm7690_vm3, %v7695_v13  ;;  %vm12354_vm3 = vmmov %vm12316_vm0 }
 0xa6a   : > { %7702 = vmatprep.subr.bf16.mxu1 %v7701_v33 }
 0xa70   : > { %7318 = vmatmul.mubr.msk.f32.vlgmr.msra.gmra.mrb[38].mxu1 %vm12340_vm9, %v10609_v16  ;;  %vm12355_vm9 = vmmov %vm12316_vm0 }
 0xa71   : > { %7320 = vmatprep.mubr.msk.f32.mxu1 %vm12341_vm14, %v10620_v28  ;;  %7704 = vmatpush3.bf16.msra.mxu1 %v7701_v33  ;;  %vm12356_vm14 = vmmov %vm12316_vm0 }
 0xa72   : > { %7706 = vmatprep.subr.bf16.mxu1 %v7705_v38 }
 0xa74   : > { %7321 = vmatmul.mubr.msk.f32.gmra.mrb[40].mxu1 %vm12342_vm4, %v10617_v29  ;;  %vm12357_vm4 = vmmov %vm12316_vm0 }
 0xa75   : > { %7323 = vmatprep.mubr.msk.f32.mxu1 %vm12343_vm5, %v10628_v37  ;;  %7708 = vmatpush3.bf16.msra.mxu1 %v7705_v38  ;;  %vm12358_vm5 = vmmov %vm12316_vm0 }
 0xa76   : > { %7710 = vmatprep.subr.bf16.mxu1 %v7709_v40 }
 0xa78   : > { %7324 = vmatmul.mubr.msk.f32.gmra.mrb[42].mxu1 %vm12344_vm6, %v10625_v55  ;;  %vm12359_vm6 = vmmov %vm12316_vm0 }
 0xa79   : > { %7326 = vmatprep.mubr.msk.f32.mxu1 %vm12345_vm15, %v10636_v11  ;;  %vm12360_vm15 = vmmov %vm12316_vm0 }
 0xa7c   : > { %7327 = vmatmul.mubr.msk.f32.gmra.mrb[44].mxu1 %vm12316_vm0, %v10633_v46 }
 0xa7d   : > { %7329 = vmatprep.mubr.msk.f32.mxu1 %vm12346_vm1, %v10644_v45  ;;  %vm12361_vm1 = vmmov %vm12316_vm0 }
 0xa80   : > { %7330 = vmatmul.mubr.msk.f32.gmra.mrb[46].mxu1 %vm12347_vm7, %v10641_v48  ;;  %vm12362_vm7 = vmmov %vm12316_vm0 }
 0xa81   : > { %7332 = vmatprep.mubr.msk.f32.mxu1 %vm12348_vm8, %v10652_v6  ;;  %vm12363_vm8 = vmmov %vm12316_vm0 }
 0xa84   : > { %7333 = vmatmul.mubr.msk.f32.gmra.mrb[48].mxu1 %vm12349_vm10, %v10649_v51  ;;  %vm12364_vm10 = vmmov %vm12316_vm0 }
 0xa85   : > { %7335 = vmatprep.mubr.msk.f32.mxu1 %vm12350_vm11, %v10660_v4  ;;  %vm12365_vm11 = vmmov %vm12316_vm0 }
 0xa88   : > { %7336 = vmatmul.mubr.msk.f32.gmra.mrb[50].mxu1 %vm12351_vm12, %v10657_v20  ;;  %vm12366_vm12 = vmmov %vm12316_vm0 }
 0xa89   : > { %7338 = vmatprep.mubr.msk.f32.mxu1 %vm12352_vm13, %v10668_v9  ;;  %vm12367_vm13 = vmmov %vm12316_vm0 }
 0xa8c   : > { %7339 = vmatmul.mubr.msk.f32.gmra.mrb[52].mxu1 %vm12353_vm2, %v10665_v42  ;;  %vm12368_vm2 = vmmov %vm12316_vm0 }
 0xa8d   : > { %7349 = vmatprep.mubr.msk.f32.mxu1 %vm12354_vm3, %v4407_v34  ;;  %vm12369_vm3 = vmmov %vm12316_vm0 }
 0xb43   : > { %v7319_v49 = vpop.f32.mrb[38].mxu1 }
 0xb44   : > { %v4292_v63 = vmul.f32 %v7319_v49, %v10754_v17  ;;  %v4202_v56 = vpop.f32.mrb[39].mxu1 }
 0xb45   : > { %v4291_v13 = vmul.f32 %v10754_v17, %v4202_v56 }
 0xb46   : > { %v4308_v21 = vadd.f32 %v4292_v63, %v10609_v16 }
 0xb47   : > { %v4307_v60 = vadd.f32 %v4291_v13, %v10612_v22  ;;  %v7322_v33 = vpop.f32.mrb[40].mxu1 }
 0xb48   : > { %4324 = vst.msk [vmem:[#allocation2 + $0x18] sm:$0xff] %vm12355_vm9, %v4308_v21  ;;  %v4294_v53 = vmul.f32 %v7322_v33, %v10754_v17  ;;  %v4212_v25 = vpop.f32.mrb[41].mxu1  ;;  %v4347_v33 = vld [vmem:[%s11446_s22 + $0x40] sm:$0xff]  ;;  %vm12370_vm9 = vmmov %vm12316_vm0 }
 0xb49   : > { %4323 = vst.msk [vmem:[#allocation2 + $0x10] sm:$0xff] %vm12356_vm14, %v4307_v60  ;;  %v4293_v35 = vmul.f32 %v10754_v17, %v4212_v25  ;;  %vm12371_vm14 = vmmov %vm12316_vm0 }
 0xb4a   : > { %v4310_v50 = vadd.f32 %v4294_v53, %v10617_v29  ;;  %v4348_v53 = vld [vmem:[%s11446_s22 + $0x48] sm:$0xff] }
 0xb4b   : > { %v4309_v57 = vadd.f32 %v4293_v35, %v10620_v28  ;;  %v7325_v38 = vpop.f32.mrb[42].mxu1  ;;  %v7737_v35 = vpack.c.bf16 %v4358_v54, %v4357_v32  ;;  %v10828_v0 = vpack.c.bf16 %v4348_v53, %v4347_v33 }
 0xb4c   : > { %4326 = vst.msk [vmem:[#allocation2 + $0x28] sm:$0xff] %vm12357_vm4, %v4310_v50  ;;  %v4296_v16 = vmul.f32 %v7325_v38, %v10754_v17  ;;  %v4222_v22 = vpop.f32.mrb[43].mxu1  ;;  %v4359_v38 = vld [vmem:[%s11446_s22 + $0xa0] sm:$0xff]  ;;  %vm12372_vm4 = vmmov %vm12316_vm0 }
 0xb4d   : > { %4325 = vst.msk [vmem:[#allocation2 + $0x20] sm:$0xff] %vm12358_vm5, %v4309_v57  ;;  %v4295_v29 = vmul.f32 %v10754_v17, %v4222_v22  ;;  %vm12373_vm5 = vmmov %vm12316_vm0 }
 0xb4e   : > { %v4312_v28 = vadd.f32 %v4296_v16, %v10625_v55  ;;  %v4360_v16 = vld [vmem:[%s11446_s22 + $0xa8] sm:$0xff] }
 0xb4f   : > { %v4311_v41 = vadd.f32 %v4295_v29, %v10628_v37  ;;  %v7328_v34 = vpop.f32.mrb[44].mxu1  ;;  %v10796_v13 = vld [vmem:[#allocation2 + $0x18] sm:$0xff]  ;;  %v10844_v54 = vpack.c.bf16 %v4360_v16, %v4359_v38 }
 0xb50   : > { %4328 = vst.msk [vmem:[#allocation2 + $0x38] sm:$0xff] %vm12359_vm6, %v4312_v28  ;;  %v4298_v19 = vmul.f32 %v7328_v34, %v10754_v17  ;;  %v4232_v49 = vpop.f32.mrb[45].mxu1  ;;  %v10786_v63 = vld [vmem:[#allocation2 + $0x10] sm:$0xff]  ;;  %vm12374_vm6 = vmmov %vm12316_vm0 }
 0xb51   : > { %v10788_v55 = vld [vmem:[#allocation2 + $0xf] sm:$0xff]  ;;  %v10790_v37 = vld [vmem:[#allocation2 + $0x17] sm:$0xff]  ;;  %4327 = vst.msk [vmem:[#allocation2 + $0x30] sm:$0xff] %vm12360_vm15, %v4311_v41  ;;  %v4297_v56 = vmul.f32 %v10754_v17, %v4232_v49  ;;  %7350 = vmatmul.mubr.msk.f32.vlgmr.msra.gmra.mrb[54].mxu1 %vm12316_vm0, %v10786_v63  ;;  %vm12375_vm15 = vmmov %vm12316_vm0 }
 0xb52   : > { %v5082_v21 = vmul.f32 %v12200_v2, %v10788_v55  ;;  %v5083_v60 = vmul.f32 %v12202_v47, %v10790_v37  ;;  %v4314_v25 = vadd.f32 %v4298_v19, %v10633_v46  ;;  %7352 = vmatprep.mubr.msk.f32.mxu1 %vm12361_vm1, %v10796_v13  ;;  %7712 = vmatpush3.bf16.msra.mxu1 %v7709_v40  ;;  %vm12376_vm1 = vmmov %vm12316_vm0 }
 0xb53   : > { %v4313_v50 = vadd.f32 %v4297_v56, %v10636_v11  ;;  %v7331_v57 = vpop.f32.mrb[46].mxu1  ;;  %7714 = vmatprep.subr.bf16.mxu1 %v7713_v44  ;;  %v10835_v28 = vld [vmem:[#allocation2 + $0x28] sm:$0xff]  ;;  %v4393_v23 = vmul.f32 %v12204_v58, %v10790_v37 }
 0xb54   : > { %7445 = vmatprep.mubr.msk.f32.mxu0 %vm12362_vm7, %v5082_v21  ;;  %4330 = vst.msk [vmem:[#allocation2 + $0x48] sm:$0xff] %vm12363_vm8, %v4314_v25  ;;  %v4300_v46 = vmul.f32 %v7331_v57, %v10754_v17  ;;  %v4242_v22 = vpop.f32.mrb[47].mxu1  ;;  %v10822_v11 = vld [vmem:[#allocation2 + $0x20] sm:$0xff]  ;;  %vm12377_vm7 = vmmov %vm12316_vm0 }
 0xb55   : > { %7446 = vmatmul.mubr.msk.f32.vlgmr.msra.gmra.mrb[6].mxu0 %vm12364_vm10, %v5083_v60  ;;  %v10824_v40 = vld [vmem:[#allocation2 + $0x1f] sm:$0xff]  ;;  %v10826_v43 = vld [vmem:[#allocation2 + $0x27] sm:$0xff]  ;;  %4329 = vst.msk [vmem:[#allocation2 + $0x40] sm:$0xff] %vm12365_vm11, %v4313_v50  ;;  %v4299_v29 = vmul.f32 %v10754_v17, %v4242_v22  ;;  %7353 = vmatmul.mubr.msk.f32.gmra.mrb[56].mxu1 %vm12366_vm12, %v10822_v11  ;;  %vm12378_vm8 = vmmov %vm12316_vm0 }
 0xb56   : > { %7736 = vmatpush3.bf16.msra.mxu0 %v10745_v5  ;;  %v5084_v41 = vmul.f32 %v12204_v58, %v10824_v40  ;;  %v5085_v34 = vmul.f32 %v12206_v31, %v10826_v43  ;;  %v4316_v32 = vadd.f32 %v4300_v46, %v10641_v48  ;;  %7355 = vmatprep.mubr.msk.f32.mxu1 %vm12367_vm13, %v10835_v28  ;;  %vm12379_vm10 = vmmov %vm12316_vm0 }
 0xb57   : > { %7738 = vmatprep.subr.bf16.mxu0 %v7737_v35  ;;  %v4315_v5 = vadd.f32 %v4299_v29, %v10644_v45  ;;  %v7334_v19 = vpop.f32.mrb[48].mxu1  ;;  %7716 = vmatpush3.bf16.msra.mxu1 %v7713_v44  ;;  %v10862_v44 = vld [vmem:[#allocation2 + $0x38] sm:$0xff]  ;;  %vm12380_vm11 = vmmov %vm12316_vm0 }
 0xb58   : > { %7448 = vmatprep.mubr.msk.f32.mxu0 %vm12368_vm2, %v5084_v41  ;;  %4332 = vst.msk [vmem:[#allocation2 + $0x58] sm:$0xff] %vm12369_vm3, %v4316_v32  ;;  %v4302_v49 = vmul.f32 %v7334_v19, %v10754_v17  ;;  %v4252_v56 = vpop.f32.mrb[49].mxu1  ;;  %v10851_v48 = vld [vmem:[#allocation2 + $0x30] sm:$0xff]  ;;  %7718 = vmatprep.subr.bf16.mxu1 %v10828_v0  ;;  %vm12381_vm12 = vmmov %vm12316_vm0 }
 0xb59   : > { %7449 = vmatmul.mubr.msk.f32.gmra.mrb[8].mxu0 %vm12370_vm9, %v5085_v34  ;;  %v10853_v21 = vld [vmem:[#allocation2 + $0x2f] sm:$0xff]  ;;  %v10855_v60 = vld [vmem:[#allocation2 + $0x37] sm:$0xff]  ;;  %4331 = vst.msk [vmem:[#allocation2 + $0x50] sm:$0xff] %vm12371_vm14, %v4315_v5  ;;  %v4301_v45 = vmul.f32 %v10754_v17, %v4252_v56  ;;  %7356 = vmatmul.mubr.msk.f32.gmra.mrb[58].mxu1 %vm12372_vm4, %v10851_v48  ;;  %vm12382_vm13 = vmmov %vm12316_vm0 }
 0xb5a   : > { %v5086_v33 = vmul.f32 %v12208_v8, %v10853_v21  ;;  %v5087_v53 = vmul.f32 %v12210_v1, %v10855_v60  ;;  %7740 = vmatpush3.bf16.msra.mxu0 %v7737_v35  ;;  %v4318_v25 = vadd.f32 %v4302_v49, %v10649_v51  ;;  %7358 = vmatprep.mubr.msk.f32.mxu1 %vm12373_vm5, %v10862_v44  ;;  %vm12383_vm2 = vmmov %vm12316_vm0 }
 0xb5b   : > { %7742 = vmatprep.subr.bf16.mxu0 %v10844_v54  ;;  %v4317_v50 = vadd.f32 %v4301_v45, %v10652_v6  ;;  %v7337_v57 = vpop.f32.mrb[50].mxu1  ;;  %v10887_v22 = vld [vmem:[#allocation2 + $0x48] sm:$0xff]  ;;  %vm12384_vm3 = vmmov %vm12316_vm0 }
 0xb5c   : > { %7451 = vmatprep.mubr.msk.f32.mxu0 %vm12374_vm6, %v5086_v33  ;;  %4334 = vst.msk [vmem:[#allocation2 + $0x68] sm:$0xff] %vm12375_vm15, %v4318_v25  ;;  %v4304_v38 = vmul.f32 %v7337_v57, %v10754_v17  ;;  %v4262_v16 = vpop.f32.mrb[51].mxu1  ;;  %v10877_v35 = vld [vmem:[#allocation2 + $0x40] sm:$0xff]  ;;  %vm12385_vm9 = vmmov %vm12316_vm0 }
 0xb5d   : > { %7452 = vmatmul.mubr.msk.f32.gmra.mrb[10].mxu0 %vm12316_vm0, %v5087_v53  ;;  %v10879_v51 = vld [vmem:[#allocation2 + $0x3f] sm:$0xff]  ;;  %v10881_v46 = vld [vmem:[#allocation2 + $0x47] sm:$0xff]  ;;  %4333 = vst.msk [vmem:[#allocation2 + $0x60] sm:$0xff] %vm12376_vm1, %v4317_v50  ;;  %v4303_v6 = vmul.f32 %v10754_v17, %v4262_v16  ;;  %7359 = vmatmul.mubr.msk.f32.gmra.mrb[60].mxu1 %vm12377_vm7, %v10877_v35  ;;  %vm12386_vm14 = vmmov %vm12316_vm0 }
 0xb5e   : > { %v5088_v29 = vmul.f32 %v12211_v12, %v10879_v51  ;;  %v5089_v41 = vmul.f32 %v12107_v24, %v10881_v46  ;;  %v4320_v34 = vadd.f32 %v4304_v38, %v10657_v20  ;;  %7361 = vmatprep.mubr.msk.f32.mxu1 %vm12378_vm8, %v10887_v22  ;;  %vm12387_vm4 = vmmov %vm12316_vm0 }
 0xb5f   : > { %v4319_v32 = vadd.f32 %v4303_v6, %v10660_v4  ;;  %v7340_v5 = vpop.f32.mrb[52].mxu1  ;;  %v10911_v33 = vld [vmem:[#allocation2 + $0x58] sm:$0xff]  ;;  %vm12388_vm5 = vmmov %vm12316_vm0 }
 0xb60   : > { %7454 = vmatprep.mubr.msk.f32.mxu0 %vm12379_vm10, %v5088_v29  ;;  %4336 = vst.msk [vmem:[#allocation2 + $0x78] sm:$0xff] %vm12380_vm11, %v4320_v34  ;;  %v4306_v19 = vmul.f32 %v7340_v5, %v10754_v17  ;;  %v4272_v49 = vpop.f32.mrb[53].mxu1  ;;  %v10901_v56 = vld [vmem:[#allocation2 + $0x50] sm:$0xff]  ;;  %vm12389_vm6 = vmmov %vm12316_vm0  ;;  %v4375_v29 = vld [vmem:[#allocation2 + $0x7] sm:$0xff] }
 0xb61   : > { %7455 = vmatmul.mubr.msk.f32.gmra.mrb[12].mxu0 %vm12381_vm12, %v5089_v41  ;;  %v10903_v45 = vld [vmem:[#allocation2 + $0x4f] sm:$0xff]  ;;  %v10905_v20 = vld [vmem:[#allocation2 + $0x57] sm:$0xff]  ;;  %4335 = vst.msk [vmem:[#allocation2 + $0x70] sm:$0xff] %vm12382_vm13, %v4319_v32  ;;  %v4305_v4 = vmul.f32 %v10754_v17, %v4272_v49  ;;  %7362 = vmatmul.mubr.msk.f32.gmra.mrb[62].mxu1 %vm12383_vm2, %v10901_v56  ;;  %vm12390_vm15 = vmmov %vm12316_vm0 }
 0xb62   : > { %v5090_v53 = vmul.f32 %v12109_v18, %v10903_v45  ;;  %v5091_v25 = vmul.f32 %v12110_v7, %v10905_v20  ;;  %v4322_v50 = vadd.f32 %v4306_v19, %v10665_v42  ;;  %7364 = vmatprep.mubr.msk.f32.mxu1 %vm12384_vm3, %v10911_v33  ;;  %vm12391_vm1 = vmmov %vm12316_vm0  ;;  %v12393_v19 = vld [vmem:[#allocation17_spill] sm:$0xff] }
 0xb63   : > { %v4321_v57 = vadd.f32 %v4305_v4, %v10668_v9  ;;  %v10933_v42 = vld [vmem:[#allocation2 + $0x68] sm:$0xff]  ;;  %vm12392_vm7 = vmmov %vm12316_vm0  ;;  %v12394_v4 = vld [vmem:[#allocation18_spill] sm:$0xff] }
 0xb64   : > { %7457 = vmatprep.mubr.msk.f32.mxu0 %vm12385_vm9, %v5090_v53  ;;  %4338 = vst.msk [vmem:[#allocation2 + $0x88] sm:$0xff] %vm12386_vm14, %v4322_v50  ;;  %v10924_v17 = vld [vmem:[#allocation2 + $0x60] sm:$0xff]  ;;  %vm12395_vm8 = vmmov %vm12316_vm0  ;;  %v4349_v50 = vld [vmem:[%s11446_s22 + $0x50] sm:$0xff] }
 0xb65   : > { %7458 = vmatmul.mubr.msk.f32.gmra.mrb[14].mxu0 %vm12387_vm4, %v5091_v25  ;;  %v10926_v38 = vld [vmem:[#allocation2 + $0x5f] sm:$0xff]  ;;  %v10928_v16 = vld [vmem:[#allocation2 + $0x67] sm:$0xff]  ;;  %4337 = vst.msk [vmem:[#allocation2 + $0x80] sm:$0xff] %vm12388_vm5, %v4321_v57  ;;  %7365 = vmatmul.mubr.msk.f32.gmra.mrb[64].mxu1 %vm12389_vm6, %v10924_v17  ;;  %v4391_v25 = vmul.f32 %v12200_v2, %v4375_v29  ;;  %vm12396_vm10 = vmmov %vm12316_vm0 }
 0xb66   : > { %v5092_v9 = vmul.f32 %v12115_v61, %v10926_v38  ;;  %v5093_v6 = vmul.f32 %v12120_v36, %v10928_v16  ;;  %7367 = vmatprep.mubr.msk.f32.mxu1 %vm12390_vm15, %v10933_v42  ;;  %v4350_v57 = vld [vmem:[%s11446_s22 + $0x58] sm:$0xff]  ;;  %vm12397_vm11 = vmmov %vm12316_vm0  ;;  %v12401_v2 = vld [vmem:[#allocation20_spill] sm:$0xff] }
 0xb67   : > { %v10951_v5 = vld [vmem:[#allocation2 + $0x78] sm:$0xff]  ;;  %vm12399_vm12 = vmmov %vm12316_vm0  ;;  %v7721_v62 = vpack.c.bf16 %v4350_v57, %v4349_v50  ;;  %v4363_v50 = vld [vmem:[%s11446_s22 + $0xc0] sm:$0xff]  ;;  %v4401_v57 = vmul.f32 %v12115_v61, %v10905_v20 }
 0xb68   : > { %7460 = vmatprep.mubr.msk.f32.mxu0 %vm12316_vm0, %v5092_v9  ;;  %v10943_v41 = vld [vmem:[#allocation2 + $0x70] sm:$0xff]  ;;  %v12400_v29 = vld [vmem:[#allocation19_spill] sm:$0xff]  ;;  %vm12402_vm13 = vmmov %vm12316_vm0 }
 0xb69   : > { %7461 = vmatmul.mubr.msk.f32.gmra.mrb[16].mxu0 %vm12391_vm1, %v5093_v6  ;;  %v10945_v34 = vld [vmem:[#allocation2 + $0x6f] sm:$0xff]  ;;  %v10947_v32 = vld [vmem:[#allocation2 + $0x77] sm:$0xff]  ;;  %7368 = vmatmul.mubr.msk.f32.gmra.mrb[66].mxu1 %vm12392_vm7, %v10943_v41  ;;  %vm12403_vm2 = vmmov %vm12316_vm0 }
 0xb6a   : > { %v5094_v49 = vmul.f32 %v12393_v19, %v10945_v34  ;;  %v5095_v53 = vmul.f32 %v12394_v4, %v10947_v32  ;;  %7370 = vmatprep.mubr.msk.f32.mxu1 %vm12395_vm8, %v10951_v5  ;;  %vm12404_vm3 = vmmov %vm12316_vm0 }
 0xb6b   : > { %vm12405_vm9 = vmmov %vm12316_vm0 }
 0xb6c   : > { %7463 = vmatprep.mubr.msk.f32.mxu0 %vm12396_vm10, %v5094_v49  ;;  %v10968_v9 = vld [vmem:[#allocation2 + $0x80] sm:$0xff]  ;;  %vm12406_vm14 = vmmov %vm12316_vm0 }
 0xb6d   : > { %7464 = vmatmul.mubr.msk.f32.gmra.mrb[18].mxu0 %vm12397_vm11, %v5095_v53  ;;  %v10970_v6 = vld [vmem:[#allocation2 + $0x7f] sm:$0xff]  ;;  %v10972_v30 = vld [vmem:[#allocation2 + $0x87] sm:$0xff]  ;;  %7371 = vmatmul.mubr.msk.f32.gmra.mrb[68].mxu1 %vm12399_vm12, %v10968_v9  ;;  %v4392_v53 = vmul.f32 %v12202_v47, %v10788_v55  ;;  %vm12407_vm4 = vmmov %vm12316_vm0 }
 0xb6e   : > { %12398 = vst [vmem:[#allocation67_spill] sm:$0xff] %v10972_v30  ;;  %v5096_v49 = vmul.f32 %v12400_v29, %v10970_v6  ;;  %v5097_v52 = vmul.f32 %v12401_v2, %v10972_v30  ;;  %7381 = vmatprep.mubr.msk.f32.mxu1 %vm12402_vm13, %v4391_v25  ;;  %v4362_v30 = vld [vmem:[%s11446_s22 + $0xb8] sm:$0xff]  ;;  %vm12408_vm5 = vmmov %vm12316_vm0  ;;  %v4395_v25 = vmul.f32 %v12208_v8, %v10826_v43 }
 0xb6f   : > { %v7745_v55 = vpack.c.bf16 %v4362_v30, %v4361_v26  ;;  %vm12409_vm6 = vmmov %vm12316_vm0  ;;  %v4396_v26 = vmul.f32 %v12210_v1, %v10853_v21 }
 0xb70   : > { %7466 = vmatprep.mubr.msk.f32.mxu0 %vm12403_vm2, %v5096_v49  ;;  %vm12410_vm15 = vmmov %vm12316_vm0  ;;  %v4402_v49 = vmul.f32 %v12120_v36, %v10926_v38 }
 0xb71   : > { %7467 = vmatmul.mubr.msk.f32.gmra.mrb[20].mxu0 %vm12404_vm3, %v5097_v52  ;;  %7382 = vmatmul.mubr.msk.f32.vlgmr.msra.gmra.mrb[54].mxu1 %vm12405_vm9, %v4392_v53  ;;  %v4394_v52 = vmul.f32 %v12206_v31, %v10824_v40  ;;  %vm12411_vm1 = vmmov %vm12316_vm0  ;;  %v4403_v53 = vmul.f32 %v12393_v19, %v10928_v16 }
 0xb72   : > { %7477 = vmatprep.mubr.msk.f32.mxu0 %vm12406_vm14, %v10786_v63  ;;  %7384 = vmatprep.mubr.msk.f32.mxu1 %vm12407_vm4, %v4393_v23  ;;  %v4364_v23 = vld [vmem:[%s11446_s22 + $0xc8] sm:$0xff]  ;;  %v4397_v63 = vmul.f32 %v12211_v12, %v10855_v60  ;;  %vm12412_vm7 = vmmov %vm12316_vm0 }
 0xb73   : > { %7720 = vmatpush3.bf16.msra.mxu1 %v10828_v0  ;;  %v7749_v30 = vpack.c.bf16 %v4364_v23, %v4363_v50  ;;  %vm12413_vm8 = vmmov %vm12316_vm0  ;;  %v4398_v0 = vmul.f32 %v12107_v24, %v10879_v51  ;;  %v4406_v50 = vmul.f32 %v12401_v2, %v10970_v6 }
 0xb74   : > { %7722 = vmatprep.subr.bf16.mxu1 %v7721_v62  ;;  %vm12414_vm10 = vmmov %vm12316_vm0 }
 0xb75   : > { %7478 = vmatmul.mubr.msk.f32.vlgmr.msra.gmra.mrb[6].mxu0 %vm12408_vm5, %v10796_v13  ;;  %7385 = vmatmul.mubr.msk.f32.gmra.mrb[56].mxu1 %vm12409_vm6, %v4394_v52  ;;  %vm12415_vm11 = vmmov %vm12316_vm0  ;;  %v4404_v52 = vmul.f32 %v12394_v4, %v10945_v34 }
 0xb76   : > { %7744 = vmatpush3.bf16.msra.mxu0 %v10844_v54  ;;  %7480 = vmatprep.mubr.msk.f32.mxu0 %vm12410_vm15, %v10822_v11  ;;  %vm12416_vm12 = vmmov %vm12316_vm0  ;;  %v4400_v54 = vmul.f32 %v12110_v7, %v10903_v45 }
 0xb77   : > { %7387 = vmatprep.mubr.msk.f32.mxu1 %vm12316_vm0, %v4395_v25  ;;  %7746 = vmatprep.subr.bf16.mxu0 %v7745_v55  ;;  %vm12417_vm13 = vmmov %vm12316_vm0  ;;  %v4825_v25 = vld [vmem:[#allocation2 + $0x9] sm:$0xff] }
 0xb78   : > { %7724 = vmatpush3.bf16.msra.mxu1 %v7721_v62  ;;  %v4399_v62 = vmul.f32 %v12109_v18, %v10881_v46  ;;  %vm12418_vm2 = vmmov %vm12316_vm0  ;;  %v4841_v23 = vmul.f32 %v12223_v10, %v4825_v25 }
 0xb79   : > { %7481 = vmatmul.mubr.msk.f32.gmra.mrb[8].mxu0 %vm12411_vm1, %v10835_v28  ;;  %7388 = vmatmul.mubr.msk.f32.gmra.mrb[58].mxu1 %vm12412_vm7, %v4396_v26  ;;  %vm12419_vm3 = vmmov %vm12316_vm0  ;;  %v4826_v26 = vld [vmem:[#allocation2 + $0x11] sm:$0xff] }
 0xb7a   : > { %7483 = vmatprep.mubr.msk.f32.mxu0 %vm12413_vm8, %v10851_v48  ;;  %7390 = vmatprep.mubr.msk.f32.mxu1 %vm12414_vm10, %v4397_v63  ;;  %vm12420_vm9 = vmmov %vm12316_vm0  ;;  %v11073_v63 = vld [vmem:[#allocation2 + $0x19] sm:$0xff] }
 0xb7b   : > { %7748 = vmatpush3.bf16.msra.mxu0 %v7745_v55  ;;  %vm12421_vm14 = vmmov %vm12316_vm0  ;;  %v4405_v55 = vmul.f32 %v12400_v29, %v10947_v32  ;;  %v5565_v25 = vmul.f32 %v12225_v3, %v11073_v63 }
 0xb7c   : > { %7750 = vmatprep.subr.bf16.mxu0 %v7749_v30  ;;  %vm12422_vm4 = vmmov %vm12316_vm0 }
 0xb7d   : > { %7484 = vmatmul.mubr.msk.f32.gmra.mrb[10].mxu0 %vm12415_vm11, %v10862_v44  ;;  %7391 = vmatmul.mubr.msk.f32.gmra.mrb[60].mxu1 %vm12416_vm12, %v4398_v0  ;;  %vm12423_vm5 = vmmov %vm12316_vm0  ;;  %v11076_v0 = vld [vmem:[#allocation2 + $0x88] sm:$0xff] }
 0xb7e   : > { %7486 = vmatprep.mubr.msk.f32.mxu0 %vm12417_vm13, %v10877_v35  ;;  %7393 = vmatprep.mubr.msk.f32.mxu1 %vm12418_vm2, %v4399_v62  ;;  %vm12424_vm6 = vmmov %vm12316_vm0  ;;  %v4842_v62 = vmul.f32 %v12225_v3, %v4826_v26  ;;  %v4368_v3 = vld [vmem:[%s11446_s22 + $0xe8] sm:$0xff] }
 0xb7f   : > { %vm12425_vm15 = vmmov %vm12316_vm0 }
 0xb80   : > { %vm12426_vm1 = vmmov %vm12316_vm0 }
 0xb81   : > { %7487 = vmatmul.mubr.msk.f32.gmra.mrb[12].mxu0 %vm12419_vm3, %v10887_v22  ;;  %7394 = vmatmul.mubr.msk.f32.gmra.mrb[62].mxu1 %vm12420_vm9, %v4400_v54  ;;  %vm12427_vm7 = vmmov %vm12316_vm0  ;;  %v5564_v54 = vmul.f32 %v12223_v10, %v4826_v26 }
 0xb82   : > { %7489 = vmatprep.mubr.msk.f32.mxu0 %vm12421_vm14, %v10901_v56  ;;  %7396 = vmatprep.mubr.msk.f32.mxu1 %vm12422_vm4, %v4401_v57  ;;  %vm12428_vm8 = vmmov %vm12316_vm0  ;;  %v4843_v57 = vmul.f32 %v12227_v27, %v11073_v63 }
 0xb83   : > { %vm12429_vm10 = vmmov %vm12316_vm0 }
 0xb84   : > { %vm12430_vm11 = vmmov %vm12316_vm0 }
 0xb85   : > { %7490 = vmatmul.mubr.msk.f32.gmra.mrb[14].mxu0 %vm12423_vm5, %v10911_v33  ;;  %7397 = vmatmul.mubr.msk.f32.gmra.mrb[64].mxu1 %vm12424_vm6, %v4402_v49  ;;  %vm12431_vm12 = vmmov %vm12316_vm0  ;;  %v11084_v49 = vld [vmem:[#allocation2 + $0x21] sm:$0xff] }
 0xb86   : > { %7492 = vmatprep.mubr.msk.f32.mxu0 %vm12425_vm15, %v10924_v17  ;;  %7399 = vmatprep.mubr.msk.f32.mxu1 %vm12316_vm0, %v4403_v53  ;;  %vm12432_vm13 = vmmov %vm12316_vm0  ;;  %12435 = vst [vmem:[#allocation73_spill] sm:$0xff] %v11084_v49  ;;  %v4365_v53 = vld [vmem:[%s11446_s22 + $0xd0] sm:$0xff]  ;;  %v5566_v26 = vmul.f32 %v12227_v27, %v11084_v49 }
 0xb87   : > { %vm12433_vm2 = vmmov %vm12316_vm0 }
 0xb88   : > { %vm12434_vm3 = vmmov %vm12316_vm0 }
 0xb89   : > { %7493 = vmatmul.mubr.msk.f32.gmra.mrb[16].mxu0 %vm12426_vm1, %v10933_v42  ;;  %7400 = vmatmul.mubr.msk.f32.gmra.mrb[66].mxu1 %vm12427_vm7, %v4404_v52  ;;  %v4366_v52 = vld [vmem:[%s11446_s22 + $0xd8] sm:$0xff]  ;;  %vm12436_vm9 = vmmov %vm12316_vm0 }
 0xb8a   : > { %7495 = vmatprep.mubr.msk.f32.mxu0 %vm12428_vm8, %v10943_v41  ;;  %7402 = vmatprep.mubr.msk.f32.mxu1 %vm12429_vm10, %v4405_v55  ;;  %vm12437_vm14 = vmmov %vm12316_vm0  ;;  %v11094_v55 = vld [vmem:[#allocation2 + $0x29] sm:$0xff] }
 0xb8b   : > { %vm12438_vm4 = vmmov %vm12316_vm0 }
 0xb8c   : > { %vm12439_vm5 = vmmov %vm12316_vm0 }
 0xb8d   : > { %7496 = vmatmul.mubr.msk.f32.gmra.mrb[18].mxu0 %vm12430_vm11, %v10951_v5  ;;  %7403 = vmatmul.mubr.msk.f32.gmra.mrb[68].mxu1 %vm12431_vm12, %v4406_v50  ;;  %v4844_v50 = vmul.f32 %v12233_v14, %v11084_v49  ;;  %vm12440_vm6 = vmmov %vm12316_vm0 }
 0xb8e   : > { %7498 = vmatprep.mubr.msk.f32.mxu0 %vm12432_vm13, %v10968_v9  ;;  %7413 = vmatprep.mubr.msk.f32.mxu1 %vm12433_vm2, %v4841_v23  ;;  %v7753_v23 = vpack.c.bf16 %v4366_v52, %v4365_v53  ;;  %v11115_v53 = vld [vmem:[#allocation2 + $0x39] sm:$0xff]  ;;  %vm12442_vm15 = vmmov %vm12316_vm0  ;;  %v5567_v52 = vmul.f32 %v12233_v14, %v11094_v55 }
 0xb8f   : > { %12441 = vst [vmem:[#allocation68_spill] sm:$0xff] %v11115_v53  ;;  %vm12443_vm1 = vmmov %vm12316_vm0 }
 0xb90   : > { %vm12446_vm7 = vmmov %vm12316_vm0 }
 0xb91   : > { %7499 = vmatmul.mubr.msk.f32.gmra.mrb[20].mxu0 %vm12434_vm3, %v11076_v0  ;;  %7414 = vmatmul.mubr.msk.f32.vlgmr.msra.gmra.mrb[54].mxu1 %vm12436_vm9, %v4842_v62  ;;  %v4845_v62 = vmul.f32 %v12238_v39, %v11094_v55  ;;  %vm12447_vm8 = vmmov %vm12316_vm0 }
 0xb92   : > { %7509 = vmatprep.mubr.msk.f32.mxu0 %vm12437_vm14, %v5564_v54  ;;  %7416 = vmatprep.mubr.msk.f32.mxu1 %vm12438_vm4, %v4843_v57  ;;  %v11106_v54 = vld [vmem:[#allocation2 + $0x31] sm:$0xff]  ;;  %v4367_v57 = vld [vmem:[%s11446_s22 + $0xe0] sm:$0xff]  ;;  %vm12449_vm10 = vmmov %vm12316_vm0 }
 0xb93   : > { %v5568_v27 = vmul.f32 %v12238_v39, %v11106_v54  ;;  %v11125_v49 = vpack.c.bf16 %v4368_v3, %v4367_v57  ;;  %v5569_v39 = vmul.f32 %v12243_v15, %v11115_v53  ;;  %v12450_v3 = vld [vmem:[#allocation29_spill] sm:$0xff]  ;;  %vm12451_vm11 = vmmov %vm12316_vm0 }
 0xb94   : > { %vm12453_vm12 = vmmov %vm12316_vm0 }
 0xb95   : > { %7510 = vmatmul.mubr.msk.f32.vlgmr.msra.gmra.mrb[6].mxu0 %vm12439_vm5, %v5565_v25  ;;  %7417 = vmatmul.mubr.msk.f32.gmra.mrb[56].mxu1 %vm12440_vm6, %v4844_v50  ;;  %v4846_v25 = vmul.f32 %v12243_v15, %v11106_v54  ;;  %vm12454_vm13 = vmmov %vm12316_vm0 }
 0xb96   : > { %7752 = vmatpush3.bf16.msra.mxu0 %v7749_v30  ;;  %7512 = vmatprep.mubr.msk.f32.mxu0 %vm12442_vm15, %v5566_v26  ;;  %v12444_v30 = vld [vmem:[#allocation28_spill] sm:$0xff]  ;;  %vm12456_vm2 = vmmov %vm12316_vm0 }
 0xb97   : > { %7419 = vmatprep.mubr.msk.f32.mxu1 %vm12316_vm0, %v4845_v62  ;;  %7754 = vmatprep.subr.bf16.mxu0 %v7753_v23  ;;  %v4847_v50 = vmul.f32 %v12444_v30, %v11115_v53  ;;  %v11130_v26 = vld [vmem:[#allocation2 + $0x41] sm:$0xff]  ;;  %v11134_v62 = vld [vmem:[#allocation2 + $0x49] sm:$0xff]  ;;  %vm12458_vm3 = vmmov %vm12316_vm0 }
 0xb98   : > { %12445 = vst [vmem:[#allocation58_spill] sm:$0xff] %v11130_v26  ;;  %12448 = vst [vmem:[#allocation70_spill] sm:$0xff] %v11134_v62  ;;  %v4848_v57 = vmul.f32 %v12450_v3, %v11130_v26  ;;  %v11163_v53 = vld [vmem:[#allocation2 + $0x61] sm:$0xff] }
 0xb99   : > { %7513 = vmatmul.mubr.msk.f32.gmra.mrb[8].mxu0 %vm12443_vm1, %v5567_v52  ;;  %7420 = vmatmul.mubr.msk.f32.gmra.mrb[58].mxu1 %vm12446_vm7, %v4846_v25  ;;  %v5570_v52 = vmul.f32 %v12444_v30, %v11130_v26  ;;  %v11147_v25 = vld [vmem:[#allocation2 + $0x51] sm:$0xff]  ;;  %v12457_v30 = vld [vmem:[#allocation31_spill] sm:$0xff]  ;;  %v12459_v26 = vld [vmem:[#allocation32_spill] sm:$0xff]  ;;  %12460 = vst [vmem:[#allocation82_spill] sm:$0xff] %v11163_v53 }
 0xb9a   : > { %7515 = vmatprep.mubr.msk.f32.mxu0 %vm12447_vm8, %v5568_v27  ;;  %7422 = vmatprep.mubr.msk.f32.mxu1 %vm12449_vm10, %v4847_v50  ;;  %v4849_v27 = vmul.f32 %v12256_v59, %v11134_v62  ;;  %12452 = vst [vmem:[#allocation81_spill] sm:$0xff] %v11147_v25  ;;  %v5571_v50 = vmul.f32 %v12450_v3, %v11134_v62  ;;  %vm12461_vm9 = vmmov %vm12316_vm0  ;;  %v11179_v62 = vld [vmem:[#allocation2 + $0x71] sm:$0xff] }
 0xb9b   : > { %7756 = vmatpush3.bf16.msra.mxu0 %v7753_v23  ;;  %v11151_v23 = vld [vmem:[#allocation2 + $0x59] sm:$0xff]  ;;  %v4850_v15 = vmul.f32 %v12457_v30, %v11147_v25  ;;  %vm12462_vm14 = vmmov %vm12316_vm0 }
 0xb9c   : > { %7758 = vmatprep.subr.bf16.mxu0 %v11125_v49  ;;  %12455 = vst [vmem:[#allocation75_spill] sm:$0xff] %v11151_v23  ;;  %vm12463_vm4 = vmmov %vm12316_vm0 }
 0xb9d   : > { %7516 = vmatmul.mubr.msk.f32.gmra.mrb[10].mxu0 %vm12451_vm11, %v5569_v39  ;;  %7423 = vmatmul.mubr.msk.f32.gmra.mrb[60].mxu1 %vm12453_vm12, %v4848_v57  ;;  %v5572_v39 = vmul.f32 %v12256_v59, %v11147_v25  ;;  %v4851_v57 = vmul.f32 %v12459_v26, %v11151_v23  ;;  %v12464_v59 = vld [vmem:[#allocation33_spill] sm:$0xff]  ;;  %vm12465_vm5 = vmmov %vm12316_vm0  ;;  %v12466_v25 = vld [vmem:[#allocation34_spill] sm:$0xff] }
 0xb9e   : > { %7518 = vmatprep.mubr.msk.f32.mxu0 %vm12454_vm13, %v5570_v52  ;;  %7425 = vmatprep.mubr.msk.f32.mxu1 %vm12456_vm2, %v4849_v27  ;;  %v11167_v52 = vld [vmem:[#allocation2 + $0x69] sm:$0xff]  ;;  %v5573_v27 = vmul.f32 %v12457_v30, %v11151_v23  ;;  %v4852_v3 = vmul.f32 %v12464_v59, %v11163_v53  ;;  %vm12467_vm6 = vmmov %vm12316_vm0  ;;  %v11195_v23 = vld [vmem:[#allocation2 + $0x81] sm:$0xff] }
 0xb9f   : > { %vm12468_vm15 = vmmov %vm12316_vm0 }
 0xba0   : > { %vm12470_vm1 = vmmov %vm12316_vm0 }
 0xba1   : > { %7519 = vmatmul.mubr.msk.f32.gmra.mrb[12].mxu0 %vm12458_vm3, %v5571_v50  ;;  %7426 = vmatmul.mubr.msk.f32.gmra.mrb[62].mxu1 %vm12461_vm9, %v4850_v15  ;;  %v5574_v50 = vmul.f32 %v12459_v26, %v11163_v53  ;;  %v4853_v15 = vmul.f32 %v12466_v25, %v11167_v52  ;;  %v12469_v26 = vld [vmem:[#allocation36_spill] sm:$0xff]  ;;  %v12471_v53 = vld [vmem:[#allocation37_spill] sm:$0xff]  ;;  %vm12472_vm7 = vmmov %vm12316_vm0 }
 0xba2   : > { %7521 = vmatprep.mubr.msk.f32.mxu0 %vm12462_vm14, %v5572_v39  ;;  %7428 = vmatprep.mubr.msk.f32.mxu1 %vm12463_vm4, %v4851_v57  ;;  %v11183_v39 = vld [vmem:[#allocation2 + $0x79] sm:$0xff]  ;;  %v5575_v57 = vmul.f32 %v12464_v59, %v11167_v52  ;;  %v4854_v30 = vmul.f32 %v12469_v26, %v11179_v62  ;;  %vm12473_vm8 = vmmov %vm12316_vm0 }
 0xba3   : > { %vm12474_vm10 = vmmov %vm12316_vm0 }
 0xba4   : > { %vm12476_vm11 = vmmov %vm12316_vm0 }
 0xba5   : > { %7522 = vmatmul.mubr.msk.f32.gmra.mrb[14].mxu0 %vm12465_vm5, %v5573_v27  ;;  %7429 = vmatmul.mubr.msk.f32.gmra.mrb[64].mxu1 %vm12467_vm6, %v4852_v3  ;;  %v5576_v27 = vmul.f32 %v12466_v25, %v11179_v62  ;;  %v4855_v3 = vmul.f32 %v12471_v53, %v11183_v39  ;;  %v11206_v25 = vld [vmem:[#allocation2 + $0x89] sm:$0xff]  ;;  %vm12477_vm12 = vmmov %vm12316_vm0 }
 0xba6   : > { %7524 = vmatprep.mubr.msk.f32.mxu0 %vm12468_vm15, %v5574_v50  ;;  %7431 = vmatprep.mubr.msk.f32.mxu1 %vm12316_vm0, %v4853_v15  ;;  %v5577_v50 = vmul.f32 %v12469_v26, %v11183_v39  ;;  %v12475_v15 = vld [vmem:[#allocation38_spill] sm:$0xff]  ;;  %vm12478_vm13 = vmmov %vm12316_vm0 }
 0xba7   : > { %v4856_v59 = vmul.f32 %v12475_v15, %v11195_v23  ;;  %v4369_v26 = vld [vmem:[%s11446_s22 + $0xf0] sm:$0xff]  ;;  %vm12480_vm2 = vmmov %vm12316_vm0 }
 0xba8   : > { %vm12481_vm3 = vmmov %vm12316_vm0 }
 0xba9   : > { %7525 = vmatmul.mubr.msk.f32.gmra.mrb[16].mxu0 %vm12470_vm1, %v5575_v57  ;;  %7432 = vmatmul.mubr.msk.f32.gmra.mrb[66].mxu1 %vm12472_vm7, %v4854_v30  ;;  %v5578_v57 = vmul.f32 %v12471_v53, %v11195_v23  ;;  %v5579_v30 = vmul.f32 %v12475_v15, %v11206_v25  ;;  %v4370_v53 = vld [vmem:[%s11446_s22 + $0xf8] sm:$0xff]  ;;  %vm12482_vm9 = vmmov %vm12316_vm0 }
 0xbaa   : > { %7527 = vmatprep.mubr.msk.f32.mxu0 %vm12473_vm8, %v5576_v27  ;;  %7434 = vmatprep.mubr.msk.f32.mxu1 %vm12474_vm10, %v4855_v3  ;;  %v12479_v27 = vld [vmem:[#allocation5_spill] sm:$0xff]  ;;  %vm12483_vm14 = vmmov %vm12316_vm0 }
 0xbab   : > { %v5805_v3 = vmul.f32 %v12479_v27, %v10790_v37  ;;  %v4371_v37 = vld [vmem:[%s11446_s22 + $0x100] sm:$0xff]  ;;  %v4372_v27 = vld [vmem:[%s11446_s22 + $0x108] sm:$0xff]  ;;  %vm12484_vm4 = vmmov %vm12316_vm0 }
 0xbac   : > { %vm12485_vm5 = vmmov %vm12316_vm0 }
 0xbad   : > { %7528 = vmatmul.mubr.msk.f32.gmra.mrb[18].mxu0 %vm12476_vm11, %v5577_v50  ;;  %7435 = vmatmul.mubr.msk.f32.gmra.mrb[68].mxu1 %vm12477_vm12, %v4856_v59  ;;  %v5806_v59 = vmul.f32 %v12202_v47, %v10824_v40  ;;  %v7761_v50 = vpack.c.bf16 %v4370_v53, %v4369_v26  ;;  %v5808_v47 = vmul.f32 %v12206_v31, %v10853_v21  ;;  %vm12486_vm6 = vmmov %vm12316_vm0  ;;  %v12493_v21 = vld [vmem:[#allocation67_spill] sm:$0xff]  ;;  %v12539_v53 = vld [vmem:[#allocation34_spill] sm:$0xff] }
 0xbae   : > { %7530 = vmatprep.mubr.msk.f32.mxu0 %vm12478_vm13, %v5578_v57  ;;  %v5807_v57 = vmul.f32 %v12204_v58, %v10826_v43  ;;  %v7765_v40 = vpack.c.bf16 %v4372_v27, %v4371_v37  ;;  %v5809_v58 = vmul.f32 %v12208_v8, %v10855_v60  ;;  %v5810_v43 = vmul.f32 %v12210_v1, %v10879_v51  ;;  %vm12487_vm15 = vmmov %vm12316_vm0  ;;  %v5804_v60 = vld [vmem:[#allocation2 + $0x8f] sm:$0xff] }
 0xbaf   : > { %v5812_v31 = vmul.f32 %v12107_v24, %v10903_v45  ;;  %v5813_v8 = vmul.f32 %v12109_v18, %v10905_v20  ;;  %vm12488_vm1 = vmmov %vm12316_vm0  ;;  %v5814_v1 = vmul.f32 %v12110_v7, %v10926_v38  ;;  %v5816_v24 = vmul.f32 %v12120_v36, %v10945_v34  ;;  %v4373_v51 = vld [vmem:[%s11446_s22 + $0x110] sm:$0xff] }
 0xbb0   : > { %vm12489_vm7 = vmmov %vm12316_vm0  ;;  %v5817_v18 = vmul.f32 %v12393_v19, %v10947_v32  ;;  %v5818_v7 = vmul.f32 %v12394_v4, %v10970_v6  ;;  %v5820_v36 = vmul.f32 %v12401_v2, %v5804_v60  ;;  %v6045_v2 = vld [vmem:[#allocation2 + $0x90] sm:$0xff]  ;;  %v12534_v6 = vld [vmem:[#allocation31_spill] sm:$0xff]  ;;  %v6299_v26 = vmul.f32 %v12539_v53, %v11183_v39 }
 0xbb1   : > { %7531 = vmatmul.mubr.msk.f32.gmra.mrb[20].mxu0 %vm12480_vm2, %v5579_v30  ;;  %vm12490_vm8 = vmmov %vm12316_vm0  ;;  %v12519_v20 = vld [vmem:[#allocation26_spill] sm:$0xff]  ;;  %v12528_v34 = vld [vmem:[#allocation81_spill] sm:$0xff] }
 0xbb2   : > { %7541 = vmatprep.mubr.msk.f32.mxu0 %vm12481_vm3, %v5805_v3  ;;  %vm12491_vm10 = vmmov %vm12316_vm0  ;;  %v12529_v32 = vld [vmem:[#allocation29_spill] sm:$0xff]  ;;  %v12531_v19 = vld [vmem:[#allocation30_spill] sm:$0xff] }
 0xbb3   : > { %vm12492_vm11 = vmmov %vm12316_vm0  ;;  %v6286_v30 = vld [vmem:[#allocation2 + $0x91] sm:$0xff]  ;;  %v12542_v3 = vld [vmem:[#allocation36_spill] sm:$0xff] }
 0xbb4   : > { %vm12494_vm12 = vmmov %vm12316_vm0 }
 0xbb5   : > { %7542 = vmatmul.mubr.msk.f32.vlgmr.msra.gmra.mrb[6].mxu0 %vm12482_vm9, %v5806_v59  ;;  %vm12495_vm13 = vmmov %vm12316_vm0  ;;  %v6300_v59 = vmul.f32 %v12542_v3, %v11195_v23 }
 0xbb6   : > { %7760 = vmatpush3.bf16.msra.mxu0 %v11125_v49  ;;  %7544 = vmatprep.mubr.msk.f32.mxu0 %vm12483_vm14, %v5807_v57  ;;  %v5811_v49 = vmul.f32 %v12211_v12, %v10881_v46  ;;  %v5815_v12 = vmul.f32 %v12115_v61, %v10928_v16  ;;  %v5819_v61 = vmul.f32 %v12400_v29, %v12493_v21  ;;  %v4374_v46 = vld [vmem:[%s11446_s22 + $0x118] sm:$0xff]  ;;  %vm12496_vm2 = vmmov %vm12316_vm0 }
 0xbb7   : > { %7762 = vmatprep.subr.bf16.mxu0 %v7761_v50  ;;  %vm12497_vm3 = vmmov %vm12316_vm0  ;;  %v7769_v45 = vpack.c.bf16 %v4374_v46, %v4373_v51  ;;  %v12524_v16 = vld [vmem:[#allocation70_spill] sm:$0xff]  ;;  %v6302_v57 = vmul.f32 %v12475_v15, %v6286_v30 }
 0xbb8   : > { %vm12498_vm9 = vmmov %vm12316_vm0 }
 0xbb9   : > { %7545 = vmatmul.mubr.msk.f32.gmra.mrb[8].mxu0 %vm12484_vm4, %v5808_v47  ;;  %vm12499_vm14 = vmmov %vm12316_vm0 }
 0xbba   : > { %7547 = vmatprep.mubr.msk.f32.mxu0 %vm12485_vm5, %v5809_v58  ;;  %7764 = vmatpush3.bf16.msra.mxu0 %v7761_v50  ;;  %vm12500_vm4 = vmmov %vm12316_vm0 }
 0xbbb   : > { %7766 = vmatprep.subr.bf16.mxu0 %v7765_v40  ;;  %vm12501_vm5 = vmmov %vm12316_vm0 }
 0xbbd   : > { %7548 = vmatmul.mubr.msk.f32.gmra.mrb[10].mxu0 %vm12486_vm6, %v5810_v43  ;;  %vm12502_vm6 = vmmov %vm12316_vm0 }
 0xbbe   : > { %7550 = vmatprep.mubr.msk.f32.mxu0 %vm12487_vm15, %v5811_v49  ;;  %vm12503_vm15 = vmmov %vm12316_vm0 }
 0xbc1   : > { %7551 = vmatmul.mubr.msk.f32.gmra.mrb[12].mxu0 %vm12316_vm0, %v5812_v31 }
 0xbc2   : > { %7553 = vmatprep.mubr.msk.f32.mxu0 %vm12488_vm1, %v5813_v8  ;;  %vm12504_vm1 = vmmov %vm12316_vm0 }
 0xbc5   : > { %7554 = vmatmul.mubr.msk.f32.gmra.mrb[14].mxu0 %vm12489_vm7, %v5814_v1  ;;  %vm12505_vm7 = vmmov %vm12316_vm0 }
 0xbc6   : > { %7556 = vmatprep.mubr.msk.f32.mxu0 %vm12490_vm8, %v5815_v12  ;;  %vm12506_vm8 = vmmov %vm12316_vm0 }
 0xbc9   : > { %7557 = vmatmul.mubr.msk.f32.gmra.mrb[16].mxu0 %vm12491_vm10, %v5816_v24  ;;  %vm12507_vm10 = vmmov %vm12316_vm0 }
 0xbca   : > { %7559 = vmatprep.mubr.msk.f32.mxu0 %vm12492_vm11, %v5817_v18  ;;  %vm12508_vm11 = vmmov %vm12316_vm0  ;;  %v11363_v18 = vld [vmem:[%s11447_s23] ss:$0 sm:$0xff] }
 0xbcd   : > { %7560 = vmatmul.mubr.msk.f32.gmra.mrb[18].mxu0 %vm12494_vm12, %v5818_v7  ;;  %vm12509_vm12 = vmmov %vm12316_vm0 }
 0xbce   : > { %7562 = vmatprep.mubr.msk.f32.mxu0 %vm12495_vm13, %v5819_v61  ;;  %vm12510_vm13 = vmmov %vm12316_vm0 }
 0xbd1   : > { %7563 = vmatmul.mubr.msk.f32.gmra.mrb[20].mxu0 %vm12496_vm2, %v5820_v36  ;;  %vm12511_vm2 = vmmov %vm12316_vm0 }
 0xbd2   : > { %7573 = vmatprep.mubr.msk.f32.mxu0 %vm12497_vm3, %v10796_v13  ;;  %v6287_v13 = vmul.f32 %v12223_v10, %v11073_v63  ;;  %vm12512_vm3 = vmmov %vm12316_vm0  ;;  %v12535_v63 = vld [vmem:[#allocation32_spill] sm:$0xff] }
 0xbd5   : > { %7574 = vmatmul.mubr.msk.f32.vlgmr.msra.gmra.mrb[6].mxu0 %vm12498_vm9, %v10822_v11  ;;  %v12513_v11 = vld [vmem:[#allocation73_spill] sm:$0xff]  ;;  %vm12516_vm9 = vmmov %vm12316_vm0 }
 0xbd6   : > { %7768 = vmatpush3.bf16.msra.mxu0 %v7765_v40  ;;  %7576 = vmatprep.mubr.msk.f32.mxu0 %vm12499_vm14, %v10835_v28  ;;  %v12514_v28 = vld [vmem:[#allocation22_spill] sm:$0xff]  ;;  %vm12517_vm14 = vmmov %vm12316_vm0 }
 0xbd7   : > { %7770 = vmatprep.subr.bf16.mxu0 %v7769_v45 }
 0xbd9   : > { %7577 = vmatmul.mubr.msk.f32.gmra.mrb[8].mxu0 %vm12500_vm4, %v10851_v48  ;;  %v6288_v48 = vmul.f32 %v12514_v28, %v12513_v11  ;;  %vm12520_vm4 = vmmov %vm12316_vm0 }
 0xbda   : > { %7579 = vmatprep.mubr.msk.f32.mxu0 %vm12501_vm5, %v10862_v44  ;;  %7772 = vmatpush3.bf16.msra.mxu0 %v7769_v45  ;;  %v12515_v44 = vld [vmem:[#allocation23_spill] sm:$0xff]  ;;  %vm12521_vm5 = vmmov %vm12316_vm0 }
 0xbdd   : > { %7580 = vmatmul.mubr.msk.f32.gmra.mrb[10].mxu0 %vm12502_vm6, %v10877_v35  ;;  %v6289_v35 = vmul.f32 %v12515_v44, %v11094_v55  ;;  %vm12526_vm6 = vmmov %vm12316_vm0  ;;  %v12538_v55 = vld [vmem:[#allocation33_spill] sm:$0xff] }
 0xbde   : > { %7582 = vmatprep.mubr.msk.f32.mxu0 %vm12503_vm15, %v10887_v22  ;;  %v6290_v22 = vmul.f32 %v12233_v14, %v11106_v54  ;;  %vm12527_vm15 = vmmov %vm12316_vm0  ;;  %v6294_v14 = vmul.f32 %v12529_v32, %v12528_v34  ;;  %v6298_v54 = vmul.f32 %v12538_v55, %v11179_v62 }
 0xbe1   : > { %7583 = vmatmul.mubr.msk.f32.gmra.mrb[12].mxu0 %vm12316_vm0, %v10901_v56  ;;  %v12518_v56 = vld [vmem:[#allocation68_spill] sm:$0xff] }
 0xbe2   : > { %7585 = vmatprep.mubr.msk.f32.mxu0 %vm12504_vm1, %v10911_v33  ;;  %v6291_v10 = vmul.f32 %v12519_v20, %v12518_v56  ;;  %v12522_v33 = vld [vmem:[#allocation58_spill] sm:$0xff]  ;;  %vm12532_vm1 = vmmov %vm12316_vm0 }
 0xbe5   : > { %7586 = vmatmul.mubr.msk.f32.gmra.mrb[14].mxu0 %vm12505_vm7, %v10924_v17  ;;  %v12523_v17 = vld [vmem:[#allocation27_spill] sm:$0xff]  ;;  %vm12536_vm7 = vmmov %vm12316_vm0 }
 0xbe6   : > { %7588 = vmatprep.mubr.msk.f32.mxu0 %vm12506_vm8, %v10933_v42  ;;  %v6292_v38 = vmul.f32 %v12523_v17, %v12522_v33  ;;  %v12525_v42 = vld [vmem:[#allocation28_spill] sm:$0xff]  ;;  %vm12537_vm8 = vmmov %vm12316_vm0 }
 0xbe9   : > { %7589 = vmatmul.mubr.msk.f32.gmra.mrb[16].mxu0 %vm12507_vm10, %v10943_v41  ;;  %v6293_v41 = vmul.f32 %v12525_v42, %v12524_v16  ;;  %vm12540_vm10 = vmmov %vm12316_vm0 }
 0xbea   : > { %7591 = vmatprep.mubr.msk.f32.mxu0 %vm12508_vm11, %v10951_v5  ;;  %v12530_v5 = vld [vmem:[#allocation75_spill] sm:$0xff]  ;;  %vm12541_vm11 = vmmov %vm12316_vm0 }
 0xbeb   : > { %v6295_v4 = vmul.f32 %v12531_v19, %v12530_v5 }
 0xbed   : > { %7592 = vmatmul.mubr.msk.f32.gmra.mrb[18].mxu0 %vm12509_vm12, %v10968_v9  ;;  %v12533_v9 = vld [vmem:[#allocation82_spill] sm:$0xff]  ;;  %vm12544_vm12 = vmmov %vm12316_vm0 }
 0xbee   : > { %7594 = vmatprep.mubr.msk.f32.mxu0 %vm12510_vm13, %v11076_v0  ;;  %v6296_v29 = vmul.f32 %v12534_v6, %v12533_v9  ;;  %v6297_v0 = vmul.f32 %v12535_v63, %v11167_v52  ;;  %v12543_v52 = vld [vmem:[#allocation37_spill] sm:$0xff]  ;;  %vm12545_vm13 = vmmov %vm12316_vm0 }
 0xbef   : > { %v6301_v50 = vmul.f32 %v12543_v52, %v11206_v25 }
 0xbf1   : > { %7595 = vmatmul.mubr.msk.f32.gmra.mrb[20].mxu0 %vm12511_vm2, %v6045_v2  ;;  %vm12546_vm2 = vmmov %vm12316_vm0 }
 0xbf2   : > { %7605 = vmatprep.mubr.msk.f32.mxu0 %vm12512_vm3, %v6287_v13  ;;  %vm6535_vm3 = vcmask 130048  }
 0xbf5   : > { %7606 = vmatmul.mubr.msk.f32.vlgmr.msra.gmra.mrb[6].mxu0 %vm12516_vm9, %v6288_v48 }
 0xbf6   : > { %7608 = vmatprep.mubr.msk.f32.mxu0 %vm12517_vm14, %v6289_v35 }
 0xbf9   : > { %7609 = vmatmul.mubr.msk.f32.gmra.mrb[8].mxu0 %vm12520_vm4, %v6290_v22 }
 0xbfa   : > { %7611 = vmatprep.mubr.msk.f32.mxu0 %vm12521_vm5, %v6291_v10 }
 0xbfd   : > { %7612 = vmatmul.mubr.msk.f32.gmra.mrb[10].mxu0 %vm12526_vm6, %v6292_v38 }
 0xbfe   : > { %7614 = vmatprep.mubr.msk.f32.mxu0 %vm12527_vm15, %v6293_v41 }
 0xc01   : > { %7615 = vmatmul.mubr.msk.f32.gmra.mrb[12].mxu0 %vm12316_vm0, %v6294_v14 }
 0xc02   : > { %7617 = vmatprep.mubr.msk.f32.mxu0 %vm12532_vm1, %v6295_v4 }
 0xc05   : > { %7618 = vmatmul.mubr.msk.f32.gmra.mrb[14].mxu0 %vm12536_vm7, %v6296_v29 }
 0xc06   : > { %7620 = vmatprep.mubr.msk.f32.mxu0 %vm12537_vm8, %v6297_v0 }
 0xc09   : > { %7621 = vmatmul.mubr.msk.f32.gmra.mrb[16].mxu0 %vm12540_vm10, %v6298_v54 }
 0xc0a   : > { %7623 = vmatprep.mubr.msk.f32.mxu0 %vm12541_vm11, %v6299_v26 }
 0xc0d   : > { %7624 = vmatmul.mubr.msk.f32.gmra.mrb[18].mxu0 %vm12544_vm12, %v6300_v59 }
 0xc0e   : > { %7626 = vmatprep.mubr.msk.f32.mxu0 %vm12545_vm13, %v6301_v50 }
 0xc11   : > { %7627 = vmatmul.mubr.msk.f32.gmra.mrb[20].mxu0 %vm12546_vm2, %v6302_v57 }
 0xc64   : > { %v7415_v62 = vpop.f32.mrb[54].mxu1 }
 0xc65   : > { %v4971_v39 = vpop.f32.mrb[55].mxu1 }
 0xc68   : > { %v7418_v37 = vpop.f32.mrb[56].mxu1 }
 0xc69   : > { %v4981_v27 = vpop.f32.mrb[57].mxu1 }
 0xc6c   : > { %v7421_v47 = vpop.f32.mrb[58].mxu1 }
 0xc6d   : > { %v4991_v40 = vpop.f32.mrb[59].mxu1 }
 0xc70   : > { %v7424_v58 = vpop.f32.mrb[60].mxu1 }
 0xc71   : > { %v5001_v23 = vpop.f32.mrb[61].mxu1 }
 0xc74   : > { %v7427_v43 = vpop.f32.mrb[62].mxu1 }
 0xc75   : > { %v5011_v49 = vpop.f32.mrb[63].mxu1 }
 0xc78   : > { %v7430_v25 = vpop.f32.mrb[64].mxu1 }
 0xc79   : > { %v5021_v31 = vpop.f32.mrb[65].mxu1 }
 0xc7c   : > { %v7433_v8 = vpop.f32.mrb[66].mxu1 }
 0xc7d   : > { %v5031_v1 = vpop.f32.mrb[67].mxu1 }
 0xc80   : > { %v7436_v15 = vpop.f32.mrb[68].mxu1 }
 0xc81   : > { %v11358_v12 = vpop.f32.mrb[69].mxu1 }
 0xcc8   : > { %v7607_v24 = vpop.f32.mrb[6].mxu0 }
 0xcc9   : > { %v7773_v7 = vadd.f32 %v7607_v24, %v7415_v62  ;;  %v6417_v21 = vpop.f32.mrb[7].mxu0 }
 0xcca   : > { %v7774_v61 = vadd.f32 %v6417_v21, %v4971_v39 }
 0xccb   : > { %v6520_v60 = vadd.f32 %v7773_v7, %v11363_v18 }
 0xccc   : > { %v6519_v36 = vadd.f32 %v7774_v61, %v11363_v18  ;;  %v7610_v51 = vpop.f32.mrb[8].mxu0 }
 0xccd   : > { %6537 = vst.msk [vmem:[%s11370_s1 + $0x8] sm:$0xff] %vm6535_vm3, %v6520_v60  ;;  %v7775_v46 = vadd.f32 %v7610_v51, %v7418_v37  ;;  %v6427_v45 = vpop.f32.mrb[9].mxu0 }
 0xcce   : > { %6536 = vst.msk [vmem:[%s11370_s1] sm:$0xff] %vm6535_vm3, %v6519_v36  ;;  %v7776_v2 = vadd.f32 %v6427_v45, %v4981_v27 }
 0xccf   : > { %v6522_v13 = vadd.f32 %v7775_v46, %v11363_v18 }
 0xcd0   : > { %v6521_v11 = vadd.f32 %v7776_v2, %v11363_v18  ;;  %v7613_v28 = vpop.f32.mrb[10].mxu0 }
 0xcd1   : > { %6539 = vst.msk [vmem:[%s11370_s1 + $0x18] sm:$0xff] %vm6535_vm3, %v6522_v13  ;;  %v7777_v48 = vadd.f32 %v7613_v28, %v7421_v47  ;;  %v6437_v44 = vpop.f32.mrb[11].mxu0 }
 0xcd2   : > { %6538 = vst.msk [vmem:[%s11370_s1 + $0x10] sm:$0xff] %vm6535_vm3, %v6521_v11  ;;  %v7778_v35 = vadd.f32 %v6437_v44, %v4991_v40 }
 0xcd3   : > { %v6524_v22 = vadd.f32 %v7777_v48, %v11363_v18 }
 0xcd4   : > { %v6523_v56 = vadd.f32 %v7778_v35, %v11363_v18  ;;  %v7616_v20 = vpop.f32.mrb[12].mxu0 }
 0xcd5   : > { %6541 = vst.msk [vmem:[%s11370_s1 + $0x28] sm:$0xff] %vm6535_vm3, %v6524_v22  ;;  %v7779_v10 = vadd.f32 %v7616_v20, %v7424_v58  ;;  %v6447_v33 = vpop.f32.mrb[13].mxu0 }
 0xcd6   : > { %6540 = vst.msk [vmem:[%s11370_s1 + $0x20] sm:$0xff] %vm6535_vm3, %v6523_v56  ;;  %v7780_v17 = vadd.f32 %v6447_v33, %v5001_v23 }
 0xcd7   : > { %v6526_v38 = vadd.f32 %v7779_v10, %v11363_v18 }
 0xcd8   : > { %v6525_v16 = vadd.f32 %v7780_v17, %v11363_v18  ;;  %v7619_v42 = vpop.f32.mrb[14].mxu0 }
 0xcd9   : > { %6543 = vst.msk [vmem:[%s11370_s1 + $0x38] sm:$0xff] %vm6535_vm3, %v6526_v38  ;;  %v7781_v41 = vadd.f32 %v7619_v42, %v7427_v43  ;;  %v6457_v34 = vpop.f32.mrb[15].mxu0 }
 0xcda   : > { %6542 = vst.msk [vmem:[%s11370_s1 + $0x30] sm:$0xff] %vm6535_vm3, %v6525_v16  ;;  %v7782_v32 = vadd.f32 %v6457_v34, %v5011_v49 }
 0xcdb   : > { %v6528_v14 = vadd.f32 %v7781_v41, %v11363_v18 }
 0xcdc   : > { %v6527_v5 = vadd.f32 %v7782_v32, %v11363_v18  ;;  %v7622_v19 = vpop.f32.mrb[16].mxu0 }
 0xcdd   : > { %6545 = vst.msk [vmem:[%s11370_s1 + $0x48] sm:$0xff] %vm6535_vm3, %v6528_v14  ;;  %v7783_v4 = vadd.f32 %v7622_v19, %v7430_v25  ;;  %v6467_v9 = vpop.f32.mrb[17].mxu0 }
 0xcde   : > { %6544 = vst.msk [vmem:[%s11370_s1 + $0x40] sm:$0xff] %vm6535_vm3, %v6527_v5  ;;  %v7784_v6 = vadd.f32 %v6467_v9, %v5021_v31 }
 0xcdf   : > { %v6530_v29 = vadd.f32 %v7783_v4, %v11363_v18 }
 0xce0   : > { %v6529_v63 = vadd.f32 %v7784_v6, %v11363_v18  ;;  %v7625_v0 = vpop.f32.mrb[18].mxu0 }
 0xce1   : > { %6547 = vst.msk [vmem:[%s11370_s1 + $0x58] sm:$0xff] %vm6535_vm3, %v6530_v29  ;;  %v7785_v55 = vadd.f32 %v7625_v0, %v7433_v8  ;;  %v6477_v54 = vpop.f32.mrb[19].mxu0 }
 0xce2   : > { %6546 = vst.msk [vmem:[%s11370_s1 + $0x50] sm:$0xff] %vm6535_vm3, %v6529_v63  ;;  %v7786_v53 = vadd.f32 %v6477_v54, %v5031_v1 }
 0xce3   : > { %v6532_v26 = vadd.f32 %v7785_v55, %v11363_v18 }
 0xce4   : > { %v6531_v30 = vadd.f32 %v7786_v53, %v11363_v18  ;;  %v7628_v3 = vpop.f32.mrb[20].mxu0 }
 0xce5   : > { %6549 = vst.msk [vmem:[%s11370_s1 + $0x68] sm:$0xff] %vm6535_vm3, %v6532_v26  ;;  %v7787_v59 = vadd.f32 %v7628_v3, %v7436_v15  ;;  %v6487_v52 = vpop.f32.mrb[21].mxu0 }
 0xce6   : > { %6548 = vst.msk [vmem:[%s11370_s1 + $0x60] sm:$0xff] %vm6535_vm3, %v6531_v30  ;;  %v7788_v50 = vadd.f32 %v6487_v52, %v11358_v12 }
 0xce7   : > { %v6534_v57 = vadd.f32 %v7787_v59, %v11363_v18 }
 0xce8   : > { %v6533_v62 = vadd.f32 %v7788_v50, %v11363_v18 }
 0xce9   : > { %6551 = vst.msk [vmem:[%s11370_s1 + $0x78] sm:$0xff] %vm6535_vm3, %v6534_v57 }
 0xcea   : > { %6550 = vst.msk [vmem:[%s11370_s1 + $0x70] sm:$0xff] %vm6535_vm3, %v6533_v62 }
 0xceb PF: > { %s36_s27 = sadd.s32 1, %s8085_s27  }
 0xcec   : > { %p33_p4 = scmp.ge.s32.totalorder %s36_s27, 4  }
 0xcee   :  { %35 = sbr.rel (!%p33_p4) target bundleno = 10 (0xa), region = 146 }

</bundles_post_ra>
